<compile_context>
chip_gen: v7x
topology: tpu7x:2x2x1
jax: 0.10.0
libtpu: 0.0.40
codegen_flags: <defaults>
</compile_context>

<pallas_src>
import math
import jax
import jax.numpy as jnp
from jax.experimental import pallas as pl
from jax.experimental.pallas import tpu as pltpu

C = 514            # in/out channels = mic_channels * mel_bins
NUM_LAYERS = 4
K = 5              # depthwise kernel size (padding=2 -> 'same')
HID = 256
OUT = 10
OUT_PAD = 128      # lane-dense padded output width (sliced back to OUT in wrapper)


def jungmin4_kernel(x_ref, dw_w_ref, pw_wT_ref, pw_b_ref,
                    fc1_wT_ref, fc1_b_ref, fc2_wT_ref, fc2_b_ref, o_ref):
    h = x_ref[...]                                   # (BB, T, C) f32, channels on lanes
    BB, T, _ = h.shape
    zpad = jnp.zeros((BB, 2, C), dtype=h.dtype)

    for l in range(NUM_LAYERS):
        # ---- depthwise conv1d (k=5, pad=2): shifts along time (sublane axis), per batch ----
        hp = jnp.concatenate([zpad, h, zpad], axis=1)        # (BB, T+4, C)
        w = dw_w_ref[l]                                      # (K, C)
        y = None
        for k in range(K):
            wk = w[k:k + 1, :][None]                         # (1, 1, C)
            term = wk * hp[:, k:k + T, :]
            y = term if y is None else y + term              # (BB, T, C) f32
        # ---- pointwise 1x1 conv (+ folded BN scale/shift + folded dw bias) + ReLU, on MXU ----
        y2 = y.reshape(BB * T, C).astype(jnp.bfloat16)
        z = jnp.dot(y2, pw_wT_ref[l], preferred_element_type=jnp.float32) + pw_b_ref[l]
        h = jnp.maximum(z, 0.0).reshape(BB, T, C)

    # ---- fc head: relu(h @ W1^T + b1) @ W2^T + b2 (W2 padded to 128 output lanes) ----
    h2 = h.reshape(BB * T, C).astype(jnp.bfloat16)
    g = jnp.maximum(
        jnp.dot(h2, fc1_wT_ref[...], preferred_element_type=jnp.float32) + fc1_b_ref[...],
        0.0)                                                  # (BB*T, HID)
    o = jnp.dot(g.astype(jnp.bfloat16), fc2_wT_ref[...],
                preferred_element_type=jnp.float32) + fc2_b_ref[...]   # (BB*T, OUT_PAD)
    o_ref[...] = o.reshape(BB, T, OUT_PAD)


def prepare_kernel_params(p):
    """Fold BN (eval mode) + depthwise bias into the pointwise weights/bias, transpose for
    lane-dense (rows, C) matmuls, and cast the matmul weights to bf16."""
    bn_s = p["bn_s"][..., 0]                                  # (L, C)
    bn_t = p["bn_t"][..., 0]
    dw_b = p["dw_b"][..., 0]
    pw_b = p["pw_b"][..., 0]
    # out = bn_s * (pw_w @ (dw(h) + dw_b) + pw_b) + bn_t
    pw_w_eff = p["pw_w"] * bn_s[:, :, None]                   # scale output rows (L, Cout, Cin)
    pw_b_eff = bn_s * (jnp.einsum("loc,lc->lo", p["pw_w"], dw_b) + pw_b) + bn_t   # (L, C)
    fc2_wT = jnp.zeros((HID, OUT_PAD), jnp.float32).at[:, :OUT].set(p["fc2_w"].T)
    fc2_b = jnp.zeros((OUT_PAD,), jnp.float32).at[:OUT].set(p["fc2_b"][:, 0])
    return {
        "dw_w": jnp.transpose(p["dw_w"], (0, 2, 1)),                        # (L, K, C) f32
        "pw_wT": jnp.transpose(pw_w_eff, (0, 2, 1)).astype(jnp.bfloat16),   # (L, Cin, Cout) bf16
        "pw_b": pw_b_eff[:, None, :],                                       # (L, 1, C) f32
        "fc1_wT": p["fc1_w"].T.astype(jnp.bfloat16),                        # (C, HID) bf16
        "fc1_b": p["fc1_b"].T,                                              # (1, HID) f32
        "fc2_wT": fc2_wT.astype(jnp.bfloat16),                              # (HID, OUT_PAD) bf16
        "fc2_b": fc2_b[None, :],                                            # (1, OUT_PAD) f32
    }


def jungmin4_forward(x, p, *, target_rows=256):
    """x: (B, M, T, F) float32 -> (B, T, 10) float32"""
    B, M, T, F = x.shape
    assert M * F == C
    kp = prepare_kernel_params(p)

    # PyTorch: permute(0,1,3,2).reshape(B, C, T); we additionally transpose to channels-last
    # so channels sit on the 128-lane axis: (B, T, C) with C = m*F + f ordering preserved.
    xr = jnp.transpose(x, (0, 2, 1, 3)).reshape(B, T, C)

    # pack BB batch elements per grid step so matmul row count BB*T approaches target_rows
    bb = max(1, min(B, target_rows // max(T, 1)))
    while B % bb:
        bb -= 1

    full = lambda shape: pl.BlockSpec(shape, lambda b: tuple(0 for _ in shape))
    out_pad = pl.pallas_call(
        jungmin4_kernel,
        out_shape=jax.ShapeDtypeStruct((B, T, OUT_PAD), jnp.float32),
        grid=(B // bb,),
        in_specs=[
            pl.BlockSpec((bb, T, C), lambda b: (b, 0, 0)),     # x  (packed batch block)
            full((NUM_LAYERS, K, C)),                          # depthwise weights (K on sublanes)
            full((NUM_LAYERS, C, C)),                          # folded pointwise weights^T (bf16)
            full((NUM_LAYERS, 1, C)),                          # folded pointwise bias
            full((C, HID)),                                    # fc1 weight^T (bf16)
            full((1, HID)),                                    # fc1 bias
            full((HID, OUT_PAD)),                              # fc2 weight^T, lane-padded (bf16)
            full((1, OUT_PAD)),                                # fc2 bias, lane-padded
        ],
        out_specs=pl.BlockSpec((bb, T, OUT_PAD), lambda b: (b, 0, 0)),
        compiler_params=pltpu.CompilerParams(
            dimension_semantics=("parallel",),
            vmem_limit_bytes=32 * 1024 * 1024,
        ),
    )(xr, kp["dw_w"], kp["pw_wT"], kp["pw_b"],
      kp["fc1_wT"], kp["fc1_b"], kp["fc2_wT"], kp["fc2_b"])

    return out_pad[:, :, :OUT]                                # (B, T, 10)


def init_params(key):
    ks = jax.random.split(key, 12)
    eps = 1e-5
    gamma = 1.0 + 0.1 * jax.random.normal(ks[0], (NUM_LAYERS, C, 1), jnp.float32)
    beta = 0.1 * jax.random.normal(ks[1], (NUM_LAYERS, C, 1), jnp.float32)
    return {
        "dw_w": jax.random.normal(ks[2], (NUM_LAYERS, C, K), jnp.float32) / math.sqrt(K),
        "dw_b": 0.01 * jax.random.normal(ks[3], (NUM_LAYERS, C, 1), jnp.float32),
        "pw_w": jax.random.normal(ks[4], (NUM_LAYERS, C, C), jnp.float32) / math.sqrt(C),
        "pw_b": 0.01 * jax.random.normal(ks[5], (NUM_LAYERS, C, 1), jnp.float32),
        # eval-mode BN with running_mean=0, running_var=1 folded into scale/shift
        "bn_s": gamma / jnp.sqrt(1.0 + eps),
        "bn_t": beta,
        "fc1_w": jax.random.normal(ks[6], (HID, C), jnp.float32) / math.sqrt(C),
        "fc1_b": 0.01 * jax.random.normal(ks[7], (HID, 1), jnp.float32),
        "fc2_w": jax.random.normal(ks[8], (OUT, HID), jnp.float32) / math.sqrt(HID),
        "fc2_b": 0.01 * jax.random.normal(ks[9], (OUT, 1), jnp.float32),
    }


def ref_forward(x, p):
    """Plain-JAX f32 reference mirroring the PyTorch forward (eval-mode BN)."""
    B, M, T, F = x.shape
    h = jnp.transpose(x, (0, 1, 3, 2)).reshape(B, C, T)
    for l in range(NUM_LAYERS):
        hp = jnp.pad(h, ((0, 0), (0, 0), (2, 2)))
        y = p["dw_b"][l][None]
        for k in range(K):
            y = y + p["dw_w"][l][None, :, k:k + 1] * hp[:, :, k:k + T]
        z = jnp.einsum("oc,bct->bot", p["pw_w"][l], y) + p["pw_b"][l][None]
        h = jnp.maximum(z * p["bn_s"][l][None] + p["bn_t"][l][None], 0.0)
    g = jnp.maximum(jnp.einsum("hc,bct->bht", p["fc1_w"], h) + p["fc1_b"][None], 0.0)
    o = jnp.einsum("oh,bht->bot", p["fc2_w"], g) + p["fc2_b"][None]
    return jnp.transpose(o, (0, 2, 1))


if __name__ == "__main__":
    key = jax.random.PRNGKey(0)
    k_x, k_p = jax.random.split(key)
    B, M, T, F = 2, 2, 16, 257                      # M * F = 514 channels
    x = jax.random.normal(k_x, (B, M, T, F), jnp.float32)
    params = init_params(k_p)

    out = jax.block_until_ready(jungmin4_forward(x, params))
    assert out.shape == (B, T, OUT), out.shape
    assert bool(jnp.all(jnp.isfinite(out)))

    ref = jax.block_until_ready(ref_forward(x, params))
    max_diff = float(jnp.max(jnp.abs(out - ref)))
    # bf16 matmul operands with f32 accumulation: observed error well below this bound
    assert max_diff < 1e-1, f"max diff too large: {max_diff}"

    print("KERNEL_OK")
</pallas_src>

<mosaic_0001>
module attributes {stable_mosaic.version = 11 : i64} {
  func.func @jungmin4_kernel(%arg0: i32, %arg1: memref<2x16x514xf32, #tpu.memory_space<vmem>>, %arg2: memref<4x5x514xf32, #tpu.memory_space<vmem>>, %arg3: memref<4x514x514xbf16, #tpu.memory_space<vmem>>, %arg4: memref<4x1x514xf32, #tpu.memory_space<vmem>>, %arg5: memref<514x256xbf16, #tpu.memory_space<vmem>>, %arg6: memref<1x256xf32, #tpu.memory_space<vmem>>, %arg7: memref<256x128xbf16, #tpu.memory_space<vmem>>, %arg8: memref<1x128xf32, #tpu.memory_space<vmem>>, %arg9: memref<2x16x128xf32, #tpu.memory_space<vmem>>) attributes {dimension_semantics = [#tpu.dimension_semantics<parallel>], iteration_bounds = array<i64: 1>, scalar_prefetch = 0 : i64, scratch_operands = 0 : i64, tpu.core_type = #tpu.core_type<tc>, window_params = [{transform_indices = @transform_0, window_bounds = array<i64: 2, 16, 514>}, {pipeline_mode = #tpu.pipeline_mode<synchronous>, transform_indices = @transform_1, window_bounds = array<i64: 4, 5, 514>}, {pipeline_mode = #tpu.pipeline_mode<synchronous>, transform_indices = @transform_2, window_bounds = array<i64: 4, 514, 514>}, {pipeline_mode = #tpu.pipeline_mode<synchronous>, transform_indices = @transform_3, window_bounds = array<i64: 4, 1, 514>}, {pipeline_mode = #tpu.pipeline_mode<synchronous>, transform_indices = @transform_4, window_bounds = array<i64: 514, 256>}, {pipeline_mode = #tpu.pipeline_mode<synchronous>, transform_indices = @transform_5, window_bounds = array<i64: 1, 256>}, {pipeline_mode = #tpu.pipeline_mode<synchronous>, transform_indices = @transform_6, window_bounds = array<i64: 256, 128>}, {pipeline_mode = #tpu.pipeline_mode<synchronous>, transform_indices = @transform_7, window_bounds = array<i64: 1, 128>}, {transform_indices = @transform_8, window_bounds = array<i64: 2, 16, 128>}]} {
    %c0 = arith.constant 0 : index
    %c0_0 = arith.constant 0 : index
    %c0_1 = arith.constant 0 : index
    %0 = vector.load %arg1[%c0, %c0_0, %c0_1] : memref<2x16x514xf32, #tpu.memory_space<vmem>>, vector<2x16x514xf32>
    %cst = arith.constant 0.000000e+00 : f32
    %1 = vector.broadcast %cst : f32 to vector<2x2x514xf32>
    %2 = tpu.concatenate %1, %0, %1 in 1 : vector<2x2x514xf32>, vector<2x16x514xf32>, vector<2x2x514xf32> -> vector<2x20x514xf32>
    %c0_2 = arith.constant 0 : index
    %c0_3 = arith.constant 0 : index
    %c0_4 = arith.constant 0 : index
    %3 = vector.load %arg2[%c0_2, %c0_3, %c0_4] : memref<4x5x514xf32, #tpu.memory_space<vmem>>, vector<1x5x514xf32>
    %4 = vector.shape_cast %3 : vector<1x5x514xf32> to vector<5x514xf32>
    %5 = vector.extract_strided_slice %4 {offsets = [0, 0], sizes = [1, 514], strides = [1, 1]} : vector<5x514xf32> to vector<1x514xf32>
    %6 = vector.shape_cast %5 : vector<1x514xf32> to vector<1x1x514xf32>
    %7 = vector.extract_strided_slice %2 {offsets = [0, 0, 0], sizes = [2, 16, 514], strides = [1, 1, 1]} : vector<2x20x514xf32> to vector<2x16x514xf32>
    %8 = vector.broadcast %6 : vector<1x1x514xf32> to vector<2x16x514xf32>
    %9 = arith.mulf %8, %7 : vector<2x16x514xf32>
    %10 = vector.extract_strided_slice %4 {offsets = [1, 0], sizes = [1, 514], strides = [1, 1]} : vector<5x514xf32> to vector<1x514xf32>
    %11 = vector.shape_cast %10 : vector<1x514xf32> to vector<1x1x514xf32>
    %12 = vector.extract_strided_slice %2 {offsets = [0, 1, 0], sizes = [2, 16, 514], strides = [1, 1, 1]} : vector<2x20x514xf32> to vector<2x16x514xf32>
    %13 = vector.broadcast %11 : vector<1x1x514xf32> to vector<2x16x514xf32>
    %14 = arith.mulf %13, %12 : vector<2x16x514xf32>
    %15 = arith.addf %9, %14 : vector<2x16x514xf32>
    %16 = vector.extract_strided_slice %4 {offsets = [2, 0], sizes = [1, 514], strides = [1, 1]} : vector<5x514xf32> to vector<1x514xf32>
    %17 = vector.shape_cast %16 : vector<1x514xf32> to vector<1x1x514xf32>
    %18 = vector.extract_strided_slice %2 {offsets = [0, 2, 0], sizes = [2, 16, 514], strides = [1, 1, 1]} : vector<2x20x514xf32> to vector<2x16x514xf32>
    %19 = vector.broadcast %17 : vector<1x1x514xf32> to vector<2x16x514xf32>
    %20 = arith.mulf %19, %18 : vector<2x16x514xf32>
    %21 = arith.addf %15, %20 : vector<2x16x514xf32>
    %22 = vector.extract_strided_slice %4 {offsets = [3, 0], sizes = [1, 514], strides = [1, 1]} : vector<5x514xf32> to vector<1x514xf32>
    %23 = vector.shape_cast %22 : vector<1x514xf32> to vector<1x1x514xf32>
    %24 = vector.extract_strided_slice %2 {offsets = [0, 3, 0], sizes = [2, 16, 514], strides = [1, 1, 1]} : vector<2x20x514xf32> to vector<2x16x514xf32>
    %25 = vector.broadcast %23 : vector<1x1x514xf32> to vector<2x16x514xf32>
    %26 = arith.mulf %25, %24 : vector<2x16x514xf32>
    %27 = arith.addf %21, %26 : vector<2x16x514xf32>
    %28 = vector.extract_strided_slice %4 {offsets = [4, 0], sizes = [1, 514], strides = [1, 1]} : vector<5x514xf32> to vector<1x514xf32>
    %29 = vector.shape_cast %28 : vector<1x514xf32> to vector<1x1x514xf32>
    %30 = vector.extract_strided_slice %2 {offsets = [0, 4, 0], sizes = [2, 16, 514], strides = [1, 1, 1]} : vector<2x20x514xf32> to vector<2x16x514xf32>
    %31 = vector.broadcast %29 : vector<1x1x514xf32> to vector<2x16x514xf32>
    %32 = arith.mulf %31, %30 : vector<2x16x514xf32>
    %33 = arith.addf %27, %32 : vector<2x16x514xf32>
    %34 = vector.shape_cast %33 : vector<2x16x514xf32> to vector<32x514xf32>
    %35 = arith.truncf %34 : vector<32x514xf32> to vector<32x514xbf16>
    %c0_5 = arith.constant 0 : index
    %c0_6 = arith.constant 0 : index
    %c0_7 = arith.constant 0 : index
    %36 = vector.load %arg3[%c0_5, %c0_6, %c0_7] : memref<4x514x514xbf16, #tpu.memory_space<vmem>>, vector<1x514x514xbf16>
    %37 = vector.shape_cast %36 : vector<1x514x514xbf16> to vector<514x514xbf16>
    %cst_8 = arith.constant dense<0.000000e+00> : vector<32x514xf32>
    %38 = tpu.matmul %35, %37, %cst_8 {dimension_numbers = #tpu.dot_dimension_numbers<[1], [0], [0], [1], [0, 0, 1, 1], [], []>} : vector<32x514xbf16>, vector<514x514xbf16>, vector<32x514xf32> -> vector<32x514xf32>
    %c0_9 = arith.constant 0 : index
    %c0_10 = arith.constant 0 : index
    %c0_11 = arith.constant 0 : index
    %39 = vector.load %arg4[%c0_9, %c0_10, %c0_11] : memref<4x1x514xf32, #tpu.memory_space<vmem>>, vector<1x1x514xf32>
    %40 = vector.shape_cast %39 : vector<1x1x514xf32> to vector<1x514xf32>
    %41 = vector.broadcast %40 : vector<1x514xf32> to vector<32x514xf32>
    %42 = arith.addf %38, %41 : vector<32x514xf32>
    %cst_12 = arith.constant 0.000000e+00 : f32
    %43 = vector.broadcast %cst_12 : f32 to vector<32x514xf32>
    %44 = arith.maximumf %42, %43 : vector<32x514xf32>
    %45 = vector.shape_cast %44 : vector<32x514xf32> to vector<2x16x514xf32>
    %46 = tpu.concatenate %1, %45, %1 in 1 : vector<2x2x514xf32>, vector<2x16x514xf32>, vector<2x2x514xf32> -> vector<2x20x514xf32>
    %c1 = arith.constant 1 : index
    %c0_13 = arith.constant 0 : index
    %c0_14 = arith.constant 0 : index
    %47 = vector.load %arg2[%c1, %c0_13, %c0_14] : memref<4x5x514xf32, #tpu.memory_space<vmem>>, vector<1x5x514xf32>
    %48 = vector.shape_cast %47 : vector<1x5x514xf32> to vector<5x514xf32>
    %49 = vector.extract_strided_slice %48 {offsets = [0, 0], sizes = [1, 514], strides = [1, 1]} : vector<5x514xf32> to vector<1x514xf32>
    %50 = vector.shape_cast %49 : vector<1x514xf32> to vector<1x1x514xf32>
    %51 = vector.extract_strided_slice %46 {offsets = [0, 0, 0], sizes = [2, 16, 514], strides = [1, 1, 1]} : vector<2x20x514xf32> to vector<2x16x514xf32>
    %52 = vector.broadcast %50 : vector<1x1x514xf32> to vector<2x16x514xf32>
    %53 = arith.mulf %52, %51 : vector<2x16x514xf32>
    %54 = vector.extract_strided_slice %48 {offsets = [1, 0], sizes = [1, 514], strides = [1, 1]} : vector<5x514xf32> to vector<1x514xf32>
    %55 = vector.shape_cast %54 : vector<1x514xf32> to vector<1x1x514xf32>
    %56 = vector.extract_strided_slice %46 {offsets = [0, 1, 0], sizes = [2, 16, 514], strides = [1, 1, 1]} : vector<2x20x514xf32> to vector<2x16x514xf32>
    %57 = vector.broadcast %55 : vector<1x1x514xf32> to vector<2x16x514xf32>
    %58 = arith.mulf %57, %56 : vector<2x16x514xf32>
    %59 = arith.addf %53, %58 : vector<2x16x514xf32>
    %60 = vector.extract_strided_slice %48 {offsets = [2, 0], sizes = [1, 514], strides = [1, 1]} : vector<5x514xf32> to vector<1x514xf32>
    %61 = vector.shape_cast %60 : vector<1x514xf32> to vector<1x1x514xf32>
    %62 = vector.extract_strided_slice %46 {offsets = [0, 2, 0], sizes = [2, 16, 514], strides = [1, 1, 1]} : vector<2x20x514xf32> to vector<2x16x514xf32>
    %63 = vector.broadcast %61 : vector<1x1x514xf32> to vector<2x16x514xf32>
    %64 = arith.mulf %63, %62 : vector<2x16x514xf32>
    %65 = arith.addf %59, %64 : vector<2x16x514xf32>
    %66 = vector.extract_strided_slice %48 {offsets = [3, 0], sizes = [1, 514], strides = [1, 1]} : vector<5x514xf32> to vector<1x514xf32>
    %67 = vector.shape_cast %66 : vector<1x514xf32> to vector<1x1x514xf32>
    %68 = vector.extract_strided_slice %46 {offsets = [0, 3, 0], sizes = [2, 16, 514], strides = [1, 1, 1]} : vector<2x20x514xf32> to vector<2x16x514xf32>
    %69 = vector.broadcast %67 : vector<1x1x514xf32> to vector<2x16x514xf32>
    %70 = arith.mulf %69, %68 : vector<2x16x514xf32>
    %71 = arith.addf %65, %70 : vector<2x16x514xf32>
    %72 = vector.extract_strided_slice %48 {offsets = [4, 0], sizes = [1, 514], strides = [1, 1]} : vector<5x514xf32> to vector<1x514xf32>
    %73 = vector.shape_cast %72 : vector<1x514xf32> to vector<1x1x514xf32>
    %74 = vector.extract_strided_slice %46 {offsets = [0, 4, 0], sizes = [2, 16, 514], strides = [1, 1, 1]} : vector<2x20x514xf32> to vector<2x16x514xf32>
    %75 = vector.broadcast %73 : vector<1x1x514xf32> to vector<2x16x514xf32>
    %76 = arith.mulf %75, %74 : vector<2x16x514xf32>
    %77 = arith.addf %71, %76 : vector<2x16x514xf32>
    %78 = vector.shape_cast %77 : vector<2x16x514xf32> to vector<32x514xf32>
    %79 = arith.truncf %78 : vector<32x514xf32> to vector<32x514xbf16>
    %c1_15 = arith.constant 1 : index
    %c0_16 = arith.constant 0 : index
    %c0_17 = arith.constant 0 : index
    %80 = vector.load %arg3[%c1_15, %c0_16, %c0_17] : memref<4x514x514xbf16, #tpu.memory_space<vmem>>, vector<1x514x514xbf16>
    %81 = vector.shape_cast %80 : vector<1x514x514xbf16> to vector<514x514xbf16>
    %cst_18 = arith.constant dense<0.000000e+00> : vector<32x514xf32>
    %82 = tpu.matmul %79, %81, %cst_18 {dimension_numbers = #tpu.dot_dimension_numbers<[1], [0], [0], [1], [0, 0, 1, 1], [], []>} : vector<32x514xbf16>, vector<514x514xbf16>, vector<32x514xf32> -> vector<32x514xf32>
    %c1_19 = arith.constant 1 : index
    %c0_20 = arith.constant 0 : index
    %c0_21 = arith.constant 0 : index
    %83 = vector.load %arg4[%c1_19, %c0_20, %c0_21] : memref<4x1x514xf32, #tpu.memory_space<vmem>>, vector<1x1x514xf32>
    %84 = vector.shape_cast %83 : vector<1x1x514xf32> to vector<1x514xf32>
    %85 = vector.broadcast %84 : vector<1x514xf32> to vector<32x514xf32>
    %86 = arith.addf %82, %85 : vector<32x514xf32>
    %cst_22 = arith.constant 0.000000e+00 : f32
    %87 = vector.broadcast %cst_22 : f32 to vector<32x514xf32>
    %88 = arith.maximumf %86, %87 : vector<32x514xf32>
    %89 = vector.shape_cast %88 : vector<32x514xf32> to vector<2x16x514xf32>
    %90 = tpu.concatenate %1, %89, %1 in 1 : vector<2x2x514xf32>, vector<2x16x514xf32>, vector<2x2x514xf32> -> vector<2x20x514xf32>
    %c2 = arith.constant 2 : index
    %c0_23 = arith.constant 0 : index
    %c0_24 = arith.constant 0 : index
    %91 = vector.load %arg2[%c2, %c0_23, %c0_24] : memref<4x5x514xf32, #tpu.memory_space<vmem>>, vector<1x5x514xf32>
    %92 = vector.shape_cast %91 : vector<1x5x514xf32> to vector<5x514xf32>
    %93 = vector.extract_strided_slice %92 {offsets = [0, 0], sizes = [1, 514], strides = [1, 1]} : vector<5x514xf32> to vector<1x514xf32>
    %94 = vector.shape_cast %93 : vector<1x514xf32> to vector<1x1x514xf32>
    %95 = vector.extract_strided_slice %90 {offsets = [0, 0, 0], sizes = [2, 16, 514], strides = [1, 1, 1]} : vector<2x20x514xf32> to vector<2x16x514xf32>
    %96 = vector.broadcast %94 : vector<1x1x514xf32> to vector<2x16x514xf32>
    %97 = arith.mulf %96, %95 : vector<2x16x514xf32>
    %98 = vector.extract_strided_slice %92 {offsets = [1, 0], sizes = [1, 514], strides = [1, 1]} : vector<5x514xf32> to vector<1x514xf32>
    %99 = vector.shape_cast %98 : vector<1x514xf32> to vector<1x1x514xf32>
    %100 = vector.extract_strided_slice %90 {offsets = [0, 1, 0], sizes = [2, 16, 514], strides = [1, 1, 1]} : vector<2x20x514xf32> to vector<2x16x514xf32>
    %101 = vector.broadcast %99 : vector<1x1x514xf32> to vector<2x16x514xf32>
    %102 = arith.mulf %101, %100 : vector<2x16x514xf32>
    %103 = arith.addf %97, %102 : vector<2x16x514xf32>
    %104 = vector.extract_strided_slice %92 {offsets = [2, 0], sizes = [1, 514], strides = [1, 1]} : vector<5x514xf32> to vector<1x514xf32>
    %105 = vector.shape_cast %104 : vector<1x514xf32> to vector<1x1x514xf32>
    %106 = vector.extract_strided_slice %90 {offsets = [0, 2, 0], sizes = [2, 16, 514], strides = [1, 1, 1]} : vector<2x20x514xf32> to vector<2x16x514xf32>
    %107 = vector.broadcast %105 : vector<1x1x514xf32> to vector<2x16x514xf32>
    %108 = arith.mulf %107, %106 : vector<2x16x514xf32>
    %109 = arith.addf %103, %108 : vector<2x16x514xf32>
    %110 = vector.extract_strided_slice %92 {offsets = [3, 0], sizes = [1, 514], strides = [1, 1]} : vector<5x514xf32> to vector<1x514xf32>
    %111 = vector.shape_cast %110 : vector<1x514xf32> to vector<1x1x514xf32>
    %112 = vector.extract_strided_slice %90 {offsets = [0, 3, 0], sizes = [2, 16, 514], strides = [1, 1, 1]} : vector<2x20x514xf32> to vector<2x16x514xf32>
    %113 = vector.broadcast %111 : vector<1x1x514xf32> to vector<2x16x514xf32>
    %114 = arith.mulf %113, %112 : vector<2x16x514xf32>
    %115 = arith.addf %109, %114 : vector<2x16x514xf32>
    %116 = vector.extract_strided_slice %92 {offsets = [4, 0], sizes = [1, 514], strides = [1, 1]} : vector<5x514xf32> to vector<1x514xf32>
    %117 = vector.shape_cast %116 : vector<1x514xf32> to vector<1x1x514xf32>
    %118 = vector.extract_strided_slice %90 {offsets = [0, 4, 0], sizes = [2, 16, 514], strides = [1, 1, 1]} : vector<2x20x514xf32> to vector<2x16x514xf32>
    %119 = vector.broadcast %117 : vector<1x1x514xf32> to vector<2x16x514xf32>
    %120 = arith.mulf %119, %118 : vector<2x16x514xf32>
    %121 = arith.addf %115, %120 : vector<2x16x514xf32>
    %122 = vector.shape_cast %121 : vector<2x16x514xf32> to vector<32x514xf32>
    %123 = arith.truncf %122 : vector<32x514xf32> to vector<32x514xbf16>
    %c2_25 = arith.constant 2 : index
    %c0_26 = arith.constant 0 : index
    %c0_27 = arith.constant 0 : index
    %124 = vector.load %arg3[%c2_25, %c0_26, %c0_27] : memref<4x514x514xbf16, #tpu.memory_space<vmem>>, vector<1x514x514xbf16>
    %125 = vector.shape_cast %124 : vector<1x514x514xbf16> to vector<514x514xbf16>
    %cst_28 = arith.constant dense<0.000000e+00> : vector<32x514xf32>
    %126 = tpu.matmul %123, %125, %cst_28 {dimension_numbers = #tpu.dot_dimension_numbers<[1], [0], [0], [1], [0, 0, 1, 1], [], []>} : vector<32x514xbf16>, vector<514x514xbf16>, vector<32x514xf32> -> vector<32x514xf32>
    %c2_29 = arith.constant 2 : index
    %c0_30 = arith.constant 0 : index
    %c0_31 = arith.constant 0 : index
    %127 = vector.load %arg4[%c2_29, %c0_30, %c0_31] : memref<4x1x514xf32, #tpu.memory_space<vmem>>, vector<1x1x514xf32>
    %128 = vector.shape_cast %127 : vector<1x1x514xf32> to vector<1x514xf32>
    %129 = vector.broadcast %128 : vector<1x514xf32> to vector<32x514xf32>
    %130 = arith.addf %126, %129 : vector<32x514xf32>
    %cst_32 = arith.constant 0.000000e+00 : f32
    %131 = vector.broadcast %cst_32 : f32 to vector<32x514xf32>
    %132 = arith.maximumf %130, %131 : vector<32x514xf32>
    %133 = vector.shape_cast %132 : vector<32x514xf32> to vector<2x16x514xf32>
    %134 = tpu.concatenate %1, %133, %1 in 1 : vector<2x2x514xf32>, vector<2x16x514xf32>, vector<2x2x514xf32> -> vector<2x20x514xf32>
    %c3 = arith.constant 3 : index
    %c0_33 = arith.constant 0 : index
    %c0_34 = arith.constant 0 : index
    %135 = vector.load %arg2[%c3, %c0_33, %c0_34] : memref<4x5x514xf32, #tpu.memory_space<vmem>>, vector<1x5x514xf32>
    %136 = vector.shape_cast %135 : vector<1x5x514xf32> to vector<5x514xf32>
    %137 = vector.extract_strided_slice %136 {offsets = [0, 0], sizes = [1, 514], strides = [1, 1]} : vector<5x514xf32> to vector<1x514xf32>
    %138 = vector.shape_cast %137 : vector<1x514xf32> to vector<1x1x514xf32>
    %139 = vector.extract_strided_slice %134 {offsets = [0, 0, 0], sizes = [2, 16, 514], strides = [1, 1, 1]} : vector<2x20x514xf32> to vector<2x16x514xf32>
    %140 = vector.broadcast %138 : vector<1x1x514xf32> to vector<2x16x514xf32>
    %141 = arith.mulf %140, %139 : vector<2x16x514xf32>
    %142 = vector.extract_strided_slice %136 {offsets = [1, 0], sizes = [1, 514], strides = [1, 1]} : vector<5x514xf32> to vector<1x514xf32>
    %143 = vector.shape_cast %142 : vector<1x514xf32> to vector<1x1x514xf32>
    %144 = vector.extract_strided_slice %134 {offsets = [0, 1, 0], sizes = [2, 16, 514], strides = [1, 1, 1]} : vector<2x20x514xf32> to vector<2x16x514xf32>
    %145 = vector.broadcast %143 : vector<1x1x514xf32> to vector<2x16x514xf32>
    %146 = arith.mulf %145, %144 : vector<2x16x514xf32>
    %147 = arith.addf %141, %146 : vector<2x16x514xf32>
    %148 = vector.extract_strided_slice %136 {offsets = [2, 0], sizes = [1, 514], strides = [1, 1]} : vector<5x514xf32> to vector<1x514xf32>
    %149 = vector.shape_cast %148 : vector<1x514xf32> to vector<1x1x514xf32>
    %150 = vector.extract_strided_slice %134 {offsets = [0, 2, 0], sizes = [2, 16, 514], strides = [1, 1, 1]} : vector<2x20x514xf32> to vector<2x16x514xf32>
    %151 = vector.broadcast %149 : vector<1x1x514xf32> to vector<2x16x514xf32>
    %152 = arith.mulf %151, %150 : vector<2x16x514xf32>
    %153 = arith.addf %147, %152 : vector<2x16x514xf32>
    %154 = vector.extract_strided_slice %136 {offsets = [3, 0], sizes = [1, 514], strides = [1, 1]} : vector<5x514xf32> to vector<1x514xf32>
    %155 = vector.shape_cast %154 : vector<1x514xf32> to vector<1x1x514xf32>
    %156 = vector.extract_strided_slice %134 {offsets = [0, 3, 0], sizes = [2, 16, 514], strides = [1, 1, 1]} : vector<2x20x514xf32> to vector<2x16x514xf32>
    %157 = vector.broadcast %155 : vector<1x1x514xf32> to vector<2x16x514xf32>
    %158 = arith.mulf %157, %156 : vector<2x16x514xf32>
    %159 = arith.addf %153, %158 : vector<2x16x514xf32>
    %160 = vector.extract_strided_slice %136 {offsets = [4, 0], sizes = [1, 514], strides = [1, 1]} : vector<5x514xf32> to vector<1x514xf32>
    %161 = vector.shape_cast %160 : vector<1x514xf32> to vector<1x1x514xf32>
    %162 = vector.extract_strided_slice %134 {offsets = [0, 4, 0], sizes = [2, 16, 514], strides = [1, 1, 1]} : vector<2x20x514xf32> to vector<2x16x514xf32>
    %163 = vector.broadcast %161 : vector<1x1x514xf32> to vector<2x16x514xf32>
    %164 = arith.mulf %163, %162 : vector<2x16x514xf32>
    %165 = arith.addf %159, %164 : vector<2x16x514xf32>
    %166 = vector.shape_cast %165 : vector<2x16x514xf32> to vector<32x514xf32>
    %167 = arith.truncf %166 : vector<32x514xf32> to vector<32x514xbf16>
    %c3_35 = arith.constant 3 : index
    %c0_36 = arith.constant 0 : index
    %c0_37 = arith.constant 0 : index
    %168 = vector.load %arg3[%c3_35, %c0_36, %c0_37] : memref<4x514x514xbf16, #tpu.memory_space<vmem>>, vector<1x514x514xbf16>
    %169 = vector.shape_cast %168 : vector<1x514x514xbf16> to vector<514x514xbf16>
    %cst_38 = arith.constant dense<0.000000e+00> : vector<32x514xf32>
    %170 = tpu.matmul %167, %169, %cst_38 {dimension_numbers = #tpu.dot_dimension_numbers<[1], [0], [0], [1], [0, 0, 1, 1], [], []>} : vector<32x514xbf16>, vector<514x514xbf16>, vector<32x514xf32> -> vector<32x514xf32>
    %c3_39 = arith.constant 3 : index
    %c0_40 = arith.constant 0 : index
    %c0_41 = arith.constant 0 : index
    %171 = vector.load %arg4[%c3_39, %c0_40, %c0_41] : memref<4x1x514xf32, #tpu.memory_space<vmem>>, vector<1x1x514xf32>
    %172 = vector.shape_cast %171 : vector<1x1x514xf32> to vector<1x514xf32>
    %173 = vector.broadcast %172 : vector<1x514xf32> to vector<32x514xf32>
    %174 = arith.addf %170, %173 : vector<32x514xf32>
    %cst_42 = arith.constant 0.000000e+00 : f32
    %175 = vector.broadcast %cst_42 : f32 to vector<32x514xf32>
    %176 = arith.maximumf %174, %175 : vector<32x514xf32>
    %177 = vector.shape_cast %176 : vector<32x514xf32> to vector<2x16x514xf32>
    %178 = vector.shape_cast %177 : vector<2x16x514xf32> to vector<32x514xf32>
    %179 = arith.truncf %178 : vector<32x514xf32> to vector<32x514xbf16>
    %c0_43 = arith.constant 0 : index
    %c0_44 = arith.constant 0 : index
    %180 = vector.load %arg5[%c0_43, %c0_44] : memref<514x256xbf16, #tpu.memory_space<vmem>>, vector<514x256xbf16>
    %cst_45 = arith.constant dense<0.000000e+00> : vector<32x256xf32>
    %181 = tpu.matmul %179, %180, %cst_45 {dimension_numbers = #tpu.dot_dimension_numbers<[1], [0], [0], [1], [0, 0, 1, 1], [], []>} : vector<32x514xbf16>, vector<514x256xbf16>, vector<32x256xf32> -> vector<32x256xf32>
    %c0_46 = arith.constant 0 : index
    %c0_47 = arith.constant 0 : index
    %182 = vector.load %arg6[%c0_46, %c0_47] : memref<1x256xf32, #tpu.memory_space<vmem>>, vector<1x256xf32>
    %183 = vector.broadcast %182 : vector<1x256xf32> to vector<32x256xf32>
    %184 = arith.addf %181, %183 : vector<32x256xf32>
    %cst_48 = arith.constant 0.000000e+00 : f32
    %185 = vector.broadcast %cst_48 : f32 to vector<32x256xf32>
    %186 = arith.maximumf %184, %185 : vector<32x256xf32>
    %187 = arith.truncf %186 : vector<32x256xf32> to vector<32x256xbf16>
    %c0_49 = arith.constant 0 : index
    %c0_50 = arith.constant 0 : index
    %188 = vector.load %arg7[%c0_49, %c0_50] : memref<256x128xbf16, #tpu.memory_space<vmem>>, vector<256x128xbf16>
    %cst_51 = arith.constant dense<0.000000e+00> : vector<32x128xf32>
    %189 = tpu.matmul %187, %188, %cst_51 {dimension_numbers = #tpu.dot_dimension_numbers<[1], [0], [0], [1], [0, 0, 1, 1], [], []>} : vector<32x256xbf16>, vector<256x128xbf16>, vector<32x128xf32> -> vector<32x128xf32>
    %c0_52 = arith.constant 0 : index
    %c0_53 = arith.constant 0 : index
    %190 = vector.load %arg8[%c0_52, %c0_53] : memref<1x128xf32, #tpu.memory_space<vmem>>, vector<1x128xf32>
    %191 = vector.broadcast %190 : vector<1x128xf32> to vector<32x128xf32>
    %192 = arith.addf %189, %191 : vector<32x128xf32>
    %193 = vector.shape_cast %192 : vector<32x128xf32> to vector<2x16x128xf32>
    %c0_54 = arith.constant 0 : index
    %c0_55 = arith.constant 0 : index
    %c0_56 = arith.constant 0 : index
    %194 = vector.load %arg9[%c0_54, %c0_55, %c0_56] : memref<2x16x128xf32, #tpu.memory_space<vmem>>, vector<2x16x128xf32>
    tpu.vector_store %arg9[%c0_54, %c0_55, %c0_56], %193 {strides = array<i32>} : memref<2x16x128xf32, #tpu.memory_space<vmem>>, vector<2x16x128xf32>,
    return
  }
  func.func @transform_0(%arg0: i32) -> (i32, i32, i32) {
    %c0_i32 = arith.constant 0 : i32
    %c0_i32_0 = arith.constant 0 : i32
    %c0_i32_1 = arith.constant 0 : i32
    return %arg0, %c0_i32, %c0_i32_0 : i32, i32, i32
  }
  func.func @transform_1(%arg0: i32) -> (i32, i32, i32) {
    %c0_i32 = arith.constant 0 : i32
    %c0_i32_0 = arith.constant 0 : i32
    %c0_i32_1 = arith.constant 0 : i32
    %c0_i32_2 = arith.constant 0 : i32
    return %c0_i32, %c0_i32_0, %c0_i32_1 : i32, i32, i32
  }
  func.func @transform_2(%arg0: i32) -> (i32, i32, i32) {
    %c0_i32 = arith.constant 0 : i32
    %c0_i32_0 = arith.constant 0 : i32
    %c0_i32_1 = arith.constant 0 : i32
    %c0_i32_2 = arith.constant 0 : i32
    return %c0_i32, %c0_i32_0, %c0_i32_1 : i32, i32, i32
  }
  func.func @transform_3(%arg0: i32) -> (i32, i32, i32) {
    %c0_i32 = arith.constant 0 : i32
    %c0_i32_0 = arith.constant 0 : i32
    %c0_i32_1 = arith.constant 0 : i32
    %c0_i32_2 = arith.constant 0 : i32
    return %c0_i32, %c0_i32_0, %c0_i32_1 : i32, i32, i32
  }
  func.func @transform_4(%arg0: i32) -> (i32, i32) {
    %c0_i32 = arith.constant 0 : i32
    %c0_i32_0 = arith.constant 0 : i32
    %c0_i32_1 = arith.constant 0 : i32
    return %c0_i32, %c0_i32_0 : i32, i32
  }
  func.func @transform_5(%arg0: i32) -> (i32, i32) {
    %c0_i32 = arith.constant 0 : i32
    %c0_i32_0 = arith.constant 0 : i32
    %c0_i32_1 = arith.constant 0 : i32
    return %c0_i32, %c0_i32_0 : i32, i32
  }
  func.func @transform_6(%arg0: i32) -> (i32, i32) {
    %c0_i32 = arith.constant 0 : i32
    %c0_i32_0 = arith.constant 0 : i32
    %c0_i32_1 = arith.constant 0 : i32
    return %c0_i32, %c0_i32_0 : i32, i32
  }
  func.func @transform_7(%arg0: i32) -> (i32, i32) {
    %c0_i32 = arith.constant 0 : i32
    %c0_i32_0 = arith.constant 0 : i32
    %c0_i32_1 = arith.constant 0 : i32
    return %c0_i32, %c0_i32_0 : i32, i32
  }
  func.func @transform_8(%arg0: i32) -> (i32, i32, i32) {
    %c0_i32 = arith.constant 0 : i32
    %c0_i32_0 = arith.constant 0 : i32
    %c0_i32_1 = arith.constant 0 : i32
    return %arg0, %c0_i32, %c0_i32_0 : i32, i32, i32
  }
}

</mosaic_0001>

<bundles_post_ra>
// kernel: tpu_custom_call.1
= control target key start
LH: loop header
LB: loop body
LE: loop exit
PB: predicated region body
PF: predicated region fallthrough
CT: control target
= control target key end

     0   :  { %v157_v37 = vlaneseq  ;;  %vm71_vm0 = vcmask 1041408   ;;  %vm277_vm1 = vcmask 1046528   ;;  %vm448_vm2 = vcmask 1045504   ;;  %s19019_s0 = inlined_call_operand.vmem [shape: f32[2,16,514], index: 0, kind: input, shape index: {}]   ;;  %s19020_s1 = inlined_call_operand.vmem [shape: f32[4,5,514], index: 1, kind: input, shape index: {}]   ;;  %s19021_s2 = inlined_call_operand.vmem [shape: bf16[4,514,514], index: 2, kind: input, shape index: {}]   ;;  %s19022_s3 = inlined_call_operand.vmem [shape: f32[4,1,514], index: 3, kind: input, shape index: {}]   ;;  %s19023_s4 = inlined_call_operand.vmem [shape: bf16[514,256], index: 4, kind: input, shape index: {}]   ;;  %s19024_s5 = inlined_call_operand.vmem [shape: f32[1,256], index: 5, kind: input, shape index: {}]   ;;  %s19025_s6 = inlined_call_operand.vmem [shape: bf16[256,128], index: 6, kind: input, shape index: {}]   ;;  %s19026_s7 = inlined_call_operand.vmem [shape: f32[1,128], index: 7, kind: input, shape index: {}]   ;;  %s19027_s8 = inlined_call_operand.hbm [shape: f32[2,16,128], index: 8, kind: output, shape index: {}]  }
   0x1   :  { %v12391_v0 = vld [vmem:[%s19021_s2 + $0x4] ss:$20 sps:$4 sm:$0xff]   ;;  %v12395_v2 = vld [vmem:[%s19021_s2] ss:$20 sps:$4 sm:$0xff]   ;;  %v12401_v6 = vld [vmem:[%s19021_s2 + $0x28] ss:$20 sps:$4 sm:$0xff]  }
   0x2   :  { %v12393_v1 = vld [vmem:[%s19021_s2 + $0x284] ss:$20 sps:$4 sm:$0xff]   ;;  %1981 = vmatprep.subr.bf16.mxu1 %v12391_v0  ;;  %v12396_v3 = vld [vmem:[%s19021_s2 + $0x280] ss:$20 sps:$4 sm:$0xff]   ;;  %v12402_v7 = vld [vmem:[%s19021_s2 + $0x2a8] ss:$20 sps:$4 sm:$0xff]  }
   0x3   :  { %2034 = vmatprep.subr.bf16.mxu0 %v12393_v1  ;;  %v12397_v4 = vld [vmem:[%s19021_s2 + $0x2c] ss:$20 sps:$4 sm:$0xff]   ;;  %1982 = vmatpush1.bf16.msra.mxu1 %v12395_v2  ;;  %v12403_v8 = vld [vmem:[%s19021_s2 + $0x54] ss:$20 sps:$4 sm:$0xff]   ;;  %v12407_v10 = vld [vmem:[%s19021_s2 + $0x50] ss:$20 sps:$4 sm:$0xff]  }
   0x4   :  { %2035 = vmatpush1.bf16.msra.mxu0 %v12396_v3  ;;  %v12399_v5 = vld [vmem:[%s19021_s2 + $0x2ac] ss:$20 sps:$4 sm:$0xff]   ;;  %1983 = vmatprep.subr.bf16.mxu1 %v12397_v4  ;;  %v12405_v9 = vld [vmem:[%s19021_s2 + $0x2d4] ss:$20 sps:$4 sm:$0xff]   ;;  %v12408_v11 = vld [vmem:[%s19021_s2 + $0x2d0] ss:$20 sps:$4 sm:$0xff]  }
   0x5   :  { %2036 = vmatprep.subr.bf16.mxu0 %v12399_v5  ;;  %v12409_v12 = vld [vmem:[%s19021_s2 + $0x7c] ss:$20 sps:$4 sm:$0xff]   ;;  %v12413_v14 = vld [vmem:[%s19021_s2 + $0x78] ss:$20 sps:$4 sm:$0xff]   ;;  %v12419_v18 = vld [vmem:[%s19021_s2 + $0xa0] ss:$20 sps:$4 sm:$0xff]  }
   0x6   :  { %v12411_v13 = vld [vmem:[%s19021_s2 + $0x2fc] ss:$20 sps:$4 sm:$0xff]   ;;  %v12414_v15 = vld [vmem:[%s19021_s2 + $0x2f8] ss:$20 sps:$4 sm:$0xff]   ;;  %v12420_v19 = vld [vmem:[%s19021_s2 + $0x320] ss:$20 sps:$4 sm:$0xff]  }
   0x7   :  { %1984 = vmatpush1.bf16.msra.mxu1 %v12401_v6  ;;  %v12415_v16 = vld [vmem:[%s19021_s2 + $0xa4] ss:$20 sps:$4 sm:$0xff]   ;;  %v12421_v20 = vld [vmem:[%s19021_s2 + $0xcc] ss:$20 sps:$4 sm:$0xff]   ;;  %v12425_v22 = vld [vmem:[%s19021_s2 + $0xc8] ss:$20 sps:$4 sm:$0xff]  }
   0x8   :  { %2037 = vmatpush1.bf16.msra.mxu0 %v12402_v7  ;;  %1985 = vmatprep.subr.bf16.mxu1 %v12403_v8  ;;  %v12417_v17 = vld [vmem:[%s19021_s2 + $0x324] ss:$20 sps:$4 sm:$0xff]   ;;  %v12423_v21 = vld [vmem:[%s19021_s2 + $0x34c] ss:$20 sps:$4 sm:$0xff]   ;;  %v12426_v23 = vld [vmem:[%s19021_s2 + $0x348] ss:$20 sps:$4 sm:$0xff]  }
   0x9   :  { %2038 = vmatprep.subr.bf16.mxu0 %v12405_v9  ;;  %v12427_v24 = vld [vmem:[%s19021_s2 + $0xf4] ss:$20 sps:$4 sm:$0xff]   ;;  %v12431_v26 = vld [vmem:[%s19021_s2 + $0xf0] ss:$20 sps:$4 sm:$0xff]   ;;  %v12437_v30 = vld [vmem:[%s19021_s2 + $0x118] ss:$20 sps:$4 sm:$0xff]  }
   0xa   :  { %v12429_v25 = vld [vmem:[%s19021_s2 + $0x374] ss:$20 sps:$4 sm:$0xff]   ;;  %v12432_v27 = vld [vmem:[%s19021_s2 + $0x370] ss:$20 sps:$4 sm:$0xff]   ;;  %v12438_v31 = vld [vmem:[%s19021_s2 + $0x398] ss:$20 sps:$4 sm:$0xff]  }
   0xb   :  { %1986 = vmatpush1.bf16.msra.mxu1 %v12407_v10  ;;  %v12433_v28 = vld [vmem:[%s19021_s2 + $0x11c] ss:$20 sps:$4 sm:$0xff]   ;;  %v12439_v32 = vld [vmem:[%s19021_s2 + $0x144] ss:$20 sps:$4 sm:$0xff]   ;;  %v12443_v34 = vld [vmem:[%s19021_s2 + $0x140] ss:$20 sps:$4 sm:$0xff]  }
   0xc   :  { %2039 = vmatpush1.bf16.msra.mxu0 %v12408_v11  ;;  %1987 = vmatprep.subr.bf16.mxu1 %v12409_v12  ;;  %v12435_v29 = vld [vmem:[%s19021_s2 + $0x39c] ss:$20 sps:$4 sm:$0xff]   ;;  %v12441_v33 = vld [vmem:[%s19021_s2 + $0x3c4] ss:$20 sps:$4 sm:$0xff]   ;;  %v12444_v35 = vld [vmem:[%s19021_s2 + $0x3c0] ss:$20 sps:$4 sm:$0xff]  }
   0xd   :  { %2040 = vmatprep.subr.bf16.mxu0 %v12411_v13  ;;  %v12445_v36 = vld [vmem:[%s19021_s2 + $0x16c] ss:$20 sps:$4 sm:$0xff]   ;;  %v12449_v39 = vld [vmem:[%s19021_s2 + $0x168] ss:$20 sps:$4 sm:$0xff]   ;;  %v158_v42 = vshrl.u32 %v157_v37, 7  ;;  %vm619_vm3 = vcmask 1044480  }
   0xe   :  { %v12447_v38 = vld [vmem:[%s19021_s2 + $0x3ec] ss:$20 sps:$4 sm:$0xff]   ;;  %v12450_v40 = vld [vmem:[%s19021_s2 + $0x3e8] ss:$20 sps:$4 sm:$0xff]   ;;  %v12455_v44 = vld [vmem:[%s19021_s2 + $0x190] ss:$20 sps:$4 sm:$0xff]  }
   0xf   :  { %1988 = vmatpush1.bf16.msra.mxu1 %v12413_v14  ;;  %v12451_v41 = vld [vmem:[%s19021_s2 + $0x194] ss:$20 sps:$4 sm:$0xff]   ;;  %v12456_v45 = vld [vmem:[%s19021_s2 + $0x410] ss:$20 sps:$4 sm:$0xff]   ;;  %v13626_v46 = vsub.s32 0, %v158_v42  ;;  %v13631_v48 = vsub.s32 1, %v158_v42 }
  0x10   :  { %2041 = vmatpush1.bf16.msra.mxu0 %v12414_v15  ;;  %1989 = vmatprep.subr.bf16.mxu1 %v12415_v16  ;;  %v12453_v43 = vld [vmem:[%s19021_s2 + $0x414] ss:$20 sps:$4 sm:$0xff]   ;;  %v12457_v47 = vld [vmem:[%s19021_s2 + $0x1bc] ss:$20 sps:$4 sm:$0xff]   ;;  %v13633_v49 = vsub.s32 2, %v158_v42  ;;  %v13638_v51 = vsub.s32 3, %v158_v42 }
  0x11   :  { %2042 = vmatprep.subr.bf16.mxu0 %v12417_v17  ;;  %19165 = vst [vmem:[#allocation5_spill] sm:$0xff] %v13626_v46  ;;  %19166 = vst [vmem:[#allocation6_spill] sm:$0xff] %v13631_v48  ;;  %v12459_v50 = vld [vmem:[%s19021_s2 + $0x43c] ss:$20 sps:$4 sm:$0xff]   ;;  %v13640_v52 = vsub.s32 4, %v158_v42  ;;  %v32_v53 = vld [vmem:[%s19019_s0 + $0x8] sm:$0xff] }
  0x12   :  { %19167 = vst [vmem:[#allocation7_spill] sm:$0xff] %v13633_v49  ;;  %19168 = vst [vmem:[#allocation8_spill] sm:$0xff] %v13638_v51  ;;  %v37_v54 = vld [vmem:[%s19019_s0 + $0x30] sm:$0xff]  ;;  %v73_v55 = vrot.slane %v32_v53, 6  ;;  %v153_v56 = vld [vmem:[%s19020_s1 + $0x8] sm:$0x1f] }
  0x13   :  { %1990 = vmatpush1.bf16.msra.mxu1 %v12419_v18  ;;  %19169 = vst [vmem:[#allocation9_spill] sm:$0xff] %v13640_v52  ;;  %v13654_v57 = vld [vmem:[%s19019_s0 + $0x18] sm:$0xff]  ;;  %v79_v60 = vrot.slane %v37_v54, 6  ;;  %v13663_v61 = vrot.slane %v153_v56, %v13626_v46  ;;  %v13666_v62 = vrot.slane %v153_v56, %v13631_v48  ;;  %v13669_v63 = vrot.slane %v153_v56, %v13633_v49  ;;  %v12467_v10 = vld [vmem:[%s19021_s2 + $0x1e0] ss:$20 sps:$4 sm:$0xff]  }
  0x14   :  { %2043 = vmatpush1.bf16.msra.mxu0 %v12420_v19  ;;  %1991 = vmatprep.subr.bf16.mxu1 %v12421_v20  ;;  %v12461_v58 = vld [vmem:[%s19021_s2 + $0x1b8] ss:$20 sps:$4 sm:$0xff]   ;;  %v133_v2 = vsel %vm71_vm0, 0.0, %v73_v55  ;;  %v13679_v3 = vrot.slane %v153_v56, %v13638_v51  ;;  %v13682_v4 = vrot.slane %v153_v56, %v13640_v52  ;;  %v75_v5 = vrot.slane %v13654_v57, 6  ;;  %v12468_v11 = vld [vmem:[%s19021_s2 + $0x460] ss:$20 sps:$4 sm:$0xff]  }
  0x15   :  { %2044 = vmatprep.subr.bf16.mxu0 %v12423_v21  ;;  %v12462_v59 = vld [vmem:[%s19021_s2 + $0x438] ss:$20 sps:$4 sm:$0xff]   ;;  %v80_v6 = vsel %vm71_vm0, %v73_v55, %v79_v60  ;;  %v143_v7 = vsel %vm71_vm0, %v79_v60, 0.0  ;;  %v178_v8 = vmul.f32 %v13663_v61, %v133_v2  ;;  %v218_v9 = vmul.f32 %v13666_v62, %v133_v2  ;;  %v12477_v42 = vld [vmem:[%s19021_s2 + $0x4b4] ss:$20 sps:$4 sm:$0xff]  }
  0x16   :  { %v12463_v0 = vld [vmem:[%s19021_s2 + $0x1e4] ss:$20 sps:$4 sm:$0xff]   ;;  %vm790_vm4 = vcmask 1043456   ;;  %v183_v12 = vmul.f32 %v13663_v61, %v80_v6  ;;  %v223_v13 = vmul.f32 %v13666_v62, %v80_v6  ;;  %v228_v14 = vmul.f32 %v13666_v62, %v143_v7  ;;  %v12469_v16 = vld [vmem:[%s19021_s2 + $0x20c] ss:$20 sps:$4 sm:$0xff]  }
  0x17   :  { %1992 = vmatpush1.bf16.msra.mxu1 %v12425_v22  ;;  %v12465_v1 = vld [vmem:[%s19021_s2 + $0x464] ss:$20 sps:$4 sm:$0xff]   ;;  %v389_v15 = vmul.f32 %v13669_v63, %v133_v2  ;;  %v281_v17 = vrot.slane %v218_v9, 1  ;;  %v394_v18 = vmul.f32 %v13669_v63, %v80_v6  ;;  %v399_v19 = vmul.f32 %v13669_v63, %v143_v7  ;;  %v12471_v21 = vld [vmem:[%s19021_s2 + $0x48c] ss:$20 sps:$4 sm:$0xff]  }
  0x18   :  { %2045 = vmatpush1.bf16.msra.mxu0 %v12426_v23  ;;  %1993 = vmatprep.subr.bf16.mxu1 %v12427_v24  ;;  %v560_v20 = vmul.f32 %v13679_v3, %v133_v2  ;;  %v282_v22 = vrot.slane %v223_v13, 1  ;;  %v295_v23 = vrot.slane %v228_v14, 1  ;;  %v12479_v53 = vld [vmem:[%s19021_s2 + $0x230] ss:$20 sps:$4 sm:$0xff]   ;;  %v12485_v57 = vld [vmem:[%s19021_s2 + $0x258] ss:$20 sps:$4 sm:$0xff]  }
  0x19   :  { %2046 = vmatprep.subr.bf16.mxu0 %v12429_v25  ;;  %v452_v24 = vrot.slane %v389_v15, 2  ;;  %v565_v25 = vmul.f32 %v13679_v3, %v80_v6  ;;  %vm1965_vm5 = vcmask 1040384   ;;  %vm1958_vm6 = vcmask 15360  }
  0x1b   :  { %1994 = vmatpush1.bf16.msra.mxu1 %v12431_v26  ;;  %v12473_v26 = vld [vmem:[%s19021_s2 + $0x208] ss:$20 sps:$4 sm:$0xff]  }
  0x1c   :  { %2047 = vmatpush1.bf16.msra.mxu0 %v12432_v27  ;;  %1995 = vmatprep.subr.bf16.mxu1 %v12433_v28  ;;  %v453_v27 = vrot.slane %v394_v18, 2  ;;  %v466_v28 = vrot.slane %v399_v19, 2 }
  0x1d   :  { %2048 = vmatprep.subr.bf16.mxu0 %v12435_v29  ;;  %v570_v29 = vmul.f32 %v13679_v3, %v143_v7 }
  0x1f   :  { %1996 = vmatpush1.bf16.msra.mxu1 %v12437_v30  ;;  %v623_v30 = vrot.slane %v560_v20, 3 }
  0x20   :  { %2049 = vmatpush1.bf16.msra.mxu0 %v12438_v31  ;;  %1997 = vmatprep.subr.bf16.mxu1 %v12439_v32  ;;  %v12474_v31 = vld [vmem:[%s19021_s2 + $0x488] ss:$20 sps:$4 sm:$0xff]   ;;  %v283_v32 = vsel %vm277_vm1, %v281_v17, %v282_v22 }
  0x21   :  { %2050 = vmatprep.subr.bf16.mxu0 %v12441_v33  ;;  %v296_v33 = vsel %vm277_vm1, %v282_v22, %v295_v23  ;;  %v349_v37 = vadd.f32 %v283_v32, %v178_v8 }
  0x23   :  { %1998 = vmatpush1.bf16.msra.mxu1 %v12443_v34  ;;  %v624_v34 = vrot.slane %v565_v25, 3 }
  0x24   :  { %2051 = vmatpush1.bf16.msra.mxu0 %v12444_v35  ;;  %1999 = vmatprep.subr.bf16.mxu1 %v12445_v36  ;;  %v731_v35 = vmul.f32 %v13682_v4, %v133_v2  ;;  %v12475_v36 = vld [vmem:[%s19021_s2 + $0x234] ss:$20 sps:$4 sm:$0xff]   ;;  %v12480_v2 = vld [vmem:[%s19021_s2 + $0x4b0] ss:$20 sps:$4 sm:$0xff]  }
  0x25   :  { %2052 = vmatprep.subr.bf16.mxu0 %v12447_v38  ;;  %v354_v38 = vadd.f32 %v296_v33, %v183_v12  ;;  %v12489_v33 = vld [vmem:[%s19021_s2 + $0xc] ss:$20 sps:$4 sm:$0xff]  }
  0x27   :  { %2000 = vmatpush1.bf16.msra.mxu1 %v12449_v39  ;;  %v454_v39 = vsel %vm448_vm2, %v452_v24, %v453_v27  ;;  %v12486_v24 = vld [vmem:[%s19021_s2 + $0x4d8] ss:$20 sps:$4 sm:$0xff]  }
  0x28   :  { %2053 = vmatpush1.bf16.msra.mxu0 %v12450_v40  ;;  %2001 = vmatprep.subr.bf16.mxu1 %v12451_v41  ;;  %v637_v40 = vrot.slane %v570_v29, 3  ;;  %v39_v41 = vld [vmem:[%s19019_s0 + $0x40] sm:$0xff]  ;;  %v520_v54 = vadd.f32 %v454_v39, %v349_v37 }
  0x29   :  { %2054 = vmatprep.subr.bf16.mxu0 %v12453_v43  ;;  %v467_v43 = vsel %vm448_vm2, %v453_v27, %v466_v28  ;;  %v83_v60 = vrot.slane %v39_v41, 6 }
  0x2a   :  { %v525_v55 = vadd.f32 %v467_v43, %v354_v38  ;;  %v638_v56 = vsel %vm619_vm3, %v624_v34, %v637_v40 }
  0x2b   :  { %2002 = vmatpush1.bf16.msra.mxu1 %v12455_v44  ;;  %v625_v44 = vsel %vm619_vm3, %v623_v30, %v624_v34  ;;  %v84_v13 = vsel %vm71_vm0, %v75_v5, %v83_v60  ;;  %v145_v14 = vsel %vm71_vm0, %v83_v60, 0.0 }
  0x2c   :  { %2055 = vmatpush1.bf16.msra.mxu0 %v12456_v45  ;;  %2003 = vmatprep.subr.bf16.mxu1 %v12457_v47  ;;  %v736_v45 = vmul.f32 %v13682_v4, %v80_v6  ;;  %v794_v47 = vrot.slane %v731_v35, 4  ;;  %v12481_v6 = vld [vmem:[%s19021_s2 + $0x25c] ss:$20 sps:$4 sm:$0xff]   ;;  %v696_v8 = vadd.f32 %v638_v56, %v525_v55  ;;  %v36_v55 = vld [vmem:[%s19019_s0 + $0x28] sm:$0xff] }
  0x2d   :  { %2056 = vmatprep.subr.bf16.mxu0 %v12459_v50  ;;  %v155_v50 = vld [vmem:[%s19020_s1 + $0x18] sm:$0x1f] }
  0x2e   :  { %v13778_v23 = vrot.slane %v155_v50, %v13633_v49  ;;  %v13787_v27 = vrot.slane %v155_v50, %v13640_v52 }
  0x2f   :  { %2004 = vmatpush1.bf16.msra.mxu1 %v12461_v58  ;;  %v741_v58 = vmul.f32 %v13682_v4, %v143_v7  ;;  %v691_v7 = vadd.f32 %v625_v44, %v520_v54 }
  0x30   :  { %2057 = vmatpush1.bf16.msra.mxu0 %v12462_v59  ;;  %2005 = vmatprep.subr.bf16.mxu1 %v12463_v0  ;;  %v795_v59 = vrot.slane %v736_v45, 4  ;;  %v135_v0 = vsel %vm71_vm0, 0.0, %v75_v5  ;;  %v396_v34 = vmul.f32 %v13778_v23, %v84_v13  ;;  %v401_v35 = vmul.f32 %v13778_v23, %v145_v14 }
  0x31   :  { %2058 = vmatprep.subr.bf16.mxu0 %v12465_v1  ;;  %v13744_v1 = vrot.slane %v155_v50, %v13626_v46  ;;  %v808_v9 = vrot.slane %v741_v58, 4  ;;  %v391_v32 = vmul.f32 %v13778_v23, %v135_v0  ;;  %v733_v54 = vmul.f32 %v13787_v27, %v135_v0 }
  0x32   :  { %v796_v12 = vsel %vm790_vm4, %v794_v47, %v795_v59  ;;  %v459_v44 = vrot.slane %v396_v34, 2  ;;  %v470_v45 = vrot.slane %v401_v35, 2  ;;  %v743_v60 = vmul.f32 %v13787_v27, %v145_v14  ;;  %v154_v34 = vld [vmem:[%s19020_s1 + $0x10] sm:$0x1f] }
  0x33   :  { %2006 = vmatpush1.bf16.msra.mxu1 %v12467_v10  ;;  %v13753_v10 = vrot.slane %v155_v50, %v13631_v48  ;;  %v180_v15 = vmul.f32 %v13744_v1, %v135_v0  ;;  %v809_v17 = vsel %vm790_vm4, %v795_v59, %v808_v9  ;;  %v862_v18 = vadd.f32 %v796_v12, %v691_v7 }
  0x34   :  { %2059 = vmatpush1.bf16.msra.mxu0 %v12468_v11  ;;  %2007 = vmatprep.subr.bf16.mxu1 %v12469_v16  ;;  %v12483_v11 = vld [vmem:[%s19021_s2 + $0x4dc] ss:$20 sps:$4 sm:$0xff]   ;;  %v13767_v16 = vld [vmem:[%s19019_s0] sm:$0xff]  ;;  %v185_v19 = vmul.f32 %v13744_v1, %v84_v13  ;;  %v867_v5 = vadd.f32 %v809_v17, %v696_v8  ;;  %v458_v40 = vrot.slane %v391_v32, 2  ;;  %v471_v58 = vsel %vm448_vm2, %v459_v44, %v470_v45 }
  0x35   :  { %2060 = vmatprep.subr.bf16.mxu0 %v12471_v21  ;;  %v220_v20 = vmul.f32 %v13753_v10, %v135_v0  ;;  %v225_v21 = vmul.f32 %v13753_v10, %v84_v13  ;;  %v230_v22 = vmul.f32 %v13753_v10, %v145_v14  ;;  %v72_v28 = vrot.slane %v13767_v16, 6 }
  0x36   :  { %v13790_v29 = vpack.c.bf16 %v867_v5, %v862_v18  ;;  %v460_v56 = vsel %vm448_vm2, %v458_v40, %v459_v44  ;;  %v738_v59 = vmul.f32 %v13787_v27, %v84_v13  ;;  %v800_v9 = vrot.slane %v733_v54, 4  ;;  %v33_v18 = vld [vmem:[%s19019_s0 + $0x10] sm:$0xff] }
  0x37   :  { %2008 = vmatpush1.bf16.msra.mxu1 %v12473_v26  ;;  %v287_v25 = vrot.slane %v220_v20, 1  ;;  %v13784_v26 = vrot.slane %v155_v50, %v13638_v51  ;;  %v288_v30 = vrot.slane %v225_v21, 1  ;;  %v812_v12 = vrot.slane %v743_v60, 4  ;;  %v38_v21 = vld [vmem:[%s19019_s0 + $0x38] sm:$0xff] }
  0x38   :  { %2061 = vmatpush1.bf16.msra.mxu0 %v12474_v31  ;;  %2009 = vmatprep.subr.bf16.mxu1 %v12475_v36  ;;  %v299_v31 = vrot.slane %v230_v22, 1 }
  0x39   :  { %2062 = vmatprep.subr.bf16.mxu0 %v12477_v42  ;;  %v562_v36 = vmul.f32 %v13784_v26, %v135_v0  ;;  %v567_v37 = vmul.f32 %v13784_v26, %v84_v13  ;;  %2013 = vmatprep.mubr.bf16.mxu1 %v13790_v29  ;;  %v289_v38 = vsel %vm277_vm1, %v287_v25, %v288_v30  ;;  %v152_v0 = vld [vmem:[%s19020_s1] sm:$0x1f]  ;;  %v132_v13 = vsel %vm71_vm0, 0.0, %v72_v28 }
  0x3a   :  { %v300_v39 = vsel %vm277_vm1, %v288_v30, %v299_v31  ;;  %v572_v41 = vmul.f32 %v13784_v26, %v145_v14  ;;  %v351_v42 = vadd.f32 %v289_v38, %v180_v15  ;;  %v77_v15 = vrot.slane %v36_v55, 6 }
  0x3b   :  { %2010 = vmatpush1.bf16.msra.mxu1 %v12479_v53  ;;  %v356_v43 = vadd.f32 %v300_v39, %v185_v19  ;;  %v629_v47 = vrot.slane %v562_v36, 3  ;;  %v630_v50 = vrot.slane %v567_v37, 3  ;;  %v13819_v14 = vrot.slane %v152_v0, %v13626_v46 }
  0x3c   :  { %2063 = vmatpush1.bf16.msra.mxu0 %v12480_v2  ;;  %2011 = vmatprep.subr.bf16.mxu1 %v12481_v6  ;;  %v641_v53 = vrot.slane %v572_v41, 3  ;;  %v522_v2 = vadd.f32 %v460_v56, %v351_v42  ;;  %v142_v5 = vsel %vm71_vm0, %v77_v15, 0.0  ;;  %v13834_v31 = vrot.slane %v152_v0, %v13631_v48 }
  0x3d   :  { %2064 = vmatprep.subr.bf16.mxu0 %v12483_v11  ;;  %v527_v6 = vadd.f32 %v471_v58, %v356_v43  ;;  %v631_v7 = vsel %vm619_vm3, %v629_v47, %v630_v50  ;;  %v801_v11 = vrot.slane %v738_v59, 4  ;;  %v177_v25 = vmul.f32 %v13819_v14, %v132_v13 }
  0x3e   :  { %v642_v8 = vsel %vm619_vm3, %v630_v50, %v641_v53  ;;  %v693_v16 = vadd.f32 %v631_v7, %v522_v2  ;;  %v13837_v32 = vrot.slane %v152_v0, %v13633_v49  ;;  %v74_v36 = vrot.slane %v33_v18, 6 }
  0x3f   :  { %2012 = vmatpush1.bf16.msra.mxu1 %v12485_v57  ;;  %v698_v17 = vadd.f32 %v642_v8, %v527_v6  ;;  %v802_v19 = vsel %vm790_vm4, %v800_v9, %v801_v11  ;;  %v813_v20 = vsel %vm790_vm4, %v801_v11, %v812_v12  ;;  %v78_v57 = vsel %vm71_vm0, %v72_v28, %v77_v15 }
  0x40   :  { %2065 = vmatpush1.bf16.msra.mxu0 %v12486_v24  ;;  %2140 = vmatprep.subr.bf16.mxu1 %v12489_v33  ;;  %v864_v22 = vadd.f32 %v802_v19, %v693_v16  ;;  %v182_v30 = vmul.f32 %v13819_v14, %v78_v57  ;;  %v13840_v28 = vrot.slane %v152_v0, %v13638_v51  ;;  %v81_v37 = vrot.slane %v38_v21, 6 }
  0x41   :  { %v869_v24 = vadd.f32 %v813_v20, %v698_v17  ;;  %v13843_v33 = vrot.slane %v152_v0, %v13640_v52  ;;  %v13851_v38 = vrot.slane %v154_v34, %v13626_v46  ;;  %v217_v39 = vmul.f32 %v13834_v31, %v132_v13 }
  0x42   :  { %v222_v40 = vmul.f32 %v13834_v31, %v78_v57  ;;  %v227_v41 = vmul.f32 %v13834_v31, %v142_v5  ;;  %v388_v42 = vmul.f32 %v13837_v32, %v132_v13  ;;  %v393_v43 = vmul.f32 %v13837_v32, %v78_v57 }
  0x43   :  { %v13848_v35 = vpack.c.bf16 %v869_v24, %v864_v22  ;;  %v398_v44 = vmul.f32 %v13837_v32, %v142_v5  ;;  %v559_v45 = vmul.f32 %v13840_v28, %v132_v13  ;;  %v564_v47 = vmul.f32 %v13840_v28, %v78_v57 }
  0x44   :  { %v278_v50 = vrot.slane %v217_v39, 1  ;;  %v279_v53 = vrot.slane %v222_v40, 1  ;;  %v293_v54 = vrot.slane %v227_v41, 1  ;;  %v449_v55 = vrot.slane %v388_v42, 2 }
  0x45   :  { %2066 = vmatprep.mubr.bf16.mxu0 %v13848_v35  ;;  %v450_v56 = vrot.slane %v393_v43, 2  ;;  %v464_v58 = vrot.slane %v398_v44, 2  ;;  %v569_v59 = vmul.f32 %v13840_v28, %v142_v5  ;;  %v620_v60 = vrot.slane %v559_v45, 3 }
  0x46   :  { %v280_v2 = vsel %vm277_vm1, %v278_v50, %v279_v53  ;;  %v294_v6 = vsel %vm277_vm1, %v279_v53, %v293_v54  ;;  %v621_v7 = vrot.slane %v564_v47, 3  ;;  %v730_v8 = vmul.f32 %v13843_v33, %v132_v13 }
  0x47   :  { %v348_v0 = vadd.f32 %v280_v2, %v177_v25  ;;  %v353_v9 = vadd.f32 %v294_v6, %v182_v30  ;;  %v451_v11 = vsel %vm448_vm2, %v449_v55, %v450_v56  ;;  %v465_v12 = vsel %vm448_vm2, %v450_v56, %v464_v58  ;;  %v12487_v56 = vld [vmem:[%s19021_s2 + $0x8] ss:$20 sps:$4 sm:$0xff]  }
  0x48   :  { %v622_v15 = vsel %vm619_vm3, %v620_v60, %v621_v7  ;;  %v635_v16 = vrot.slane %v569_v59, 3  ;;  %v735_v17 = vmul.f32 %v13843_v33, %v78_v57  ;;  %v740_v18 = vmul.f32 %v13843_v33, %v142_v5  ;;  %v12492_v6 = vld [vmem:[%s19021_s2 + $0x34] ss:$20 sps:$4 sm:$0xff]  }
  0x49   :  { %v519_v19 = vadd.f32 %v451_v11, %v348_v0  ;;  %v524_v20 = vadd.f32 %v465_v12, %v353_v9  ;;  %v791_v21 = vrot.slane %v730_v8, 4  ;;  %v82_v22 = vsel %vm71_vm0, %v74_v36, %v81_v37 }
  0x4a   :  { %v636_v13 = vsel %vm619_vm3, %v621_v7, %v635_v16  ;;  %v792_v24 = vrot.slane %v735_v17, 4  ;;  %v806_v25 = vrot.slane %v740_v18, 4  ;;  %v134_v30 = vsel %vm71_vm0, 0.0, %v74_v36 }
  0x4b   :  { %v690_v39 = vadd.f32 %v622_v15, %v519_v19  ;;  %v695_v40 = vadd.f32 %v636_v13, %v524_v20  ;;  %v144_v41 = vsel %vm71_vm0, %v81_v37, 0.0  ;;  %v179_v42 = vmul.f32 %v13851_v38, %v134_v30  ;;  %v12490_v20 = vld [vmem:[%s19021_s2 + $0x30] ss:$20 sps:$4 sm:$0xff]  }
  0x4c   :  { %v793_v57 = vsel %vm790_vm4, %v791_v21, %v792_v24  ;;  %v807_v5 = vsel %vm790_vm4, %v792_v24, %v806_v25  ;;  %v184_v43 = vmul.f32 %v13851_v38, %v82_v22  ;;  %v13880_v44 = vrot.slane %v154_v34, %v13631_v48  ;;  %v44_v21 = vld [vmem:[%s19019_s0 + $0x68] sm:$0xff] }
  0x4d   :  { %v861_v45 = vadd.f32 %v793_v57, %v690_v39  ;;  %v866_v47 = vadd.f32 %v807_v5, %v695_v40  ;;  %v13883_v50 = vrot.slane %v154_v34, %v13633_v49  ;;  %v13886_v36 = vrot.slane %v154_v34, %v13638_v51  ;;  %v49_v40 = vld [vmem:[%s19019_s0 + $0x90] sm:$0xff] }
  0x4e   :  { %v219_v37 = vmul.f32 %v13880_v44, %v134_v30  ;;  %v224_v53 = vmul.f32 %v13880_v44, %v82_v22  ;;  %v229_v54 = vmul.f32 %v13880_v44, %v144_v41  ;;  %v13892_v55 = vrot.slane %v154_v34, %v13640_v52  ;;  %v12495_v57 = vld [vmem:[%s19021_s2 + $0x5c] ss:$20 sps:$4 sm:$0xff]  }
  0x4f   :  { %v13897_v58 = vpack.c.bf16 %v866_v47, %v861_v45  ;;  %v390_v59 = vmul.f32 %v13883_v50, %v134_v30  ;;  %v395_v60 = vmul.f32 %v13883_v50, %v82_v22  ;;  %v400_v2 = vmul.f32 %v13883_v50, %v144_v41 }
  0x50   :  { %v284_v7 = vrot.slane %v219_v37, 1  ;;  %v285_v8 = vrot.slane %v224_v53, 1  ;;  %v297_v34 = vrot.slane %v229_v54, 1  ;;  %v561_v0 = vmul.f32 %v13886_v36, %v134_v30 }
  0x51   :  { %2014 = vmatmul.mubr.bf16.vlgmr.msra.gmra.mrb[0].mxu1 %v13897_v58  ;;  %v455_v9 = vrot.slane %v390_v59, 2  ;;  %v456_v11 = vrot.slane %v395_v60, 2  ;;  %v468_v12 = vrot.slane %v400_v2, 2  ;;  %v566_v15 = vmul.f32 %v13886_v36, %v82_v22  ;;  %v13936_v59 = vld [vmem:[%s19019_s0 + $0x88] sm:$0xff] }
  0x52   :  { %v286_v16 = vsel %vm277_vm1, %v284_v7, %v285_v8  ;;  %v298_v17 = vsel %vm277_vm1, %v285_v8, %v297_v34  ;;  %v571_v18 = vmul.f32 %v13886_v36, %v144_v41  ;;  %v626_v19 = vrot.slane %v561_v0, 3  ;;  %2141 = vmatpush1.bf16.msra.mxu1 %v12487_v56 }
  0x53   :  { %v350_v13 = vadd.f32 %v286_v16, %v179_v42  ;;  %v355_v24 = vadd.f32 %v298_v17, %v184_v43  ;;  %v457_v25 = vsel %vm448_vm2, %v455_v9, %v456_v11  ;;  %v469_v39 = vsel %vm448_vm2, %v456_v11, %v468_v12  ;;  %2142 = vmatprep.subr.bf16.mxu1 %v12492_v6  ;;  %v13930_v43 = vld [vmem:[%s19019_s0 + $0x60] sm:$0xff]  ;;  %v12493_v6 = vld [vmem:[%s19021_s2 + $0x58] ss:$20 sps:$4 sm:$0xff]  }
  0x54   :  { %v627_v5 = vrot.slane %v566_v15, 3  ;;  %v639_v45 = vrot.slane %v571_v18, 3  ;;  %v732_v47 = vmul.f32 %v13892_v55, %v134_v30  ;;  %v737_v42 = vmul.f32 %v13892_v55, %v82_v22 }
  0x55   :  { %v521_v37 = vadd.f32 %v457_v25, %v350_v13  ;;  %v526_v53 = vadd.f32 %v469_v39, %v355_v24  ;;  %v742_v54 = vmul.f32 %v13892_v55, %v144_v41  ;;  %v90_v56 = vrot.slane %v44_v21, 6  ;;  %v12499_v41 = vld [vmem:[%s19021_s2 + $0x84] ss:$20 sps:$4 sm:$0xff]   ;;  %v12503_v21 = vld [vmem:[%s19021_s2 + $0xac] ss:$20 sps:$4 sm:$0xff]  }
  0x56   :  { %v628_v60 = vsel %vm619_vm3, %v626_v19, %v627_v5  ;;  %v640_v30 = vsel %vm619_vm3, %v627_v5, %v639_v45  ;;  %v797_v22 = vrot.slane %v732_v47, 4  ;;  %v798_v2 = vrot.slane %v737_v42, 4  ;;  %2143 = vmatpush1.bf16.msra.mxu1 %v12490_v20  ;;  %v12497_v20 = vld [vmem:[%s19021_s2 + $0x80] ss:$20 sps:$4 sm:$0xff]  }
  0x57   :  { %v692_v7 = vadd.f32 %v628_v60, %v521_v37  ;;  %v697_v8 = vadd.f32 %v640_v30, %v526_v53  ;;  %v810_v34 = vrot.slane %v742_v54, 4  ;;  %v98_v0 = vrot.slane %v49_v40, 6  ;;  %2144 = vmatprep.subr.bf16.mxu1 %v12495_v57 }
  0x58   :  { %v799_v9 = vsel %vm790_vm4, %v797_v22, %v798_v2  ;;  %v140_v11 = vsel %vm71_vm0, 0.0, %v90_v56  ;;  %v89_v12 = vrot.slane %v13930_v43, 6  ;;  %v96_v15 = vrot.slane %v13936_v59, 6 }
  0x59   :  { %v811_v16 = vsel %vm790_vm4, %v798_v2, %v810_v34  ;;  %v863_v17 = vadd.f32 %v799_v9, %v692_v7  ;;  %v99_v18 = vsel %vm71_vm0, %v90_v56, %v98_v0  ;;  %v150_v19 = vsel %vm71_vm0, %v98_v0, 0.0  ;;  %v12504_v9 = vld [vmem:[%s19021_s2 + $0xd0] ss:$20 sps:$4 sm:$0xff]  }
  0x5a   :  { %v868_v13 = vadd.f32 %v811_v16, %v697_v8  ;;  %v190_v24 = vmul.f32 %v13744_v1, %v140_v11  ;;  %v195_v25 = vmul.f32 %v13744_v1, %v99_v18  ;;  %v235_v39 = vmul.f32 %v13753_v10, %v140_v11  ;;  %2145 = vmatpush1.bf16.msra.mxu1 %v12493_v6 }
  0x5b   :  { %v240_v40 = vmul.f32 %v13753_v10, %v99_v18  ;;  %v245_v57 = vmul.f32 %v13753_v10, %v150_v19  ;;  %v406_v5 = vmul.f32 %v13778_v23, %v140_v11  ;;  %v411_v45 = vmul.f32 %v13778_v23, %v99_v18  ;;  %2146 = vmatprep.subr.bf16.mxu1 %v12499_v41  ;;  %v12501_v10 = vld [vmem:[%s19021_s2 + $0xa8] ss:$20 sps:$4 sm:$0xff]  }
  0x5c   :  { %v13966_v47 = vpack.c.bf16 %v868_v13, %v863_v17  ;;  %v312_v42 = vrot.slane %v235_v39, 1  ;;  %v416_v43 = vmul.f32 %v13778_v23, %v150_v19  ;;  %v577_v37 = vmul.f32 %v13784_v26, %v140_v11  ;;  %v12506_v23 = vld [vmem:[%s19021_s2 + $0xd4] ss:$20 sps:$4 sm:$0xff]  }
  0x5d   :  { %v313_v1 = vrot.slane %v240_v40, 1  ;;  %v324_v53 = vrot.slane %v245_v57, 1  ;;  %v483_v54 = vrot.slane %v406_v5, 2  ;;  %v484_v56 = vrot.slane %v411_v45, 2 }
  0x5e   :  { %2067 = vmatmul.mubr.bf16.vlgmr.msra.gmra.mrb[0].mxu0 %v13966_v47  ;;  %v495_v59 = vrot.slane %v416_v43, 2  ;;  %v582_v60 = vmul.f32 %v13784_v26, %v99_v18  ;;  %v587_v30 = vmul.f32 %v13784_v26, %v150_v19  ;;  %v654_v22 = vrot.slane %v577_v37, 3  ;;  %2147 = vmatpush1.bf16.msra.mxu1 %v12497_v20 }
  0x5f   :  { %v314_v2 = vsel %vm277_vm1, %v312_v42, %v313_v1  ;;  %v325_v6 = vsel %vm277_vm1, %v313_v1, %v324_v53  ;;  %v485_v41 = vsel %vm448_vm2, %v483_v54, %v484_v56  ;;  %v748_v7 = vmul.f32 %v13787_v27, %v140_v11  ;;  %2148 = vmatprep.subr.bf16.mxu1 %v12503_v21  ;;  %v12509_v11 = vld [vmem:[%s19021_s2 + $0xfc] ss:$20 sps:$4 sm:$0xff]   ;;  %v12512_v54 = vld [vmem:[%s19021_s2 + $0x124] ss:$20 sps:$4 sm:$0xff]  }
  0x60   :  { %v361_v8 = vadd.f32 %v314_v2, %v190_v24  ;;  %v366_v34 = vadd.f32 %v325_v6, %v195_v25  ;;  %v496_v0 = vsel %vm448_vm2, %v484_v56, %v495_v59  ;;  %v655_v26 = vrot.slane %v582_v60, 3 }
  0x61   :  { %v666_v16 = vrot.slane %v587_v30, 3  ;;  %v753_v17 = vmul.f32 %v13787_v27, %v99_v18  ;;  %v758_v20 = vmul.f32 %v13787_v27, %v150_v19  ;;  %v825_v13 = vrot.slane %v748_v7, 4  ;;  %v1083_v7 = vld [vmem:[%s19021_s2 + $0x500] sm:$0x11] }
  0x62   :  { %v532_v21 = vadd.f32 %v485_v41, %v361_v8  ;;  %v537_v24 = vadd.f32 %v496_v0, %v366_v34  ;;  %v656_v25 = vsel %vm619_vm3, %v654_v22, %v655_v26  ;;  %v97_v39 = vsel %vm71_vm0, %v89_v12, %v96_v15  ;;  %2149 = vmatpush1.bf16.msra.mxu1 %v12501_v10 }
  0x63   :  { %v667_v40 = vsel %vm619_vm3, %v655_v26, %v666_v16  ;;  %v826_v57 = vrot.slane %v753_v17, 4  ;;  %v837_v5 = vrot.slane %v758_v20, 4  ;;  %v139_v18 = vsel %vm71_vm0, 0.0, %v89_v12  ;;  %2150 = vmatprep.subr.bf16.mxu1 %v12506_v23  ;;  %v12507_v12 = vld [vmem:[%s19021_s2 + $0xf8] ss:$20 sps:$4 sm:$0xff]  }
  0x64   :  { %v703_v27 = vadd.f32 %v656_v25, %v532_v21  ;;  %v708_v19 = vadd.f32 %v667_v40, %v537_v24  ;;  %v149_v45 = vsel %vm71_vm0, %v96_v15, 0.0  ;;  %v189_v42 = vmul.f32 %v13851_v38, %v139_v18  ;;  %v12515_v26 = vld [vmem:[%s19021_s2 + $0x14c] ss:$20 sps:$4 sm:$0xff]  }
  0x65   :  { %v827_v43 = vsel %vm790_vm4, %v825_v13, %v826_v57  ;;  %v838_v37 = vsel %vm790_vm4, %v826_v57, %v837_v5  ;;  %v194_v1 = vmul.f32 %v13851_v38, %v97_v39  ;;  %v234_v53 = vmul.f32 %v13880_v44, %v139_v18 }
  0x66   :  { %v874_v15 = vadd.f32 %v827_v43, %v703_v27  ;;  %v879_v56 = vadd.f32 %v838_v37, %v708_v19  ;;  %v239_v10 = vmul.f32 %v13880_v44, %v97_v39  ;;  %v244_v59 = vmul.f32 %v13880_v44, %v149_v45  ;;  %2151 = vmatpush1.bf16.msra.mxu1 %v12504_v9  ;;  %v12510_v44 = vld [vmem:[%s19021_s2 + $0x120] ss:$20 sps:$4 sm:$0xff]  }
  0x67   :  { %v309_v60 = vrot.slane %v234_v53, 1  ;;  %v405_v38 = vmul.f32 %v13883_v50, %v139_v18  ;;  %v410_v30 = vmul.f32 %v13883_v50, %v97_v39  ;;  %v415_v22 = vmul.f32 %v13883_v50, %v149_v45  ;;  %2152 = vmatprep.subr.bf16.mxu1 %v12509_v11  ;;  %v35_v27 = vld [vmem:[%s19019_s0 + $0x20] sm:$0xff] }
  0x68   :  { %v14013_v23 = vpack.c.bf16 %v879_v56, %v874_v15  ;;  %v310_v2 = vrot.slane %v239_v10, 1  ;;  %v322_v6 = vrot.slane %v244_v59, 1  ;;  %v576_v41 = vmul.f32 %v13886_v36, %v139_v18 }
  0x69   :  { %v480_v8 = vrot.slane %v405_v38, 2  ;;  %v481_v34 = vrot.slane %v410_v30, 2  ;;  %v493_v0 = vrot.slane %v415_v22, 2  ;;  %v581_v50 = vmul.f32 %v13886_v36, %v97_v39 }
  0x6a   :  { %2076 = vmatprep.mubr.bf16.mxu0 %v14013_v23  ;;  %v311_v9 = vsel %vm277_vm1, %v309_v60, %v310_v2  ;;  %v323_v16 = vsel %vm277_vm1, %v310_v2, %v322_v6  ;;  %v586_v17 = vmul.f32 %v13886_v36, %v149_v45  ;;  %v651_v20 = vrot.slane %v576_v41, 3  ;;  %2153 = vmatpush1.bf16.msra.mxu1 %v12507_v12  ;;  %v40_v36 = vld [vmem:[%s19019_s0 + $0x48] sm:$0xff]  ;;  %v12516_v2 = vld [vmem:[%s19021_s2 + $0x170] ss:$20 sps:$4 sm:$0xff]   ;;  %v14066_v6 = vld [vmem:[%s19019_s0 + $0x58] sm:$0xff] }
  0x6b   :  { %v360_v13 = vadd.f32 %v311_v9, %v189_v42  ;;  %v365_v11 = vadd.f32 %v323_v16, %v194_v1  ;;  %v482_v21 = vsel %vm448_vm2, %v480_v8, %v481_v34  ;;  %v494_v24 = vsel %vm448_vm2, %v481_v34, %v493_v0  ;;  %2154 = vmatprep.subr.bf16.mxu1 %v12512_v54  ;;  %v156_v1 = vld [vmem:[%s19020_s1 + $0x20] sm:$0x1f] }
  0x6c   :  { %v652_v25 = vrot.slane %v581_v50, 3  ;;  %v664_v40 = vrot.slane %v586_v17, 3  ;;  %v747_v57 = vmul.f32 %v13892_v55, %v139_v18  ;;  %v752_v5 = vmul.f32 %v13892_v55, %v97_v39  ;;  %v12513_v39 = vld [vmem:[%s19021_s2 + $0x148] ss:$20 sps:$4 sm:$0xff]  }
  0x6d   :  { %v531_v19 = vadd.f32 %v482_v21, %v360_v13  ;;  %v536_v42 = vadd.f32 %v494_v24, %v365_v11  ;;  %v757_v43 = vmul.f32 %v13892_v55, %v149_v45  ;;  %v10659_v37 = vcombine.high %v1083_v7, %v1083_v7  ;;  %v12518_v18 = vld [vmem:[%s19021_s2 + $0x174] ss:$20 sps:$4 sm:$0xff]   ;;  %v12586_v55 = vld [vmem:[%s19021_s2 + $0x150] ss:$20 sps:$4 sm:$0xff]  }
  0x6e   :  { %v653_v53 = vsel %vm619_vm3, %v651_v20, %v652_v25  ;;  %v665_v12 = vsel %vm619_vm3, %v652_v25, %v664_v40  ;;  %v822_v54 = vrot.slane %v747_v57, 4  ;;  %v823_v15 = vrot.slane %v752_v5, 4  ;;  %2155 = vmatpush1.bf16.msra.mxu1 %v12510_v44  ;;  %v12521_v25 = vld [vmem:[%s19021_s2 + $0x19c] ss:$20 sps:$4 sm:$0xff]  }
  0x6f   :  { %v702_v45 = vadd.f32 %v653_v53, %v531_v19  ;;  %v707_v56 = vadd.f32 %v665_v12, %v536_v42  ;;  %v835_v10 = vrot.slane %v757_v43, 4  ;;  %10663 = vmatprep.subr.msk.bf16.mxu0 %vm1965_vm5, %v10659_v37  ;;  %v10658_v59 = vcombine.low %v1083_v7, %v1083_v7  ;;  %2156 = vmatprep.subr.bf16.mxu1 %v12515_v26  ;;  %v12519_v37 = vld [vmem:[%s19021_s2 + $0x198] ss:$20 sps:$4 sm:$0xff]  }
  0x70   :  { %v824_v60 = vsel %vm790_vm4, %v822_v54, %v823_v15  ;;  %v76_v38 = vrot.slane %v35_v27, 6  ;;  %v85_v30 = vrot.slane %v40_v36, 6  ;;  %v14058_v22 = vrot.slane %v156_v1, %v13626_v46  ;;  %v12524_v54 = vld [vmem:[%s19021_s2 + $0x1c4] ss:$20 sps:$4 sm:$0xff]  }
  0x71   :  { %v836_v41 = vsel %vm790_vm4, %v823_v15, %v835_v10  ;;  %v873_v7 = vadd.f32 %v824_v60, %v702_v45  ;;  %v1967_v44 = vsel %vm1965_vm5, %v10658_v59, 0  ;;  %v14071_v8 = vrot.slane %v156_v1, %v13631_v48  ;;  %v12522_v10 = vld [vmem:[%s19021_s2 + $0x1c0] ss:$20 sps:$4 sm:$0xff]  }
  0x72   :  { %v878_v34 = vadd.f32 %v836_v41, %v707_v56  ;;  %2088 = vmatpush1.bf16.msra.mxu0 %v1967_v44  ;;  %v86_v0 = vsel %vm71_vm0, %v76_v38, %v85_v30  ;;  %v136_v50 = vsel %vm71_vm0, 0.0, %v76_v38  ;;  %v146_v26 = vsel %vm71_vm0, %v85_v30, 0.0  ;;  %2157 = vmatpush1.bf16.msra.mxu1 %v12513_v39 }
  0x73   :  { %v181_v9 = vmul.f32 %v14058_v22, %v136_v50  ;;  %v186_v16 = vmul.f32 %v14058_v22, %v86_v0  ;;  %v221_v17 = vmul.f32 %v14071_v8, %v136_v50  ;;  %v226_v20 = vmul.f32 %v14071_v8, %v86_v0  ;;  %2158 = vmatprep.subr.bf16.mxu1 %v12518_v18 }
  0x74   :  { %v14080_v13 = vpack.c.bf16 %v878_v34, %v873_v7  ;;  %v231_v11 = vmul.f32 %v14071_v8, %v146_v26  ;;  %v14084_v21 = vrot.slane %v156_v1, %v13633_v49  ;;  %v14087_v24 = vrot.slane %v156_v1, %v13638_v51  ;;  %11879 = vmatprep.subr.bf16.mxu0 %v12586_v55  ;;  %v12527_v34 = vld [vmem:[%s19021_s2 + $0x1ec] ss:$20 sps:$4 sm:$0xff]  }
  0x75   :  { %v290_v40 = vrot.slane %v221_v17, 1  ;;  %v291_v57 = vrot.slane %v226_v20, 1  ;;  %v14093_v5 = vrot.slane %v156_v1, %v13640_v52  ;;  %v88_v27 = vrot.slane %v14066_v6, 6 }
  0x76   :  { %2077 = vmatmul.mubr.bf16.gmra.mrb[4].mxu0 %v14080_v13  ;;  %v301_v36 = vrot.slane %v231_v11, 1  ;;  %v392_v19 = vmul.f32 %v14084_v21, %v136_v50  ;;  %v397_v42 = vmul.f32 %v14084_v21, %v86_v0  ;;  %v402_v43 = vmul.f32 %v14084_v21, %v146_v26  ;;  %2159 = vmatpush1.bf16.msra.mxu1 %v12516_v2  ;;  %v47_v2 = vld [vmem:[%s19019_s0 + $0x80] sm:$0xff] }
  0x77   :  { %v19028_v39 = vmov 0   ;;  %v292_v1 = vsel %vm277_vm1, %v290_v40, %v291_v57  ;;  %v563_v18 = vmul.f32 %v14087_v24, %v136_v50  ;;  %v568_v53 = vmul.f32 %v14087_v24, %v86_v0  ;;  %2160 = vmatprep.subr.bf16.mxu1 %v12521_v25 }
  0x78   :  { %2119 = vmatprep.mubr.bf16.mxu0 %v19028_v39  ;;  %v573_v12 = vmul.f32 %v14087_v24, %v146_v26  ;;  %v302_v15 = vsel %vm277_vm1, %v291_v57, %v301_v36  ;;  %v352_v55 = vadd.f32 %v292_v1, %v181_v9  ;;  %v461_v45 = vrot.slane %v392_v19, 2 }
  0x79   :  { %v462_v56 = vrot.slane %v397_v42, 2  ;;  %v357_v59 = vadd.f32 %v302_v15, %v186_v16  ;;  %v472_v60 = vrot.slane %v402_v43, 2  ;;  %v632_v38 = vrot.slane %v563_v18, 3  ;;  %v12530_v18 = vld [vmem:[%s19021_s2 + $0x214] ss:$20 sps:$4 sm:$0xff]  }
  0x7a   :  { %v633_v30 = vrot.slane %v568_v53, 3  ;;  %v643_v41 = vrot.slane %v573_v12, 3  ;;  %v734_v7 = vmul.f32 %v14093_v5, %v136_v50  ;;  %v739_v44 = vmul.f32 %v14093_v5, %v86_v0  ;;  %2161 = vmatpush1.bf16.msra.mxu1 %v12519_v37 }
  0x7b   :  { %v463_v6 = vsel %vm448_vm2, %v461_v45, %v462_v56  ;;  %v473_v9 = vsel %vm448_vm2, %v462_v56, %v472_v60  ;;  %v744_v20 = vmul.f32 %v14093_v5, %v146_v26  ;;  %2162 = vmatprep.subr.bf16.mxu1 %v12524_v54  ;;  %v94_v36 = vrot.slane %v47_v2, 6  ;;  %v12525_v26 = vld [vmem:[%s19021_s2 + $0x1e8] ss:$20 sps:$4 sm:$0xff]  }
  0x7c   :  { %v523_v16 = vadd.f32 %v463_v6, %v352_v55  ;;  %v634_v17 = vsel %vm619_vm3, %v632_v38, %v633_v30  ;;  %v528_v11 = vadd.f32 %v473_v9, %v357_v59  ;;  %v644_v25 = vsel %vm619_vm3, %v633_v30, %v643_v41  ;;  %v12528_v59 = vld [vmem:[%s19021_s2 + $0x210] ss:$20 sps:$4 sm:$0xff]  }
  0x7d   :  { %v803_v40 = vrot.slane %v734_v7, 4  ;;  %v804_v50 = vrot.slane %v739_v44, 4  ;;  %v814_v0 = vrot.slane %v744_v20, 4  ;;  %v138_v19 = vsel %vm71_vm0, 0.0, %v88_v27  ;;  %v12533_v2 = vld [vmem:[%s19021_s2 + $0x23c] ss:$20 sps:$4 sm:$0xff]  }
  0x7e   :  { %v694_v57 = vadd.f32 %v634_v17, %v523_v16  ;;  %v699_v42 = vadd.f32 %v644_v25, %v528_v11  ;;  %2163 = vmatpush1.bf16.msra.mxu1 %v12522_v10  ;;  %v188_v37 = vmul.f32 %v13663_v61, %v138_v19  ;;  %v233_v1 = vmul.f32 %v13666_v62, %v138_v19  ;;  %v41_v44 = vld [vmem:[%s19019_s0 + $0x50] sm:$0xff] }
  0x7f   :  { %v805_v43 = vsel %vm790_vm4, %v803_v40, %v804_v50  ;;  %v815_v53 = vsel %vm790_vm4, %v804_v50, %v814_v0  ;;  %v95_v54 = vsel %vm71_vm0, %v88_v27, %v94_v36  ;;  %v148_v15 = vsel %vm71_vm0, %v94_v36, 0.0  ;;  %2164 = vmatprep.subr.bf16.mxu1 %v12527_v34  ;;  %v46_v50 = vld [vmem:[%s19019_s0 + $0x78] sm:$0xff] }
  0x80   :  { %v865_v12 = vadd.f32 %v805_v43, %v694_v57  ;;  %v870_v55 = vadd.f32 %v815_v53, %v699_v42  ;;  %v193_v45 = vmul.f32 %v13663_v61, %v95_v54  ;;  %v238_v56 = vmul.f32 %v13666_v62, %v95_v54  ;;  %v12588_v61 = vld [vmem:[%s19021_s2 + $0x10] ss:$20 sps:$4 sm:$0xff]   ;;  %v12531_v57 = vld [vmem:[%s19021_s2 + $0x238] ss:$20 sps:$4 sm:$0xff]  }
  0x81   :  { %v243_v10 = vmul.f32 %v13666_v62, %v148_v15  ;;  %v306_v60 = vrot.slane %v233_v1, 1  ;;  %v404_v38 = vmul.f32 %v13669_v63, %v138_v19  ;;  %v409_v30 = vmul.f32 %v13669_v63, %v95_v54  ;;  %v12536_v1 = vld [vmem:[%s19021_s2 + $0x264] ss:$20 sps:$4 sm:$0xff]  }
  0x82   :  { %v414_v27 = vmul.f32 %v13669_v63, %v148_v15  ;;  %v14156_v62 = vpack.c.bf16 %v870_v55, %v865_v12  ;;  %v307_v6 = vrot.slane %v238_v56, 1  ;;  %v575_v7 = vmul.f32 %v13679_v3, %v138_v19  ;;  %2165 = vmatpush1.bf16.msra.mxu1 %v12525_v26  ;;  %v12589_v63 = vld [vmem:[%s19021_s2 + $0x178] ss:$20 sps:$4 sm:$0xff]  }
  0x83   :  { %v320_v41 = vrot.slane %v243_v10, 1  ;;  %v477_v34 = vrot.slane %v404_v38, 2  ;;  %v478_v9 = vrot.slane %v409_v30, 2  ;;  %v580_v17 = vmul.f32 %v13679_v3, %v95_v54  ;;  %2166 = vmatprep.subr.bf16.mxu1 %v12530_v18  ;;  %v14193_v12 = vld [vmem:[%s19019_s0 + $0x98] sm:$0xff] }
  0x84   :  { %v491_v16 = vrot.slane %v414_v27, 2  ;;  %10664 = vmatmul.mubr.msk.bf16.vlgmr.msra.gmra.mrb[0].mxu0 %vm1958_vm6, %v14156_v62  ;;  %v308_v20 = vsel %vm277_vm1, %v306_v60, %v307_v6  ;;  %v585_v25 = vmul.f32 %v13679_v3, %v148_v15  ;;  %v648_v40 = vrot.slane %v575_v7, 3  ;;  %v14183_v3 = vld [vmem:[%s19019_s0 + $0x70] sm:$0xff]  ;;  %v12590_v55 = vld [vmem:[%s19021_s2 + $0x38] ss:$20 sps:$4 sm:$0xff]  }
  0x85   :  { %v321_v11 = vsel %vm277_vm1, %v307_v6, %v320_v41  ;;  %v359_v0 = vadd.f32 %v308_v20, %v188_v37  ;;  %v479_v42 = vsel %vm448_vm2, %v477_v34, %v478_v9  ;;  %2129 = vmatprep.mubr.bf16.mxu0 %v19028_v39  ;;  %v649_v26 = vrot.slane %v580_v17, 3  ;;  %11880 = vmatpush3.bf16.msra.mxu0 %v12588_v61  ;;  %v12534_v27 = vld [vmem:[%s19021_s2 + $0x260] ss:$20 sps:$4 sm:$0xff]  }
  0x86   :  { %v364_v36 = vadd.f32 %v321_v11, %v193_v45  ;;  %v492_v43 = vsel %vm448_vm2, %v478_v9, %v491_v16  ;;  %v662_v18 = vrot.slane %v585_v25, 3  ;;  %v746_v37 = vmul.f32 %v13682_v4, %v138_v19  ;;  %2167 = vmatpush1.bf16.msra.mxu1 %v12528_v59  ;;  %11881 = vmatprep.subr.bf16.mxu0 %v12589_v63  ;;  %v12591_v19 = vld [vmem:[%s19021_s2 + $0x1a0] ss:$20 sps:$4 sm:$0xff]   ;;  %v12593_v9 = vld [vmem:[%s19021_s2 + $0x1c8] ss:$20 sps:$4 sm:$0xff]  }
  0x87   :  { %v751_v53 = vmul.f32 %v13682_v4, %v95_v54  ;;  %v530_v45 = vadd.f32 %v479_v42, %v359_v0  ;;  %v756_v10 = vmul.f32 %v13682_v4, %v148_v15  ;;  %v87_v60 = vrot.slane %v41_v44, 6  ;;  %2168 = vmatprep.subr.bf16.mxu1 %v12533_v2  ;;  %v12539_v2 = vld [vmem:[%s19021_s2 + $0x28c] ss:$20 sps:$4 sm:$0xff]  }
  0x88   :  { %v535_v56 = vadd.f32 %v492_v43, %v364_v36  ;;  %v650_v54 = vsel %vm619_vm3, %v648_v40, %v649_v26  ;;  %v663_v59 = vsel %vm619_vm3, %v649_v26, %v662_v18  ;;  %v819_v38 = vrot.slane %v746_v37, 4  ;;  %v12592_v41 = vld [vmem:[%s19021_s2 + $0x60] ss:$20 sps:$4 sm:$0xff]  }
  0x89   :  { %v820_v30 = vrot.slane %v751_v53, 4  ;;  %v701_v61 = vadd.f32 %v650_v54, %v530_v45  ;;  %v833_v4 = vrot.slane %v756_v10, 4  ;;  %v92_v15 = vrot.slane %v46_v50, 6  ;;  %11882 = vmatpush3.bf16.msra.mxu0 %v12590_v55 }
  0x8a   :  { %v706_v6 = vadd.f32 %v663_v59, %v535_v56  ;;  %v137_v44 = vsel %vm71_vm0, 0.0, %v87_v60  ;;  %v91_v63 = vrot.slane %v14183_v3, 6  ;;  %v100_v34 = vrot.slane %v14193_v12, 6  ;;  %2169 = vmatpush1.bf16.msra.mxu1 %v12531_v57  ;;  %11883 = vmatprep.subr.bf16.mxu0 %v12591_v19  ;;  %v12594_v3 = vld [vmem:[%s19021_s2 + $0x88] ss:$20 sps:$4 sm:$0xff]  }
  0x8b   :  { %v821_v7 = vsel %vm790_vm4, %v819_v38, %v820_v30  ;;  %v834_v16 = vsel %vm790_vm4, %v820_v30, %v833_v4  ;;  %v93_v20 = vsel %vm71_vm0, %v87_v60, %v92_v15  ;;  %v147_v11 = vsel %vm71_vm0, %v92_v15, 0.0  ;;  %2170 = vmatprep.subr.bf16.mxu1 %v12536_v1  ;;  %v12598_v19 = vld [vmem:[%s19021_s2 + $0xb0] ss:$20 sps:$4 sm:$0xff]  }
  0x8c   :  { %v872_v17 = vadd.f32 %v821_v7, %v701_v61  ;;  %v877_v25 = vadd.f32 %v834_v16, %v706_v6  ;;  %v187_v40 = vmul.f32 %v13819_v14, %v137_v44  ;;  %v192_v50 = vmul.f32 %v13819_v14, %v93_v20 }
  0x8d   :  { %v232_v57 = vmul.f32 %v13834_v31, %v137_v44  ;;  %v237_v0 = vmul.f32 %v13834_v31, %v93_v20  ;;  %v242_v36 = vmul.f32 %v13834_v31, %v147_v11  ;;  %v403_v42 = vmul.f32 %v13837_v32, %v137_v44  ;;  %11884 = vmatpush3.bf16.msra.mxu0 %v12592_v41  ;;  %v12596_v31 = vld [vmem:[%s19021_s2 + $0x1f0] ss:$20 sps:$4 sm:$0xff]  }
  0x8e   :  { %v408_v43 = vmul.f32 %v13837_v32, %v93_v20  ;;  %v14233_v1 = vpack.c.bf16 %v877_v25, %v872_v17  ;;  %v413_v18 = vmul.f32 %v13837_v32, %v147_v11  ;;  %v574_v14 = vmul.f32 %v13840_v28, %v137_v44  ;;  %2171 = vmatpush1.bf16.msra.mxu1 %v12534_v27  ;;  %v12600_v27 = vld [vmem:[%s19021_s2 + $0x218] ss:$20 sps:$4 sm:$0xff]  }
  0x8f   :  { %v303_v26 = vrot.slane %v232_v57, 1  ;;  %v304_v37 = vrot.slane %v237_v0, 1  ;;  %v318_v53 = vrot.slane %v242_v36, 1  ;;  %v474_v55 = vrot.slane %v403_v42, 2  ;;  %2193 = vmatprep.subr.bf16.mxu1 %v12539_v2  ;;  %11885 = vmatprep.subr.bf16.mxu0 %v12593_v9  ;;  %v12602_v25 = vld [vmem:[%s19021_s2 + $0xd8] ss:$20 sps:$4 sm:$0xff]  }
  0x90   :  { %v475_v45 = vrot.slane %v408_v43, 2  ;;  %2023 = vmatprep.mubr.bf16.mxu1 %v14233_v1  ;;  %v489_v56 = vrot.slane %v413_v18, 2  ;;  %v579_v10 = vmul.f32 %v13840_v28, %v93_v20  ;;  %v584_v32 = vmul.f32 %v13840_v28, %v147_v11 }
  0x91   :  { %v645_v60 = vrot.slane %v574_v14, 3  ;;  %v305_v54 = vsel %vm277_vm1, %v303_v26, %v304_v37  ;;  %v319_v59 = vsel %vm277_vm1, %v304_v37, %v318_v53  ;;  %v745_v30 = vmul.f32 %v13843_v33, %v137_v44  ;;  %11886 = vmatpush3.bf16.msra.mxu0 %v12594_v3 }
  0x92   :  { %v476_v38 = vsel %vm448_vm2, %v474_v55, %v475_v45  ;;  %v358_v61 = vadd.f32 %v305_v54, %v187_v40  ;;  %v363_v6 = vadd.f32 %v319_v59, %v192_v50  ;;  %v490_v28 = vsel %vm448_vm2, %v475_v45, %v489_v56  ;;  %11887 = vmatprep.subr.bf16.mxu0 %v12596_v31  ;;  %v12608_v45 = vld [vmem:[%s19021_s2 + $0x268] ss:$20 sps:$4 sm:$0xff]  }
  0x93   :  { %v646_v4 = vrot.slane %v579_v10, 3  ;;  %v660_v15 = vrot.slane %v584_v32, 3  ;;  %v750_v2 = vmul.f32 %v13843_v33, %v93_v20  ;;  %v755_v41 = vmul.f32 %v13843_v33, %v147_v11  ;;  %v12604_v11 = vld [vmem:[%s19021_s2 + $0x240] ss:$20 sps:$4 sm:$0xff]  }
  0x94   :  { %v816_v7 = vrot.slane %v745_v30, 4  ;;  %v529_v9 = vadd.f32 %v476_v38, %v358_v61  ;;  %v534_v16 = vadd.f32 %v490_v28, %v363_v6  ;;  %v101_v17 = vsel %vm71_vm0, %v91_v63, %v100_v34 }
  0x95   :  { %v647_v44 = vsel %vm619_vm3, %v645_v60, %v646_v4  ;;  %v661_v40 = vsel %vm619_vm3, %v646_v4, %v660_v15  ;;  %v817_v50 = vrot.slane %v750_v2, 4  ;;  %v831_v20 = vrot.slane %v755_v41, 4  ;;  %11888 = vmatpush3.bf16.msra.mxu0 %v12598_v19  ;;  %v12610_v15 = vld [vmem:[%s19021_s2 + $0x128] ss:$20 sps:$4 sm:$0xff]  }
  0x96   :  { %v141_v33 = vsel %vm71_vm0, 0.0, %v91_v63  ;;  %v700_v57 = vadd.f32 %v647_v44, %v529_v9  ;;  %v705_v0 = vadd.f32 %v661_v40, %v534_v16  ;;  %v151_v36 = vsel %vm71_vm0, %v100_v34, 0.0  ;;  %11889 = vmatprep.subr.bf16.mxu0 %v12600_v27  ;;  %v12606_v34 = vld [vmem:[%s19021_s2 + $0x100] ss:$20 sps:$4 sm:$0xff]  }
  0x97   :  { %v191_v42 = vmul.f32 %v14058_v22, %v141_v33  ;;  %v818_v43 = vsel %vm790_vm4, %v816_v7, %v817_v50  ;;  %v832_v3 = vsel %vm790_vm4, %v817_v50, %v831_v20  ;;  %v196_v26 = vmul.f32 %v14058_v22, %v101_v17 }
  0x98   :  { %v236_v63 = vmul.f32 %v14071_v8, %v141_v33  ;;  %v871_v18 = vadd.f32 %v818_v43, %v700_v57  ;;  %v876_v14 = vadd.f32 %v832_v3, %v705_v0  ;;  %v241_v31 = vmul.f32 %v14071_v8, %v101_v17 }
  0x99   :  { %v246_v12 = vmul.f32 %v14071_v8, %v151_v36  ;;  %v407_v53 = vmul.f32 %v14084_v21, %v141_v33  ;;  %v412_v55 = vmul.f32 %v14084_v21, %v101_v17  ;;  %v417_v22 = vmul.f32 %v14084_v21, %v151_v36  ;;  %11890 = vmatpush3.bf16.msra.mxu0 %v12602_v25 }
  0x9a   :  { %v315_v37 = vrot.slane %v236_v63, 1  ;;  %v14287_v56 = vpack.c.bf16 %v876_v14, %v871_v18  ;;  %v316_v10 = vrot.slane %v241_v31, 1  ;;  %v578_v8 = vmul.f32 %v14087_v24, %v141_v33  ;;  %11891 = vmatprep.subr.bf16.mxu0 %v12604_v11  ;;  %v12545_v18 = vld [vmem:[%s19021_s2 + $0x2dc] ss:$20 sps:$4 sm:$0xff]   ;;  %v12543_v14 = vld [vmem:[%s19021_s2 + $0x2d8] ss:$20 sps:$4 sm:$0xff]  }
  0x9b   :  { %v326_v32 = vrot.slane %v246_v12, 1  ;;  %v486_v60 = vrot.slane %v407_v53, 2  ;;  %v487_v19 = vrot.slane %v412_v55, 2  ;;  %v497_v54 = vrot.slane %v417_v22, 2  ;;  %v12548_v31 = vld [vmem:[%s19021_s2 + $0x304] ss:$20 sps:$4 sm:$0xff]  }
  0x9c   :  { %v583_v59 = vmul.f32 %v14087_v24, %v101_v17  ;;  %2024 = vmatmul.mubr.bf16.gmra.mrb[4].mxu1 %v14287_v56  ;;  %v317_v21 = vsel %vm277_vm1, %v315_v37, %v316_v10  ;;  %v588_v30 = vmul.f32 %v14087_v24, %v151_v36  ;;  %v657_v27 = vrot.slane %v578_v8, 3  ;;  %v12614_v24 = vld [vmem:[%s19021_s2 + $0x510] ss:$0 sps:$4 sm:$0x11]   ;;  %v12546_v12 = vld [vmem:[%s19021_s2 + $0x300] ss:$20 sps:$4 sm:$0xff]  }
  0x9d   :  { %v327_v38 = vsel %vm277_vm1, %v316_v10, %v326_v32  ;;  %v362_v61 = vadd.f32 %v317_v21, %v191_v42  ;;  %v488_v28 = vsel %vm448_vm2, %v486_v60, %v487_v19  ;;  %v498_v4 = vsel %vm448_vm2, %v487_v19, %v497_v54  ;;  %2172 = vmatprep.mubr.bf16.mxu1 %v13790_v29  ;;  %v12542_v42 = vld [vmem:[%s19021_s2 + $0x2b4] ss:$20 sps:$4 sm:$0xff]   ;;  %v12552_v55 = vld [vmem:[%s19021_s2 + $0x350] ss:$20 sps:$4 sm:$0xff]   ;;  %v12555_v22 = vld [vmem:[%s19021_s2 + $0x378] ss:$20 sps:$4 sm:$0xff]  }
  0x9e   :  { %v367_v6 = vadd.f32 %v327_v38, %v196_v26  ;;  %v658_v2 = vrot.slane %v583_v59, 3  ;;  %v668_v41 = vrot.slane %v588_v30, 3  ;;  %v749_v7 = vmul.f32 %v14093_v5, %v141_v33  ;;  %11892 = vmatpush3.bf16.msra.mxu0 %v12606_v34  ;;  %v12540_v26 = vld [vmem:[%s19021_s2 + $0x2b0] ss:$20 sps:$4 sm:$0xff]   ;;  %v12551_v34 = vld [vmem:[%s19021_s2 + $0x32c] ss:$20 sps:$4 sm:$0xff]  }
  0x9f   :  { %v754_v9 = vmul.f32 %v14093_v5, %v101_v17  ;;  %v533_v16 = vadd.f32 %v488_v28, %v362_v61  ;;  %v759_v25 = vmul.f32 %v14093_v5, %v151_v36  ;;  %11893 = vmatprep.subr.bf16.mxu0 %v12608_v45  ;;  %v12537_v17 = vld [vmem:[%s19021_s2 + $0x288] ss:$20 sps:$4 sm:$0xff]   ;;  %v1979_v37 = vsel %vm1965_vm5, %v12614_v24, 0  ;;  %v12560_v45 = vld [vmem:[%s19021_s2 + $0x3a4] ss:$20 sps:$4 sm:$0xff]  }
  0xa0   :  { %v538_v44 = vadd.f32 %v498_v4, %v367_v6  ;;  %v659_v40 = vsel %vm619_vm3, %v657_v27, %v658_v2  ;;  %v669_v50 = vsel %vm619_vm3, %v658_v2, %v668_v41  ;;  %v828_v20 = vrot.slane %v749_v7, 4  ;;  %v12554_v53 = vld [vmem:[%s19021_s2 + $0x354] ss:$20 sps:$4 sm:$0xff]   ;;  %v12563_v10 = vld [vmem:[%s19021_s2 + $0x3cc] ss:$20 sps:$4 sm:$0xff]  }
  0xa1   :  { %v829_v11 = vrot.slane %v754_v9, 4  ;;  %v704_v57 = vadd.f32 %v659_v40, %v533_v16  ;;  %v839_v0 = vrot.slane %v759_v25, 4  ;;  %v12561_v32 = vld [vmem:[%s19021_s2 + $0x3c8] ss:$20 sps:$4 sm:$0xff]   ;;  %v12564_v8 = vld [vmem:[%s19021_s2 + $0x3f0] ss:$20 sps:$4 sm:$0xff]  }
  0xa2   :  { %v709_v33 = vadd.f32 %v669_v50, %v538_v44  ;;  %11894 = vmatpush3.bf16.msra.mxu0 %v12610_v15  ;;  %v12569_v60 = vld [vmem:[%s19021_s2 + $0x41c] ss:$20 sps:$4 sm:$0xff]   ;;  %v12567_v19 = vld [vmem:[%s19021_s2 + $0x418] ss:$20 sps:$4 sm:$0xff]   ;;  %v12570_v59 = vld [vmem:[%s19021_s2 + $0x440] ss:$20 sps:$4 sm:$0xff]  }
  0xa3   :  { %v830_v5 = vsel %vm790_vm4, %v828_v20, %v829_v11  ;;  %v840_v36 = vsel %vm790_vm4, %v829_v11, %v839_v0  ;;  %12383 = vmatprep.subr.msk.bf16.mxu0 %vm1965_vm5, %v12614_v24  ;;  %v12572_v54 = vld [vmem:[%s19021_s2 + $0x444] ss:$20 sps:$4 sm:$0xff]   ;;  %v12575_v21 = vld [vmem:[%s19021_s2 + $0x46c] ss:$20 sps:$4 sm:$0xff]   ;;  %v12573_v38 = vld [vmem:[%s19021_s2 + $0x468] ss:$20 sps:$4 sm:$0xff]  }
  0xa4   :  { %v875_v43 = vadd.f32 %v830_v5, %v704_v57  ;;  %v880_v3 = vadd.f32 %v840_v36, %v709_v33  ;;  %2173 = vmatmul.mubr.bf16.vlgmr.msra.gmra.mrb[8].mxu1 %v13897_v58  ;;  %v12578_v30 = vld [vmem:[%s19021_s2 + $0x494] ss:$20 sps:$4 sm:$0xff]   ;;  %v12576_v27 = vld [vmem:[%s19021_s2 + $0x490] ss:$20 sps:$4 sm:$0xff]   ;;  %v12579_v6 = vld [vmem:[%s19021_s2 + $0x4b8] ss:$20 sps:$4 sm:$0xff]  }
  0xa5   :  { %2194 = vmatpush1.bf16.msra.mxu1 %v12537_v17  ;;  %2182 = vmatprep.mubr.bf16.mxu1 %v14233_v1  ;;  %v12581_v61 = vld [vmem:[%s19021_s2 + $0x4bc] ss:$20 sps:$4 sm:$0xff]   ;;  %v12584_v28 = vld [vmem:[%s19021_s2 + $0x4e4] ss:$20 sps:$4 sm:$0xff]   ;;  %v1084_v4 = vld [vmem:[%s19021_s2 + $0x508] sm:$0x11] }
  0xa6   :  { %v14323_v63 = vpack.c.bf16 %v880_v3, %v875_v43  ;;  %2195 = vmatprep.subr.bf16.mxu1 %v12542_v42  ;;  %v12582_v15 = vld [vmem:[%s19021_s2 + $0x4e0] ss:$20 sps:$4 sm:$0xff]   ;;  %v10661_v2 = vcombine.high %v1084_v4, %v1084_v4  ;;  %v10660_v41 = vcombine.low %v1084_v4, %v1084_v4  ;;  %v12595_v7 = vld [vmem:[%s19021_s2 + $0x3d0] ss:$20 sps:$4 sm:$0xff]   ;;  %v12599_v16 = vld [vmem:[%s19021_s2 + $0x3f8] ss:$20 sps:$4 sm:$0xff]  }
  0xa7   :  { %v12597_v24 = vld [vmem:[%s19021_s2 + $0x290] ss:$20 sps:$4 sm:$0xff]   ;;  %v12601_v44 = vld [vmem:[%s19021_s2 + $0x2b8] ss:$20 sps:$4 sm:$0xff]   ;;  %v12603_v25 = vld [vmem:[%s19021_s2 + $0x420] ss:$20 sps:$4 sm:$0xff]  }
  0xa8   :  { %10665 = vmatmul.mubr.msk.bf16.gmra.mrb[4].mxu0 %vm1958_vm6, %v14323_v63  ;;  %v1973_v9 = vsel %vm1965_vm5, %v10660_v41, 0  ;;  %v12605_v40 = vld [vmem:[%s19021_s2 + $0x2e0] ss:$20 sps:$4 sm:$0xff]   ;;  %v12607_v50 = vld [vmem:[%s19021_s2 + $0x448] ss:$20 sps:$4 sm:$0xff]  }
  0xa9   :  { %2196 = vmatpush1.bf16.msra.mxu1 %v12540_v26  ;;  %2331 = vmatprep.mubr.bf16.mxu0 %v13790_v29  ;;  %v12549_v29 = vld [vmem:[%s19021_s2 + $0x328] ss:$20 sps:$4 sm:$0xff]   ;;  %v12611_v20 = vld [vmem:[%s19021_s2 + $0x470] ss:$20 sps:$4 sm:$0xff]   ;;  %v12613_v57 = vld [vmem:[%s19021_s2 + $0x498] ss:$20 sps:$4 sm:$0xff]  }
  0xaa   :  { %2197 = vmatprep.subr.bf16.mxu1 %v12545_v18  ;;  %v12612_v11 = vld [vmem:[%s19021_s2 + $0x330] ss:$20 sps:$4 sm:$0xff]   ;;  %v12615_v33 = vld [vmem:[%s19021_s2 + $0x358] ss:$20 sps:$4 sm:$0xff]   ;;  %v12616_v0 = vld [vmem:[%s19021_s2 + $0x4c0] ss:$20 sps:$4 sm:$0xff]  }
  0xab   :  { %v12618_v17 = vld [vmem:[%s19021_s2 + $0x4e8] ss:$20 sps:$4 sm:$0xff]   ;;  %v12622_v5 = vld [vmem:[%s19021_s2 + $0x518] ss:$20 sps:$4 sm:$0xff]   ;;  %v12625_v43 = vld [vmem:[%s19021_s2 + $0x540] ss:$20 sps:$4 sm:$0xff]  }
  0xac   :  { %2183 = vmatmul.mubr.bf16.gmra.mrb[12].mxu1 %v14287_v56  ;;  %v12619_v42 = vld [vmem:[%s19021_s2 + $0x3a8] ss:$20 sps:$4 sm:$0xff]   ;;  %v12631_v18 = vld [vmem:[%s19021_s2 + $0x590] ss:$20 sps:$4 sm:$0xff]   ;;  %v12670_v4 = vld [vmem:[%s19021_s2 + $0x798] ss:$20 sps:$4 sm:$0xff]  }
  0xad   :  { %2198 = vmatpush1.bf16.msra.mxu1 %v12543_v14  ;;  %2225 = vmatprep.mubr.bf16.mxu1 %v13848_v35  ;;  %v12620_v36 = vld [vmem:[%s19021_s2 + $0x514] ss:$20 sps:$4 sm:$0xff]   ;;  %v12623_v3 = vld [vmem:[%s19021_s2 + $0x53c] ss:$20 sps:$4 sm:$0xff]  }
  0xae   :  { %2199 = vmatprep.subr.bf16.mxu1 %v12548_v31  ;;  %v12628_v26 = vld [vmem:[%s19021_s2 + $0x568] ss:$20 sps:$4 sm:$0xff]   ;;  %v12637_v31 = vld [vmem:[%s19021_s2 + $0x5e0] ss:$20 sps:$4 sm:$0xff]  }
  0xaf   :  { %v12632_v14 = vld [vmem:[%s19021_s2 + $0x5b4] ss:$20 sps:$4 sm:$0xff]  }
  0xb0   :  { %2332 = vmatmul.mubr.bf16.vlgmr.msra.gmra.mrb[8].mxu0 %v13897_v58  ;;  %v12557_v58 = vld [vmem:[%s19021_s2 + $0x37c] ss:$20 sps:$4 sm:$0xff]   ;;  %v10671_v41 = vld [vmem:[%s19020_s1 + $0x28] sm:$0x1f] }
  0xb1   :  { %2200 = vmatpush1.bf16.msra.mxu1 %v12546_v12  ;;  %12144 = vmatpush3.bf16.msra.mxu0 %v1979_v37 }
  0xb2   :  { %2201 = vmatprep.subr.bf16.mxu1 %v12551_v34  ;;  %2339 = vmatprep.mubr.bf16.mxu0 %v14233_v1  ;;  %v12558_v1 = vld [vmem:[%s19021_s2 + $0x3a0] ss:$20 sps:$4 sm:$0xff]  }
  0xb5   :  { %2202 = vmatpush1.bf16.msra.mxu1 %v12549_v29  ;;  %v12640_v29 = vld [vmem:[%s19021_s2 + $0x608] ss:$20 sps:$4 sm:$0xff]  }
  0xb6   :  { %2203 = vmatprep.subr.bf16.mxu1 %v12554_v53 }
  0xb8   :  { %2340 = vmatmul.mubr.bf16.gmra.mrb[12].mxu0 %v14287_v56  ;;  %v12566_v56 = vld [vmem:[%s19021_s2 + $0x3f4] ss:$20 sps:$4 sm:$0xff]  }
  0xb9   :  { %2204 = vmatpush1.bf16.msra.mxu1 %v12552_v55  ;;  %12145 = vmatprep.mubr.msk.bf16.mxu0 %vm1958_vm6, %v14156_v62  ;;  %v12638_v55 = vld [vmem:[%s19021_s2 + $0x604] ss:$20 sps:$4 sm:$0xff]  }
  0xba   :  { %2205 = vmatprep.subr.bf16.mxu1 %v12557_v58  ;;  %v12643_v58 = vld [vmem:[%s19021_s2 + $0x630] ss:$20 sps:$4 sm:$0xff]  }
  0xbd   :  { %2206 = vmatpush1.bf16.msra.mxu1 %v12555_v22  ;;  %v12641_v22 = vld [vmem:[%s19021_s2 + $0x62c] ss:$20 sps:$4 sm:$0xff]  }
  0xbe   :  { %2207 = vmatprep.subr.bf16.mxu1 %v12560_v45  ;;  %v12646_v45 = vld [vmem:[%s19021_s2 + $0x658] ss:$20 sps:$4 sm:$0xff]  }
  0xc0   :  { %12146 = vmatmul.mubr.msk.bf16.vlgmr.msra.gmra.mrb[16].mxu0 %vm1958_vm6, %v14323_v63 }
  0xc1   :  { %2208 = vmatpush1.bf16.msra.mxu1 %v12558_v1  ;;  %4530 = vmatprep.mubr.bf16.mxu0 %v19028_v39  ;;  %v12644_v1 = vld [vmem:[%s19021_s2 + $0x654] ss:$20 sps:$4 sm:$0xff]  }
  0xc2   :  { %2209 = vmatprep.subr.bf16.mxu1 %v12563_v10  ;;  %v12649_v10 = vld [vmem:[%s19021_s2 + $0x680] ss:$20 sps:$4 sm:$0xff]  }
  0xc5   :  { %2210 = vmatpush1.bf16.msra.mxu1 %v12561_v32  ;;  %v12647_v32 = vld [vmem:[%s19021_s2 + $0x67c] ss:$20 sps:$4 sm:$0xff]  }
  0xc6   :  { %2211 = vmatprep.subr.bf16.mxu1 %v12566_v56  ;;  %v12652_v56 = vld [vmem:[%s19021_s2 + $0x6a8] ss:$20 sps:$4 sm:$0xff]  }
  0xc9   :  { %2212 = vmatpush1.bf16.msra.mxu1 %v12564_v8  ;;  %v12650_v8 = vld [vmem:[%s19021_s2 + $0x6a4] ss:$20 sps:$4 sm:$0xff]  }
  0xca   :  { %2213 = vmatprep.subr.bf16.mxu1 %v12569_v60  ;;  %v12655_v60 = vld [vmem:[%s19021_s2 + $0x6d0] ss:$20 sps:$4 sm:$0xff]  }
  0xcd   :  { %2214 = vmatpush1.bf16.msra.mxu1 %v12567_v19  ;;  %v12653_v19 = vld [vmem:[%s19021_s2 + $0x6cc] ss:$20 sps:$4 sm:$0xff]  }
  0xce   :  { %2215 = vmatprep.subr.bf16.mxu1 %v12572_v54  ;;  %v12658_v54 = vld [vmem:[%s19021_s2 + $0x6f8] ss:$20 sps:$4 sm:$0xff]  }
  0xd1   :  { %2216 = vmatpush1.bf16.msra.mxu1 %v12570_v59  ;;  %v12656_v59 = vld [vmem:[%s19021_s2 + $0x6f4] ss:$20 sps:$4 sm:$0xff]  }
  0xd2   :  { %2217 = vmatprep.subr.bf16.mxu1 %v12575_v21  ;;  %v12661_v21 = vld [vmem:[%s19021_s2 + $0x720] ss:$20 sps:$4 sm:$0xff]  }
  0xd5   :  { %2218 = vmatpush1.bf16.msra.mxu1 %v12573_v38  ;;  %v12659_v38 = vld [vmem:[%s19021_s2 + $0x71c] ss:$20 sps:$4 sm:$0xff]  }
  0xd6   :  { %2219 = vmatprep.subr.bf16.mxu1 %v12578_v30  ;;  %v12664_v30 = vld [vmem:[%s19021_s2 + $0x748] ss:$20 sps:$4 sm:$0xff]  }
  0xd9   :  { %2220 = vmatpush1.bf16.msra.mxu1 %v12576_v27  ;;  %v12662_v27 = vld [vmem:[%s19021_s2 + $0x744] ss:$20 sps:$4 sm:$0xff]  }
  0xda   :  { %2221 = vmatprep.subr.bf16.mxu1 %v12581_v61  ;;  %v12667_v61 = vld [vmem:[%s19021_s2 + $0x770] ss:$20 sps:$4 sm:$0xff]  }
  0xdd   :  { %2222 = vmatpush1.bf16.msra.mxu1 %v12579_v6  ;;  %v12665_v6 = vld [vmem:[%s19021_s2 + $0x76c] ss:$20 sps:$4 sm:$0xff]  }
  0xde   :  { %2223 = vmatprep.subr.bf16.mxu1 %v12584_v28  ;;  %v14588_v28 = vld [vmem:[%s19022_s3] sm:$0x1f] }
  0xe1   :  { %2224 = vmatpush1.bf16.msra.mxu1 %v12582_v15  ;;  %v14595_v15 = vrot.slane %v14588_v28, %v13626_v46 }
  0xe2   :  { %10666 = vmatprep.subr.msk.bf16.mxu1 %vm1965_vm5, %v10661_v2  ;;  %v14599_v2 = vrot.slane %v14588_v28, %v13631_v48 }
  0xe4   :  { %2226 = vmatmul.mubr.bf16.vlgmr.msra.gmra.mrb[8].mxu1 %v13966_v47 }
  0xe5   :  { %2247 = vmatpush1.bf16.msra.mxu1 %v1973_v9  ;;  %2235 = vmatprep.mubr.bf16.mxu1 %v14013_v23 }
  0xe6   :  { %11907 = vmatprep.subr.bf16.mxu1 %v12595_v7 }
  0xec   :  { %2236 = vmatmul.mubr.bf16.gmra.mrb[12].mxu1 %v14080_v13 }
  0xed   :  { %2278 = vmatprep.mubr.bf16.mxu1 %v19028_v39 }
  0xf4   :  { %10667 = vmatmul.mubr.msk.bf16.vlgmr.msra.gmra.mrb[8].mxu1 %vm1958_vm6, %v14156_v62  ;;  %v12609_v62 = vld [vmem:[%s19021_s2 + $0x308] ss:$20 sps:$4 sm:$0xff]  }
  0xf5   :  { %11908 = vmatpush3.bf16.msra.mxu1 %v12597_v24  ;;  %2288 = vmatprep.mubr.bf16.mxu1 %v19028_v39 }
  0xf6   :  { %11909 = vmatprep.subr.bf16.mxu1 %v12599_v16 }
  0xf9   :  { %11910 = vmatpush3.bf16.msra.mxu1 %v12601_v44 }
  0xfa   :  { %11911 = vmatprep.subr.bf16.mxu1 %v12603_v25 }
  0xfc   :  { %10668 = vmatmul.mubr.msk.bf16.gmra.mrb[12].mxu1 %vm1958_vm6, %v14323_v63  ;;  %v12626_v63 = vld [vmem:[%s19021_s2 + $0x564] ss:$20 sps:$4 sm:$0xff]  }
  0xfd   :  { %11912 = vmatpush3.bf16.msra.mxu1 %v12605_v40  ;;  %2380 = vmatprep.mubr.bf16.mxu1 %v13848_v35  ;;  %v12617_v35 = vld [vmem:[%s19021_s2 + $0x380] ss:$20 sps:$4 sm:$0xff]  }
  0xfe   :  { %11913 = vmatprep.subr.bf16.mxu1 %v12607_v50  ;;  %v10672_v40 = vld [vmem:[%s19020_s1 + $0x30] sm:$0x1f] }
 0x101   :  { %11914 = vmatpush3.bf16.msra.mxu1 %v12609_v62 }
 0x102   :  { %11915 = vmatprep.subr.bf16.mxu1 %v12611_v20 }
 0x105   :  { %11916 = vmatpush3.bf16.msra.mxu1 %v12612_v11 }
 0x106   :  { %11917 = vmatprep.subr.bf16.mxu1 %v12613_v57  ;;  %v14612_v57 = vrot.slane %v10671_v41, %v13631_v48 }
 0x109   :  { %11918 = vmatpush3.bf16.msra.mxu1 %v12615_v33 }
 0x10a   :  { %11919 = vmatprep.subr.bf16.mxu1 %v12616_v0 }
 0x10d   :  { %11920 = vmatpush3.bf16.msra.mxu1 %v12617_v35  ;;  %v14615_v35 = vrot.slane %v10671_v41, %v13633_v49 }
 0x10e   :  { %11921 = vmatprep.subr.bf16.mxu1 %v12618_v17  ;;  %v14618_v17 = vrot.slane %v10671_v41, %v13638_v51 }
 0x111   :  { %11922 = vmatpush3.bf16.msra.mxu1 %v12619_v42 }
 0x112   :  { %4392 = vmatprep.subr.bf16.mxu1 %v12622_v5 }
 0x114   :  { %2381 = vmatmul.mubr.bf16.vlgmr.msra.gmra.mrb[16].mxu1 %v13966_v47  ;;  %v12629_v47 = vld [vmem:[%s19021_s2 + $0x58c] ss:$20 sps:$4 sm:$0xff]  }
 0x115   :  { %2388 = vmatprep.mubr.bf16.mxu1 %v14013_v23  ;;  %4393 = vmatpush1.bf16.msra.mxu1 %v12620_v36  ;;  %v12634_v23 = vld [vmem:[%s19021_s2 + $0x5b8] ss:$20 sps:$4 sm:$0xff]  }
 0x116   :  { %4394 = vmatprep.subr.bf16.mxu1 %v12625_v43  ;;  %v14621_v43 = vrot.slane %v10671_v41, %v13640_v52 }
 0x119   :  { %4395 = vmatpush1.bf16.msra.mxu1 %v12623_v3 }
 0x11a   :  { %4396 = vmatprep.subr.bf16.mxu1 %v12628_v26  ;;  %v14624_v26 = vrot.slane %v10671_v41, %v13626_v46 }
 0x11c   :  { %2389 = vmatmul.mubr.bf16.gmra.mrb[20].mxu1 %v14080_v13  ;;  %v12635_v13 = vld [vmem:[%s19021_s2 + $0x5dc] ss:$20 sps:$4 sm:$0xff]  }
 0x11d   :  { %4397 = vmatpush1.bf16.msra.mxu1 %v12626_v63 }
 0x11e   :  { %4398 = vmatprep.subr.bf16.mxu1 %v12631_v18  ;;  %v14627_v18 = vrot.slane %v10672_v40, %v13626_v46 }
 0x121   :  { %4399 = vmatpush1.bf16.msra.mxu1 %v12629_v47  ;;  %v14630_v47 = vrot.slane %v10672_v40, %v13631_v48 }
 0x122   :  { %4400 = vmatprep.subr.bf16.mxu1 %v12634_v23 }
 0x124   :  { %v2015_v12 = vpop.f32.mrb[0].mxu1 }
 0x125   :  { %4401 = vmatpush1.bf16.msra.mxu1 %v12632_v14  ;;  %v2017_v34 = vpop.f32.mrb[1].mxu1  ;;  %v2016_v7 = vadd.f32 %v2015_v12, %v14595_v15  ;;  %v14634_v14 = vrot.slane %v10672_v40, %v13633_v49 }
 0x126   :  { %4402 = vmatprep.subr.bf16.mxu1 %v12637_v31  ;;  %v2019_v37 = vpop.f32.mrb[2].mxu1  ;;  %v2018_v9 = vadd.f32 %v2017_v34, %v14599_v2  ;;  %v14637_v31 = vrot.slane %v10672_v40, %v13638_v51 }
 0x127   :  { %v2021_v53 = vpop.f32.mrb[3].mxu1  ;;  %v2020_v16 = vadd.f32 %v2019_v37, %v14595_v15 }
 0x128   :  { %v2022_v50 = vadd.f32 %v2021_v53, %v14599_v2 }
 0x129   :  { %4403 = vmatpush1.bf16.msra.mxu1 %v12635_v13 }
 0x12a   :  { %4404 = vmatprep.subr.bf16.mxu1 %v12640_v29  ;;  %v14643_v29 = vrot.slane %v10672_v40, %v13640_v52 }
 0x12d   :  { %4405 = vmatpush1.bf16.msra.mxu1 %v12638_v55 }
 0x12e   :  { %4406 = vmatprep.subr.bf16.mxu1 %v12643_v58 }
 0x131   :  { %4407 = vmatpush1.bf16.msra.mxu1 %v12641_v22 }
 0x132   :  { %4408 = vmatprep.subr.bf16.mxu1 %v12646_v45 }
 0x135   :  { %4409 = vmatpush1.bf16.msra.mxu1 %v12644_v1 }
 0x136   :  { %4410 = vmatprep.subr.bf16.mxu1 %v12649_v10 }
 0x139   :  { %4411 = vmatpush1.bf16.msra.mxu1 %v12647_v32 }
 0x13a   :  { %4412 = vmatprep.subr.bf16.mxu1 %v12652_v56 }
 0x13d   :  { %4413 = vmatpush1.bf16.msra.mxu1 %v12650_v8 }
 0x13e   :  { %4414 = vmatprep.subr.bf16.mxu1 %v12655_v60 }
 0x141   :  { %4415 = vmatpush1.bf16.msra.mxu1 %v12653_v19 }
 0x142   :  { %4416 = vmatprep.subr.bf16.mxu1 %v12658_v54 }
 0x145   :  { %4417 = vmatpush1.bf16.msra.mxu1 %v12656_v59 }
 0x146   :  { %4418 = vmatprep.subr.bf16.mxu1 %v12661_v21 }
 0x149   :  { %4419 = vmatpush1.bf16.msra.mxu1 %v12659_v38 }
 0x14a   :  { %4420 = vmatprep.subr.bf16.mxu1 %v12664_v30 }
 0x14d   :  { %4421 = vmatpush1.bf16.msra.mxu1 %v12662_v27 }
 0x14e   :  { %4422 = vmatprep.subr.bf16.mxu1 %v12667_v61 }
 0x151   :  { %4423 = vmatpush1.bf16.msra.mxu1 %v12665_v6 }
 0x152   :  { %4445 = vmatprep.subr.bf16.mxu1 %v12670_v4 }
 0x157   :  { %v2121_v24 = vpop.f32.mrb[0].mxu0 }
 0x158   :  { %v12168_v44 = vadd.f32 %v2121_v24, %v2016_v7  ;;  %v2123_v25 = vpop.f32.mrb[1].mxu0 }
 0x159   :  { %v12170_v62 = vadd.f32 %v2123_v25, %v2018_v9  ;;  %v2125_v20 = vpop.f32.mrb[2].mxu0 }
 0x15a   :  { %v2446_v11 = vmax.f32 %v12168_v44, 0.0  ;;  %v12172_v33 = vadd.f32 %v2125_v20, %v2020_v16  ;;  %v2127_v0 = vpop.f32.mrb[3].mxu0 }
 0x15b   :  { %v2447_v42 = vmax.f32 %v12170_v62, 0.0  ;;  %v12174_v5 = vadd.f32 %v2127_v0, %v2022_v50 }
 0x15c   :  { %v2486_v36 = vrot.slane %v2446_v11, 6  ;;  %v2451_v3 = vmax.f32 %v12172_v33, 0.0 }
 0x15d   :  { %v2487_v63 = vrot.slane %v2447_v42, 6  ;;  %v2452_v32 = vmax.f32 %v12174_v5, 0.0 }
 0x15e   :  { %v2546_v23 = vsel %vm71_vm0, 0.0, %v2486_v36  ;;  %v2491_v12 = vrot.slane %v2451_v3, 6 }
 0x15f   :  { %v2632_v13 = vmul.f32 %v14612_v57, %v2546_v23  ;;  %v2802_v34 = vmul.f32 %v14615_v35, %v2546_v23  ;;  %v2972_v37 = vmul.f32 %v14618_v17, %v2546_v23  ;;  %v3142_v53 = vmul.f32 %v14621_v43, %v2546_v23 }
 0x160   :  { %v2547_v55 = vsel %vm71_vm0, 0.0, %v2487_v63  ;;  %v2492_v58 = vsel %vm71_vm0, %v2486_v36, %v2491_v12  ;;  %v2556_v22 = vsel %vm71_vm0, %v2491_v12, 0.0  ;;  %v2592_v45 = vmul.f32 %v14624_v26, %v2546_v23 }
 0x161   :  { %v2692_v1 = vrot.slane %v2632_v13, 1  ;;  %v2862_v10 = vrot.slane %v2802_v34, 2  ;;  %v3032_v56 = vrot.slane %v2972_v37, 3  ;;  %v14651_v8 = vmul.f32 %v14627_v18, %v2547_v55 }
 0x162   :  { %v14654_v60 = vmul.f32 %v14630_v47, %v2547_v55  ;;  %v14657_v19 = vmul.f32 %v14634_v14, %v2547_v55  ;;  %v3202_v54 = vrot.slane %v3142_v53, 4  ;;  %v14660_v59 = vmul.f32 %v14637_v31, %v2547_v55 }
 0x163   :  { %v2637_v21 = vmul.f32 %v14612_v57, %v2492_v58  ;;  %v2642_v38 = vmul.f32 %v14612_v57, %v2556_v22  ;;  %v14666_v27 = vmul.f32 %v14643_v29, %v2547_v55  ;;  %v2597_v61 = vmul.f32 %v14624_v26, %v2492_v58 }
 0x164   :  { %v2695_v30 = vrot.slane %v14654_v60, 1  ;;  %v2807_v6 = vmul.f32 %v14615_v35, %v2492_v58  ;;  %v2865_v4 = vrot.slane %v14657_v19, 2  ;;  %v2812_v9 = vmul.f32 %v14615_v35, %v2556_v22 }
 0x165   :  { %v2693_v41 = vrot.slane %v2637_v21, 1  ;;  %v2707_v7 = vrot.slane %v2642_v38, 1  ;;  %v2977_v16 = vmul.f32 %v14618_v17, %v2492_v58  ;;  %v2982_v44 = vmul.f32 %v14618_v17, %v2556_v22 }
 0x166   :  { %v2863_v24 = vrot.slane %v2807_v6, 2  ;;  %v3147_v25 = vmul.f32 %v14621_v43, %v2492_v58  ;;  %v2877_v62 = vrot.slane %v2812_v9, 2  ;;  %v3152_v20 = vmul.f32 %v14621_v43, %v2556_v22 }
 0x167   :  { %v2694_v40 = vsel %vm277_vm1, %v2692_v1, %v2693_v41  ;;  %v2708_v50 = vsel %vm277_vm1, %v2693_v41, %v2707_v7  ;;  %v3033_v42 = vrot.slane %v2977_v16, 3  ;;  %v3047_v36 = vrot.slane %v2982_v44, 3 }
 0x168   :  { %v2762_v11 = vadd.f32 %v2694_v40, %v2592_v45  ;;  %v2767_v33 = vadd.f32 %v2708_v50, %v2597_v61  ;;  %v2864_v0 = vsel %vm448_vm2, %v2862_v10, %v2863_v24  ;;  %v2878_v5 = vsel %vm448_vm2, %v2863_v24, %v2877_v62 }
 0x169   :  { %v3203_v3 = vrot.slane %v3147_v25, 4  ;;  %v3217_v23 = vrot.slane %v3152_v20, 4  ;;  %v2493_v13 = vrot.slane %v2452_v32, 6  ;;  %v3034_v37 = vsel %vm619_vm3, %v3032_v56, %v3033_v42 }
 0x16a   :  { %v2937_v12 = vadd.f32 %v2878_v5, %v2767_v33  ;;  %v2932_v34 = vadd.f32 %v2864_v0, %v2762_v11  ;;  %v3035_v53 = vrot.slane %v14660_v59, 3  ;;  %v3048_v55 = vsel %vm619_vm3, %v3033_v42, %v3047_v36 }
 0x16b   :  { %v3218_v58 = vsel %vm790_vm4, %v3203_v3, %v3217_v23  ;;  %v3204_v22 = vsel %vm790_vm4, %v3202_v54, %v3203_v3  ;;  %v2494_v1 = vsel %vm71_vm0, %v2487_v63, %v2493_v13  ;;  %v2557_v10 = vsel %vm71_vm0, %v2493_v13, 0.0 }
 0x16c   :  { %v3107_v45 = vadd.f32 %v3048_v55, %v2937_v12  ;;  %v3102_v60 = vadd.f32 %v3034_v37, %v2932_v34  ;;  %v2598_v19 = vmul.f32 %v14627_v18, %v2494_v1  ;;  %v2638_v32 = vmul.f32 %v14630_v47, %v2494_v1 }
 0x16d   :  { %v2643_v56 = vmul.f32 %v14630_v47, %v2557_v10  ;;  %v2808_v59 = vmul.f32 %v14634_v14, %v2494_v1  ;;  %v2813_v38 = vmul.f32 %v14634_v14, %v2557_v10  ;;  %v2978_v61 = vmul.f32 %v14637_v31, %v2494_v1 }
 0x16e   :  { %v3277_v21 = vadd.f32 %v3218_v58, %v3107_v45  ;;  %v2983_v54 = vmul.f32 %v14637_v31, %v2557_v10  ;;  %v2696_v6 = vrot.slane %v2638_v32, 1  ;;  %v3153_v7 = vmul.f32 %v14643_v29, %v2557_v10 }
 0x16f   :  { %v2709_v63 = vrot.slane %v2643_v56, 1  ;;  %v2866_v41 = vrot.slane %v2808_v59, 2  ;;  %v2025_v9 = vpop.f32.mrb[4].mxu1  ;;  %v2879_v24 = vrot.slane %v2813_v38, 2  ;;  %v3036_v16 = vrot.slane %v2978_v61, 3 }
 0x170   :  { %v3049_v44 = vrot.slane %v2983_v54, 3  ;;  %v3148_v25 = vmul.f32 %v14643_v29, %v2494_v1  ;;  %v2027_v40 = vpop.f32.mrb[5].mxu1  ;;  %v3219_v62 = vrot.slane %v3153_v7, 4  ;;  %v2697_v20 = vsel %vm277_vm1, %v2695_v30, %v2696_v6  ;;  %v12671_v7 = vld [vmem:[%s19021_s2 + $0x7bc] ss:$20 sps:$4 sm:$0xff]  }
 0x171   :  { %v2710_v50 = vsel %vm277_vm1, %v2696_v6, %v2709_v63  ;;  %v2867_v11 = vsel %vm448_vm2, %v2865_v4, %v2866_v41  ;;  %v2029_v33 = vpop.f32.mrb[6].mxu1  ;;  %v2763_v0 = vadd.f32 %v2697_v20, %v14651_v8  ;;  %v2880_v5 = vsel %vm448_vm2, %v2866_v41, %v2879_v24 }
 0x172   :  { %v2768_v42 = vadd.f32 %v2710_v50, %v2598_v19  ;;  %v3037_v36 = vsel %vm619_vm3, %v3035_v53, %v3036_v16  ;;  %v2031_v3 = vpop.f32.mrb[7].mxu1  ;;  %v3205_v23 = vrot.slane %v14666_v27, 4  ;;  %v3050_v12 = vsel %vm619_vm3, %v3036_v16, %v3049_v44  ;;  %v12668_v27 = vld [vmem:[%s19021_s2 + $0x794] ss:$20 sps:$4 sm:$0xff]   ;;  %v12674_v44 = vld [vmem:[%s19021_s2 + $0x7e4] ss:$20 sps:$4 sm:$0xff]  }
 0x173   :  { %v3206_v13 = vrot.slane %v3148_v25, 4  ;;  %v3272_v34 = vadd.f32 %v3204_v22, %v3102_v60  ;;  %v2933_v37 = vadd.f32 %v2867_v11, %v2763_v0  ;;  %v2026_v53 = vadd.f32 %v2025_v9, %v14595_v15  ;;  %v12673_v60 = vld [vmem:[%s19021_s2 + $0x7c0] ss:$20 sps:$4 sm:$0xff]  }
 0x174   :  { %v2938_v55 = vadd.f32 %v2880_v5, %v2768_v42  ;;  %v2028_v22 = vadd.f32 %v2027_v40, %v14599_v2  ;;  %v2030_v32 = vadd.f32 %v2029_v33, %v14595_v15  ;;  %v2032_v59 = vadd.f32 %v2031_v3, %v14599_v2  ;;  %v12676_v2 = vld [vmem:[%s19021_s2 + $0x7e8] ss:$20 sps:$4 sm:$0xff]  }
 0x175   :  { %v3207_v30 = vsel %vm790_vm4, %v3205_v23, %v3206_v13  ;;  %v3220_v4 = vsel %vm790_vm4, %v3206_v13, %v3219_v62  ;;  %v14706_v58 = vpack.c.bf16 %v3277_v21, %v3272_v34  ;;  %v3103_v8 = vadd.f32 %v3037_v36, %v2933_v37 }
 0x176   :  { %v3108_v45 = vadd.f32 %v3050_v12, %v2938_v55 }
 0x177   :  { %19170 = vst [vmem:[#allocation10_spill] sm:$0xff] %v14706_v58  ;;  %v3273_v1 = vadd.f32 %v3207_v30, %v3103_v8 }
 0x178   :  { %v3278_v10 = vadd.f32 %v3220_v4, %v3108_v45 }
 0x17a   :  { %v14716_v19 = vpack.c.bf16 %v3278_v10, %v3273_v1 }
 0x17b   :  { %v2131_v56 = vpop.f32.mrb[4].mxu0 }
 0x17c   :  { %19171 = vst [vmem:[#allocation11_spill] sm:$0xff] %v14716_v19  ;;  %4424 = vmatprep.mubr.bf16.mxu1 %v14716_v19  ;;  %v12176_v21 = vadd.f32 %v2131_v56, %v2026_v53  ;;  %v2133_v38 = vpop.f32.mrb[5].mxu0 }
 0x17d   :  { %4425 = vmatmul.mubr.bf16.vlgmr.msra.gmra.mrb[24].mxu1 %v14706_v58  ;;  %v12178_v61 = vadd.f32 %v2133_v38, %v2028_v22  ;;  %v2135_v54 = vpop.f32.mrb[6].mxu0 }
 0x17e   :  { %v2456_v6 = vmax.f32 %v12176_v21, 0.0  ;;  %v12180_v63 = vadd.f32 %v2135_v54, %v2030_v32  ;;  %v2137_v41 = vpop.f32.mrb[7].mxu0  ;;  %4446 = vmatpush1.bf16.msra.mxu1 %v12668_v27 }
 0x17f   :  { %v2457_v15 = vmax.f32 %v12178_v61, 0.0  ;;  %v12182_v9 = vadd.f32 %v2137_v41, %v2032_v59  ;;  %4447 = vmatprep.subr.bf16.mxu1 %v12673_v60 }
 0x180   :  { %v2501_v24 = vrot.slane %v2456_v6, 6  ;;  %v2461_v16 = vmax.f32 %v12180_v63, 0.0 }
 0x181   :  { %v14731_v25 = vrot.slane %v2457_v15, 6  ;;  %v2462_v62 = vmax.f32 %v12182_v9, 0.0 }
 0x182   :  { %v2551_v40 = vsel %vm71_vm0, 0.0, %v2501_v24  ;;  %v2506_v50 = vrot.slane %v2461_v16, 6  ;;  %4448 = vmatpush1.bf16.msra.mxu1 %v12671_v7 }
 0x183   :  { %13 = vsyncpa [#allocation3], 0  ;;  %v2602_v20 = vmul.f32 %v14624_v26, %v2551_v40  ;;  %v2647_v11 = vmul.f32 %v14612_v57, %v2551_v40  ;;  %v2817_v33 = vmul.f32 %v14615_v35, %v2551_v40  ;;  %v14738_v0 = vmul.f32 %v14618_v17, %v2551_v40  ;;  %4449 = vmatprep.subr.bf16.mxu1 %v12676_v2  ;;  %v12679_v42 = vld [vmem:[%s19021_s2 + $0x810] ss:$20 sps:$4 sm:$0xff]   ;;  %v14743_v5 = vpop.f32.mrb[8].mxu0  ;;  %s13446_s27 = smov [#allocation2]  }
 0x184   :  { %v14746_v36 = vmul.f32 %v14621_v43, %v2551_v40  ;;  %v2552_v3 = vsel %vm71_vm0, 0.0, %v14731_v25  ;;  %v14751_v23 = vsel %vm71_vm0, %v2501_v24, %v2506_v50  ;;  %v2561_v12 = vsel %vm71_vm0, %v2506_v50, 0.0  ;;  %v14754_v13 = vpop.f32.mrb[9].mxu0  ;;  %v12677_v53 = vld [vmem:[%s19021_s2 + $0x80c] ss:$20 sps:$4 sm:$0xff]   ;;  %s10487_s28 = sshll.u32 %s13446_s27, 4  ;;  %s10488_s28 = int_to_ptr.vmem [resolvable:$true] %s10487_s28 }
 0x185   :  { %v2717_v34 = vrot.slane %v2647_v11, 1  ;;  %v2887_v37 = vrot.slane %v2817_v33, 2  ;;  %v3057_v55 = vrot.slane %v14738_v0, 3  ;;  %v14758_v30 = vmul.f32 %v14627_v18, %v2552_v3  ;;  %v14760_v4 = vpop.f32.mrb[10].mxu0  ;;  %v12682_v59 = vld [vmem:[%s19021_s2 + $0x838] ss:$20 sps:$4 sm:$0xff]   ;;  %p13426_p1 = scmp.lt.s32.totalorder %s10488_s28, %s10488_s28 }
 0x186   :  { %v3227_v8 = vrot.slane %v14746_v36, 4  ;;  %v14764_v45 = vmul.f32 %v14630_v47, %v2552_v3  ;;  %v14767_v1 = vmul.f32 %v14634_v14, %v2552_v3  ;;  %v14770_v10 = vmul.f32 %v14637_v31, %v2552_v3  ;;  %4450 = vmatpush1.bf16.msra.mxu1 %v12674_v44  ;;  %v14775_v27 = vpop.f32.mrb[11].mxu0  ;;  %v12680_v2 = vld [vmem:[%s19021_s2 + $0x834] ss:$20 sps:$4 sm:$0xff]  }
 0x187   :  { %v14778_v22 = vmul.f32 %v14643_v29, %v2552_v3  ;;  %v2607_v60 = vmul.f32 %v14624_v26, %v14751_v23  ;;  %v2652_v32 = vmul.f32 %v14612_v57, %v14751_v23  ;;  %v2657_v56 = vmul.f32 %v14612_v57, %v2561_v12  ;;  %4451 = vmatprep.subr.bf16.mxu1 %v12679_v42  ;;  %v12697_v36 = vld [vmem:[%s19021_s2 + $0x900] ss:$20 sps:$4 sm:$0xff]  }
 0x188   :  { %v2720_v21 = vrot.slane %v14764_v45, 1  ;;  %v2890_v38 = vrot.slane %v14767_v1, 2  ;;  %v3060_v61 = vrot.slane %v14770_v10, 3  ;;  %v14793_v54 = vmul.f32 %v14615_v35, %v14751_v23 }
 0x189   :  { %v3230_v26 = vrot.slane %v14778_v22, 4  ;;  %v2718_v6 = vrot.slane %v2652_v32, 1  ;;  %v2732_v63 = vrot.slane %v2657_v56, 1  ;;  %v14797_v57 = vmul.f32 %v14615_v35, %v2561_v12 }
 0x18a   :  { %v2888_v41 = vrot.slane %v14793_v54, 2  ;;  %v14802_v7 = vmul.f32 %v14618_v17, %v14751_v23  ;;  %v14805_v15 = vmul.f32 %v14618_v17, %v2561_v12  ;;  %v14808_v9 = vmul.f32 %v14621_v43, %v2561_v12  ;;  %4452 = vmatpush1.bf16.msra.mxu1 %v12677_v53  ;;  %v12685_v17 = vld [vmem:[%s19021_s2 + $0x860] ss:$20 sps:$4 sm:$0xff]  }
 0x18b   :  { %v2733_v35 = vsel %vm277_vm1, %v2718_v6, %v2732_v63  ;;  %v2902_v24 = vrot.slane %v14797_v57, 2  ;;  %v2508_v16 = vrot.slane %v2462_v62, 6  ;;  %v2719_v44 = vsel %vm277_vm1, %v2717_v34, %v2718_v6  ;;  %4453 = vmatprep.subr.bf16.mxu1 %v12682_v59  ;;  %v14819_v40 = vpop.f32.mrb[12].mxu0 }
 0x18c   :  { %v3058_v50 = vrot.slane %v14802_v7, 3  ;;  %v3072_v11 = vrot.slane %v14805_v15, 3  ;;  %v3242_v33 = vrot.slane %v14808_v9, 4  ;;  %v2772_v42 = vadd.f32 %v2719_v44, %v2602_v20  ;;  %v14824_v3 = vpop.f32.mrb[13].mxu0 }
 0x18d   :  { %v2509_v62 = vsel %vm71_vm0, %v14731_v25, %v2508_v16  ;;  %v2562_v12 = vsel %vm71_vm0, %v2508_v16, 0.0  ;;  %v2777_v34 = vadd.f32 %v2733_v35, %v2607_v60  ;;  %v2889_v45 = vsel %vm448_vm2, %v2887_v37, %v2888_v41  ;;  %v14830_v1 = vpop.f32.mrb[14].mxu0  ;;  %v12683_v25 = vld [vmem:[%s19021_s2 + $0x85c] ss:$20 sps:$4 sm:$0xff]  }
 0x18e   :  { %v2608_v10 = vmul.f32 %v14627_v18, %v2509_v62  ;;  %v2653_v53 = vmul.f32 %v14630_v47, %v2509_v62  ;;  %v2658_v32 = vmul.f32 %v14630_v47, %v2562_v12  ;;  %v2823_v20 = vmul.f32 %v14634_v14, %v2509_v62  ;;  %4454 = vmatpush1.bf16.msra.mxu1 %v12680_v2  ;;  %v11905_v56 = vpop.f32.mrb[15].mxu0  ;;  %v12688_v47 = vld [vmem:[%s19021_s2 + $0x888] ss:$20 sps:$4 sm:$0xff]  }
 0x18f   :  { %v2828_v60 = vmul.f32 %v14634_v14, %v2562_v12  ;;  %v2993_v37 = vmul.f32 %v14637_v31, %v2509_v62  ;;  %v2998_v59 = vmul.f32 %v14637_v31, %v2562_v12  ;;  %v3168_v18 = vmul.f32 %v14643_v29, %v2562_v12  ;;  %4455 = vmatprep.subr.bf16.mxu1 %v12685_v17  ;;  %v12686_v17 = vld [vmem:[%s19021_s2 + $0x884] ss:$20 sps:$4 sm:$0xff]  }
 0x190   :  { %v2721_v54 = vrot.slane %v2653_v53, 1  ;;  %v2734_v6 = vrot.slane %v2658_v32, 1  ;;  %v2891_v63 = vrot.slane %v2823_v20, 2  ;;  %v3163_v57 = vmul.f32 %v14643_v29, %v2509_v62 }
 0x191   :  { %v2904_v7 = vrot.slane %v2828_v60, 2  ;;  %v3061_v15 = vrot.slane %v2993_v37, 3  ;;  %v3074_v2 = vrot.slane %v2998_v59, 3  ;;  %v3244_v14 = vrot.slane %v3168_v18, 4 }
 0x192   :  { %v2735_v35 = vsel %vm277_vm1, %v2721_v54, %v2734_v6  ;;  %v2722_v31 = vsel %vm277_vm1, %v2720_v21, %v2721_v54  ;;  %v2892_v16 = vsel %vm448_vm2, %v2890_v38, %v2891_v63  ;;  %v3231_v44 = vrot.slane %v3163_v57, 4  ;;  %4456 = vmatpush1.bf16.msra.mxu1 %v12683_v25  ;;  %v12691_v21 = vld [vmem:[%s19021_s2 + $0x8b0] ss:$20 sps:$4 sm:$0xff]   ;;  %v12700_v57 = vld [vmem:[%s19021_s2 + $0x928] ss:$20 sps:$4 sm:$0xff]  }
 0x193   :  { %v2773_v12 = vadd.f32 %v2722_v31, %v14758_v30  ;;  %v2778_v53 = vadd.f32 %v2735_v35, %v2608_v10  ;;  %v2905_v29 = vsel %vm448_vm2, %v2891_v63, %v2904_v7  ;;  %v3062_v62 = vsel %vm619_vm3, %v3060_v61, %v3061_v15  ;;  %4457 = vmatprep.subr.bf16.mxu1 %v12688_v47  ;;  %v14859_v32 = vpop.f32.mrb[16].mxu0  ;;  %v12701_v35 = vld [vmem:[%s19021_s2 + $0x94c] ss:$20 sps:$4 sm:$0xff]  }
 0x194   :  { %19172 = vst [vmem:[#allocation12_spill] sm:$0xff] %v14859_v32  ;;  %v3075_v38 = vsel %vm619_vm3, %v3061_v15, %v3074_v2  ;;  %v3232_v20 = vsel %vm790_vm4, %v3230_v26, %v3231_v44  ;;  %v3245_v30 = vsel %vm790_vm4, %v3231_v44, %v3244_v14  ;;  %v2903_v10 = vsel %vm448_vm2, %v2888_v41, %v2902_v24  ;;  %v14867_v25 = vpop.f32.mrb[17].mxu0  ;;  %v12689_v41 = vld [vmem:[%s19021_s2 + $0x8ac] ss:$20 sps:$4 sm:$0xff]   ;;  %v12698_v2 = vld [vmem:[%s19021_s2 + $0x924] ss:$20 sps:$4 sm:$0xff]  }
 0x195   :  { %v2943_v61 = vadd.f32 %v2892_v16, %v2773_v12  ;;  %v2948_v60 = vadd.f32 %v2905_v29, %v2778_v53  ;;  %v2942_v37 = vadd.f32 %v2889_v45, %v2772_v42  ;;  %v2947_v59 = vadd.f32 %v2903_v10, %v2777_v34  ;;  %v14869_v18 = vpop.f32.mrb[18].mxu0  ;;  %v12736_v15 = vld [vmem:[%s19021_s2 + $0x520] ss:$20 sps:$4 sm:$0xff]   ;;  %v12703_v14 = vld [vmem:[%s19021_s2 + $0x950] ss:$20 sps:$4 sm:$0xff]  }
 0x196   :  { %19173 = vst [vmem:[#allocation13_spill] sm:$0xff] %v14869_v18  ;;  %v3059_v47 = vsel %vm619_vm3, %v3057_v55, %v3058_v50  ;;  %v3073_v22 = vsel %vm619_vm3, %v3058_v50, %v3072_v11  ;;  %v3162_v26 = vmul.f32 %v14621_v43, %v14751_v23  ;;  %4458 = vmatpush1.bf16.msra.mxu1 %v12686_v17  ;;  %v14884_v42 = vpop.f32.mrb[19].mxu0  ;;  %v12694_v43 = vld [vmem:[%s19021_s2 + $0x8d8] ss:$20 sps:$4 sm:$0xff]   ;;  %v12704_v16 = vld [vmem:[%s19021_s2 + $0x974] ss:$20 sps:$4 sm:$0xff]  }
 0x197   :  { %v14882_v24 = vadd.f32 %v14754_v13, %v14743_v5  ;;  %v3113_v34 = vadd.f32 %v3062_v62, %v2943_v61  ;;  %v3118_v0 = vadd.f32 %v3075_v38, %v2948_v60  ;;  %v3112_v45 = vadd.f32 %v3059_v47, %v2942_v37  ;;  %4459 = vmatprep.subr.bf16.mxu1 %v12691_v21  ;;  %v12706_v31 = vld [vmem:[%s19021_s2 + $0x978] ss:$20 sps:$4 sm:$0xff]   ;;  %v12709_v44 = vld [vmem:[%s19021_s2 + $0x9a0] ss:$20 sps:$4 sm:$0xff]   ;;  %v12707_v17 = vld [vmem:[%s19021_s2 + $0x99c] ss:$20 sps:$4 sm:$0xff]  }
 0x198   :  { %v3117_v55 = vadd.f32 %v3073_v22, %v2947_v59  ;;  %v3228_v23 = vrot.slane %v3162_v26, 4  ;;  %v14891_v50 = vadd.f32 %v14775_v27, %v14760_v4  ;;  %v14895_v5 = vadd.f32 %v14824_v3, %v14819_v40  ;;  %v12692_v4 = vld [vmem:[%s19021_s2 + $0x8d4] ss:$20 sps:$4 sm:$0xff]   ;;  %v12710_v53 = vld [vmem:[%s19021_s2 + $0x9c4] ss:$20 sps:$4 sm:$0xff]  }
 0x199   :  { %v3283_v13 = vadd.f32 %v3232_v20, %v3113_v34  ;;  %v3288_v11 = vadd.f32 %v3245_v30, %v3118_v0  ;;  %v14898_v54 = vadd.f32 %v11905_v56, %v14830_v1  ;;  %v12695_v56 = vld [vmem:[%s19021_s2 + $0x8fc] ss:$20 sps:$4 sm:$0xff]   ;;  %v12713_v62 = vld [vmem:[%s19021_s2 + $0x9ec] ss:$20 sps:$4 sm:$0xff]   ;;  %v12716_v21 = vld [vmem:[%s19021_s2 + $0x664] ss:$20 sps:$4 sm:$0xff]   ;;  %v14970_v38 = vrot.slane %v14588_v28, %v13633_v49 }
 0x19a   :  { %v3229_v6 = vsel %vm790_vm4, %v3227_v8, %v3228_v23  ;;  %v3243_v63 = vsel %vm790_vm4, %v3228_v23, %v3242_v33  ;;  %4460 = vmatpush1.bf16.msra.mxu1 %v12689_v41  ;;  %v10868_v8 = vld [vmem:[%s19021_s2 + $0xa14] sm:$0x11]  ;;  %v12712_v12 = vld [vmem:[%s19021_s2 + $0x9c8] ss:$20 sps:$4 sm:$0xff]   ;;  %v12715_v29 = vld [vmem:[%s19021_s2 + $0x9f0] ss:$20 sps:$4 sm:$0xff]   ;;  %v14977_v30 = vrot.slane %v14588_v28, %v13638_v51  ;;  %v1107_v37 = vrot.slane %v14588_v28, %v13640_v52 }
 0x19b   :  { %v14909_v27 = vpack.c.bf16 %v3288_v11, %v3283_v13  ;;  %v3282_v40 = vadd.f32 %v3229_v6, %v3112_v45  ;;  %v3287_v3 = vadd.f32 %v3243_v63, %v3117_v55  ;;  %4461 = vmatprep.subr.bf16.mxu1 %v12694_v43  ;;  %v11033_v33 = vcombine.high %v10868_v8, %v10868_v8  ;;  %v10673_v20 = vld [vmem:[%s19020_s1 + $0x38] sm:$0x1f]  ;;  %v10674_v10 = vld [vmem:[%s19020_s1 + $0x40] sm:$0x1f]  ;;  %v10675_v34 = vld [vmem:[%s19020_s1 + $0x48] sm:$0x1f] }
 0x19c   :  { %v11032_v1 = vcombine.low %v10868_v8, %v10868_v8  ;;  %v14983_v60 = vrot.slane %v10673_v20, %v13626_v46  ;;  %v14989_v47 = vrot.slane %v10673_v20, %v13631_v48  ;;  %v14992_v22 = vrot.slane %v10673_v20, %v13633_v49 }
 0x19d   :  { %19174 = vst [vmem:[#allocation14_spill] sm:$0xff] %v14909_v27  ;;  %4434 = vmatprep.mubr.bf16.mxu1 %v14909_v27  ;;  %v14918_v9 = vpack.c.bf16 %v3287_v3, %v3282_v40  ;;  %11037 = vmatprep.subr.msk.bf16.mxu0 %vm1965_vm5, %v11033_v33  ;;  %v14995_v26 = vrot.slane %v10673_v20, %v13638_v51 }
 0x19e   :  { %4462 = vmatpush1.bf16.msra.mxu1 %v12692_v4  ;;  %v4378_v7 = vsel %vm1965_vm5, %v11032_v1, 0  ;;  %v15001_v0 = vrot.slane %v10673_v20, %v13640_v52  ;;  %v15005_v45 = vrot.slane %v10674_v10, %v13626_v46  ;;  %v15008_v55 = vrot.slane %v10674_v10, %v13631_v48 }
 0x19f   :  { %19175 = vst [vmem:[#allocation15_spill] sm:$0xff] %v14918_v9  ;;  %4435 = vmatmul.mubr.bf16.gmra.mrb[28].mxu1 %v14918_v9  ;;  %4463 = vmatprep.subr.bf16.mxu1 %v12697_v36  ;;  %v15011_v13 = vrot.slane %v10674_v10, %v13633_v49  ;;  %v15014_v11 = vrot.slane %v10674_v10, %v13638_v51 }
 0x1a0   :  { %4499 = vmatpush1.bf16.msra.mxu0 %v4378_v7  ;;  %19176 = vst [vmem:[#allocation16_spill] sm:$0xff] %v15001_v0  ;;  %v15018_v40 = vrot.slane %v10674_v10, %v13640_v52  ;;  %v15021_v3 = vadd.f32 %v14882_v24, %v1107_v37  ;;  %v15024_v36 = vrot.slane %v10675_v34, %v13626_v46 }
 0x1a1   :  { %4551 = vmatprep.subr.bf16.mxu0 %v12736_v15  ;;  %v15027_v1 = vadd.f32 %v14891_v50, %v1107_v37  ;;  %v15036_v15 = vadd.f32 %v14898_v54, %v1107_v37  ;;  %v15039_v24 = vrot.slane %v10675_v34, %v13631_v48  ;;  %v15046_v50 = vrot.slane %v10675_v34, %v13638_v51 }
 0x1a2   :  { %4464 = vmatpush1.bf16.msra.mxu1 %v12695_v56  ;;  %19177 = vst [vmem:[#allocation17_spill] sm:$0xff] %v15024_v36  ;;  %v15030_v56 = vadd.f32 %v14895_v5, %v1107_v37 }
 0x1a3   :  { %4465 = vmatprep.subr.bf16.mxu1 %v12700_v57  ;;  %19179 = vst [vmem:[#allocation19_spill] sm:$0xff] %v15036_v15  ;;  %19180 = vst [vmem:[#allocation20_spill] sm:$0xff] %v15039_v24 }
 0x1a4   :  { %19178 = vst [vmem:[#allocation18_spill] sm:$0xff] %v15030_v56  ;;  %19182 = vst [vmem:[#allocation22_spill] sm:$0xff] %v15046_v50 }
 0x1a6   :  { %4466 = vmatpush1.bf16.msra.mxu1 %v12698_v2 }
 0x1a7   :  { %4467 = vmatprep.subr.bf16.mxu1 %v12703_v14 }
 0x1aa   :  { %4468 = vmatpush1.bf16.msra.mxu1 %v12701_v35  ;;  %v15043_v35 = vrot.slane %v10675_v34, %v13633_v49 }
 0x1ab   :  { %4469 = vmatprep.subr.bf16.mxu1 %v12706_v31 }
 0x1ac   :  { %19181 = vst [vmem:[#allocation21_spill] sm:$0xff] %v15043_v35 }
 0x1ae   :  { %4470 = vmatpush1.bf16.msra.mxu1 %v12704_v16 }
 0x1af   :  { %4471 = vmatprep.subr.bf16.mxu1 %v12709_v44  ;;  %v15054_v44 = vrot.slane %v10675_v34, %v13640_v52 }
 0x1b1   :  { %19183 = vst [vmem:[#allocation23_spill] sm:$0xff] %v15054_v44 }
 0x1b2   :  { %4472 = vmatpush1.bf16.msra.mxu1 %v12707_v17 }
 0x1b3   :  { %4473 = vmatprep.subr.bf16.mxu1 %v12712_v12 }
 0x1b6   :  { %4474 = vmatpush1.bf16.msra.mxu1 %v12710_v53 }
 0x1b7   :  { %4475 = vmatprep.subr.bf16.mxu1 %v12715_v29 }
 0x1ba   :  { %4476 = vmatpush1.bf16.msra.mxu1 %v12713_v62 }
 0x1bb   :  { %11938 = vmatprep.subr.bf16.mxu1 %v12716_v21 }
 0x1c7   :  { %v2280_v61 = vpop.f32.mrb[8].mxu1 }
 0x1c8   :  { %v12183_v59 = vadd.f32 %v2280_v61, %v14970_v38  ;;  %v2282_v41 = vpop.f32.mrb[9].mxu1 }
 0x1c9   :  { %v12184_v28 = vadd.f32 %v2282_v41, %v14977_v30  ;;  %v2284_v43 = vpop.f32.mrb[10].mxu1 }
 0x1ca   :  { %v2448_v23 = vmax.f32 %v12183_v59, 0.0  ;;  %v12185_v6 = vadd.f32 %v2284_v43, %v14970_v38  ;;  %v2286_v63 = vpop.f32.mrb[11].mxu1 }
 0x1cb   :  { %v2449_v4 = vmax.f32 %v12184_v28, 0.0  ;;  %v12186_v7 = vadd.f32 %v2286_v63, %v14977_v30 }
 0x1cc   :  { %v2488_v8 = vrot.slane %v2448_v23, 6  ;;  %v2453_v33 = vmax.f32 %v12185_v6, 0.0 }
 0x1cd   :  { %v15032_v57 = vrot.slane %v2449_v4, 6  ;;  %v2454_v61 = vmax.f32 %v12186_v7, 0.0 }
 0x1ce   :  { %v2548_v2 = vsel %vm71_vm0, 0.0, %v2488_v8  ;;  %v2495_v14 = vrot.slane %v2453_v33, 6 }
 0x1cf   :  { %v2634_v5 = vmul.f32 %v14989_v47, %v2548_v2  ;;  %v2804_v31 = vmul.f32 %v14992_v22, %v2548_v2  ;;  %v15051_v16 = vmul.f32 %v14995_v26, %v2548_v2  ;;  %v2290_v54 = vpop.f32.mrb[12].mxu1  ;;  %v15057_v17 = vmul.f32 %v15001_v0, %v2548_v2 }
 0x1d0   :  { %v2549_v12 = vsel %vm71_vm0, 0.0, %v15032_v57  ;;  %v2496_v53 = vsel %vm71_vm0, %v2488_v8, %v2495_v14  ;;  %v2558_v29 = vsel %vm71_vm0, %v2495_v14, 0.0  ;;  %v2292_v62 = vpop.f32.mrb[13].mxu1  ;;  %v2594_v21 = vmul.f32 %v14983_v60, %v2548_v2 }
 0x1d1   :  { %v2698_v20 = vrot.slane %v2634_v5, 1  ;;  %v2868_v10 = vrot.slane %v2804_v31, 2  ;;  %v2294_v37 = vpop.f32.mrb[14].mxu1  ;;  %v15066_v41 = vmul.f32 %v15005_v45, %v2549_v12  ;;  %v15069_v34 = vmul.f32 %v15008_v55, %v2549_v12 }
 0x1d2   :  { %v15072_v28 = vmul.f32 %v15011_v13, %v2549_v12  ;;  %v2296_v43 = vpop.f32.mrb[15].mxu1  ;;  %v15076_v6 = vmul.f32 %v15014_v11, %v2549_v12  ;;  %v2639_v63 = vmul.f32 %v14989_v47, %v2496_v53  ;;  %v2644_v4 = vmul.f32 %v14989_v47, %v2558_v29 }
 0x1d3   :  { %v2701_v8 = vrot.slane %v15069_v34, 1  ;;  %v15082_v33 = vmul.f32 %v15018_v40, %v2549_v12  ;;  %v2599_v7 = vmul.f32 %v14983_v60, %v2496_v53  ;;  %v2809_v2 = vmul.f32 %v14992_v22, %v2496_v53 }
 0x1d4   :  { %v2699_v5 = vrot.slane %v2639_v63, 1  ;;  %v2711_v31 = vrot.slane %v2644_v4, 1  ;;  %v2814_v39 = vmul.f32 %v14992_v22, %v2558_v29  ;;  %v15089_v59 = vmul.f32 %v14995_v26, %v2496_v53 }
 0x1d5   :  { %v2869_v23 = vrot.slane %v2809_v2, 2  ;;  %v2984_v52 = vmul.f32 %v14995_v26, %v2558_v29  ;;  %v15093_v34 = vmul.f32 %v15001_v0, %v2496_v53  ;;  %v3154_v14 = vmul.f32 %v15001_v0, %v2558_v29 }
 0x1d6   :  { %v2700_v12 = vsel %vm277_vm1, %v2698_v20, %v2699_v5  ;;  %v2712_v51 = vsel %vm277_vm1, %v2699_v5, %v2711_v31  ;;  %v2881_v49 = vrot.slane %v2814_v39, 2  ;;  %v19045_v48 = vrot.slane %v15089_v59, 3 }
 0x1d7   :  { %v15098_v63 = vadd.f32 %v2700_v12, %v2594_v21  ;;  %v2769_v4 = vadd.f32 %v2712_v51, %v2599_v7  ;;  %v15101_v2 = vsel %vm448_vm2, %v2868_v10, %v2869_v23  ;;  %v3051_v9 = vrot.slane %v2984_v52, 3 }
 0x1d8   :  { %v2882_v46 = vsel %vm448_vm2, %v2869_v23, %v2881_v49  ;;  %v19044_v53 = vrot.slane %v15093_v34, 4  ;;  %v3221_v27 = vrot.slane %v3154_v14, 4  ;;  %v2497_v39 = vrot.slane %v2454_v61, 6 }
 0x1d9   :  { %v2939_v5 = vadd.f32 %v2882_v46, %v2769_v4  ;;  %v12187_v29 = vadd.f32 %v2290_v54, %v14970_v38  ;;  %v3052_v51 = vsel %vm619_vm3, %v19045_v48, %v3051_v9  ;;  %v12188_v52 = vadd.f32 %v2292_v62, %v14977_v30 }
 0x1da   :  { %v3222_v49 = vsel %vm790_vm4, %v19044_v53, %v3221_v27  ;;  %v15118_v23 = vsel %vm71_vm0, %v15032_v57, %v2497_v39  ;;  %v2559_v46 = vsel %vm71_vm0, %v2497_v39, 0.0  ;;  %v12189_v27 = vadd.f32 %v2294_v37, %v14970_v38 }
 0x1db   :  { %v3109_v10 = vadd.f32 %v3052_v51, %v2939_v5  ;;  %v2458_v54 = vmax.f32 %v12187_v29, 0.0  ;;  %v2640_v61 = vmul.f32 %v15008_v55, %v15118_v23  ;;  %v2645_v7 = vmul.f32 %v15008_v55, %v2559_v46 }
 0x1dc   :  { %v15126_v9 = vmul.f32 %v15011_v13, %v15118_v23  ;;  %v15132_v14 = vmul.f32 %v15011_v13, %v2559_v46  ;;  %v15136_v57 = vmul.f32 %v15014_v11, %v15118_v23  ;;  %v12190_v31 = vadd.f32 %v2296_v43, %v14977_v30 }
 0x1dd   :  { %v15129_v62 = vadd.f32 %v3222_v49, %v3109_v10  ;;  %v2600_v12 = vmul.f32 %v15005_v45, %v15118_v23  ;;  %v2702_v4 = vrot.slane %v2640_v61, 1  ;;  %v2713_v5 = vrot.slane %v2645_v7, 1 }
 0x1de   :  { %v15142_v39 = vmul.f32 %v15014_v11, %v2559_v46  ;;  %v15147_v29 = vmul.f32 %v15018_v40, %v2559_v46  ;;  %v2503_v51 = vrot.slane %v2458_v54, 6  ;;  %v2459_v43 = vmax.f32 %v12188_v52, 0.0 }
 0x1df   :  { %v2714_v49 = vsel %vm277_vm1, %v2702_v4, %v2713_v5  ;;  %v2463_v10 = vmax.f32 %v12189_v27, 0.0  ;;  %v2464_v7 = vmax.f32 %v12190_v31, 0.0  ;;  %v2703_v21 = vsel %vm277_vm1, %v2701_v8, %v2702_v4 }
 0x1e0   :  { %v2553_v61 = vsel %vm71_vm0, 0.0, %v2503_v51  ;;  %v15153_v53 = vadd.f32 %v2714_v49, %v2600_v12  ;;  %v2504_v31 = vrot.slane %v2459_v43, 6  ;;  %v2765_v49 = vadd.f32 %v2703_v21, %v15066_v41 }
 0x1e1   :  { %v15157_v20 = vmul.f32 %v14989_v47, %v2553_v61  ;;  %v15160_v46 = vmul.f32 %v14992_v22, %v2553_v61  ;;  %v15163_v54 = vmul.f32 %v14995_v26, %v2553_v61  ;;  %v15167_v27 = vmul.f32 %v14983_v60, %v2553_v61 }
 0x1e2   :  { %v2510_v8 = vrot.slane %v2463_v10, 6  ;;  %v15171_v4 = vmul.f32 %v15001_v0, %v2553_v61  ;;  %v2512_v5 = vrot.slane %v2464_v7, 6  ;;  %v2554_v30 = vsel %vm71_vm0, 0.0, %v2504_v31 }
 0x1e3   :  { %19184 = vst [vmem:[#allocation24_spill] sm:$0xff] %v15163_v54  ;;  %v15182_v10 = vmul.f32 %v15008_v55, %v2554_v30  ;;  %v15185_v61 = vmul.f32 %v15011_v13, %v2554_v30  ;;  %v15188_v7 = vmul.f32 %v15014_v11, %v2554_v30  ;;  %v15191_v21 = vmul.f32 %v15005_v45, %v2554_v30 }
 0x1e4   :  { %19185 = vst [vmem:[#allocation25_spill] sm:$0xff] %v15171_v4  ;;  %v15177_v37 = vsel %vm71_vm0, %v2503_v51, %v2510_v8  ;;  %v2563_v52 = vsel %vm71_vm0, %v2510_v8, 0.0  ;;  %v15194_v51 = vmul.f32 %v15018_v40, %v2554_v30  ;;  %v19191_v44 = vrot.slane %v15072_v28, 2 }
 0x1e5   :  { %19186 = vst [vmem:[#allocation26_spill] sm:$0xff] %v15177_v37  ;;  %v15198_v8 = vmul.f32 %v14989_v47, %v15177_v37  ;;  %v2659_v43 = vmul.f32 %v14989_v47, %v2563_v52  ;;  %v2726_v12 = vrot.slane %v15182_v10, 1  ;;  %v2896_v38 = vrot.slane %v15185_v61, 2 }
 0x1e6   :  { %19187 = vst [vmem:[#allocation27_spill] sm:$0xff] %v15194_v51  ;;  %v15205_v58 = vmul.f32 %v14983_v60, %v15177_v37  ;;  %v15209_v19 = vmul.f32 %v14992_v22, %v15177_v37  ;;  %v15214_v47 = vmul.f32 %v14992_v22, %v2563_v52  ;;  %v15220_v60 = vmul.f32 %v14995_v26, %v15177_v37 }
 0x1e7   :  { %v11923_v41 = vpop.f32.mrb[16].mxu1  ;;  %v19054_v32 = vrot.slane %v15198_v8, 1  ;;  %v2736_v15 = vrot.slane %v2659_v43, 1  ;;  %v15223_v36 = vmul.f32 %v14995_v26, %v2563_v52  ;;  %v15231_v22 = vmul.f32 %v15001_v0, %v2563_v52 }
 0x1e8   :  { %v11924_v48 = vpop.f32.mrb[17].mxu1  ;;  %v2513_v43 = vsel %vm71_vm0, %v2504_v31, %v2512_v5  ;;  %v2564_v61 = vsel %vm71_vm0, %v2512_v5, 0.0  ;;  %v19190_v37 = vrot.slane %v15126_v9, 2 }
 0x1e9   :  { %v11926_v30 = vpop.f32.mrb[18].mxu1  ;;  %19188 = vst [vmem:[#allocation28_spill] sm:$0xff] %v15223_v36  ;;  %v15228_v18 = vsel %vm277_vm1, %v19054_v32, %v2736_v15  ;;  %19189 = vst [vmem:[#allocation29_spill] sm:$0xff] %v15231_v22  ;;  %v2610_v26 = vmul.f32 %v15005_v45, %v2513_v43  ;;  %v2655_v50 = vmul.f32 %v15008_v55, %v2513_v43 }
 0x1ea   :  { %v11927_v10 = vpop.f32.mrb[19].mxu1  ;;  %v2660_v15 = vmul.f32 %v15008_v55, %v2564_v61  ;;  %v2825_v32 = vmul.f32 %v15011_v13, %v2513_v43  ;;  %v2830_v52 = vmul.f32 %v15011_v13, %v2564_v61  ;;  %v2995_v31 = vmul.f32 %v15014_v11, %v2513_v43 }
 0x1eb   :  { %v3000_v5 = vmul.f32 %v15014_v11, %v2564_v61  ;;  %v15246_v56 = vmul.f32 %v15018_v40, %v2564_v61  ;;  %v2873_v45 = vsel %vm448_vm2, %v19191_v44, %v19190_v37  ;;  %v2727_v55 = vrot.slane %v2655_v50, 1 }
 0x1ec   :  { %v2738_v22 = vrot.slane %v2660_v15, 1  ;;  %v2897_v35 = vrot.slane %v2825_v32, 2  ;;  %v2908_v24 = vrot.slane %v2830_v52, 2  ;;  %v3067_v4 = vrot.slane %v2995_v31, 3 }
 0x1ed   :  { %v3078_v51 = vrot.slane %v3000_v5, 3  ;;  %v3248_v11 = vrot.slane %v15246_v56, 4  ;;  %v19192_v61 = vrot.slane %v15132_v14, 2  ;;  %v19193_v36 = vmov %v19190_v37 }
 0x1ee   :  { %v2739_v44 = vsel %vm277_vm1, %v2727_v55, %v2738_v22  ;;  %v2935_v50 = vadd.f32 %v2873_v45, %v2765_v49  ;;  %v19194_v37 = vrot.slane %v15136_v57, 3  ;;  %v19195_v15 = vrot.slane %v15076_v6, 3 }
 0x1ef   :  { %v15253_v0 = vpop.f32.mrb[20].mxu1  ;;  %v2884_v28 = vsel %vm448_vm2, %v19193_v36, %v19192_v61  ;;  %v19196_v14 = vrot.slane %v15142_v39, 3  ;;  %v3150_v22 = vmul.f32 %v15018_v40, %v15118_v23  ;;  %v19198_v49 = vrot.slane %v15089_v59, 3 }
 0x1f0   :  { %v15255_v13 = vpop.f32.mrb[21].mxu1  ;;  %v2940_v32 = vadd.f32 %v2884_v28, %v15153_v53  ;;  %v3043_v52 = vsel %vm619_vm3, %v19195_v15, %v19194_v37  ;;  %v19197_v9 = vmov %v19194_v37  ;;  %v2934_v53 = vadd.f32 %v15101_v2, %v15098_v63 }
 0x1f1   :  { %v15263_v54 = vpop.f32.mrb[22].mxu1  ;;  %v3054_v36 = vsel %vm619_vm3, %v19197_v9, %v19196_v14  ;;  %v19199_v6 = vrot.slane %v15051_v16, 3  ;;  %v3105_v5 = vadd.f32 %v3043_v52, %v2935_v50  ;;  %v19200_v39 = vrot.slane %v15093_v34, 4 }
 0x1f2   :  { %v15272_v56 = vpop.f32.mrb[23].mxu1  ;;  %v3110_v45 = vadd.f32 %v3054_v36, %v2940_v32  ;;  %v19201_v57 = vrot.slane %v15057_v17, 4  ;;  %v11925_v28 = vadd.f32 %v11924_v48, %v11923_v41  ;;  %v3212_v37 = vrot.slane %v3150_v22, 4 }
 0x1f3   :  { %v3040_v31 = vsel %vm619_vm3, %v19199_v6, %v19198_v49  ;;  %v11928_v15 = vadd.f32 %v11927_v10, %v11926_v30  ;;  %v2728_v63 = vsel %vm277_vm1, %v2726_v12, %v2727_v55  ;;  %v2780_v2 = vadd.f32 %v2739_v44, %v2610_v26 }
 0x1f4   :  { %v3210_v61 = vsel %vm790_vm4, %v19201_v57, %v19200_v39  ;;  %v3104_v23 = vadd.f32 %v3040_v31, %v2934_v53  ;;  %v2383_v59 = vadd.f32 %v11925_v28, %v15021_v3  ;;  %v2775_v16 = vadd.f32 %v2728_v63, %v15191_v21  ;;  %v19212_v31 = vld [vmem:[#allocation24_spill] sm:$0xff] }
 0x1f5   :  { %v2898_v50 = vsel %vm448_vm2, %v2896_v38, %v2897_v35  ;;  %v19202_v32 = vrot.slane %v15082_v33, 4  ;;  %v19203_v17 = vrot.slane %v15147_v29, 4  ;;  %v2909_v30 = vsel %vm448_vm2, %v2897_v35, %v2908_v24  ;;  %v12717_v24 = vld [vmem:[%s19021_s2 + $0x524] ss:$20 sps:$4 sm:$0xff]  }
 0x1f6   :  { %v3274_v41 = vadd.f32 %v3210_v61, %v3104_v23  ;;  %v2432_v3 = vadd.f32 %v14867_v25, %v2383_v59  ;;  %v2945_v55 = vadd.f32 %v2898_v50, %v2775_v16  ;;  %v2950_v38 = vadd.f32 %v2909_v30, %v2780_v2  ;;  %v19221_v16 = vld [vmem:[#allocation21_spill] sm:$0xff]  ;;  %v19222_v50 = vld [vmem:[#allocation22_spill] sm:$0xff] }
 0x1f7   :  { %v3213_v34 = vsel %vm790_vm4, %v19202_v32, %v3212_v37  ;;  %v3224_v48 = vsel %vm790_vm4, %v3212_v37, %v19203_v17  ;;  %v19204_v33 = vrot.slane %v15188_v7, 3  ;;  %v3079_v29 = vsel %vm619_vm3, %v3067_v4, %v3078_v51  ;;  %v19223_v17 = vld [vmem:[#allocation23_spill] sm:$0xff] }
 0x1f8   :  { %v3275_v10 = vadd.f32 %v3213_v34, %v3105_v5  ;;  %v3280_v12 = vadd.f32 %v3224_v48, %v3110_v45  ;;  %v15306_v21 = vpack.c.bf16 %v15129_v62, %v3274_v41  ;;  %v2450_v35 = vmax.f32 %v2432_v3, 0.0  ;;  %v12718_v62 = vld [vmem:[%s19021_s2 + $0x68c] ss:$20 sps:$4 sm:$0xff]   ;;  %v19214_v45 = vld [vmem:[#allocation28_spill] sm:$0xff]  ;;  %v12720_v34 = vld [vmem:[%s19021_s2 + $0x6b4] ss:$20 sps:$4 sm:$0xff]  }
 0x1f9   :  { %v3068_v26 = vsel %vm619_vm3, %v19204_v33, %v3067_v4  ;;  %v3165_v25 = vmul.f32 %v15018_v40, %v2513_v43  ;;  %v3120_v14 = vadd.f32 %v3079_v29, %v2950_v38  ;;  %v2386_v7 = vadd.f32 %v11928_v15, %v15027_v1  ;;  %v19219_v15 = vld [vmem:[#allocation25_spill] sm:$0xff] }
 0x1fa   :  { %v15312_v44 = vpack.c.bf16 %v3280_v12, %v3275_v10  ;;  %v3115_v52 = vadd.f32 %v3068_v26, %v2945_v55  ;;  %v19205_v9 = vrot.slane %v15198_v8, 1  ;;  %v19206_v4 = vrot.slane %v15157_v20, 1  ;;  %v19224_v10 = vld [vmem:[#allocation29_spill] sm:$0xff] }
 0x1fb   :  { %v2779_v36 = vadd.f32 %v15228_v18, %v15205_v58  ;;  %v2490_v22 = vrot.slane %v2450_v35, 6  ;;  %v3237_v40 = vrot.slane %v3165_v25, 4  ;;  %v19207_v53 = vrot.slane %v15209_v19, 2  ;;  %v19225_v3 = vld [vmem:[#allocation17_spill] sm:$0xff]  ;;  %v12721_v25 = vld [vmem:[%s19021_s2 + $0x574] ss:$20 sps:$4 sm:$0xff]  }
 0x1fc   :  { %v2725_v51 = vsel %vm277_vm1, %v19206_v4, %v19205_v9  ;;  %4477 = vmatprep.mubr.bf16.mxu1 %v15312_v44  ;;  %v19208_v49 = vrot.slane %v15160_v46, 2  ;;  %v2435_v20 = vadd.f32 %v14884_v42, %v2386_v7  ;;  %v19209_v8 = vrot.slane %v15214_v47, 2  ;;  %v12719_v42 = vld [vmem:[%s19021_s2 + $0x54c] ss:$20 sps:$4 sm:$0xff]   ;;  %v19217_v47 = vld [vmem:[#allocation27_spill] sm:$0xff] }
 0x1fd   :  { %v2774_v43 = vadd.f32 %v2725_v51, %v15167_v27  ;;  %4478 = vmatmul.mubr.bf16.vlgmr.msra.gmra.mrb[24].mxu1 %v15306_v21  ;;  %v19210_v58 = vmov %v19207_v53  ;;  %v19211_v6 = vrot.slane %v15220_v60, 3  ;;  %v19213_v27 = vrot.slane %v19212_v31, 3  ;;  %v19220_v60 = vld [vmem:[#allocation20_spill] sm:$0xff] }
 0x1fe   :  { %v2895_v1 = vsel %vm448_vm2, %v19208_v49, %v19207_v53  ;;  %v2907_v18 = vsel %vm448_vm2, %v19210_v58, %v19209_v8  ;;  %v19215_v46 = vrot.slane %v19214_v45, 3  ;;  %11939 = vmatpush3.bf16.msra.mxu1 %v12717_v24  ;;  %v2550_v19 = vsel %vm71_vm0, 0.0, %v2490_v22  ;;  %v12723_v8 = vld [vmem:[%s19021_s2 + $0x59c] ss:$20 sps:$4 sm:$0xff]  }
 0x1ff   :  { %v3065_v5 = vsel %vm619_vm3, %v19213_v27, %v19211_v6  ;;  %v19216_v39 = vmov %v19211_v6  ;;  %v19218_v61 = vrot.slane %v19217_v47, 4  ;;  %v3249_v37 = vsel %vm790_vm4, %v3237_v40, %v3248_v11  ;;  %11940 = vmatprep.subr.bf16.mxu1 %v12718_v62  ;;  %v12724_v27 = vld [vmem:[%s19021_s2 + $0x704] ss:$20 sps:$4 sm:$0xff]  }
 0x200   :  { %v3077_v57 = vsel %vm619_vm3, %v19216_v39, %v19215_v46  ;;  %v2944_v23 = vadd.f32 %v2895_v1, %v2774_v43  ;;  %v3233_v63 = vrot.slane %v19219_v15, 4  ;;  %v2636_v59 = vmul.f32 %v19220_v60, %v2550_v19  ;;  %v19227_v43 = vld [vmem:[#allocation16_spill] sm:$0xff]  ;;  %v12727_v15 = vld [vmem:[%s19021_s2 + $0x5ec] ss:$20 sps:$4 sm:$0xff]  }
 0x201   :  { %v3238_v28 = vsel %vm790_vm4, %v19218_v61, %v3237_v40  ;;  %v2806_v2 = vmul.f32 %v19221_v16, %v2550_v19  ;;  %v15365_v32 = vmul.f32 %v19222_v50, %v2550_v19  ;;  %v15371_v48 = vmul.f32 %v19223_v17, %v2550_v19  ;;  %v19226_v40 = vld [vmem:[#allocation26_spill] sm:$0xff] }
 0x202   :  { %v3285_v41 = vadd.f32 %v3238_v28, %v3115_v52  ;;  %v3290_v11 = vadd.f32 %v3249_v37, %v3120_v14  ;;  %v2455_v30 = vmax.f32 %v2435_v20, 0.0  ;;  %v3246_v12 = vrot.slane %v19224_v10, 4  ;;  %11941 = vmatpush3.bf16.msra.mxu1 %v12719_v42  ;;  %v12722_v14 = vld [vmem:[%s19021_s2 + $0x6dc] ss:$20 sps:$4 sm:$0xff]  }
 0x203   :  { %v2596_v55 = vmul.f32 %v19225_v3, %v2550_v19  ;;  %v2704_v38 = vrot.slane %v2636_v59, 1  ;;  %v2949_v33 = vadd.f32 %v2907_v18, %v2779_v36  ;;  %v2874_v26 = vrot.slane %v2806_v2, 2  ;;  %11942 = vmatprep.subr.bf16.mxu1 %v12720_v34  ;;  %v12725_v59 = vld [vmem:[%s19021_s2 + $0x5c4] ss:$20 sps:$4 sm:$0xff]   ;;  %v19228_v34 = vld [vmem:[#allocation18_spill] sm:$0xff] }
 0x204   :  { %v15375_v29 = vpack.c.bf16 %v3290_v11, %v3285_v41  ;;  %v2499_v24 = vrot.slane %v2455_v30, 6  ;;  %v3114_v35 = vadd.f32 %v3065_v5, %v2944_v23  ;;  %v3044_v52 = vrot.slane %v15365_v32, 3  ;;  %v19229_v41 = vld [vmem:[#allocation19_spill] sm:$0xff]  ;;  %v12726_v30 = vld [vmem:[%s19021_s2 + $0x72c] ss:$20 sps:$4 sm:$0xff]  }
 0x205   :  { %v3119_v62 = vadd.f32 %v3077_v57, %v2949_v33  ;;  %v11931_v7 = vadd.f32 %v15255_v13, %v15253_v0  ;;  %v11934_v9 = vadd.f32 %v15272_v56, %v15263_v54  ;;  %v3214_v4 = vrot.slane %v15371_v48, 4 }
 0x206   :  { %4487 = vmatprep.mubr.bf16.mxu1 %v15375_v29  ;;  %v2500_v51 = vsel %vm71_vm0, %v2490_v22, %v2499_v24  ;;  %v2560_v36 = vsel %vm71_vm0, %v2499_v24, 0.0  ;;  %v3164_v53 = vmul.f32 %v19227_v43, %v19226_v40  ;;  %11943 = vmatpush3.bf16.msra.mxu1 %v12721_v25 }
 0x207   :  { %v2601_v49 = vmul.f32 %v19225_v3, %v2500_v51  ;;  %v2641_v1 = vmul.f32 %v19220_v60, %v2500_v51  ;;  %v2646_v0 = vmul.f32 %v19220_v60, %v2560_v36  ;;  %v2811_v13 = vmul.f32 %v19221_v16, %v2500_v51  ;;  %11944 = vmatprep.subr.bf16.mxu1 %v12722_v14  ;;  %v19230_v14 = vld [vmem:[#allocation12_spill] sm:$0xff] }
 0x208   :  { %v2816_v54 = vmul.f32 %v19221_v16, %v2560_v36  ;;  %v2981_v56 = vmul.f32 %v19222_v50, %v2500_v51  ;;  %v2986_v20 = vmul.f32 %v19222_v50, %v2560_v36  ;;  %v3151_v22 = vmul.f32 %v19223_v17, %v2500_v51 }
 0x209   :  { %v2705_v58 = vrot.slane %v2641_v1, 1  ;;  %v2715_v18 = vrot.slane %v2646_v0, 1  ;;  %v2875_v6 = vrot.slane %v2811_v13, 2  ;;  %v3156_v31 = vmul.f32 %v19223_v17, %v2560_v36  ;;  %v19232_v13 = vld [vmem:[#allocation11_spill] sm:$0xff] }
 0x20a   :  { %v2885_v5 = vrot.slane %v2816_v54, 2  ;;  %v3045_v45 = vrot.slane %v2981_v56, 3  ;;  %v3055_v46 = vrot.slane %v2986_v20, 3  ;;  %v3215_v39 = vrot.slane %v3151_v22, 4  ;;  %11945 = vmatpush3.bf16.msra.mxu1 %v12723_v8  ;;  %v12729_v22 = vld [vmem:[%s19021_s2 + $0x614] ss:$20 sps:$4 sm:$0xff]  }
 0x20b   :  { %v2706_v57 = vsel %vm277_vm1, %v2704_v38, %v2705_v58  ;;  %v2716_v42 = vsel %vm277_vm1, %v2705_v58, %v2715_v18  ;;  %v2876_v19 = vsel %vm448_vm2, %v2874_v26, %v2875_v6  ;;  %v3225_v47 = vrot.slane %v3156_v31, 4  ;;  %11946 = vmatprep.subr.bf16.mxu1 %v12724_v27  ;;  %v12739_v8 = vld [vmem:[%s19021_s2 + $0x548] ss:$20 sps:$4 sm:$0xff]  }
 0x20c   :  { %v2766_v61 = vadd.f32 %v2706_v57, %v2596_v55  ;;  %v2771_v28 = vadd.f32 %v2716_v42, %v2601_v49  ;;  %v2886_v37 = vsel %vm448_vm2, %v2875_v6, %v2885_v5  ;;  %v3056_v23 = vsel %vm619_vm3, %v3045_v45, %v3055_v46  ;;  %v12732_v27 = vld [vmem:[%s19021_s2 + $0x77c] ss:$20 sps:$4 sm:$0xff]  }
 0x20d   :  { %v3226_v2 = vsel %vm790_vm4, %v3215_v39, %v3225_v47  ;;  %v3234_v32 = vrot.slane %v3164_v53, 4  ;;  %v2391_v48 = vadd.f32 %v11931_v7, %v19228_v34  ;;  %v2394_v11 = vadd.f32 %v11934_v9, %v19229_v41  ;;  %v19231_v9 = vld [vmem:[#allocation13_spill] sm:$0xff]  ;;  %v12733_v57 = vld [vmem:[%s19021_s2 + $0x63c] ss:$20 sps:$4 sm:$0xff]  }
 0x20e   :  { %v2941_v55 = vadd.f32 %v2886_v37, %v2771_v28  ;;  %v2936_v38 = vadd.f32 %v2876_v19, %v2766_v61  ;;  %v3046_v33 = vsel %vm619_vm3, %v3044_v52, %v3045_v45  ;;  %v3216_v26 = vsel %vm790_vm4, %v3214_v4, %v3215_v39  ;;  %11947 = vmatpush3.bf16.msra.mxu1 %v12725_v59 }
 0x20f   :  { %v3235_v24 = vsel %vm790_vm4, %v3233_v63, %v3234_v32  ;;  %v3247_v25 = vsel %vm790_vm4, %v3234_v32, %v3246_v12  ;;  %v2440_v7 = vadd.f32 %v19230_v14, %v2391_v48  ;;  %v2443_v51 = vadd.f32 %v19231_v9, %v2394_v11  ;;  %11948 = vmatprep.subr.bf16.mxu1 %v12726_v30  ;;  %v12728_v12 = vld [vmem:[%s19021_s2 + $0x754] ss:$20 sps:$4 sm:$0xff]   ;;  %v12743_v11 = vld [vmem:[%s19021_s2 + $0xa24] ss:$0 sps:$4 sm:$0x11]  }
 0x210   :  { %v3111_v36 = vadd.f32 %v3056_v23, %v2941_v55  ;;  %v3284_v40 = vadd.f32 %v3235_v24, %v3114_v35  ;;  %v3289_v43 = vadd.f32 %v3247_v25, %v3119_v62  ;;  %v3106_v53 = vadd.f32 %v3046_v33, %v2936_v38  ;;  %v12734_v62 = vld [vmem:[%s19021_s2 + $0x51c] ss:$20 sps:$4 sm:$0xff]  }
 0x211   :  { %v2460_v52 = vmax.f32 %v2440_v7, 0.0  ;;  %v2465_v49 = vmax.f32 %v2443_v51, 0.0  ;;  %v19233_v28 = vmov 0  }
 0x212   :  { %v3281_v63 = vadd.f32 %v3226_v2, %v3111_v36  ;;  %v15436_v10 = vpack.c.bf16 %v3289_v43, %v3284_v40  ;;  %v3276_v4 = vadd.f32 %v3216_v26, %v3106_v53  ;;  %11949 = vmatpush3.bf16.msra.mxu1 %v12727_v15  ;;  %v12742_v2 = vld [vmem:[%s19021_s2 + $0x570] ss:$20 sps:$4 sm:$0xff]   ;;  %v4390_v43 = vsel %vm1965_vm5, %v12743_v11, 0  ;;  %v12746_v53 = vld [vmem:[%s19021_s2 + $0x598] ss:$20 sps:$4 sm:$0xff]  }
 0x213   :  { %v2505_v1 = vrot.slane %v2460_v52, 6  ;;  %v2514_v35 = vrot.slane %v2465_v49, 6  ;;  %11950 = vmatprep.subr.bf16.mxu1 %v12728_v12 }
 0x214   :  { %4488 = vmatmul.mubr.bf16.gmra.mrb[28].mxu1 %v15436_v10  ;;  %v15445_v0 = vpack.c.bf16 %v3281_v63, %v3276_v4  ;;  %v19234_v63 = vld [vmem:[#allocation10_spill] sm:$0xff] }
 0x215   :  { %4742 = vmatprep.mubr.bf16.mxu1 %v19232_v13  ;;  %v2555_v54 = vsel %vm71_vm0, 0.0, %v2505_v1  ;;  %v2515_v56 = vsel %vm71_vm0, %v2505_v1, %v2514_v35  ;;  %v2565_v20 = vsel %vm71_vm0, %v2514_v35, 0.0  ;;  %v12744_v4 = vld [vmem:[%s19021_s2 + $0x594] ss:$20 sps:$4 sm:$0xff]  }
 0x216   :  { %v2606_v58 = vmul.f32 %v19225_v3, %v2555_v54  ;;  %v2651_v18 = vmul.f32 %v19220_v60, %v2555_v54  ;;  %v2821_v6 = vmul.f32 %v19221_v16, %v2555_v54  ;;  %v2991_v31 = vmul.f32 %v19222_v50, %v2555_v54  ;;  %11038 = vmatmul.mubr.msk.bf16.vlgmr.msra.gmra.mrb[20].mxu0 %vm1958_vm6, %v15445_v0  ;;  %v19235_v1 = vld [vmem:[#allocation14_spill] sm:$0xff] }
 0x217   :  { %v3161_v5 = vmul.f32 %v19223_v17, %v2555_v54  ;;  %v2611_v45 = vmul.f32 %v19225_v3, %v2515_v56  ;;  %v2656_v46 = vmul.f32 %v19220_v60, %v2515_v56  ;;  %v2661_v39 = vmul.f32 %v19220_v60, %v2565_v20  ;;  %4552 = vmatpush1.bf16.msra.mxu0 %v12734_v62  ;;  %v12737_v3 = vld [vmem:[%s19021_s2 + $0x544] ss:$20 sps:$4 sm:$0xff]   ;;  %v12749_v62 = vld [vmem:[%s19021_s2 + $0x5c0] ss:$20 sps:$4 sm:$0xff]  }
 0x218   :  { %v2729_v42 = vrot.slane %v2651_v18, 1  ;;  %v2899_v19 = vrot.slane %v2821_v6, 2  ;;  %v3069_v47 = vrot.slane %v2991_v31, 3  ;;  %v2826_v61 = vmul.f32 %v19221_v16, %v2515_v56  ;;  %4540 = vmatprep.mubr.bf16.mxu0 %v19233_v28  ;;  %11951 = vmatpush3.bf16.msra.mxu1 %v12729_v22  ;;  %v12747_v22 = vld [vmem:[%s19021_s2 + $0x5bc] ss:$20 sps:$4 sm:$0xff]  }
 0x219   :  { %v3239_v60 = vrot.slane %v3161_v5, 4  ;;  %v2730_v37 = vrot.slane %v2656_v46, 1  ;;  %v2740_v23 = vrot.slane %v2661_v39, 1  ;;  %v2831_v59 = vmul.f32 %v19221_v16, %v2565_v20  ;;  %4553 = vmatprep.subr.bf16.mxu0 %v12739_v8  ;;  %11952 = vmatprep.subr.bf16.mxu1 %v12732_v27  ;;  %v12752_v8 = vld [vmem:[%s19021_s2 + $0x5e8] ss:$20 sps:$4 sm:$0xff]  }
 0x21a   :  { %v2900_v32 = vrot.slane %v2826_v61, 2  ;;  %v2996_v34 = vmul.f32 %v19222_v50, %v2515_v56  ;;  %v3001_v48 = vmul.f32 %v19222_v50, %v2565_v20  ;;  %v3171_v41 = vmul.f32 %v19223_v17, %v2565_v20  ;;  %v12740_v50 = vld [vmem:[%s19021_s2 + $0x56c] ss:$20 sps:$4 sm:$0xff]   ;;  %v12750_v18 = vld [vmem:[%s19021_s2 + $0x5e4] ss:$20 sps:$4 sm:$0xff]  }
 0x21b   :  { %v2910_v30 = vrot.slane %v2831_v59, 2  ;;  %v2731_v16 = vsel %vm277_vm1, %v2729_v42, %v2730_v37  ;;  %v2741_v55 = vsel %vm277_vm1, %v2730_v37, %v2740_v23  ;;  %v3166_v38 = vmul.f32 %v19223_v17, %v2515_v56  ;;  %4554 = vmatpush1.bf16.msra.mxu0 %v12737_v3  ;;  %v12755_v6 = vld [vmem:[%s19021_s2 + $0x610] ss:$20 sps:$4 sm:$0xff]   ;;  %v12753_v31 = vld [vmem:[%s19021_s2 + $0x60c] ss:$20 sps:$4 sm:$0xff]  }
 0x21c   :  { %v3070_v33 = vrot.slane %v2996_v34, 3  ;;  %v3080_v26 = vrot.slane %v3001_v48, 3  ;;  %v3250_v24 = vrot.slane %v3171_v41, 4  ;;  %v2776_v25 = vadd.f32 %v2731_v16, %v2606_v58  ;;  %11953 = vmatpush3.bf16.msra.mxu1 %v12733_v57  ;;  %4555 = vmatprep.subr.bf16.mxu0 %v12742_v2  ;;  %v19236_v58 = vld [vmem:[#allocation15_spill] sm:$0xff]  ;;  %v12764_v46 = vld [vmem:[%s19021_s2 + $0x688] ss:$20 sps:$4 sm:$0xff]  }
 0x21d   :  { %v2781_v14 = vadd.f32 %v2741_v55, %v2611_v45  ;;  %v2901_v7 = vsel %vm448_vm2, %v2899_v19, %v2900_v32  ;;  %v2911_v9 = vsel %vm448_vm2, %v2900_v32, %v2910_v30  ;;  %v3240_v51 = vrot.slane %v3166_v38, 4  ;;  %12384 = vmatprep.subr.msk.bf16.mxu1 %vm1965_vm5, %v12743_v11  ;;  %v12756_v27 = vld [vmem:[%s19021_s2 + $0x634] ss:$20 sps:$4 sm:$0xff]   ;;  %v12759_v45 = vld [vmem:[%s19021_s2 + $0x65c] ss:$20 sps:$4 sm:$0xff]  }
 0x21e   :  { %v2946_v36 = vadd.f32 %v2901_v7, %v2776_v25  ;;  %v3071_v17 = vsel %vm619_vm3, %v3069_v47, %v3070_v33  ;;  %v3081_v40 = vsel %vm619_vm3, %v3070_v33, %v3080_v26  ;;  %v12761_v5 = vld [vmem:[%s19021_s2 + $0x660] ss:$20 sps:$4 sm:$0xff]   ;;  %v12762_v39 = vld [vmem:[%s19021_s2 + $0x684] ss:$20 sps:$4 sm:$0xff]   ;;  %v12771_v3 = vld [vmem:[%s19021_s2 + $0x6fc] ss:$20 sps:$4 sm:$0xff]  }
 0x21f   :  { %v2951_v52 = vadd.f32 %v2911_v9, %v2781_v14  ;;  %v3241_v49 = vsel %vm790_vm4, %v3239_v60, %v3240_v51  ;;  %v3251_v15 = vsel %vm790_vm4, %v3240_v51, %v3250_v24  ;;  %4743 = vmatmul.mubr.bf16.vlgmr.msra.gmra.mrb[32].mxu1 %v19234_v63  ;;  %4556 = vmatpush1.bf16.msra.mxu0 %v12740_v50  ;;  %v12767_v57 = vld [vmem:[%s19021_s2 + $0x6b0] ss:$20 sps:$4 sm:$0xff]   ;;  %v12765_v42 = vld [vmem:[%s19021_s2 + $0x6ac] ss:$20 sps:$4 sm:$0xff]   ;;  %v12768_v47 = vld [vmem:[%s19021_s2 + $0x6d4] ss:$20 sps:$4 sm:$0xff]  }
 0x220   :  { %v3116_v12 = vadd.f32 %v3071_v17, %v2946_v36  ;;  %4750 = vmatprep.mubr.bf16.mxu1 %v19235_v1  ;;  %12150 = vmatpush3.bf16.msra.mxu1 %v4390_v43  ;;  %v12770_v19 = vld [vmem:[%s19021_s2 + $0x6d8] ss:$20 sps:$4 sm:$0xff]   ;;  %v12773_v61 = vld [vmem:[%s19021_s2 + $0x700] ss:$20 sps:$4 sm:$0xff]   ;;  %v12776_v60 = vld [vmem:[%s19021_s2 + $0x728] ss:$20 sps:$4 sm:$0xff]  }
 0x221   :  { %v3121_v35 = vadd.f32 %v3081_v40, %v2951_v52  ;;  %4557 = vmatprep.subr.bf16.mxu0 %v12746_v53  ;;  %v12852_v37 = vld [vmem:[%s19021_s2 + $0xa30] ss:$20 sps:$4 sm:$0xff]   ;;  %v12854_v59 = vld [vmem:[%s19021_s2 + $0xa34] ss:$20 sps:$4 sm:$0xff]   ;;  %v12777_v32 = vld [vmem:[%s19021_s2 + $0x74c] ss:$20 sps:$4 sm:$0xff]  }
 0x222   :  { %v3286_v54 = vadd.f32 %v3241_v49, %v3116_v12  ;;  %v12774_v23 = vld [vmem:[%s19021_s2 + $0x724] ss:$20 sps:$4 sm:$0xff]   ;;  %6962 = vmatprep.subr.bf16.mxu1 %v12854_v59  ;;  %v12780_v48 = vld [vmem:[%s19021_s2 + $0x774] ss:$20 sps:$4 sm:$0xff]   ;;  %v12783_v30 = vld [vmem:[%s19021_s2 + $0x79c] ss:$20 sps:$4 sm:$0xff]  }
 0x223   :  { %v3291_v56 = vadd.f32 %v3251_v15, %v3121_v35  ;;  %4558 = vmatpush1.bf16.msra.mxu0 %v12744_v4  ;;  %v12779_v2 = vld [vmem:[%s19021_s2 + $0x750] ss:$20 sps:$4 sm:$0xff]   ;;  %v12782_v34 = vld [vmem:[%s19021_s2 + $0x778] ss:$20 sps:$4 sm:$0xff]   ;;  %v12785_v41 = vld [vmem:[%s19021_s2 + $0x7a0] ss:$20 sps:$4 sm:$0xff]  }
 0x224   :  { %4559 = vmatprep.subr.bf16.mxu0 %v12749_v62  ;;  %v12858_v11 = vld [vmem:[%s19021_s2 + $0xa58] ss:$20 sps:$4 sm:$0xff]   ;;  %v12860_v16 = vld [vmem:[%s19021_s2 + $0xa5c] ss:$20 sps:$4 sm:$0xff]   ;;  %v12864_v33 = vld [vmem:[%s19021_s2 + $0xa80] ss:$20 sps:$4 sm:$0xff]  }
 0x225   :  { %v15513_v20 = vpack.c.bf16 %v3291_v56, %v3286_v54  ;;  %v12788_v55 = vld [vmem:[%s19021_s2 + $0x7c8] ss:$20 sps:$4 sm:$0xff]   ;;  %v12866_v38 = vld [vmem:[%s19021_s2 + $0xa84] ss:$20 sps:$4 sm:$0xff]   ;;  %v12789_v50 = vld [vmem:[%s19021_s2 + $0x7ec] ss:$20 sps:$4 sm:$0xff]  }
 0x226   :  { %v12786_v26 = vld [vmem:[%s19021_s2 + $0x7c4] ss:$20 sps:$4 sm:$0xff]   ;;  %v12792_v14 = vld [vmem:[%s19021_s2 + $0x814] ss:$20 sps:$4 sm:$0xff]   ;;  %v12795_v9 = vld [vmem:[%s19021_s2 + $0x83c] ss:$20 sps:$4 sm:$0xff]  }
 0x227   :  { %11039 = vmatmul.mubr.msk.bf16.gmra.mrb[24].mxu0 %vm1958_vm6, %v15513_v20  ;;  %4751 = vmatmul.mubr.bf16.gmra.mrb[36].mxu1 %v19236_v58  ;;  %v12791_v24 = vld [vmem:[%s19021_s2 + $0x7f0] ss:$20 sps:$4 sm:$0xff]   ;;  %v12794_v25 = vld [vmem:[%s19021_s2 + $0x818] ss:$20 sps:$4 sm:$0xff]   ;;  %v12797_v7 = vld [vmem:[%s19021_s2 + $0x840] ss:$20 sps:$4 sm:$0xff]  }
 0x228   :  { %4583 = vmatprep.mubr.bf16.mxu0 %v19232_v13  ;;  %12151 = vmatprep.mubr.msk.bf16.mxu1 %vm1958_vm6, %v15445_v0  ;;  %v12758_v13 = vld [vmem:[%s19021_s2 + $0x638] ss:$20 sps:$4 sm:$0xff]   ;;  %v12800_v51 = vld [vmem:[%s19021_s2 + $0x868] ss:$20 sps:$4 sm:$0xff]   ;;  %v12803_v40 = vld [vmem:[%s19021_s2 + $0x890] ss:$20 sps:$4 sm:$0xff]  }
 0x229   :  { %4560 = vmatpush1.bf16.msra.mxu0 %v12747_v22  ;;  %v12798_v36 = vld [vmem:[%s19021_s2 + $0x864] ss:$20 sps:$4 sm:$0xff]   ;;  %v12870_v17 = vld [vmem:[%s19021_s2 + $0xaa8] ss:$20 sps:$4 sm:$0xff]   ;;  %v12872_v43 = vld [vmem:[%s19021_s2 + $0xaac] ss:$20 sps:$4 sm:$0xff]  }
 0x22a   :  { %4561 = vmatprep.subr.bf16.mxu0 %v12752_v8  ;;  %v12878_v53 = vld [vmem:[%s19021_s2 + $0xad4] ss:$20 sps:$4 sm:$0xff]   ;;  %v12801_v52 = vld [vmem:[%s19021_s2 + $0x88c] ss:$20 sps:$4 sm:$0xff]   ;;  %v12876_v49 = vld [vmem:[%s19021_s2 + $0xad0] ss:$20 sps:$4 sm:$0xff]  }
 0x22b   :  { %v12806_v15 = vld [vmem:[%s19021_s2 + $0x8b8] ss:$20 sps:$4 sm:$0xff]   ;;  %v12804_v12 = vld [vmem:[%s19021_s2 + $0x8b4] ss:$20 sps:$4 sm:$0xff]   ;;  %v12807_v62 = vld [vmem:[%s19021_s2 + $0x8dc] ss:$20 sps:$4 sm:$0xff]  }
 0x22c   :  { %v12882_v4 = vld [vmem:[%s19021_s2 + $0xaf8] ss:$20 sps:$4 sm:$0xff]   ;;  %v12888_v54 = vld [vmem:[%s19021_s2 + $0xb20] ss:$20 sps:$4 sm:$0xff]   ;;  %v12812_v56 = vld [vmem:[%s19021_s2 + $0x908] ss:$20 sps:$4 sm:$0xff]  }
 0x22d   :  { %4562 = vmatpush1.bf16.msra.mxu0 %v12750_v18  ;;  %v12890_v35 = vld [vmem:[%s19021_s2 + $0xb24] ss:$20 sps:$4 sm:$0xff]   ;;  %v12896_v22 = vld [vmem:[%s19021_s2 + $0xb4c] ss:$20 sps:$4 sm:$0xff]  }
 0x22e   :  { %4563 = vmatprep.subr.bf16.mxu0 %v12755_v6  ;;  %v12810_v8 = vld [vmem:[%s19021_s2 + $0x904] ss:$20 sps:$4 sm:$0xff]   ;;  %v12902_v6 = vld [vmem:[%s19021_s2 + $0xb74] ss:$20 sps:$4 sm:$0xff]  }
 0x22f   :  { %12152 = vmatmul.mubr.msk.bf16.vlgmr.msra.gmra.mrb[40].mxu1 %vm1958_vm6, %v15513_v20  ;;  %v12815_v18 = vld [vmem:[%s19021_s2 + $0x930] ss:$20 sps:$4 sm:$0xff]   ;;  %v12830_v59 = vld [vmem:[%s19021_s2 + $0x9f8] ss:$20 sps:$4 sm:$0xff]  }
 0x230   :  { %6963 = vmatpush1.bf16.msra.mxu1 %v12852_v37  ;;  %v12827_v37 = vld [vmem:[%s19021_s2 + $0x9d0] ss:$20 sps:$4 sm:$0xff]  }
 0x231   :  { %4564 = vmatpush1.bf16.msra.mxu0 %v12753_v31  ;;  %6964 = vmatprep.subr.bf16.mxu1 %v12860_v16  ;;  %v12813_v31 = vld [vmem:[%s19021_s2 + $0x92c] ss:$20 sps:$4 sm:$0xff]   ;;  %v12833_v16 = vld [vmem:[%s19021_s2 + $0x8e4] ss:$20 sps:$4 sm:$0xff]  }
 0x232   :  { %4565 = vmatprep.subr.bf16.mxu0 %v12758_v13  ;;  %v12900_v13 = vld [vmem:[%s19021_s2 + $0xb70] ss:$20 sps:$4 sm:$0xff]  }
 0x234   :  { %6965 = vmatpush1.bf16.msra.mxu1 %v12858_v11  ;;  %v12924_v11 = vld [vmem:[%s19021_s2 + $0xc10] ss:$20 sps:$4 sm:$0xff]  }
 0x235   :  { %4566 = vmatpush1.bf16.msra.mxu0 %v12756_v27  ;;  %6966 = vmatprep.subr.bf16.mxu1 %v12866_v38  ;;  %v12818_v27 = vld [vmem:[%s19021_s2 + $0x958] ss:$20 sps:$4 sm:$0xff]  }
 0x236   :  { %4567 = vmatprep.subr.bf16.mxu0 %v12761_v5  ;;  %v12908_v5 = vld [vmem:[%s19021_s2 + $0xb9c] ss:$20 sps:$4 sm:$0xff]   ;;  %v12930_v38 = vld [vmem:[%s19021_s2 + $0xc38] ss:$20 sps:$4 sm:$0xff]  }
 0x238   :  { %6967 = vmatpush1.bf16.msra.mxu1 %v12864_v33  ;;  %v12936_v33 = vld [vmem:[%s19021_s2 + $0xc60] ss:$20 sps:$4 sm:$0xff]  }
 0x239   :  { %4568 = vmatpush1.bf16.msra.mxu0 %v12759_v45  ;;  %6968 = vmatprep.subr.bf16.mxu1 %v12872_v43  ;;  %v12816_v45 = vld [vmem:[%s19021_s2 + $0x954] ss:$20 sps:$4 sm:$0xff]   ;;  %v12842_v43 = vld [vmem:[%s19021_s2 + $0x844] ss:$20 sps:$4 sm:$0xff]  }
 0x23a   :  { %4569 = vmatprep.subr.bf16.mxu0 %v12764_v46  ;;  %v12906_v46 = vld [vmem:[%s19021_s2 + $0xb98] ss:$20 sps:$4 sm:$0xff]  }
 0x23c   :  { %6969 = vmatpush1.bf16.msra.mxu1 %v12870_v17  ;;  %v12840_v17 = vld [vmem:[%s19021_s2 + $0x81c] ss:$20 sps:$4 sm:$0xff]  }
 0x23d   :  { %4570 = vmatpush1.bf16.msra.mxu0 %v12762_v39  ;;  %6970 = vmatprep.subr.bf16.mxu1 %v12878_v53  ;;  %v12821_v39 = vld [vmem:[%s19021_s2 + $0x980] ss:$20 sps:$4 sm:$0xff]  }
 0x23e   :  { %4571 = vmatprep.subr.bf16.mxu0 %v12767_v57  ;;  %v12819_v57 = vld [vmem:[%s19021_s2 + $0x97c] ss:$20 sps:$4 sm:$0xff]   ;;  %v12845_v53 = vld [vmem:[%s19021_s2 + $0x9d4] ss:$20 sps:$4 sm:$0xff]  }
 0x240   :  { %6971 = vmatpush1.bf16.msra.mxu1 %v12876_v49  ;;  %v12847_v49 = vld [vmem:[%s19021_s2 + $0x9fc] ss:$20 sps:$4 sm:$0xff]  }
 0x241   :  { %4572 = vmatpush1.bf16.msra.mxu0 %v12765_v42  ;;  %v12912_v42 = vld [vmem:[%s19021_s2 + $0xbc0] ss:$20 sps:$4 sm:$0xff]  }
 0x242   :  { %4573 = vmatprep.subr.bf16.mxu0 %v12770_v19  ;;  %v12914_v19 = vld [vmem:[%s19021_s2 + $0xbc4] ss:$20 sps:$4 sm:$0xff]  }
 0x245   :  { %4574 = vmatpush1.bf16.msra.mxu0 %v12768_v47  ;;  %v12824_v47 = vld [vmem:[%s19021_s2 + $0x9a8] ss:$20 sps:$4 sm:$0xff]  }
 0x246   :  { %4575 = vmatprep.subr.bf16.mxu0 %v12773_v61  ;;  %v12920_v61 = vld [vmem:[%s19021_s2 + $0xbec] ss:$20 sps:$4 sm:$0xff]  }
 0x249   :  { %4576 = vmatpush1.bf16.msra.mxu0 %v12771_v3  ;;  %v12822_v3 = vld [vmem:[%s19021_s2 + $0x9a4] ss:$20 sps:$4 sm:$0xff]  }
 0x24a   :  { %4577 = vmatprep.subr.bf16.mxu0 %v12776_v60  ;;  %v12918_v60 = vld [vmem:[%s19021_s2 + $0xbe8] ss:$20 sps:$4 sm:$0xff]  }
 0x24d   :  { %4578 = vmatpush1.bf16.msra.mxu0 %v12774_v23  ;;  %v12825_v23 = vld [vmem:[%s19021_s2 + $0x9cc] ss:$20 sps:$4 sm:$0xff]  }
 0x24e   :  { %4579 = vmatprep.subr.bf16.mxu0 %v12779_v2  ;;  %v10869_v2 = vld [vmem:[%s19021_s2 + $0xa1c] sm:$0x11] }
 0x251   :  { %4580 = vmatpush1.bf16.msra.mxu0 %v12777_v32  ;;  %v12828_v32 = vld [vmem:[%s19021_s2 + $0x9f4] ss:$20 sps:$4 sm:$0xff]  }
 0x252   :  { %4581 = vmatprep.subr.bf16.mxu0 %v12782_v34  ;;  %v11035_v34 = vcombine.high %v10869_v2, %v10869_v2 }
 0x255   :  { %4582 = vmatpush1.bf16.msra.mxu0 %v12780_v48  ;;  %v11034_v48 = vcombine.low %v10869_v2, %v10869_v2 }
 0x256   :  { %4604 = vmatprep.subr.bf16.mxu0 %v12785_v41  ;;  %v12926_v41 = vld [vmem:[%s19021_s2 + $0xc14] ss:$20 sps:$4 sm:$0xff]  }
 0x258   :  { %4584 = vmatmul.mubr.bf16.vlgmr.msra.gmra.mrb[28].mxu0 %v19234_v63  ;;  %v12884_v63 = vld [vmem:[%s19021_s2 + $0xafc] ss:$20 sps:$4 sm:$0xff]  }
 0x259   :  { %4593 = vmatprep.mubr.bf16.mxu0 %v19235_v1  ;;  %4605 = vmatpush1.bf16.msra.mxu0 %v12783_v30  ;;  %v12809_v1 = vld [vmem:[%s19021_s2 + $0x8e0] ss:$20 sps:$4 sm:$0xff]   ;;  %v4384_v30 = vsel %vm1965_vm5, %v11034_v48, 0 }
 0x25a   :  { %4606 = vmatprep.subr.bf16.mxu0 %v12788_v55  ;;  %6972 = vmatprep.subr.bf16.mxu1 %v12884_v63  ;;  %v12932_v55 = vld [vmem:[%s19021_s2 + $0xc3c] ss:$20 sps:$4 sm:$0xff]   ;;  %v12851_v63 = vld [vmem:[%s19021_s2 + $0xa2c] ss:$20 sps:$4 sm:$0xff]  }
 0x25b   :  { %6973 = vmatpush1.bf16.msra.mxu1 %v12882_v4  ;;  %v12857_v4 = vld [vmem:[%s19021_s2 + $0xa54] ss:$20 sps:$4 sm:$0xff]  }
 0x25c   :  { %6974 = vmatprep.subr.bf16.mxu1 %v12890_v35  ;;  %v12863_v35 = vld [vmem:[%s19021_s2 + $0xa7c] ss:$20 sps:$4 sm:$0xff]  }
 0x25d   :  { %4607 = vmatpush1.bf16.msra.mxu0 %v12786_v26  ;;  %v12938_v26 = vld [vmem:[%s19021_s2 + $0xc64] ss:$20 sps:$4 sm:$0xff]   ;;  %v11045_v48 = vld [vmem:[%s19020_s1 + $0x50] sm:$0x1f] }
 0x25e   :  { %4608 = vmatprep.subr.bf16.mxu0 %v12791_v24  ;;  %v12944_v24 = vld [vmem:[%s19021_s2 + $0xc8c] ss:$20 sps:$4 sm:$0xff]  }
 0x25f   :  { %6975 = vmatpush1.bf16.msra.mxu1 %v12888_v54 }
 0x260   :  { %4594 = vmatmul.mubr.bf16.gmra.mrb[32].mxu0 %v19236_v58  ;;  %v12894_v58 = vld [vmem:[%s19021_s2 + $0xb48] ss:$20 sps:$4 sm:$0xff]   ;;  %6976 = vmatprep.subr.bf16.mxu1 %v12896_v22 }
 0x261   :  { %4609 = vmatpush1.bf16.msra.mxu0 %v12789_v50  ;;  %4636 = vmatprep.mubr.bf16.mxu0 %v15312_v44  ;;  %v12942_v50 = vld [vmem:[%s19021_s2 + $0xc88] ss:$20 sps:$4 sm:$0xff]  }
 0x262   :  { %4610 = vmatprep.subr.bf16.mxu0 %v12794_v25  ;;  %v12834_v25 = vld [vmem:[%s19021_s2 + $0x7a4] ss:$20 sps:$4 sm:$0xff]  }
 0x263   :  { %6977 = vmatpush1.bf16.msra.mxu1 %v12894_v58 }
 0x264   :  { %6978 = vmatprep.subr.bf16.mxu1 %v12902_v6  ;;  %v12879_v6 = vld [vmem:[%s19021_s2 + $0xaf0] ss:$20 sps:$4 sm:$0xff]  }
 0x265   :  { %4611 = vmatpush1.bf16.msra.mxu0 %v12792_v14  ;;  %v12835_v14 = vld [vmem:[%s19021_s2 + $0x90c] ss:$20 sps:$4 sm:$0xff]  }
 0x266   :  { %4612 = vmatprep.subr.bf16.mxu0 %v12797_v7  ;;  %v12836_v7 = vld [vmem:[%s19021_s2 + $0x7cc] ss:$20 sps:$4 sm:$0xff]  }
 0x267   :  { %6979 = vmatpush1.bf16.msra.mxu1 %v12900_v13  ;;  %v12885_v13 = vld [vmem:[%s19021_s2 + $0xb18] ss:$20 sps:$4 sm:$0xff]  }
 0x268   :  { %6980 = vmatprep.subr.bf16.mxu1 %v12908_v5  ;;  %v12891_v5 = vld [vmem:[%s19021_s2 + $0xb40] ss:$20 sps:$4 sm:$0xff]  }
 0x269   :  { %4613 = vmatpush1.bf16.msra.mxu0 %v12795_v9  ;;  %v12837_v9 = vld [vmem:[%s19021_s2 + $0x934] ss:$20 sps:$4 sm:$0xff]  }
 0x26a   :  { %4614 = vmatprep.subr.bf16.mxu0 %v12800_v51  ;;  %v12838_v51 = vld [vmem:[%s19021_s2 + $0x7f4] ss:$20 sps:$4 sm:$0xff]  }
 0x26b   :  { %6981 = vmatpush1.bf16.msra.mxu1 %v12906_v46  ;;  %v12899_v46 = vld [vmem:[%s19021_s2 + $0xb6c] ss:$20 sps:$4 sm:$0xff]  }
 0x26c   :  { %6982 = vmatprep.subr.bf16.mxu1 %v12914_v19  ;;  %v19238_v19 = vld [vmem:[#allocation6_spill] sm:$0xff] }
 0x26d   :  { %4615 = vmatpush1.bf16.msra.mxu0 %v12798_v36  ;;  %v12839_v36 = vld [vmem:[%s19021_s2 + $0x95c] ss:$20 sps:$4 sm:$0xff]  }
 0x26e   :  { %4616 = vmatprep.subr.bf16.mxu0 %v12803_v40  ;;  %v12841_v40 = vld [vmem:[%s19021_s2 + $0x984] ss:$20 sps:$4 sm:$0xff]  }
 0x26f   :  { %6983 = vmatpush1.bf16.msra.mxu1 %v12912_v42  ;;  %v12897_v42 = vld [vmem:[%s19021_s2 + $0xb68] ss:$20 sps:$4 sm:$0xff]  }
 0x270   :  { %6984 = vmatprep.subr.bf16.mxu1 %v12920_v61  ;;  %v12905_v61 = vld [vmem:[%s19021_s2 + $0xb94] ss:$20 sps:$4 sm:$0xff]  }
 0x271   :  { %4617 = vmatpush1.bf16.msra.mxu0 %v12801_v52  ;;  %v12846_v52 = vld [vmem:[%s19021_s2 + $0x894] ss:$20 sps:$4 sm:$0xff]  }
 0x272   :  { %4618 = vmatprep.subr.bf16.mxu0 %v12806_v15  ;;  %v12848_v15 = vld [vmem:[%s19021_s2 + $0x8bc] ss:$20 sps:$4 sm:$0xff]  }
 0x273   :  { %6985 = vmatpush1.bf16.msra.mxu1 %v12918_v60 }
 0x274   :  { %6986 = vmatprep.subr.bf16.mxu1 %v12926_v41  ;;  %v12911_v41 = vld [vmem:[%s19021_s2 + $0xbbc] ss:$20 sps:$4 sm:$0xff]  }
 0x275   :  { %4619 = vmatpush1.bf16.msra.mxu0 %v12804_v12  ;;  %v12849_v12 = vld [vmem:[%s19021_s2 + $0xa28] ss:$20 sps:$4 sm:$0xff]  }
 0x276   :  { %4620 = vmatprep.subr.bf16.mxu0 %v12809_v1  ;;  %v12855_v1 = vld [vmem:[%s19021_s2 + $0xa50] ss:$20 sps:$4 sm:$0xff]  }
 0x277   :  { %6987 = vmatpush1.bf16.msra.mxu1 %v12924_v11 }
 0x278   :  { %6988 = vmatprep.subr.bf16.mxu1 %v12932_v55 }
 0x279   :  { %4621 = vmatpush1.bf16.msra.mxu0 %v12807_v62  ;;  %v12861_v62 = vld [vmem:[%s19021_s2 + $0xa78] ss:$20 sps:$4 sm:$0xff]  }
 0x27a   :  { %4622 = vmatprep.subr.bf16.mxu0 %v12812_v56  ;;  %v12875_v56 = vld [vmem:[%s19021_s2 + $0xacc] ss:$20 sps:$4 sm:$0xff]  }
 0x27b   :  { %6989 = vmatpush1.bf16.msra.mxu1 %v12930_v38 }
 0x27c   :  { %6990 = vmatprep.subr.bf16.mxu1 %v12938_v26 }
 0x27d   :  { %4623 = vmatpush1.bf16.msra.mxu0 %v12810_v8 }
 0x27e   :  { %4624 = vmatprep.subr.bf16.mxu0 %v12815_v18  ;;  %v12873_v18 = vld [vmem:[%s19021_s2 + $0xac8] ss:$20 sps:$4 sm:$0xff]  }
 0x27f   :  { %6991 = vmatpush1.bf16.msra.mxu1 %v12936_v33 }
 0x280   :  { %6992 = vmatprep.subr.bf16.mxu1 %v12944_v24  ;;  %v15933_v24 = vrot.slane %v11045_v48, %v19238_v19 }
 0x281   :  { %4625 = vmatpush1.bf16.msra.mxu0 %v12813_v31  ;;  %v12887_v31 = vld [vmem:[%s19021_s2 + $0xb1c] ss:$20 sps:$4 sm:$0xff]  }
 0x282   :  { %4626 = vmatprep.subr.bf16.mxu0 %v12818_v27  ;;  %v12893_v27 = vld [vmem:[%s19021_s2 + $0xb44] ss:$20 sps:$4 sm:$0xff]  }
 0x283   :  { %6993 = vmatpush1.bf16.msra.mxu1 %v12942_v50  ;;  %v11046_v50 = vld [vmem:[%s19020_s1 + $0x58] sm:$0x1f] }
 0x285   :  { %4627 = vmatpush1.bf16.msra.mxu0 %v12816_v45  ;;  %v15908_v45 = vld [vmem:[%s19022_s3 + $0x5] sm:$0x1f] }
 0x286   :  { %4628 = vmatprep.subr.bf16.mxu0 %v12821_v39  ;;  %v19237_v39 = vld [vmem:[#allocation5_spill] sm:$0xff] }
 0x289   :  { %4629 = vmatpush1.bf16.msra.mxu0 %v12819_v57  ;;  %v3504_v57 = vrot.slane %v15908_v45, %v19237_v39 }
 0x28a   :  { %4630 = vmatprep.subr.bf16.mxu0 %v12824_v47  ;;  %v3508_v47 = vrot.slane %v15908_v45, %v19238_v19 }
 0x28d   :  { %4631 = vmatpush1.bf16.msra.mxu0 %v12822_v3 }
 0x28e   :  { %4632 = vmatprep.subr.bf16.mxu0 %v12827_v37 }
 0x291   :  { %4633 = vmatpush1.bf16.msra.mxu0 %v12825_v23 }
 0x292   :  { %4634 = vmatprep.subr.bf16.mxu0 %v12830_v59  ;;  %v12903_v59 = vld [vmem:[%s19021_s2 + $0xb90] ss:$20 sps:$4 sm:$0xff]  }
 0x295   :  { %4635 = vmatpush1.bf16.msra.mxu0 %v12828_v32 }
 0x296   :  { %11040 = vmatprep.subr.msk.bf16.mxu0 %vm1965_vm5, %v11035_v34 }
 0x298   :  { %4637 = vmatmul.mubr.bf16.vlgmr.msra.gmra.mrb[28].mxu0 %v15306_v21 }
 0x299   :  { %4646 = vmatprep.mubr.bf16.mxu0 %v15375_v29  ;;  %4658 = vmatpush1.bf16.msra.mxu0 %v4384_v30 }
 0x29a   :  { %11966 = vmatprep.subr.bf16.mxu0 %v12833_v16 }
 0x2a0   :  { %4647 = vmatmul.mubr.bf16.gmra.mrb[32].mxu0 %v15436_v10 }
 0x2a1   :  { %4689 = vmatprep.mubr.bf16.mxu0 %v19233_v28 }
 0x2a8   :  { %11041 = vmatmul.mubr.msk.bf16.vlgmr.msra.gmra.mrb[28].mxu0 %vm1958_vm6, %v15445_v0  ;;  %v12950_v0 = vld [vmem:[%s19021_s2 + $0xcb4] ss:$20 sps:$4 sm:$0xff]  }
 0x2a9   :  { %11967 = vmatpush3.bf16.msra.mxu0 %v12834_v25  ;;  %4699 = vmatprep.mubr.bf16.mxu0 %v19233_v28 }
 0x2aa   :  { %11968 = vmatprep.subr.bf16.mxu0 %v12835_v14  ;;  %7015 = vmatprep.subr.bf16.mxu1 %v12950_v0  ;;  %v19240_v0 = vld [vmem:[#allocation8_spill] sm:$0xff] }
 0x2ad   :  { %11969 = vmatpush3.bf16.msra.mxu0 %v12836_v7  ;;  %v12909_v7 = vld [vmem:[%s19021_s2 + $0xbb8] ss:$20 sps:$4 sm:$0xff]  }
 0x2ae   :  { %11970 = vmatprep.subr.bf16.mxu0 %v12837_v9  ;;  %v19239_v9 = vld [vmem:[#allocation7_spill] sm:$0xff] }
 0x2b0   :  { %11042 = vmatmul.mubr.msk.bf16.gmra.mrb[32].mxu0 %vm1958_vm6, %v15513_v20  ;;  %v12843_v20 = vld [vmem:[%s19021_s2 + $0x9ac] ss:$20 sps:$4 sm:$0xff]  }
 0x2b1   :  { %11971 = vmatpush3.bf16.msra.mxu0 %v12838_v51  ;;  %4791 = vmatprep.mubr.bf16.mxu0 %v15312_v44  ;;  %v12844_v44 = vld [vmem:[%s19021_s2 + $0x86c] ss:$20 sps:$4 sm:$0xff]   ;;  %v15942_v51 = vrot.slane %v11045_v48, %v19239_v9 }
 0x2b2   :  { %11972 = vmatprep.subr.bf16.mxu0 %v12839_v36  ;;  %v15945_v36 = vrot.slane %v11045_v48, %v19240_v0 }
 0x2b5   :  { %11973 = vmatpush3.bf16.msra.mxu0 %v12840_v17 }
 0x2b6   :  { %11974 = vmatprep.subr.bf16.mxu0 %v12841_v40 }
 0x2b9   :  { %11975 = vmatpush3.bf16.msra.mxu0 %v12842_v43  ;;  %v12917_v43 = vld [vmem:[%s19021_s2 + $0xbe4] ss:$20 sps:$4 sm:$0xff]  }
 0x2ba   :  { %11976 = vmatprep.subr.bf16.mxu0 %v12843_v20 }
 0x2bd   :  { %11977 = vmatpush3.bf16.msra.mxu0 %v12844_v44 }
 0x2be   :  { %11978 = vmatprep.subr.bf16.mxu0 %v12845_v53  ;;  %v15953_v53 = vrot.slane %v11045_v48, %v19237_v39 }
 0x2c1   :  { %11979 = vmatpush3.bf16.msra.mxu0 %v12846_v52  ;;  %v19241_v52 = vld [vmem:[#allocation9_spill] sm:$0xff] }
 0x2c2   :  { %11980 = vmatprep.subr.bf16.mxu0 %v12847_v49  ;;  %v15956_v49 = vrot.slane %v11045_v48, %v19241_v52 }
 0x2c5   :  { %11981 = vmatpush3.bf16.msra.mxu0 %v12848_v15 }
 0x2c6   :  { %6803 = vmatprep.subr.bf16.mxu0 %v12851_v63  ;;  %v15961_v63 = vrot.slane %v11046_v50, %v19237_v39 }
 0x2c8   :  { %4792 = vmatmul.mubr.bf16.vlgmr.msra.gmra.mrb[36].mxu0 %v15306_v21  ;;  %v12869_v21 = vld [vmem:[%s19021_s2 + $0xaa4] ss:$20 sps:$4 sm:$0xff]  }
 0x2c9   :  { %4799 = vmatprep.mubr.bf16.mxu0 %v15375_v29  ;;  %6804 = vmatpush1.bf16.msra.mxu0 %v12849_v12  ;;  %v12867_v29 = vld [vmem:[%s19021_s2 + $0xaa0] ss:$20 sps:$4 sm:$0xff]  }
 0x2ca   :  { %6805 = vmatprep.subr.bf16.mxu0 %v12857_v4  ;;  %v15965_v4 = vrot.slane %v11046_v50, %v19238_v19 }
 0x2cd   :  { %6806 = vmatpush1.bf16.msra.mxu0 %v12855_v1  ;;  %v15968_v1 = vrot.slane %v11046_v50, %v19239_v9 }
 0x2ce   :  { %6807 = vmatprep.subr.bf16.mxu0 %v12863_v35 }
 0x2d0   :  { %4800 = vmatmul.mubr.bf16.gmra.mrb[40].mxu0 %v15436_v10  ;;  %v4479_v54 = vpop.f32.mrb[24].mxu1  ;;  %v12881_v10 = vld [vmem:[%s19021_s2 + $0xaf4] ss:$20 sps:$4 sm:$0xff]  }
 0x2d1   :  { %6808 = vmatpush1.bf16.msra.mxu0 %v12861_v62  ;;  %v4481_v22 = vpop.f32.mrb[25].mxu1  ;;  %v12191_v37 = vadd.f32 %v4479_v54, %v3504_v57  ;;  %v12915_v62 = vld [vmem:[%s19021_s2 + $0xbe0] ss:$20 sps:$4 sm:$0xff]  }
 0x2d2   :  { %6809 = vmatprep.subr.bf16.mxu0 %v12869_v21  ;;  %v4483_v8 = vpop.f32.mrb[26].mxu1  ;;  %v12193_v2 = vadd.f32 %v4481_v22, %v3508_v47  ;;  %v12923_v22 = vld [vmem:[%s19021_s2 + $0xc0c] ss:$20 sps:$4 sm:$0xff]  }
 0x2d3   :  { %v4485_v58 = vpop.f32.mrb[27].mxu1  ;;  %v12195_v11 = vadd.f32 %v4483_v8, %v3504_v57 }
 0x2d4   :  { %v12197_v55 = vadd.f32 %v4485_v58, %v3508_v47 }
 0x2d5   :  { %6810 = vmatpush1.bf16.msra.mxu0 %v12867_v29 }
 0x2d6   :  { %6811 = vmatprep.subr.bf16.mxu0 %v12875_v56  ;;  %v15981_v56 = vrot.slane %v11046_v50, %v19240_v0 }
 0x2d9   :  { %6812 = vmatpush1.bf16.msra.mxu0 %v12873_v18 }
 0x2da   :  { %6813 = vmatprep.subr.bf16.mxu0 %v12881_v10  ;;  %v15991_v10 = vrot.slane %v11046_v50, %v19241_v52 }
 0x2dd   :  { %6814 = vmatpush1.bf16.msra.mxu0 %v12879_v6 }
 0x2de   :  { %6815 = vmatprep.subr.bf16.mxu0 %v12887_v31 }
 0x2e1   :  { %6816 = vmatpush1.bf16.msra.mxu0 %v12885_v13 }
 0x2e2   :  { %6817 = vmatprep.subr.bf16.mxu0 %v12893_v27 }
 0x2e5   :  { %6818 = vmatpush1.bf16.msra.mxu0 %v12891_v5 }
 0x2e6   :  { %6819 = vmatprep.subr.bf16.mxu0 %v12899_v46 }
 0x2e7   :  { %v4489_v3 = vpop.f32.mrb[28].mxu1 }
 0x2e8   :  { %v4491_v60 = vpop.f32.mrb[29].mxu1  ;;  %v15986_v8 = vadd.f32 %v4489_v3, %v3504_v57 }
 0x2e9   :  { %v4493_v23 = vpop.f32.mrb[30].mxu1  ;;  %6820 = vmatpush1.bf16.msra.mxu0 %v12897_v42  ;;  %v4532_v34 = vpop.f32.mrb[20].mxu0  ;;  %v15988_v58 = vadd.f32 %v4491_v60, %v3508_v47 }
 0x2ea   :  { %v4495_v32 = vpop.f32.mrb[31].mxu1  ;;  %6821 = vmatprep.subr.bf16.mxu0 %v12905_v61  ;;  %v12192_v30 = vadd.f32 %v12191_v37, %v4532_v34  ;;  %v4534_v16 = vpop.f32.mrb[21].mxu0  ;;  %v15994_v31 = vadd.f32 %v4493_v23, %v3504_v57  ;;  %v12921_v57 = vld [vmem:[%s19021_s2 + $0xc08] ss:$20 sps:$4 sm:$0xff]  }
 0x2eb   :  { %v12194_v38 = vadd.f32 %v12193_v2, %v4534_v16  ;;  %v4536_v33 = vpop.f32.mrb[22].mxu0  ;;  %v15996_v13 = vadd.f32 %v4495_v32, %v3508_v47  ;;  %v12929_v34 = vld [vmem:[%s19021_s2 + $0xc34] ss:$20 sps:$4 sm:$0xff]  }
 0x2ec   :  { %v4857_v26 = vmax.f32 %v12192_v30, 0.0  ;;  %v12196_v25 = vadd.f32 %v12195_v11, %v4536_v33  ;;  %v4538_v14 = vpop.f32.mrb[23].mxu0 }
 0x2ed   :  { %6822 = vmatpush1.bf16.msra.mxu0 %v12903_v59  ;;  %v4858_v17 = vmax.f32 %v12194_v38, 0.0  ;;  %v15947_v40 = vadd.f32 %v12197_v55, %v4538_v14 }
 0x2ee   :  { %6823 = vmatprep.subr.bf16.mxu0 %v12911_v41  ;;  %v4897_v20 = vrot.slane %v4857_v26, 6  ;;  %v4862_v44 = vmax.f32 %v12196_v25, 0.0 }
 0x2ef   :  { %v15958_v15 = vrot.slane %v4858_v17, 6  ;;  %v4863_v46 = vmax.f32 %v15947_v40, 0.0 }
 0x2f0   :  { %v4957_v12 = vsel %vm71_vm0, 0.0, %v4897_v20  ;;  %v4902_v35 = vrot.slane %v4862_v44, 6 }
 0x2f1   :  { %6824 = vmatpush1.bf16.msra.mxu0 %v12909_v7  ;;  %v5043_v21 = vmul.f32 %v15933_v24, %v4957_v12  ;;  %v15975_v29 = vmul.f32 %v15942_v51, %v4957_v12  ;;  %v15978_v54 = vmul.f32 %v15945_v36, %v4957_v12  ;;  %v4958_v5 = vsel %vm71_vm0, 0.0, %v15958_v15  ;;  %v12927_v7 = vld [vmem:[%s19021_s2 + $0xc30] ss:$20 sps:$4 sm:$0xff]  }
 0x2f2   :  { %6825 = vmatprep.subr.bf16.mxu0 %v12917_v43  ;;  %v11954_v18 = vpop.f32.mrb[32].mxu1  ;;  %v4903_v6 = vsel %vm71_vm0, %v4897_v20, %v4902_v35  ;;  %v5003_v3 = vmul.f32 %v15953_v53, %v4957_v12  ;;  %v16005_v60 = vmul.f32 %v15956_v49, %v4957_v12  ;;  %v4967_v37 = vsel %vm71_vm0, %v4902_v35, 0.0  ;;  %v12935_v12 = vld [vmem:[%s19021_s2 + $0xc5c] ss:$20 sps:$4 sm:$0xff]  }
 0x2f3   :  { %v11955_v27 = vpop.f32.mrb[33].mxu1  ;;  %v5103_v47 = vrot.slane %v5043_v21, 1  ;;  %v5273_v23 = vrot.slane %v15975_v29, 2  ;;  %v5048_v32 = vmul.f32 %v15933_v24, %v4903_v6  ;;  %v16020_v41 = vmul.f32 %v15961_v63, %v4958_v5 }
 0x2f4   :  { %v16001_v42 = vadd.f32 %v11955_v27, %v11954_v18  ;;  %v11957_v61 = vpop.f32.mrb[34].mxu1  ;;  %v16023_v11 = vmul.f32 %v15965_v4, %v4958_v5  ;;  %v16026_v30 = vmul.f32 %v15968_v1, %v4958_v5  ;;  %v16029_v16 = vmul.f32 %v15981_v56, %v4958_v5 }
 0x2f5   :  { %6826 = vmatpush1.bf16.msra.mxu0 %v12915_v62  ;;  %v11958_v2 = vpop.f32.mrb[35].mxu1  ;;  %v16032_v55 = vmul.f32 %v15991_v10, %v4958_v5  ;;  %v5053_v38 = vmul.f32 %v15933_v24, %v4967_v37  ;;  %v5104_v33 = vrot.slane %v5048_v32, 1  ;;  %v5008_v26 = vmul.f32 %v15953_v53, %v4903_v6 }
 0x2f6   :  { %6827 = vmatprep.subr.bf16.mxu0 %v12923_v22  ;;  %v16017_v48 = vadd.f32 %v11958_v2, %v11957_v61  ;;  %v5218_v50 = vmul.f32 %v15942_v51, %v4903_v6  ;;  %v5223_v25 = vmul.f32 %v15942_v51, %v4967_v37  ;;  %v16039_v14 = vmul.f32 %v15945_v36, %v4903_v6 }
 0x2f7   :  { %v5105_v17 = vsel %vm277_vm1, %v5103_v47, %v5104_v33  ;;  %v5118_v40 = vrot.slane %v5053_v38, 1  ;;  %v5393_v43 = vmul.f32 %v15945_v36, %v4967_v37  ;;  %v16047_v20 = vmul.f32 %v15956_v49, %v4903_v6 }
 0x2f8   :  { %v16052_v35 = vadd.f32 %v5105_v17, %v5003_v3  ;;  %v5274_v62 = vrot.slane %v5218_v50, 2  ;;  %v5288_v21 = vrot.slane %v5223_v25, 2  ;;  %v19064_v29 = vrot.slane %v16039_v14, 3 }
 0x2f9   :  { %6828 = vmatpush1.bf16.msra.mxu0 %v12921_v57  ;;  %v5119_v27 = vsel %vm277_vm1, %v5104_v33, %v5118_v40  ;;  %v5458_v5 = vrot.slane %v5393_v43, 3  ;;  %v5563_v6 = vmul.f32 %v15956_v49, %v4967_v37  ;;  %v19063_v61 = vrot.slane %v16047_v20, 4  ;;  %v12933_v33 = vld [vmem:[%s19021_s2 + $0xc58] ss:$20 sps:$4 sm:$0xff]  }
 0x2fa   :  { %v4542_v44 = vpop.f32.mrb[24].mxu0  ;;  %6829 = vmatprep.subr.bf16.mxu0 %v12929_v34  ;;  %v11960_v22 = vpop.f32.mrb[36].mxu1  ;;  %v5178_v2 = vadd.f32 %v5119_v27, %v5008_v26  ;;  %v16059_v32 = vsel %vm448_vm2, %v5273_v23, %v5274_v62  ;;  %v5289_v3 = vsel %vm448_vm2, %v5274_v62, %v5288_v21  ;;  %v4904_v34 = vrot.slane %v4863_v46, 6  ;;  %v12941_v46 = vld [vmem:[%s19021_s2 + $0xc84] ss:$20 sps:$4 sm:$0xff]  }
 0x2fb   :  { %v4544_v18 = vpop.f32.mrb[25].mxu0  ;;  %v11961_v57 = vpop.f32.mrb[37].mxu1  ;;  %v5459_v37 = vsel %vm619_vm3, %v19064_v29, %v5458_v5  ;;  %v5628_v25 = vrot.slane %v5563_v6, 4  ;;  %v12200_v23 = vadd.f32 %v15986_v8, %v4542_v44  ;;  %v5106_v21 = vrot.slane %v16023_v11, 1  ;;  %v12939_v11 = vld [vmem:[%s19021_s2 + $0xc80] ss:$20 sps:$4 sm:$0xff]  }
 0x2fc   :  { %v4546_v47 = vpop.f32.mrb[26].mxu0  ;;  %v11963_v38 = vpop.f32.mrb[38].mxu1  ;;  %v16068_v17 = vadd.f32 %v11961_v57, %v11960_v22  ;;  %v16076_v40 = vsel %vm71_vm0, %v15958_v15, %v4904_v34  ;;  %v4968_v43 = vsel %vm71_vm0, %v4904_v34, 0.0  ;;  %v5276_v6 = vrot.slane %v16026_v30, 2  ;;  %v12947_v34 = vld [vmem:[%s19021_s2 + $0xcac] ss:$20 sps:$4 sm:$0xff]  }
 0x2fd   :  { %v4548_v50 = vpop.f32.mrb[27].mxu0  ;;  %6830 = vmatpush1.bf16.msra.mxu0 %v12927_v7  ;;  %v11964_v26 = vpop.f32.mrb[39].mxu1  ;;  %v5348_v7 = vadd.f32 %v5289_v3, %v5178_v2  ;;  %v5629_v8 = vsel %vm790_vm4, %v19063_v61, %v5628_v25  ;;  %v5049_v44 = vmul.f32 %v15965_v4, %v16076_v40  ;;  %v5219_v15 = vmul.f32 %v15968_v1, %v16076_v40 }
 0x2fe   :  { %6831 = vmatprep.subr.bf16.mxu0 %v12935_v12  ;;  %v16079_v62 = vadd.f32 %v11964_v26, %v11963_v38  ;;  %v5054_v12 = vmul.f32 %v15965_v4, %v4968_v43  ;;  %v5224_v27 = vmul.f32 %v15968_v1, %v4968_v43  ;;  %v5389_v5 = vmul.f32 %v15981_v56, %v16076_v40 }
 0x2ff   :  { %v5518_v22 = vadd.f32 %v5459_v37, %v5348_v7  ;;  %v5107_v57 = vrot.slane %v5049_v44, 1  ;;  %v5394_v3 = vmul.f32 %v15981_v56, %v4968_v43  ;;  %v5446_v38 = vrot.slane %v16029_v16, 3 }
 0x300   :  { %19242 = vst [vmem:[#allocation24_spill] sm:$0xff] %v16079_v62  ;;  %v5120_v2 = vrot.slane %v5054_v12, 1  ;;  %v5277_v25 = vrot.slane %v5219_v15, 2  ;;  %v5290_v7 = vrot.slane %v5224_v27, 2  ;;  %v5447_v44 = vrot.slane %v5389_v5, 3 }
 0x301   :  { %6832 = vmatpush1.bf16.msra.mxu0 %v12933_v33  ;;  %v16102_v37 = vadd.f32 %v5629_v8, %v5518_v22  ;;  %v5009_v33 = vmul.f32 %v15961_v63, %v16076_v40  ;;  %v5460_v12 = vrot.slane %v5394_v3, 3  ;;  %v16112_v61 = vmul.f32 %v15991_v10, %v4968_v43 }
 0x302   :  { %6833 = vmatprep.subr.bf16.mxu0 %v12941_v46  ;;  %v16106_v26 = vpop.f32.mrb[40].mxu1  ;;  %v5121_v30 = vsel %vm277_vm1, %v5107_v57, %v5120_v2  ;;  %v4867_v59 = vmax.f32 %v12200_v23, 0.0  ;;  %v12202_v16 = vadd.f32 %v15988_v58, %v4544_v18  ;;  %v12204_v8 = vadd.f32 %v15994_v31, %v4546_v47 }
 0x303   :  { %19243 = vst [vmem:[#allocation28_spill] sm:$0xff] %v16106_v26  ;;  %v16109_v46 = vpop.f32.mrb[41].mxu1  ;;  %v12206_v15 = vadd.f32 %v15996_v13, %v4548_v50  ;;  %v5108_v27 = vsel %vm277_vm1, %v5106_v21, %v5107_v57  ;;  %v5179_v5 = vadd.f32 %v5121_v30, %v5009_v33  ;;  %v5278_v2 = vsel %vm448_vm2, %v5276_v6, %v5277_v25 }
 0x304   :  { %19244 = vst [vmem:[#allocation27_spill] sm:$0xff] %v16109_v46  ;;  %v16116_v22 = vpop.f32.mrb[42].mxu1  ;;  %v4912_v43 = vrot.slane %v4867_v59, 6  ;;  %v4868_v3 = vmax.f32 %v12202_v16, 0.0  ;;  %v4872_v23 = vmax.f32 %v12204_v8, 0.0  ;;  %v5174_v58 = vadd.f32 %v5108_v27, %v16020_v41 }
 0x305   :  { %19245 = vst [vmem:[#allocation25_spill] sm:$0xff] %v16116_v22  ;;  %6834 = vmatpush1.bf16.msra.mxu0 %v12939_v11  ;;  %v16119_v29 = vpop.f32.mrb[43].mxu1  ;;  %v5291_v18 = vsel %vm448_vm2, %v5277_v25, %v5290_v7  ;;  %v5448_v47 = vsel %vm619_vm3, %v5446_v38, %v5447_v44  ;;  %v5461_v13 = vsel %vm619_vm3, %v5447_v44, %v5460_v12  ;;  %v5616_v6 = vrot.slane %v16032_v55, 4 }
 0x306   :  { %19246 = vst [vmem:[#allocation20_spill] sm:$0xff] %v16119_v29  ;;  %6856 = vmatprep.subr.bf16.mxu0 %v12947_v34  ;;  %v4962_v50 = vsel %vm71_vm0, 0.0, %v4912_v43  ;;  %v4913_v21 = vrot.slane %v4868_v3, 6  ;;  %v4917_v11 = vrot.slane %v4872_v23, 6  ;;  %v5344_v57 = vadd.f32 %v5278_v2, %v5174_v58 }
 0x307   :  { %v16131_v59 = vmul.f32 %v15933_v24, %v4962_v50  ;;  %v16134_v41 = vmul.f32 %v15942_v51, %v4962_v50  ;;  %v16137_v34 = vmul.f32 %v15945_v36, %v4962_v50  ;;  %v5630_v38 = vrot.slane %v16112_v61, 4 }
 0x308   :  { %v4963_v33 = vsel %vm71_vm0, 0.0, %v4913_v21  ;;  %v16142_v25 = vsel %vm71_vm0, %v4912_v43, %v4917_v11  ;;  %v4972_v30 = vsel %vm71_vm0, %v4917_v11, 0.0  ;;  %v16146_v55 = vmul.f32 %v15953_v53, %v4962_v50 }
 0x309   :  { %v16150_v44 = vmul.f32 %v15956_v49, %v4962_v50  ;;  %v4873_v12 = vmax.f32 %v12206_v15, 0.0  ;;  %v5059_v61 = vmul.f32 %v15965_v4, %v4963_v33  ;;  %v5229_v8 = vmul.f32 %v15968_v1, %v4963_v33 }
 0x30a   :  { %v5399_v27 = vmul.f32 %v15981_v56, %v4963_v33  ;;  %v16158_v43 = vmul.f32 %v15991_v10, %v4963_v33  ;;  %v16162_v3 = vmul.f32 %v15933_v24, %v16142_v25  ;;  %v5068_v23 = vmul.f32 %v15933_v24, %v4972_v30 }
 0x30b   :  { %v5014_v15 = vmul.f32 %v15961_v63, %v4963_v33  ;;  %v5131_v58 = vrot.slane %v5059_v61, 1  ;;  %v16168_v50 = vmul.f32 %v15953_v53, %v16142_v25  ;;  %v16172_v11 = vmul.f32 %v15942_v51, %v16142_v25 }
 0x30c   :  { %v5301_v2 = vrot.slane %v5229_v8, 2  ;;  %v5129_v16 = vrot.slane %v16162_v3, 1  ;;  %v5143_v7 = vrot.slane %v5068_v23, 1  ;;  %v16176_v31 = vmul.f32 %v15942_v51, %v4972_v30 }
 0x30d   :  { %v5471_v28 = vrot.slane %v5399_v27, 3  ;;  %v16182_v53 = vmul.f32 %v15945_v36, %v16142_v25  ;;  %v16186_v22 = vmul.f32 %v15945_v36, %v4972_v30  ;;  %v4919_v8 = vrot.slane %v4873_v12, 6 }
 0x30e   :  { %v5144_v61 = vsel %vm277_vm1, %v5129_v16, %v5143_v7  ;;  %v5349_v3 = vadd.f32 %v5291_v18, %v5179_v5  ;;  %v5313_v23 = vrot.slane %v16176_v31, 2  ;;  %v16191_v27 = vmul.f32 %v15956_v49, %v4972_v30 }
 0x30f   :  { %v5514_v24 = vadd.f32 %v5448_v47, %v5344_v57  ;;  %v4920_v33 = vsel %vm71_vm0, %v4913_v21, %v4919_v8  ;;  %v4973_v26 = vsel %vm71_vm0, %v4919_v8, 0.0  ;;  %v5559_v7 = vmul.f32 %v15991_v10, %v16076_v40 }
 0x310   :  { %v5519_v29 = vadd.f32 %v5461_v13, %v5349_v3  ;;  %v5019_v36 = vmul.f32 %v15961_v63, %v4920_v33  ;;  %v5064_v5 = vmul.f32 %v15965_v4, %v4920_v33  ;;  %v5069_v31 = vmul.f32 %v15965_v4, %v4973_v26 }
 0x311   :  { %v5234_v18 = vmul.f32 %v15968_v1, %v4920_v33  ;;  %v5239_v30 = vmul.f32 %v15968_v1, %v4973_v26  ;;  %v5404_v47 = vmul.f32 %v15981_v56, %v4920_v33  ;;  %v5409_v21 = vmul.f32 %v15981_v56, %v4973_v26 }
 0x312   :  { %v5579_v57 = vmul.f32 %v15991_v10, %v4973_v26  ;;  %v5132_v13 = vrot.slane %v5064_v5, 1  ;;  %v5145_v12 = vrot.slane %v5069_v31, 1  ;;  %v5617_v40 = vrot.slane %v5559_v7, 4 }
 0x313   :  { %v5302_v8 = vrot.slane %v5234_v18, 2  ;;  %v5315_v3 = vrot.slane %v5239_v30, 2  ;;  %v5472_v63 = vrot.slane %v5404_v47, 3  ;;  %v5485_v51 = vrot.slane %v5409_v21, 3 }
 0x314   :  { %v5655_v46 = vrot.slane %v5579_v57, 4  ;;  %v5146_v4 = vsel %vm277_vm1, %v5132_v13, %v5145_v12  ;;  %v5618_v19 = vsel %vm790_vm4, %v5616_v6, %v5617_v40  ;;  %v5631_v1 = vsel %vm790_vm4, %v5617_v40, %v5630_v38 }
 0x315   :  { %v5343_v39 = vadd.f32 %v16059_v32, %v16052_v35  ;;  %v5684_v56 = vadd.f32 %v5618_v19, %v5514_v24  ;;  %v5689_v62 = vadd.f32 %v5631_v1, %v5519_v29  ;;  %v19247_v26 = vrot.slane %v16039_v14, 3 }
 0x316   :  { %v19248_v5 = vrot.slane %v15978_v54, 3  ;;  %v19249_v31 = vrot.slane %v16047_v20, 4  ;;  %v19250_v18 = vrot.slane %v16005_v60, 4  ;;  %v5133_v38 = vsel %vm277_vm1, %v5131_v58, %v5132_v13 }
 0x317   :  { %v5189_v47 = vadd.f32 %v5146_v4, %v5019_v36  ;;  %v5303_v35 = vsel %vm448_vm2, %v5301_v2, %v5302_v8  ;;  %v16222_v19 = vpack.c.bf16 %v5689_v62, %v5684_v56  ;;  %v5184_v29 = vadd.f32 %v5133_v38, %v5014_v15  ;;  %v12948_v36 = vld [vmem:[%s19021_s2 + $0xcb0] ss:$20 sps:$4 sm:$0xff]   ;;  %v12960_v38 = vld [vmem:[%s19021_s2 + $0xd00] ss:$20 sps:$4 sm:$0xff]  }
 0x318   :  { %v5445_v7 = vsel %vm619_vm3, %v19248_v5, %v19247_v26  ;;  %v5615_v30 = vsel %vm790_vm4, %v19250_v18, %v19249_v31  ;;  %v5316_v14 = vsel %vm448_vm2, %v5302_v8, %v5315_v3  ;;  %v5473_v54 = vsel %vm619_vm3, %v5471_v28, %v5472_v63  ;;  %v12945_v28 = vld [vmem:[%s19021_s2 + $0xca8] ss:$20 sps:$4 sm:$0xff]  }
 0x319   :  { %v5513_v6 = vadd.f32 %v5445_v7, %v5343_v39  ;;  %19251 = vst [vmem:[#allocation21_spill] sm:$0xff] %v16222_v19  ;;  %v5359_v24 = vadd.f32 %v5316_v14, %v5189_v47  ;;  %v5486_v20 = vsel %vm619_vm3, %v5472_v63, %v5485_v51  ;;  %v5574_v60 = vmul.f32 %v15991_v10, %v4920_v33  ;;  %v12956_v8 = vld [vmem:[%s19021_s2 + $0xcdc] ss:$20 sps:$4 sm:$0xff]  }
 0x31a   :  { %v5483_v39 = vrot.slane %v16186_v22, 3  ;;  %6835 = vmatprep.mubr.bf16.mxu0 %v16222_v19  ;;  %6994 = vmatprep.mubr.bf16.mxu1 %v16222_v19  ;;  %v5354_v2 = vadd.f32 %v5303_v35, %v5184_v29  ;;  %v19252_v62 = vrot.slane %v16131_v59, 1  ;;  %v5188_v58 = vadd.f32 %v5144_v61, %v16168_v50  ;;  %v12953_v59 = vld [vmem:[%s19021_s2 + $0xcd4] ss:$20 sps:$4 sm:$0xff]   ;;  %v12965_v35 = vld [vmem:[%s19021_s2 + $0xd24] ss:$20 sps:$4 sm:$0xff]  }
 0x31b   :  { %v5683_v32 = vadd.f32 %v5615_v30, %v5513_v6  ;;  %v5529_v10 = vadd.f32 %v5486_v20, %v5359_v24  ;;  %v5642_v22 = vrot.slane %v5574_v60, 4  ;;  %v19254_v50 = vrot.slane %v16172_v11, 2  ;;  %v12957_v6 = vld [vmem:[%s19021_s2 + $0xcf8] ss:$20 sps:$4 sm:$0xff]   ;;  %v12974_v20 = vld [vmem:[%s19021_s2 + $0xd54] ss:$20 sps:$4 sm:$0xff]  }
 0x31c   :  { %v5130_v15 = vsel %vm277_vm1, %v19252_v62, %v5129_v16  ;;  %v5524_v16 = vadd.f32 %v5473_v54, %v5354_v2  ;;  %v19255_v61 = vrot.slane %v16134_v41, 2  ;;  %v19258_v13 = vrot.slane %v16137_v34, 3  ;;  %v12968_v29 = vld [vmem:[%s19021_s2 + $0xd2c] ss:$20 sps:$4 sm:$0xff]   ;;  %v12969_v60 = vld [vmem:[%s19021_s2 + $0xd48] ss:$20 sps:$4 sm:$0xff]  }
 0x31d   :  { %v16239_v51 = vpack.c.bf16 %v16102_v37, %v5683_v32  ;;  %v5183_v33 = vadd.f32 %v5130_v15, %v16146_v55  ;;  %v19256_v21 = vmov %v19254_v50  ;;  %v19257_v55 = vrot.slane %v16182_v53, 3  ;;  %v12963_v54 = vld [vmem:[%s19021_s2 + $0xd20] ss:$20 sps:$4 sm:$0xff]   ;;  %v12966_v32 = vld [vmem:[%s19021_s2 + $0xd28] ss:$20 sps:$4 sm:$0xff]  }
 0x31e   :  { %v5300_v37 = vsel %vm448_vm2, %v19255_v61, %v19254_v50  ;;  %v5314_v57 = vsel %vm448_vm2, %v19256_v21, %v5313_v23  ;;  %v19259_v41 = vrot.slane %v16158_v43, 4  ;;  %v5656_v23 = vsel %vm790_vm4, %v5642_v22, %v5655_v46  ;;  %v12951_v46 = vld [vmem:[%s19021_s2 + $0xcd0] ss:$20 sps:$4 sm:$0xff]   ;;  %v12954_v43 = vld [vmem:[%s19021_s2 + $0xcd8] ss:$20 sps:$4 sm:$0xff]  }
 0x31f   :  { %19253 = vst [vmem:[#allocation22_spill] sm:$0xff] %v16239_v51  ;;  %v5470_v12 = vsel %vm619_vm3, %v19258_v13, %v19257_v55  ;;  %6836 = vmatmul.mubr.bf16.vlgmr.msra.gmra.mrb[44].mxu0 %v16239_v51  ;;  %6995 = vmatmul.mubr.bf16.vlgmr.msra.gmra.mrb[44].mxu1 %v16239_v51  ;;  %v5353_v40 = vadd.f32 %v5300_v37, %v5183_v33  ;;  %v19260_v4 = vmov %v19257_v55  ;;  %v5653_v56 = vrot.slane %v16191_v27, 4  ;;  %v12959_v27 = vld [vmem:[%s19021_s2 + $0xcfc] ss:$20 sps:$4 sm:$0xff]   ;;  %v12971_v24 = vld [vmem:[%s19021_s2 + $0xd4c] ss:$20 sps:$4 sm:$0xff]  }
 0x320   :  { %v5643_v11 = vsel %vm790_vm4, %v19259_v41, %v5642_v22  ;;  %v5699_v63 = vadd.f32 %v5656_v23, %v5529_v10  ;;  %v5358_v34 = vadd.f32 %v5314_v57, %v5188_v58  ;;  %v5484_v1 = vsel %vm619_vm3, %v19260_v4, %v5483_v39  ;;  %6857 = vmatpush1.bf16.msra.mxu0 %v12945_v28  ;;  %v12972_v39 = vld [vmem:[%s19021_s2 + $0xd50] ss:$20 sps:$4 sm:$0xff]   ;;  %v12977_v2 = vld [vmem:[%s19021_s2 + $0xd74] ss:$20 sps:$4 sm:$0xff]   ;;  %v12978_v58 = vld [vmem:[%s19021_s2 + $0xd78] ss:$20 sps:$4 sm:$0xff]  }
 0x321   :  { %v5694_v3 = vadd.f32 %v5643_v11, %v5524_v16  ;;  %v5523_v26 = vadd.f32 %v5470_v12, %v5353_v40  ;;  %v5573_v5 = vmul.f32 %v15956_v49, %v16142_v25  ;;  %7016 = vmatpush1.bf16.msra.mxu1 %v12948_v36  ;;  %6858 = vmatprep.subr.bf16.mxu0 %v12953_v59  ;;  %v12962_v49 = vld [vmem:[%s19021_s2 + $0xd04] ss:$20 sps:$4 sm:$0xff]   ;;  %v5638_v25 = vrot.slane %v16150_v44, 4  ;;  %v12980_v62 = vld [vmem:[%s19021_s2 + $0xd7c] ss:$20 sps:$4 sm:$0xff]  }
 0x322   :  { %v5528_v7 = vadd.f32 %v5484_v1, %v5358_v34  ;;  %7017 = vmatprep.subr.bf16.mxu1 %v12956_v8  ;;  %v12975_v15 = vld [vmem:[%s19021_s2 + $0xd70] ss:$20 sps:$4 sm:$0xff]   ;;  %v12981_v22 = vld [vmem:[%s19021_s2 + $0xd98] ss:$20 sps:$4 sm:$0xff]   ;;  %v12984_v33 = vld [vmem:[%s19021_s2 + $0xda0] ss:$20 sps:$4 sm:$0xff]  }
 0x323   :  { %v16282_v53 = vpack.c.bf16 %v5699_v63, %v5694_v3  ;;  %v5639_v31 = vrot.slane %v5573_v5, 4  ;;  %v12983_v28 = vld [vmem:[%s19021_s2 + $0xd9c] ss:$20 sps:$4 sm:$0xff]   ;;  %v12986_v10 = vld [vmem:[%s19021_s2 + $0xda4] ss:$20 sps:$4 sm:$0xff]  }
 0x324   :  { %6859 = vmatpush1.bf16.msra.mxu0 %v12951_v46  ;;  %v12989_v36 = vld [vmem:[%s19021_s2 + $0xdc4] ss:$20 sps:$4 sm:$0xff]   ;;  %v12992_v59 = vld [vmem:[%s19021_s2 + $0xdcc] ss:$20 sps:$4 sm:$0xff]   ;;  %v12990_v50 = vld [vmem:[%s19021_s2 + $0xdc8] ss:$20 sps:$4 sm:$0xff]  }
 0x325   :  { %19261 = vst [vmem:[#allocation23_spill] sm:$0xff] %v16282_v53  ;;  %6845 = vmatprep.mubr.bf16.mxu0 %v16282_v53  ;;  %7004 = vmatprep.mubr.bf16.mxu1 %v16282_v53  ;;  %v5640_v18 = vsel %vm790_vm4, %v5638_v25, %v5639_v31  ;;  %v5654_v30 = vsel %vm790_vm4, %v5639_v31, %v5653_v56  ;;  %v12987_v16 = vld [vmem:[%s19021_s2 + $0xdc0] ss:$20 sps:$4 sm:$0xff]   ;;  %v12993_v21 = vld [vmem:[%s19021_s2 + $0xde8] ss:$20 sps:$4 sm:$0xff]  }
 0x326   :  { %7018 = vmatpush1.bf16.msra.mxu1 %v12954_v43  ;;  %v5693_v44 = vadd.f32 %v5640_v18, %v5523_v26  ;;  %v5698_v47 = vadd.f32 %v5654_v30, %v5528_v7  ;;  %6860 = vmatprep.subr.bf16.mxu0 %v12959_v27  ;;  %v12995_v61 = vld [vmem:[%s19021_s2 + $0xdec] ss:$20 sps:$4 sm:$0xff]   ;;  %v12998_v37 = vld [vmem:[%s19021_s2 + $0xdf4] ss:$20 sps:$4 sm:$0xff]   ;;  %v12996_v57 = vld [vmem:[%s19021_s2 + $0xdf0] ss:$20 sps:$4 sm:$0xff]  }
 0x327   :  { %7019 = vmatprep.subr.bf16.mxu1 %v12962_v49  ;;  %v13001_v55 = vld [vmem:[%s19021_s2 + $0xe14] ss:$20 sps:$4 sm:$0xff]   ;;  %v13004_v13 = vld [vmem:[%s19021_s2 + $0xe1c] ss:$20 sps:$4 sm:$0xff]   ;;  %v13002_v8 = vld [vmem:[%s19021_s2 + $0xe18] ss:$20 sps:$4 sm:$0xff]  }
 0x328   :  { %v16307_v14 = vpack.c.bf16 %v5698_v47, %v5693_v44  ;;  %6861 = vmatpush1.bf16.msra.mxu0 %v12957_v6  ;;  %v12999_v12 = vld [vmem:[%s19021_s2 + $0xe10] ss:$20 sps:$4 sm:$0xff]   ;;  %v13005_v23 = vld [vmem:[%s19021_s2 + $0xe38] ss:$20 sps:$4 sm:$0xff]   ;;  %v13008_v40 = vld [vmem:[%s19021_s2 + $0xe40] ss:$20 sps:$4 sm:$0xff]  }
 0x329   :  { %6862 = vmatprep.subr.bf16.mxu0 %v12965_v35  ;;  %v13007_v41 = vld [vmem:[%s19021_s2 + $0xe3c] ss:$20 sps:$4 sm:$0xff]   ;;  %v13010_v11 = vld [vmem:[%s19021_s2 + $0xe44] ss:$20 sps:$4 sm:$0xff]   ;;  %v13016_v63 = vld [vmem:[%s19021_s2 + $0xe6c] ss:$20 sps:$4 sm:$0xff]  }
 0x32a   :  { %19262 = vst [vmem:[#allocation29_spill] sm:$0xff] %v16307_v14  ;;  %7020 = vmatpush1.bf16.msra.mxu1 %v12960_v38  ;;  %6846 = vmatmul.mubr.bf16.gmra.mrb[48].mxu0 %v16307_v14  ;;  %v13013_v3 = vld [vmem:[%s19021_s2 + $0xe64] ss:$20 sps:$4 sm:$0xff]   ;;  %v13011_v34 = vld [vmem:[%s19021_s2 + $0xe60] ss:$20 sps:$4 sm:$0xff]  }
 0x32b   :  { %7005 = vmatmul.mubr.bf16.gmra.mrb[48].mxu1 %v16307_v14  ;;  %7021 = vmatprep.subr.bf16.mxu1 %v12968_v29  ;;  %v13014_v4 = vld [vmem:[%s19021_s2 + $0xe68] ss:$20 sps:$4 sm:$0xff]   ;;  %v13019_v1 = vld [vmem:[%s19021_s2 + $0xe8c] ss:$20 sps:$4 sm:$0xff]   ;;  %v13020_v5 = vld [vmem:[%s19021_s2 + $0xe90] ss:$20 sps:$4 sm:$0xff]  }
 0x32c   :  { %6863 = vmatpush1.bf16.msra.mxu0 %v12963_v54  ;;  %v13022_v56 = vld [vmem:[%s19021_s2 + $0xe94] ss:$20 sps:$4 sm:$0xff]   ;;  %v13028_v43 = vld [vmem:[%s19021_s2 + $0xebc] ss:$20 sps:$4 sm:$0xff]   ;;  %v13026_v27 = vld [vmem:[%s19021_s2 + $0xeb8] ss:$20 sps:$4 sm:$0xff]  }
 0x32d   :  { %6864 = vmatprep.subr.bf16.mxu0 %v12971_v24  ;;  %v13017_v26 = vld [vmem:[%s19021_s2 + $0xe88] ss:$20 sps:$4 sm:$0xff]   ;;  %v13023_v7 = vld [vmem:[%s19021_s2 + $0xeb0] ss:$20 sps:$4 sm:$0xff]   ;;  %v13029_v31 = vld [vmem:[%s19021_s2 + $0xed8] ss:$20 sps:$4 sm:$0xff]   ;;  %v16473_v24 = vrot.slane %v15908_v45, %v19239_v9 }
 0x32e   :  { %7022 = vmatpush1.bf16.msra.mxu1 %v12966_v32  ;;  %v13025_v46 = vld [vmem:[%s19021_s2 + $0xeb4] ss:$20 sps:$4 sm:$0xff]   ;;  %v13031_v49 = vld [vmem:[%s19021_s2 + $0xedc] ss:$20 sps:$4 sm:$0xff]   ;;  %v13034_v25 = vld [vmem:[%s19021_s2 + $0xee4] ss:$20 sps:$4 sm:$0xff]   ;;  %v3520_v32 = vrot.slane %v15908_v45, %v19241_v52 }
 0x32f   :  { %7023 = vmatprep.subr.bf16.mxu1 %v12974_v20  ;;  %v13032_v18 = vld [vmem:[%s19021_s2 + $0xee0] ss:$20 sps:$4 sm:$0xff]   ;;  %v13037_v30 = vld [vmem:[%s19021_s2 + $0xf04] ss:$20 sps:$4 sm:$0xff]   ;;  %v11242_v38 = vld [vmem:[%s19021_s2 + $0xf28] sm:$0x11] }
 0x330   :  { %6865 = vmatpush1.bf16.msra.mxu0 %v12969_v60  ;;  %v13040_v6 = vld [vmem:[%s19021_s2 + $0xf0c] ss:$20 sps:$4 sm:$0xff]   ;;  %v11243_v44 = vld [vmem:[%s19021_s2 + $0xf30] sm:$0x11]  ;;  %v13038_v35 = vld [vmem:[%s19021_s2 + $0xf08] ss:$20 sps:$4 sm:$0xff]   ;;  %v11407_v29 = vcombine.high %v11242_v38, %v11242_v38  ;;  %v16480_v60 = vrot.slane %v15908_v45, %v19240_v0 }
 0x331   :  { %6866 = vmatprep.subr.bf16.mxu0 %v12977_v2  ;;  %v13035_v47 = vld [vmem:[%s19021_s2 + $0xf00] ss:$20 sps:$4 sm:$0xff]   ;;  %v11409_v54 = vcombine.high %v11243_v44, %v11243_v44  ;;  %v16486_v2 = vadd.f32 %v16001_v42, %v3520_v32 }
 0x332   :  { %7024 = vmatpush1.bf16.msra.mxu1 %v12972_v39  ;;  %v11047_v20 = vld [vmem:[%s19020_s1 + $0x60] sm:$0x1f]  ;;  %v11048_v39 = vld [vmem:[%s19020_s1 + $0x68] sm:$0x1f] }
 0x333   :  { %7025 = vmatprep.subr.bf16.mxu1 %v12980_v62  ;;  %v16489_v62 = vadd.f32 %v16017_v48, %v3520_v32  ;;  %v16508_v48 = vrot.slane %v11047_v20, %v19240_v0 }
 0x334   :  { %6867 = vmatpush1.bf16.msra.mxu0 %v12975_v15  ;;  %v16492_v15 = vadd.f32 %v16068_v17, %v3520_v32  ;;  %v16511_v17 = vrot.slane %v11047_v20, %v19241_v52 }
 0x335   :  { %6868 = vmatprep.subr.bf16.mxu0 %v12983_v28 }
 0x336   :  { %7026 = vmatpush1.bf16.msra.mxu1 %v12978_v58  ;;  %19263 = vst [vmem:[#allocation17_spill] sm:$0xff] %v16492_v15  ;;  %v19264_v58 = vld [vmem:[#allocation24_spill] sm:$0xff]  ;;  %19268 = vst [vmem:[#allocation16_spill] sm:$0xff] %v16511_v17 }
 0x337   :  { %7027 = vmatprep.subr.bf16.mxu1 %v12986_v10  ;;  %v16495_v28 = vadd.f32 %v19264_v58, %v3520_v32 }
 0x338   :  { %6869 = vmatpush1.bf16.msra.mxu0 %v12981_v22  ;;  %v19266_v22 = vld [vmem:[#allocation5_spill] sm:$0xff] }
 0x339   :  { %6870 = vmatprep.subr.bf16.mxu0 %v12989_v36  ;;  %19265 = vst [vmem:[#allocation26_spill] sm:$0xff] %v16495_v28  ;;  %v16498_v45 = vrot.slane %v11047_v20, %v19266_v22 }
 0x33a   :  { %7028 = vmatpush1.bf16.msra.mxu1 %v12984_v33  ;;  %v19267_v33 = vld [vmem:[#allocation6_spill] sm:$0xff] }
 0x33b   :  { %7029 = vmatprep.subr.bf16.mxu1 %v12992_v59  ;;  %v16501_v36 = vrot.slane %v11047_v20, %v19267_v33  ;;  %v16504_v59 = vrot.slane %v11047_v20, %v19239_v9 }
 0x33c   :  { %6871 = vmatpush1.bf16.msra.mxu0 %v12987_v16 }
 0x33d   :  { %6872 = vmatprep.subr.bf16.mxu0 %v12995_v61  ;;  %v11049_v61 = vld [vmem:[%s19020_s1 + $0x70] sm:$0x1f] }
 0x33e   :  { %7030 = vmatpush1.bf16.msra.mxu1 %v12990_v50  ;;  %v16514_v50 = vrot.slane %v11048_v39, %v19266_v22 }
 0x33f   :  { %7031 = vmatprep.subr.bf16.mxu1 %v12998_v37 }
 0x340   :  { %6873 = vmatpush1.bf16.msra.mxu0 %v12993_v21  ;;  %v16521_v21 = vrot.slane %v11048_v39, %v19267_v33 }
 0x341   :  { %6874 = vmatprep.subr.bf16.mxu0 %v13001_v55 }
 0x342   :  { %7032 = vmatpush1.bf16.msra.mxu1 %v12996_v57  ;;  %v16524_v57 = vrot.slane %v11048_v39, %v19239_v9 }
 0x343   :  { %7033 = vmatprep.subr.bf16.mxu1 %v13004_v13  ;;  %v11406_v13 = vcombine.low %v11242_v38, %v11242_v38 }
 0x344   :  { %6875 = vmatpush1.bf16.msra.mxu0 %v12999_v12 }
 0x345   :  { %6876 = vmatprep.subr.bf16.mxu0 %v13007_v41 }
 0x346   :  { %7034 = vmatpush1.bf16.msra.mxu1 %v13002_v8  ;;  %v16527_v8 = vrot.slane %v11048_v39, %v19240_v0 }
 0x347   :  { %7035 = vmatprep.subr.bf16.mxu1 %v13010_v11 }
 0x348   :  { %6877 = vmatpush1.bf16.msra.mxu0 %v13005_v23  ;;  %v11408_v23 = vcombine.low %v11243_v44, %v11243_v44 }
 0x349   :  { %6878 = vmatprep.subr.bf16.mxu0 %v13013_v3  ;;  %v16531_v3 = vrot.slane %v11048_v39, %v19241_v52 }
 0x34a   :  { %7036 = vmatpush1.bf16.msra.mxu1 %v13008_v40 }
 0x34b   :  { %7037 = vmatprep.subr.bf16.mxu1 %v13016_v63 }
 0x34c   :  { %6879 = vmatpush1.bf16.msra.mxu0 %v13011_v34  ;;  %v16537_v34 = vrot.slane %v11049_v61, %v19266_v22 }
 0x34d   :  { %6880 = vmatprep.subr.bf16.mxu0 %v13019_v1 }
 0x34e   :  { %7038 = vmatpush1.bf16.msra.mxu1 %v13014_v4  ;;  %19269 = vst [vmem:[#allocation18_spill] sm:$0xff] %v16537_v34 }
 0x34f   :  { %7039 = vmatprep.subr.bf16.mxu1 %v13022_v56  ;;  %v16540_v56 = vrot.slane %v11049_v61, %v19267_v33 }
 0x350   :  { %6881 = vmatpush1.bf16.msra.mxu0 %v13017_v26  ;;  %v16543_v26 = vrot.slane %v11049_v61, %v19239_v9 }
 0x351   :  { %6882 = vmatprep.subr.bf16.mxu0 %v13025_v46  ;;  %19270 = vst [vmem:[#allocation19_spill] sm:$0xff] %v16540_v56  ;;  %v16548_v46 = vrot.slane %v11049_v61, %v19240_v0 }
 0x352   :  { %7040 = vmatpush1.bf16.msra.mxu1 %v13020_v5  ;;  %19271 = vst [vmem:[#allocation12_spill] sm:$0xff] %v16543_v26 }
 0x353   :  { %7041 = vmatprep.subr.bf16.mxu1 %v13028_v43  ;;  %19272 = vst [vmem:[#allocation13_spill] sm:$0xff] %v16548_v46  ;;  %v16551_v43 = vrot.slane %v11049_v61, %v19241_v52 }
 0x354   :  { %6883 = vmatpush1.bf16.msra.mxu0 %v13023_v7  ;;  %v16554_v7 = vsel %vm1965_vm5, %v11406_v13, 0 }
 0x355   :  { %6884 = vmatprep.subr.bf16.mxu0 %v13031_v49  ;;  %19273 = vst [vmem:[#allocation11_spill] sm:$0xff] %v16551_v43  ;;  %19274 = vst [vmem:[#allocation10_spill] sm:$0xff] %v16554_v7 }
 0x356   :  { %7042 = vmatpush1.bf16.msra.mxu1 %v13026_v27 }
 0x357   :  { %7043 = vmatprep.subr.bf16.mxu1 %v13034_v25 }
 0x358   :  { %6885 = vmatpush1.bf16.msra.mxu0 %v13029_v31  ;;  %v16559_v31 = vsel %vm1965_vm5, %v11408_v23, 0 }
 0x359   :  { %6886 = vmatprep.subr.bf16.mxu0 %v13037_v30  ;;  %19275 = vst [vmem:[#allocation14_spill] sm:$0xff] %v16559_v31 }
 0x35a   :  { %7044 = vmatpush1.bf16.msra.mxu1 %v13032_v18 }
 0x35b   :  { %7045 = vmatprep.subr.bf16.mxu1 %v13040_v6 }
 0x35c   :  { %6887 = vmatpush1.bf16.msra.mxu0 %v13035_v47 }
 0x35d   :  { %11411 = vmatprep.subr.msk.bf16.mxu0 %vm1965_vm5, %v11407_v29 }
 0x35e   :  { %7046 = vmatpush1.bf16.msra.mxu1 %v13038_v35 }
 0x35f   :  { %11414 = vmatprep.subr.msk.bf16.mxu1 %vm1965_vm5, %v11409_v54 }
 0x37b   :  { %v4691_v10 = vpop.f32.mrb[28].mxu0 }
 0x37c   :  { %v12207_v42 = vadd.f32 %v4691_v10, %v16473_v24  ;;  %v4693_v16 = vpop.f32.mrb[29].mxu0 }
 0x37d   :  { %v12208_v37 = vadd.f32 %v4693_v16, %v16480_v60  ;;  %v4695_v55 = vpop.f32.mrb[30].mxu0 }
 0x37e   :  { %v4859_v12 = vmax.f32 %v12207_v42, 0.0  ;;  %v12209_v41 = vadd.f32 %v4695_v55, %v16473_v24  ;;  %v4697_v11 = vpop.f32.mrb[31].mxu0 }
 0x37f   :  { %v4860_v40 = vmax.f32 %v12208_v37, 0.0  ;;  %v16534_v63 = vadd.f32 %v4697_v11, %v16480_v60 }
 0x380   :  { %v4899_v4 = vrot.slane %v4859_v12, 6  ;;  %v4864_v1 = vmax.f32 %v12209_v41, 0.0 }
 0x381   :  { %v16545_v5 = vrot.slane %v4860_v40, 6  ;;  %v4865_v25 = vmax.f32 %v16534_v63, 0.0 }
 0x382   :  { %v4959_v27 = vsel %vm71_vm0, 0.0, %v4899_v4  ;;  %v4906_v49 = vrot.slane %v4864_v1, 6 }
 0x383   :  { %v5005_v18 = vmul.f32 %v16498_v45, %v4959_v27  ;;  %v5045_v30 = vmul.f32 %v16501_v36, %v4959_v27  ;;  %v5215_v6 = vmul.f32 %v16504_v59, %v4959_v27  ;;  %v16565_v38 = vmul.f32 %v16508_v48, %v4959_v27  ;;  %v4701_v44 = vpop.f32.mrb[32].mxu0 }
 0x384   :  { %v16568_v47 = vmul.f32 %v16511_v17, %v4959_v27  ;;  %v4960_v35 = vsel %vm71_vm0, 0.0, %v16545_v5  ;;  %v4907_v29 = vsel %vm71_vm0, %v4899_v4, %v4906_v49  ;;  %v4969_v54 = vsel %vm71_vm0, %v4906_v49, 0.0  ;;  %v4703_v32 = vpop.f32.mrb[33].mxu0 }
 0x385   :  { %v5109_v20 = vrot.slane %v5045_v30, 1  ;;  %v5279_v39 = vrot.slane %v5215_v6, 2  ;;  %v16576_v10 = vmul.f32 %v16514_v50, %v4960_v35  ;;  %v4705_v42 = vpop.f32.mrb[34].mxu0  ;;  %v16580_v61 = vmul.f32 %v16521_v21, %v4960_v35 }
 0x386   :  { %v16583_v37 = vmul.f32 %v16524_v57, %v4960_v35  ;;  %v16586_v55 = vmul.f32 %v16527_v8, %v4960_v35  ;;  %v4707_v13 = vpop.f32.mrb[35].mxu0  ;;  %v16589_v12 = vmul.f32 %v16531_v3, %v4960_v35  ;;  %v5010_v41 = vmul.f32 %v16498_v45, %v4907_v29 }
 0x387   :  { %v5050_v11 = vmul.f32 %v16501_v36, %v4907_v29  ;;  %v5055_v23 = vmul.f32 %v16501_v36, %v4969_v54  ;;  %v5112_v40 = vrot.slane %v16580_v61, 1  ;;  %v5220_v1 = vmul.f32 %v16504_v59, %v4907_v29 }
 0x388   :  { %v5225_v6 = vmul.f32 %v16504_v59, %v4969_v54  ;;  %v16601_v16 = vmul.f32 %v16508_v48, %v4907_v29  ;;  %v5395_v58 = vmul.f32 %v16508_v48, %v4969_v54  ;;  %v16605_v61 = vmul.f32 %v16511_v17, %v4907_v29 }
 0x389   :  { %v5110_v49 = vrot.slane %v5050_v11, 1  ;;  %v5122_v30 = vrot.slane %v5055_v23, 1  ;;  %v5280_v35 = vrot.slane %v5220_v1, 2  ;;  %v5565_v27 = vmul.f32 %v16511_v17, %v4969_v54 }
 0x38a   :  { %v5292_v52 = vrot.slane %v5225_v6, 2  ;;  %v19075_v0 = vrot.slane %v16601_v16, 3  ;;  %v5462_v9 = vrot.slane %v5395_v58, 3  ;;  %v19074_v29 = vrot.slane %v16605_v61, 4 }
 0x38b   :  { %v5111_v63 = vsel %vm277_vm1, %v5109_v20, %v5110_v49  ;;  %v5123_v4 = vsel %vm277_vm1, %v5110_v49, %v5122_v30  ;;  %v16613_v1 = vsel %vm448_vm2, %v5279_v39, %v5280_v35  ;;  %v5632_v22 = vrot.slane %v5565_v27, 4 }
 0x38c   :  { %v16610_v11 = vadd.f32 %v5111_v63, %v5005_v18  ;;  %v5180_v23 = vadd.f32 %v5123_v4, %v5010_v41  ;;  %v5293_v33 = vsel %vm448_vm2, %v5280_v35, %v5292_v52  ;;  %v4908_v14 = vrot.slane %v4865_v25, 6 }
 0x38d   :  { %v12211_v49 = vadd.f32 %v4701_v44, %v16473_v24  ;;  %v12212_v54 = vadd.f32 %v4703_v32, %v16480_v60  ;;  %v5463_v18 = vsel %vm619_vm3, %v19075_v0, %v5462_v9  ;;  %v5633_v39 = vsel %vm790_vm4, %v19074_v29, %v5632_v22 }
 0x38e   :  { %v5350_v20 = vadd.f32 %v5293_v33, %v5180_v23  ;;  %v12213_v52 = vadd.f32 %v4705_v42, %v16473_v24  ;;  %v12214_v58 = vadd.f32 %v4707_v13, %v16480_v60  ;;  %v16630_v33 = vsel %vm71_vm0, %v16545_v5, %v4908_v14 }
 0x38f   :  { %v4970_v25 = vsel %vm71_vm0, %v4908_v14, 0.0  ;;  %v4869_v44 = vmax.f32 %v12211_v49, 0.0  ;;  %v5011_v32 = vmul.f32 %v16514_v50, %v16630_v33  ;;  %v5051_v9 = vmul.f32 %v16521_v21, %v16630_v33 }
 0x390   :  { %v5520_v41 = vadd.f32 %v5463_v18, %v5350_v20  ;;  %v5056_v22 = vmul.f32 %v16521_v21, %v4970_v25  ;;  %v16640_v24 = vmul.f32 %v16524_v57, %v16630_v33  ;;  %v16645_v5 = vmul.f32 %v16524_v57, %v4970_v25 }
 0x391   :  { %v16649_v14 = vmul.f32 %v16527_v8, %v16630_v33  ;;  %v16652_v42 = vmul.f32 %v16527_v8, %v4970_v25  ;;  %v5113_v13 = vrot.slane %v5051_v9, 1  ;;  %v16656_v27 = vmul.f32 %v16531_v3, %v4970_v25 }
 0x392   :  { %v16642_v60 = vadd.f32 %v5633_v39, %v5520_v41  ;;  %v5124_v63 = vrot.slane %v5056_v22, 1  ;;  %v4914_v23 = vrot.slane %v4869_v44, 6  ;;  %v4870_v18 = vmax.f32 %v12212_v54, 0.0 }
 0x393   :  { %v4874_v39 = vmax.f32 %v12213_v52, 0.0  ;;  %v4875_v9 = vmax.f32 %v12214_v58, 0.0  ;;  %v5114_v22 = vsel %vm277_vm1, %v5112_v40, %v5113_v13 }
 0x394   :  { %v5125_v20 = vsel %vm277_vm1, %v5113_v13, %v5124_v63  ;;  %v4964_v41 = vsel %vm71_vm0, 0.0, %v4914_v23  ;;  %v4915_v52 = vrot.slane %v4870_v18, 6  ;;  %v5176_v49 = vadd.f32 %v5114_v22, %v16576_v10 }
 0x395   :  { %v16665_v25 = vadd.f32 %v5125_v20, %v5011_v32  ;;  %v16668_v29 = vmul.f32 %v16498_v45, %v4964_v41  ;;  %v16671_v0 = vmul.f32 %v16501_v36, %v4964_v41  ;;  %v16674_v44 = vmul.f32 %v16504_v59, %v4964_v41 }
 0x396   :  { %v16677_v63 = vmul.f32 %v16508_v48, %v4964_v41  ;;  %v16680_v54 = vmul.f32 %v16511_v17, %v4964_v41  ;;  %v4921_v58 = vrot.slane %v4874_v39, 6  ;;  %v4923_v40 = vrot.slane %v4875_v9, 6 }
 0x397   :  { %v4965_v6 = vsel %vm71_vm0, 0.0, %v4915_v52 }
 0x398   :  { %19276 = vst [vmem:[#allocation15_spill] sm:$0xff] %v16680_v54  ;;  %v16689_v30 = vsel %vm71_vm0, %v4914_v23, %v4921_v58  ;;  %v4974_v41 = vsel %vm71_vm0, %v4921_v58, 0.0  ;;  %v16693_v18 = vmul.f32 %v16514_v50, %v4965_v6  ;;  %v16696_v39 = vmul.f32 %v16521_v21, %v4965_v6 }
 0x399   :  { %19277 = vst [vmem:[#allocation24_spill] sm:$0xff] %v16689_v30  ;;  %v16699_v9 = vmul.f32 %v16524_v57, %v4965_v6  ;;  %v16702_v10 = vmul.f32 %v16527_v8, %v4965_v6  ;;  %v16705_v35 = vmul.f32 %v16531_v3, %v4965_v6  ;;  %v16709_v23 = vmul.f32 %v16498_v45, %v16689_v30 }
 0x39a   :  { %v16713_v58 = vmul.f32 %v16501_v36, %v16689_v30  ;;  %v5070_v20 = vmul.f32 %v16501_v36, %v4974_v41  ;;  %v5137_v32 = vrot.slane %v16696_v39, 1  ;;  %v16721_v6 = vmul.f32 %v16504_v59, %v16689_v30 }
 0x39b   :  { %v11982_v22 = vpop.f32.mrb[36].mxu0  ;;  %19278 = vst [vmem:[#allocation30_spill] sm:$0xff] %v16705_v35  ;;  %v5307_v4 = vrot.slane %v16699_v9, 2  ;;  %v16726_v28 = vmul.f32 %v16504_v59, %v4974_v41  ;;  %v16731_v9 = vmul.f32 %v16508_v48, %v16689_v30  ;;  %v16734_v53 = vmul.f32 %v16508_v48, %v4974_v41 }
 0x39c   :  { %v11983_v13 = vpop.f32.mrb[37].mxu0  ;;  %v19082_v19 = vrot.slane %v16713_v58, 1  ;;  %v5147_v54 = vrot.slane %v5070_v20, 1  ;;  %v16737_v15 = vmul.f32 %v16511_v17, %v4974_v41  ;;  %v16746_v45 = vsel %vm71_vm0, %v4915_v52, %v4923_v40 }
 0x39d   :  { %v11985_v51 = vpop.f32.mrb[38].mxu0  ;;  %v4975_v39 = vsel %vm71_vm0, %v4923_v40, 0.0  ;;  %v5021_v41 = vmul.f32 %v16514_v50, %v16746_v45  ;;  %v5236_v52 = vmul.f32 %v16524_v57, %v16746_v45  ;;  %v5406_v40 = vmul.f32 %v16527_v8, %v16746_v45 }
 0x39e   :  { %v11986_v36 = vpop.f32.mrb[39].mxu0  ;;  %19279 = vst [vmem:[#allocation31_spill] sm:$0xff] %v16737_v15  ;;  %v16742_v20 = vsel %vm277_vm1, %v19082_v19, %v5147_v54  ;;  %v5066_v54 = vmul.f32 %v16521_v21, %v16746_v45  ;;  %v5071_v19 = vmul.f32 %v16521_v21, %v4975_v39  ;;  %v5241_v59 = vmul.f32 %v16524_v57, %v4975_v39 }
 0x39f   :  { %v5411_v48 = vmul.f32 %v16527_v8, %v4975_v39  ;;  %v16764_v35 = vmul.f32 %v16531_v3, %v4975_v39  ;;  %v19280_v50 = vrot.slane %v16640_v24, 2  ;;  %v19281_v30 = vrot.slane %v16583_v37, 2 }
 0x3a0   :  { %v5138_v17 = vrot.slane %v5066_v54, 1  ;;  %v5149_v43 = vrot.slane %v5071_v19, 1  ;;  %v5308_v46 = vrot.slane %v5236_v52, 2  ;;  %v5319_v57 = vrot.slane %v5241_v59, 2 }
 0x3a1   :  { %v5284_v15 = vsel %vm448_vm2, %v19281_v30, %v19280_v50  ;;  %v5478_v56 = vrot.slane %v5406_v40, 3  ;;  %v5489_v34 = vrot.slane %v5411_v48, 3  ;;  %v5659_v8 = vrot.slane %v16764_v35, 4 }
 0x3a2   :  { %v19282_v39 = vrot.slane %v16645_v5, 2  ;;  %v19283_v31 = vmov %v19280_v50  ;;  %v5150_v30 = vsel %vm277_vm1, %v5138_v17, %v5149_v43  ;;  %v5346_v54 = vadd.f32 %v5284_v15, %v5176_v49 }
 0x3a3   :  { %v16771_v21 = vpop.f32.mrb[40].mxu0  ;;  %v19284_v59 = vrot.slane %v16649_v14, 3  ;;  %v19285_v52 = vrot.slane %v16586_v55, 3  ;;  %v19286_v5 = vrot.slane %v16652_v42, 3  ;;  %v5561_v43 = vmul.f32 %v16531_v3, %v16630_v33 }
 0x3a4   :  { %v16773_v26 = vpop.f32.mrb[41].mxu0  ;;  %v5295_v37 = vsel %vm448_vm2, %v19283_v31, %v19282_v39  ;;  %v5345_v15 = vadd.f32 %v16613_v1, %v16610_v11  ;;  %v19288_v49 = vrot.slane %v16601_v16, 3  ;;  %v19289_v55 = vrot.slane %v16565_v38, 3 }
 0x3a5   :  { %v16781_v7 = vpop.f32.mrb[42].mxu0  ;;  %v5351_v19 = vadd.f32 %v5295_v37, %v16665_v25  ;;  %v5454_v48 = vsel %vm619_vm3, %v19285_v52, %v19284_v59  ;;  %v19287_v24 = vmov %v19284_v59  ;;  %v19290_v42 = vrot.slane %v16605_v61, 4 }
 0x3a6   :  { %v16790_v40 = vpop.f32.mrb[43].mxu0  ;;  %v5465_v31 = vsel %vm619_vm3, %v19287_v24, %v19286_v5  ;;  %v5451_v25 = vsel %vm619_vm3, %v19289_v55, %v19288_v49  ;;  %v5516_v50 = vadd.f32 %v5454_v48, %v5346_v54  ;;  %v19291_v14 = vrot.slane %v16568_v47, 4 }
 0x3a7   :  { %v5521_v39 = vadd.f32 %v5465_v31, %v5351_v19  ;;  %v11984_v59 = vadd.f32 %v11983_v13, %v11982_v22  ;;  %v5623_v52 = vrot.slane %v5561_v43, 4  ;;  %v5515_v33 = vadd.f32 %v5451_v25, %v5345_v15 }
 0x3a8   :  { %v5621_v37 = vsel %vm790_vm4, %v19291_v14, %v19290_v42  ;;  %v11987_v5 = vadd.f32 %v11986_v36, %v11985_v51  ;;  %v5139_v11 = vsel %vm277_vm1, %v5137_v32, %v5138_v17  ;;  %v5191_v1 = vadd.f32 %v5150_v30, %v5021_v41  ;;  %v19294_v32 = vld [vmem:[#allocation27_spill] sm:$0xff] }
 0x3a9   :  { %v4794_v16 = vadd.f32 %v11984_v59, %v16486_v2  ;;  %v5186_v38 = vadd.f32 %v5139_v11, %v16693_v18  ;;  %v5309_v54 = vsel %vm448_vm2, %v5307_v4, %v5308_v46  ;;  %v19292_v19 = vrot.slane %v16589_v12, 4  ;;  %v19295_v4 = vld [vmem:[#allocation20_spill] sm:$0xff] }
 0x3aa   :  { %v19293_v47 = vrot.slane %v16656_v27, 4  ;;  %v5685_v22 = vadd.f32 %v5621_v37, %v5515_v33  ;;  %v4797_v51 = vadd.f32 %v11987_v5, %v16489_v62  ;;  %v5320_v18 = vsel %vm448_vm2, %v5308_v46, %v5319_v57  ;;  %v13045_v57 = vld [vmem:[%s19021_s2 + $0xb78] ss:$20 sps:$4 sm:$0xff]  }
 0x3ab   :  { %v5624_v61 = vsel %vm790_vm4, %v19292_v19, %v5623_v52  ;;  %v4843_v2 = vadd.f32 %v19294_v32, %v4794_v16  ;;  %v5356_v30 = vadd.f32 %v5309_v54, %v5186_v38  ;;  %v5361_v48 = vadd.f32 %v5320_v18, %v5191_v1  ;;  %v19309_v16 = vld [vmem:[#allocation18_spill] sm:$0xff]  ;;  %v19310_v1 = vld [vmem:[#allocation19_spill] sm:$0xff]  ;;  %v19311_v19 = vld [vmem:[#allocation12_spill] sm:$0xff] }
 0x3ac   :  { %v5635_v13 = vsel %vm790_vm4, %v5623_v52, %v19293_v47  ;;  %v5686_v36 = vadd.f32 %v5624_v61, %v5516_v50  ;;  %v16825_v41 = vpack.c.bf16 %v16642_v60, %v5685_v22  ;;  %v4846_v12 = vadd.f32 %v19295_v4, %v4797_v51  ;;  %v19312_v47 = vld [vmem:[#allocation13_spill] sm:$0xff]  ;;  %v19314_v51 = vld [vmem:[#allocation30_spill] sm:$0xff] }
 0x3ad   :  { %v5691_v17 = vadd.f32 %v5635_v13, %v5521_v39  ;;  %v4861_v27 = vmax.f32 %v4843_v2, 0.0  ;;  %v19296_v31 = vrot.slane %v16702_v10, 3  ;;  %v5490_v43 = vsel %vm619_vm3, %v5478_v56, %v5489_v34  ;;  %v13046_v39 = vld [vmem:[%s19021_s2 + $0xdf8] ss:$20 sps:$4 sm:$0xff]   ;;  %v19313_v13 = vld [vmem:[#allocation11_spill] sm:$0xff] }
 0x3ae   :  { %v4866_v15 = vmax.f32 %v4846_v12, 0.0  ;;  %v16836_v46 = vadd.f32 %v5490_v43, %v5361_v48  ;;  %v16840_v60 = vmul.f32 %v16531_v3, %v16746_v45  ;;  %v19297_v34 = vrot.slane %v16713_v58, 1 }
 0x3af   :  { %v16828_v24 = vpack.c.bf16 %v5691_v17, %v5686_v36  ;;  %v5479_v62 = vsel %vm619_vm3, %v19296_v31, %v5478_v56  ;;  %v4901_v10 = vrot.slane %v4861_v27, 6  ;;  %v19298_v56 = vrot.slane %v16671_v0, 1 }
 0x3b0   :  { %v16834_v49 = vadd.f32 %v5479_v62, %v5356_v30  ;;  %v5190_v25 = vadd.f32 %v16742_v20, %v16709_v23  ;;  %v19299_v3 = vrot.slane %v16721_v6, 2  ;;  %v19300_v45 = vrot.slane %v16674_v44, 2  ;;  %v19308_v6 = vld [vmem:[#allocation14_spill] sm:$0xff] }
 0x3b1   :  { %6888 = vmatprep.mubr.bf16.mxu0 %v16828_v24  ;;  %7047 = vmatprep.mubr.bf16.mxu1 %v16828_v24  ;;  %v5136_v55 = vsel %vm277_vm1, %v19298_v56, %v19297_v34  ;;  %v4910_v0 = vrot.slane %v4866_v15, 6  ;;  %v5648_v58 = vrot.slane %v16840_v60, 4  ;;  %v19301_v23 = vrot.slane %v16726_v28, 2  ;;  %v19307_v28 = vld [vmem:[#allocation10_spill] sm:$0xff] }
 0x3b2   :  { %v5306_v50 = vsel %vm448_vm2, %v19300_v45, %v19299_v3  ;;  %6889 = vmatmul.mubr.bf16.vlgmr.msra.gmra.mrb[44].mxu0 %v16825_v41  ;;  %7048 = vmatmul.mubr.bf16.vlgmr.msra.gmra.mrb[44].mxu1 %v16825_v41  ;;  %v5185_v42 = vadd.f32 %v5136_v55, %v16668_v29  ;;  %v19302_v20 = vmov %v19299_v3  ;;  %v4961_v14 = vsel %vm71_vm0, 0.0, %v4901_v10 }
 0x3b3   :  { %v5318_v44 = vsel %vm448_vm2, %v19302_v20, %v19301_v23  ;;  %v19303_v59 = vrot.slane %v16731_v9, 3  ;;  %v19304_v52 = vrot.slane %v16677_v63, 3  ;;  %v19305_v5 = vrot.slane %v16734_v53, 3  ;;  %6910 = vmatpush1.bf16.msra.mxu0 %v19307_v28  ;;  %7069 = vmatpush1.bf16.msra.mxu1 %v19308_v6 }
 0x3b4   :  { %v5360_v37 = vadd.f32 %v5318_v44, %v5190_v25  ;;  %v5007_v38 = vmul.f32 %v19309_v16, %v4961_v14  ;;  %v5047_v54 = vmul.f32 %v19310_v1, %v4961_v14  ;;  %v5217_v61 = vmul.f32 %v19311_v19, %v4961_v14  ;;  %11997 = vmatprep.subr.bf16.mxu0 %v13045_v57 }
 0x3b5   :  { %v5476_v33 = vsel %vm619_vm3, %v19304_v52, %v19303_v59  ;;  %v19306_v11 = vmov %v19303_v59  ;;  %v5387_v63 = vmul.f32 %v19312_v47, %v4961_v14  ;;  %v5557_v22 = vmul.f32 %v19313_v13, %v4961_v14  ;;  %12025 = vmatprep.subr.bf16.mxu1 %v13046_v39 }
 0x3b6   :  { %v5488_v29 = vsel %vm619_vm3, %v19306_v11, %v19305_v5  ;;  %v4911_v53 = vsel %vm71_vm0, %v4901_v10, %v4910_v0  ;;  %v4971_v9 = vsel %vm71_vm0, %v4910_v0, 0.0  ;;  %v19315_v36 = vrot.slane %v19314_v51, 4 }
 0x3b7   :  { %v5115_v32 = vrot.slane %v5047_v54, 1  ;;  %v5285_v2 = vrot.slane %v5217_v61, 2  ;;  %v5455_v18 = vrot.slane %v5387_v63, 3  ;;  %v5012_v4 = vmul.f32 %v19309_v16, %v4911_v53 }
 0x3b8   :  { %v5649_v17 = vsel %vm790_vm4, %v19315_v36, %v5648_v58  ;;  %v5625_v12 = vrot.slane %v5557_v22, 4  ;;  %v5052_v30 = vmul.f32 %v19310_v1, %v4911_v53  ;;  %v5057_v48 = vmul.f32 %v19310_v1, %v4971_v9  ;;  %v19316_v22 = vld [vmem:[#allocation24_spill] sm:$0xff] }
 0x3b9   :  { %v5222_v27 = vmul.f32 %v19311_v19, %v4911_v53  ;;  %v5227_v31 = vmul.f32 %v19311_v19, %v4971_v9  ;;  %v5392_v62 = vmul.f32 %v19312_v47, %v4911_v53  ;;  %v5397_v43 = vmul.f32 %v19312_v47, %v4971_v9 }
 0x3ba   :  { %v5562_v15 = vmul.f32 %v19313_v13, %v4911_v53  ;;  %v5116_v60 = vrot.slane %v5052_v30, 1  ;;  %v5126_v57 = vrot.slane %v5057_v48, 1  ;;  %v5567_v34 = vmul.f32 %v19313_v13, %v4971_v9  ;;  %v19317_v53 = vld [vmem:[#allocation16_spill] sm:$0xff]  ;;  %v19325_v48 = vld [vmem:[#allocation25_spill] sm:$0xff] }
 0x3bb   :  { %v5286_v10 = vrot.slane %v5222_v27, 2  ;;  %v5296_v56 = vrot.slane %v5227_v31, 2  ;;  %v5456_v55 = vrot.slane %v5392_v62, 3  ;;  %v5466_v25 = vrot.slane %v5397_v43, 3 }
 0x3bc   :  { %v5626_v3 = vrot.slane %v5562_v15, 4  ;;  %v5117_v45 = vsel %vm277_vm1, %v5115_v32, %v5116_v60  ;;  %v5127_v39 = vsel %vm277_vm1, %v5116_v60, %v5126_v57  ;;  %v5636_v23 = vrot.slane %v5567_v34, 4 }
 0x3bd   :  { %v5287_v0 = vsel %vm448_vm2, %v5285_v2, %v5286_v10  ;;  %v5177_v20 = vadd.f32 %v5117_v45, %v5007_v38  ;;  %v5182_v44 = vadd.f32 %v5127_v39, %v5012_v4  ;;  %v5297_v14 = vsel %vm448_vm2, %v5286_v10, %v5296_v56  ;;  %v19324_v4 = vld [vmem:[#allocation28_spill] sm:$0xff] }
 0x3be   :  { %v5457_v59 = vsel %vm619_vm3, %v5455_v18, %v5456_v55  ;;  %v5467_v52 = vsel %vm619_vm3, %v5456_v55, %v5466_v25  ;;  %v5637_v5 = vsel %vm790_vm4, %v5626_v3, %v5636_v23  ;;  %v5660_v11 = vsel %vm790_vm4, %v5648_v58, %v5659_v8 }
 0x3bf   :  { %v5696_v28 = vadd.f32 %v5649_v17, %v16834_v49  ;;  %v5347_v6 = vadd.f32 %v5287_v0, %v5177_v20  ;;  %v5352_v54 = vadd.f32 %v5297_v14, %v5182_v44  ;;  %v5701_v61 = vadd.f32 %v5660_v11, %v16836_v46  ;;  %v19318_v17 = vld [vmem:[#allocation17_spill] sm:$0xff]  ;;  %v19319_v46 = vld [vmem:[#allocation26_spill] sm:$0xff] }
 0x3c0   :  { %v5355_v38 = vadd.f32 %v5306_v50, %v5185_v42  ;;  %v5530_v63 = vadd.f32 %v5488_v29, %v5360_v37  ;;  %v5575_v9 = vmul.f32 %v19317_v53, %v19316_v22  ;;  %v11990_v51 = vadd.f32 %v16773_v26, %v16771_v21  ;;  %v19320_v21 = vld [vmem:[#allocation15_spill] sm:$0xff] }
 0x3c1   :  { %v11993_v36 = vadd.f32 %v16790_v40, %v16781_v7  ;;  %v5522_v35 = vadd.f32 %v5467_v52, %v5352_v54  ;;  %v16921_v32 = vpack.c.bf16 %v5701_v61, %v5696_v28  ;;  %v5517_v49 = vadd.f32 %v5457_v59, %v5347_v6  ;;  %v19322_v29 = vld [vmem:[#allocation31_spill] sm:$0xff]  ;;  %v13047_v28 = vld [vmem:[%s19021_s2 + $0xa38] ss:$20 sps:$4 sm:$0xff]  }
 0x3c2   :  { %v5525_v8 = vadd.f32 %v5476_v33, %v5355_v38  ;;  %v5645_v58 = vrot.slane %v5575_v9, 4  ;;  %v4802_v2 = vadd.f32 %v11990_v51, %v19318_v17  ;;  %v5627_v42 = vsel %vm790_vm4, %v5625_v12, %v5626_v3  ;;  %v13049_v9 = vld [vmem:[%s19021_s2 + $0xba0] ss:$20 sps:$4 sm:$0xff]  }
 0x3c3   :  { %v4805_v50 = vadd.f32 %v11993_v36, %v19319_v46  ;;  %v5692_v37 = vadd.f32 %v5637_v5, %v5522_v35  ;;  %6898 = vmatprep.mubr.bf16.mxu0 %v16921_v32  ;;  %7057 = vmatprep.mubr.bf16.mxu1 %v16921_v32  ;;  %v5687_v26 = vadd.f32 %v5627_v42, %v5517_v49  ;;  %v19321_v7 = vrot.slane %v19320_v21, 4  ;;  %v13050_v51 = vld [vmem:[%s19021_s2 + $0xe20] ss:$20 sps:$4 sm:$0xff]   ;;  %v13054_v21 = vld [vmem:[%s19021_s2 + $0xe48] ss:$20 sps:$4 sm:$0xff]  }
 0x3c4   :  { %v19323_v33 = vrot.slane %v19322_v29, 4  ;;  %v4851_v30 = vadd.f32 %v19324_v4, %v4802_v2  ;;  %v19326_v25 = vmov 0   ;;  %v13051_v2 = vld [vmem:[%s19021_s2 + $0xa60] ss:$20 sps:$4 sm:$0xff]  }
 0x3c5   :  { %v5646_v40 = vsel %vm790_vm4, %v19321_v7, %v5645_v58  ;;  %v4854_v27 = vadd.f32 %v19325_v48, %v4805_v50  ;;  %v16936_v62 = vpack.c.bf16 %v5692_v37, %v5687_v26  ;;  %v13053_v26 = vld [vmem:[%s19021_s2 + $0xbc8] ss:$20 sps:$4 sm:$0xff]  }
 0x3c6   :  { %v5658_v18 = vsel %vm790_vm4, %v5645_v58, %v19323_v33  ;;  %v5695_v31 = vadd.f32 %v5646_v40, %v5525_v8  ;;  %v4871_v43 = vmax.f32 %v4851_v30, 0.0 }
 0x3c7   :  { %v5700_v12 = vadd.f32 %v5658_v18, %v5530_v63  ;;  %v4876_v15 = vmax.f32 %v4854_v27, 0.0  ;;  %v13055_v27 = vld [vmem:[%s19021_s2 + $0xa88] ss:$20 sps:$4 sm:$0xff]  }
 0x3c8   :  { %v4916_v57 = vrot.slane %v4871_v43, 6  ;;  %v13057_v43 = vld [vmem:[%s19021_s2 + $0xbf0] ss:$20 sps:$4 sm:$0xff]  }
 0x3c9   :  { %v16938_v60 = vpack.c.bf16 %v5700_v12, %v5695_v31  ;;  %v4925_v10 = vrot.slane %v4876_v15, 6  ;;  %v13056_v31 = vld [vmem:[%s19021_s2 + $0xd08] ss:$20 sps:$4 sm:$0xff]   ;;  %v13058_v15 = vld [vmem:[%s19021_s2 + $0xe70] ss:$20 sps:$4 sm:$0xff]  }
 0x3ca   :  { %v4966_v34 = vsel %vm71_vm0, 0.0, %v4916_v57 }
 0x3cb   :  { %6899 = vmatmul.mubr.bf16.gmra.mrb[48].mxu0 %v16938_v60  ;;  %7058 = vmatmul.mubr.bf16.gmra.mrb[48].mxu1 %v16938_v60  ;;  %v4926_v56 = vsel %vm71_vm0, %v4916_v57, %v4925_v10  ;;  %v4976_v55 = vsel %vm71_vm0, %v4925_v10, 0.0  ;;  %v5017_v3 = vmul.f32 %v19309_v16, %v4966_v34  ;;  %v5062_v45 = vmul.f32 %v19310_v1, %v4966_v34 }
 0x3cc   :  { %6941 = vmatprep.mubr.bf16.mxu0 %v19326_v25  ;;  %7100 = vmatprep.mubr.bf16.mxu1 %v19326_v25  ;;  %v5232_v39 = vmul.f32 %v19311_v19, %v4966_v34  ;;  %v5402_v0 = vmul.f32 %v19312_v47, %v4966_v34  ;;  %v5572_v23 = vmul.f32 %v19313_v13, %v4966_v34  ;;  %v13059_v34 = vld [vmem:[%s19021_s2 + $0xab0] ss:$20 sps:$4 sm:$0xff]  }
 0x3cd   :  { %v5022_v20 = vmul.f32 %v19309_v16, %v4926_v56  ;;  %v5067_v44 = vmul.f32 %v19310_v1, %v4926_v56  ;;  %v5072_v14 = vmul.f32 %v19310_v1, %v4976_v55  ;;  %v5140_v59 = vrot.slane %v5062_v45, 1  ;;  %v13048_v16 = vld [vmem:[%s19021_s2 + $0xcb8] ss:$20 sps:$4 sm:$0xff]   ;;  %v19327_v45 = vld [vmem:[#allocation21_spill] sm:$0xff] }
 0x3ce   :  { %v5310_v52 = vrot.slane %v5232_v39, 2  ;;  %v5480_v5 = vrot.slane %v5402_v0, 3  ;;  %v5237_v11 = vmul.f32 %v19311_v19, %v4926_v56  ;;  %v5650_v6 = vrot.slane %v5572_v23, 4  ;;  %v13063_v39 = vld [vmem:[%s19021_s2 + $0xad8] ss:$20 sps:$4 sm:$0xff]  }
 0x3cf   :  { %v5141_v54 = vrot.slane %v5067_v44, 1  ;;  %v5151_v61 = vrot.slane %v5072_v14, 1  ;;  %v5242_v38 = vmul.f32 %v19311_v19, %v4976_v55  ;;  %v5407_v1 = vmul.f32 %v19312_v47, %v4926_v56  ;;  %v13064_v0 = vld [vmem:[%s19021_s2 + $0xd58] ss:$20 sps:$4 sm:$0xff]   ;;  %v13065_v23 = vld [vmem:[%s19021_s2 + $0xc40] ss:$20 sps:$4 sm:$0xff]  }
 0x3d0   :  { %v5311_v63 = vrot.slane %v5237_v11, 2  ;;  %v5412_v22 = vmul.f32 %v19312_v47, %v4976_v55  ;;  %v5582_v53 = vmul.f32 %v19313_v13, %v4976_v55  ;;  %v5577_v8 = vmul.f32 %v19313_v13, %v4926_v56  ;;  %v13052_v13 = vld [vmem:[%s19021_s2 + $0xce0] ss:$20 sps:$4 sm:$0xff]   ;;  %v13060_v56 = vld [vmem:[%s19021_s2 + $0xd30] ss:$20 sps:$4 sm:$0xff]  }
 0x3d1   :  { %v5321_v19 = vrot.slane %v5242_v38, 2  ;;  %v5142_v36 = vsel %vm277_vm1, %v5140_v59, %v5141_v54  ;;  %v5152_v35 = vsel %vm277_vm1, %v5141_v54, %v5151_v61  ;;  %v5481_v49 = vrot.slane %v5407_v1, 3  ;;  %v13061_v55 = vld [vmem:[%s19021_s2 + $0xc18] ss:$20 sps:$4 sm:$0xff]   ;;  %v13068_v44 = vld [vmem:[%s19021_s2 + $0xd80] ss:$20 sps:$4 sm:$0xff]  }
 0x3d2   :  { %v5491_v58 = vrot.slane %v5412_v22, 3  ;;  %v5661_v47 = vrot.slane %v5582_v53, 4  ;;  %v5187_v17 = vadd.f32 %v5142_v36, %v5017_v3  ;;  %v5192_v46 = vadd.f32 %v5152_v35, %v5022_v20  ;;  %v13062_v3 = vld [vmem:[%s19021_s2 + $0xe98] ss:$20 sps:$4 sm:$0xff]   ;;  %v13067_v20 = vld [vmem:[%s19021_s2 + $0xb00] ss:$20 sps:$4 sm:$0xff]  }
 0x3d3   :  { %11412 = vmatmul.mubr.msk.bf16.vlgmr.msra.gmra.mrb[44].mxu0 %vm1958_vm6, %v16936_v62  ;;  %11415 = vmatmul.mubr.msk.bf16.vlgmr.msra.gmra.mrb[44].mxu1 %vm1958_vm6, %v16936_v62  ;;  %v5312_v50 = vsel %vm448_vm2, %v5310_v52, %v5311_v63  ;;  %v5322_v42 = vsel %vm448_vm2, %v5311_v63, %v5321_v19  ;;  %v5651_v37 = vrot.slane %v5577_v8, 4  ;;  %v5482_v40 = vsel %vm619_vm3, %v5480_v5, %v5481_v49  ;;  %v13069_v14 = vld [vmem:[%s19021_s2 + $0xc68] ss:$20 sps:$4 sm:$0xff]   ;;  %v13073_v11 = vld [vmem:[%s19021_s2 + $0xc90] ss:$20 sps:$4 sm:$0xff]  }
 0x3d4   :  { %11998 = vmatpush3.bf16.msra.mxu0 %v13047_v28  ;;  %12026 = vmatpush3.bf16.msra.mxu1 %v13048_v16  ;;  %v5357_v7 = vadd.f32 %v5312_v50, %v5187_v17  ;;  %v5492_v29 = vsel %vm619_vm3, %v5481_v49, %v5491_v58  ;;  %v5362_v33 = vadd.f32 %v5322_v42, %v5192_v46  ;;  %v13070_v59 = vld [vmem:[%s19021_s2 + $0xee8] ss:$20 sps:$4 sm:$0xff]   ;;  %v13074_v28 = vld [vmem:[%s19021_s2 + $0xf10] ss:$20 sps:$4 sm:$0xff]   ;;  %v13080_v38 = vld [vmem:[%s19021_s2 + $0xf40] ss:$20 sps:$4 sm:$0xff]  }
 0x3d5   :  { %11999 = vmatprep.subr.bf16.mxu0 %v13049_v9  ;;  %12027 = vmatprep.subr.bf16.mxu1 %v13050_v51  ;;  %v5652_v18 = vsel %vm790_vm4, %v5650_v6, %v5651_v37  ;;  %v5662_v4 = vsel %vm790_vm4, %v5651_v37, %v5661_v47  ;;  %v13071_v52 = vld [vmem:[%s19021_s2 + $0xb28] ss:$20 sps:$4 sm:$0xff]   ;;  %v13075_v6 = vld [vmem:[%s19021_s2 + $0xb50] ss:$20 sps:$4 sm:$0xff]   ;;  %v13104_v8 = vld [vmem:[%s19021_s2 + $0xfe0] ss:$20 sps:$4 sm:$0xff]  }
 0x3d6   :  { %6951 = vmatprep.mubr.bf16.mxu0 %v19326_v25  ;;  %7110 = vmatprep.mubr.bf16.mxu1 %v19326_v25  ;;  %v5527_v30 = vadd.f32 %v5482_v40, %v5357_v7  ;;  %v5532_v48 = vadd.f32 %v5492_v29, %v5362_v33  ;;  %v13072_v5 = vld [vmem:[%s19021_s2 + $0xda8] ss:$20 sps:$4 sm:$0xff]   ;;  %v13076_v54 = vld [vmem:[%s19021_s2 + $0xdd0] ss:$20 sps:$4 sm:$0xff]   ;;  %v13087_v47 = vld [vmem:[%s19021_s2 + $0xf6c] ss:$20 sps:$4 sm:$0xff]  }
 0x3d7   :  { %v13077_v61 = vld [vmem:[%s19021_s2 + $0xf38] ss:$0 sps:$4 sm:$0x11]   ;;  %v13078_v16 = vld [vmem:[%s19021_s2 + $0xf3c] ss:$20 sps:$4 sm:$0xff]   ;;  %v19328_v53 = vld [vmem:[#allocation22_spill] sm:$0xff] }
 0x3d8   :  { %12000 = vmatpush3.bf16.msra.mxu0 %v13051_v2  ;;  %12028 = vmatpush3.bf16.msra.mxu1 %v13052_v13  ;;  %v5697_v12 = vadd.f32 %v5652_v18, %v5527_v30  ;;  %v5702_v57 = vadd.f32 %v5662_v4, %v5532_v48  ;;  %v6801_v63 = vsel %vm1965_vm5, %v13077_v61, 0  ;;  %v13083_v1 = vld [vmem:[%s19021_s2 + $0xf48] ss:$20 sps:$4 sm:$0xff]   ;;  %v19329_v9 = vld [vmem:[#allocation23_spill] sm:$0xff]  ;;  %v13084_v51 = vld [vmem:[%s19021_s2 + $0xf64] ss:$20 sps:$4 sm:$0xff]  }
 0x3d9   :  { %12001 = vmatprep.subr.bf16.mxu0 %v13053_v26  ;;  %12029 = vmatprep.subr.bf16.mxu1 %v13054_v21  ;;  %v13086_v22 = vld [vmem:[%s19021_s2 + $0xf68] ss:$20 sps:$4 sm:$0xff]   ;;  %v13092_v19 = vld [vmem:[%s19021_s2 + $0xf90] ss:$20 sps:$4 sm:$0xff]   ;;  %v13095_v17 = vld [vmem:[%s19021_s2 + $0xf98] ss:$20 sps:$4 sm:$0xff]  }
 0x3da   :  { %v17011_v10 = vpack.c.bf16 %v5702_v57, %v5697_v12  ;;  %v19330_v36 = vld [vmem:[#allocation29_spill] sm:$0xff]  ;;  %v13096_v35 = vld [vmem:[%s19021_s2 + $0xfb4] ss:$20 sps:$4 sm:$0xff]   ;;  %v13122_v37 = vld [vmem:[%s19021_s2 + $0x1058] ss:$20 sps:$4 sm:$0xff]  }
 0x3db   :  { %v13081_v49 = vld [vmem:[%s19021_s2 + $0xf44] ss:$20 sps:$4 sm:$0xff]   ;;  %v13110_v58 = vld [vmem:[%s19021_s2 + $0x1008] ss:$20 sps:$4 sm:$0xff]   ;;  %v13101_v50 = vld [vmem:[%s19021_s2 + $0xfc0] ss:$20 sps:$4 sm:$0xff]  }
 0x3dc   :  { %12002 = vmatpush3.bf16.msra.mxu0 %v13055_v27  ;;  %12030 = vmatpush3.bf16.msra.mxu1 %v13056_v31  ;;  %v13108_v2 = vld [vmem:[%s19021_s2 + $0x1004] ss:$20 sps:$4 sm:$0xff]   ;;  %v13093_v46 = vld [vmem:[%s19021_s2 + $0xf94] ss:$20 sps:$4 sm:$0xff]   ;;  %v13114_v42 = vld [vmem:[%s19021_s2 + $0x102c] ss:$20 sps:$4 sm:$0xff]  }
 0x3dd   :  { %12003 = vmatprep.subr.bf16.mxu0 %v13057_v43  ;;  %12031 = vmatprep.subr.bf16.mxu1 %v13058_v15  ;;  %v13116_v13 = vld [vmem:[%s19021_s2 + $0x1030] ss:$20 sps:$4 sm:$0xff]   ;;  %v13107_v21 = vld [vmem:[%s19021_s2 + $0xfe8] ss:$20 sps:$4 sm:$0xff]   ;;  %v13128_v40 = vld [vmem:[%s19021_s2 + $0x1080] ss:$20 sps:$4 sm:$0xff]  }
 0x3de   :  { %11413 = vmatmul.mubr.msk.bf16.gmra.mrb[48].mxu0 %vm1958_vm6, %v17011_v10  ;;  %11416 = vmatmul.mubr.msk.bf16.gmra.mrb[48].mxu1 %vm1958_vm6, %v17011_v10  ;;  %v13099_v26 = vld [vmem:[%s19021_s2 + $0xfbc] ss:$20 sps:$4 sm:$0xff]   ;;  %v13120_v7 = vld [vmem:[%s19021_s2 + $0x1054] ss:$20 sps:$4 sm:$0xff]   ;;  %v13105_v29 = vld [vmem:[%s19021_s2 + $0xfe4] ss:$20 sps:$4 sm:$0xff]  }
 0x3df   :  { %7153 = vmatprep.mubr.bf16.mxu0 %v19327_v45  ;;  %7202 = vmatprep.mubr.bf16.mxu1 %v16828_v24  ;;  %v13066_v24 = vld [vmem:[%s19021_s2 + $0xec0] ss:$20 sps:$4 sm:$0xff]   ;;  %v13113_v33 = vld [vmem:[%s19021_s2 + $0x1010] ss:$20 sps:$4 sm:$0xff]   ;;  %v13134_v4 = vld [vmem:[%s19021_s2 + $0x10a8] ss:$20 sps:$4 sm:$0xff]  }
 0x3e0   :  { %12004 = vmatpush3.bf16.msra.mxu0 %v13059_v34  ;;  %12032 = vmatpush3.bf16.msra.mxu1 %v13060_v56  ;;  %v13126_v18 = vld [vmem:[%s19021_s2 + $0x107c] ss:$20 sps:$4 sm:$0xff]   ;;  %v13111_v30 = vld [vmem:[%s19021_s2 + $0x100c] ss:$20 sps:$4 sm:$0xff]   ;;  %v13132_v27 = vld [vmem:[%s19021_s2 + $0x10a4] ss:$20 sps:$4 sm:$0xff]  }
 0x3e1   :  { %12005 = vmatprep.subr.bf16.mxu0 %v13061_v55  ;;  %12033 = vmatprep.subr.bf16.mxu1 %v13062_v3  ;;  %v13119_v48 = vld [vmem:[%s19021_s2 + $0x1038] ss:$20 sps:$4 sm:$0xff]   ;;  %v13117_v31 = vld [vmem:[%s19021_s2 + $0x1034] ss:$20 sps:$4 sm:$0xff]   ;;  %v13123_v43 = vld [vmem:[%s19021_s2 + $0x105c] ss:$20 sps:$4 sm:$0xff]  }
 0x3e2   :  { %v13125_v12 = vld [vmem:[%s19021_s2 + $0x1060] ss:$20 sps:$4 sm:$0xff]   ;;  %v13131_v15 = vld [vmem:[%s19021_s2 + $0x1088] ss:$20 sps:$4 sm:$0xff]   ;;  %v13129_v57 = vld [vmem:[%s19021_s2 + $0x1084] ss:$20 sps:$4 sm:$0xff]  }
 0x3e3   :  { %v13135_v34 = vld [vmem:[%s19021_s2 + $0x10ac] ss:$20 sps:$4 sm:$0xff]   ;;  %v13140_v56 = vld [vmem:[%s19021_s2 + $0x10d0] ss:$20 sps:$4 sm:$0xff]   ;;  %v13141_v45 = vld [vmem:[%s19021_s2 + $0x10d4] ss:$20 sps:$4 sm:$0xff]  }
 0x3e4   :  { %12006 = vmatpush3.bf16.msra.mxu0 %v13063_v39  ;;  %12034 = vmatpush3.bf16.msra.mxu1 %v13064_v0  ;;  %v13143_v55 = vld [vmem:[%s19021_s2 + $0x10d8] ss:$20 sps:$4 sm:$0xff]   ;;  %v13149_v0 = vld [vmem:[%s19021_s2 + $0x1100] ss:$20 sps:$4 sm:$0xff]  }
 0x3e5   :  { %12007 = vmatprep.subr.bf16.mxu0 %v13065_v23  ;;  %12035 = vmatprep.subr.bf16.mxu1 %v13066_v24  ;;  %v13138_v3 = vld [vmem:[%s19021_s2 + $0x10cc] ss:$20 sps:$4 sm:$0xff]   ;;  %v13144_v23 = vld [vmem:[%s19021_s2 + $0x10f4] ss:$20 sps:$4 sm:$0xff]   ;;  %v13147_v24 = vld [vmem:[%s19021_s2 + $0x10fc] ss:$20 sps:$4 sm:$0xff]  }
 0x3e6   :  { %v13146_v39 = vld [vmem:[%s19021_s2 + $0x10f8] ss:$20 sps:$4 sm:$0xff]  }
 0x3e8   :  { %12008 = vmatpush3.bf16.msra.mxu0 %v13067_v20  ;;  %12036 = vmatpush3.bf16.msra.mxu1 %v13068_v44  ;;  %v13152_v20 = vld [vmem:[%s19021_s2 + $0x1120] ss:$20 sps:$4 sm:$0xff]   ;;  %v13155_v44 = vld [vmem:[%s19021_s2 + $0x1128] ss:$20 sps:$4 sm:$0xff]  }
 0x3e9   :  { %12009 = vmatprep.subr.bf16.mxu0 %v13069_v14  ;;  %12037 = vmatprep.subr.bf16.mxu1 %v13070_v59  ;;  %v13150_v14 = vld [vmem:[%s19021_s2 + $0x111c] ss:$20 sps:$4 sm:$0xff]   ;;  %v13153_v59 = vld [vmem:[%s19021_s2 + $0x1124] ss:$20 sps:$4 sm:$0xff]  }
 0x3ec   :  { %12010 = vmatpush3.bf16.msra.mxu0 %v13071_v52  ;;  %12038 = vmatpush3.bf16.msra.mxu1 %v13072_v5  ;;  %v13158_v52 = vld [vmem:[%s19021_s2 + $0x1148] ss:$20 sps:$4 sm:$0xff]   ;;  %v13161_v5 = vld [vmem:[%s19021_s2 + $0x1150] ss:$20 sps:$4 sm:$0xff]  }
 0x3ed   :  { %12011 = vmatprep.subr.bf16.mxu0 %v13073_v11  ;;  %12039 = vmatprep.subr.bf16.mxu1 %v13074_v28  ;;  %v13156_v11 = vld [vmem:[%s19021_s2 + $0x1144] ss:$20 sps:$4 sm:$0xff]   ;;  %v13159_v28 = vld [vmem:[%s19021_s2 + $0x114c] ss:$20 sps:$4 sm:$0xff]  }
 0x3f0   :  { %12012 = vmatpush3.bf16.msra.mxu0 %v13075_v6  ;;  %12040 = vmatpush3.bf16.msra.mxu1 %v13076_v54  ;;  %v13164_v6 = vld [vmem:[%s19021_s2 + $0x1170] ss:$20 sps:$4 sm:$0xff]   ;;  %v13167_v54 = vld [vmem:[%s19021_s2 + $0x1178] ss:$20 sps:$4 sm:$0xff]  }
 0x3f1   :  { %12385 = vmatprep.subr.msk.bf16.mxu0 %vm1965_vm5, %v13077_v61  ;;  %9214 = vmatprep.subr.bf16.mxu1 %v13080_v38  ;;  %v13162_v61 = vld [vmem:[%s19021_s2 + $0x116c] ss:$20 sps:$4 sm:$0xff]   ;;  %v13165_v38 = vld [vmem:[%s19021_s2 + $0x1174] ss:$20 sps:$4 sm:$0xff]  }
 0x3f3   :  { %7154 = vmatmul.mubr.bf16.vlgmr.msra.gmra.mrb[52].mxu0 %v19328_v53  ;;  %7203 = vmatmul.mubr.bf16.vlgmr.msra.gmra.mrb[52].mxu1 %v16825_v41  ;;  %v13090_v41 = vld [vmem:[%s19021_s2 + $0xf8c] ss:$20 sps:$4 sm:$0xff]  }
 0x3f4   :  { %7161 = vmatprep.mubr.bf16.mxu0 %v19329_v9  ;;  %7210 = vmatprep.mubr.bf16.mxu1 %v16921_v32  ;;  %v13098_v32 = vld [vmem:[%s19021_s2 + $0xfb8] ss:$20 sps:$4 sm:$0xff]   ;;  %v13176_v53 = vld [vmem:[%s19021_s2 + $0x11c0] ss:$20 sps:$4 sm:$0xff]   ;;  %v13179_v9 = vld [vmem:[%s19021_s2 + $0x11c8] ss:$20 sps:$4 sm:$0xff]  }
 0x3f5   :  { %12156 = vmatpush3.bf16.msra.mxu0 %v6801_v63  ;;  %9215 = vmatpush1.bf16.msra.mxu1 %v13078_v16  ;;  %v13170_v16 = vld [vmem:[%s19021_s2 + $0x1198] ss:$20 sps:$4 sm:$0xff]   ;;  %v13173_v63 = vld [vmem:[%s19021_s2 + $0x11a0] ss:$20 sps:$4 sm:$0xff]  }
 0x3f6   :  { %9373 = vmatprep.subr.bf16.mxu0 %v13083_v1  ;;  %9216 = vmatprep.subr.bf16.mxu1 %v13086_v22  ;;  %v13168_v1 = vld [vmem:[%s19021_s2 + $0x1194] ss:$20 sps:$4 sm:$0xff]   ;;  %v13171_v22 = vld [vmem:[%s19021_s2 + $0x119c] ss:$20 sps:$4 sm:$0xff]  }
 0x3f9   :  { %9217 = vmatpush1.bf16.msra.mxu1 %v13084_v51  ;;  %v11245_v51 = vld [vmem:[%s19022_s3 + $0xa] sm:$0x1f] }
 0x3fa   :  { %9218 = vmatprep.subr.bf16.mxu1 %v13092_v19  ;;  %v19331_v19 = vld [vmem:[#allocation5_spill] sm:$0xff] }
 0x3fb   :  { %7162 = vmatmul.mubr.bf16.gmra.mrb[56].mxu0 %v19330_v36  ;;  %7211 = vmatmul.mubr.bf16.gmra.mrb[56].mxu1 %v16938_v60  ;;  %v13089_v60 = vld [vmem:[%s19021_s2 + $0xf70] ss:$20 sps:$4 sm:$0xff]  }
 0x3fc   :  { %12157 = vmatprep.mubr.msk.bf16.mxu0 %vm1958_vm6, %v16936_v62  ;;  %v13102_v62 = vld [vmem:[%s19021_s2 + $0xfdc] ss:$20 sps:$4 sm:$0xff]  }
 0x3fd   :  { %9219 = vmatpush1.bf16.msra.mxu1 %v13090_v41  ;;  %v17290_v41 = vrot.slane %v11245_v51, %v19331_v19  ;;  %v19332_v36 = vld [vmem:[#allocation7_spill] sm:$0xff] }
 0x3fe   :  { %9220 = vmatprep.subr.bf16.mxu1 %v13098_v32  ;;  %v11419_v32 = vld [vmem:[%s19020_s1 + $0x78] sm:$0x1f] }
 0x401   :  { %9221 = vmatpush1.bf16.msra.mxu1 %v13096_v35  ;;  %v17296_v35 = vrot.slane %v11245_v51, %v19332_v36 }
 0x402   :  { %9222 = vmatprep.subr.bf16.mxu1 %v13104_v8  ;;  %v19333_v8 = vld [vmem:[#allocation6_spill] sm:$0xff] }
 0x403   :  { %12158 = vmatmul.mubr.msk.bf16.vlgmr.msra.gmra.mrb[60].mxu0 %vm1958_vm6, %v17011_v10  ;;  %v13137_v10 = vld [vmem:[%s19021_s2 + $0x10b0] ss:$20 sps:$4 sm:$0xff]  }
 0x404   :  { %9374 = vmatpush1.bf16.msra.mxu0 %v13081_v49  ;;  %v17299_v49 = vrot.slane %v11245_v51, %v19333_v8 }
 0x405   :  { %9375 = vmatprep.subr.bf16.mxu0 %v13089_v60  ;;  %9223 = vmatpush1.bf16.msra.mxu1 %v13102_v62  ;;  %v11421_v60 = vld [vmem:[%s19020_s1 + $0x88] sm:$0x1f] }
 0x406   :  { %9224 = vmatprep.subr.bf16.mxu1 %v13110_v58  ;;  %v17305_v58 = vrot.slane %v11419_v32, %v19331_v19 }
 0x408   :  { %9376 = vmatpush1.bf16.msra.mxu0 %v13087_v47  ;;  %19334 = vst [vmem:[#allocation27_spill] sm:$0xff] %v17305_v58  ;;  %v17308_v47 = vrot.slane %v11419_v32, %v19333_v8 }
 0x409   :  { %9377 = vmatprep.subr.bf16.mxu0 %v13095_v17  ;;  %9225 = vmatpush1.bf16.msra.mxu1 %v13108_v2  ;;  %v17311_v17 = vrot.slane %v11419_v32, %v19332_v36  ;;  %v19337_v2 = vld [vmem:[#allocation8_spill] sm:$0xff] }
 0x40a   :  { %9226 = vmatprep.subr.bf16.mxu1 %v13116_v13  ;;  %19335 = vst [vmem:[#allocation20_spill] sm:$0xff] %v17308_v47  ;;  %v17314_v13 = vrot.slane %v11419_v32, %v19337_v2 }
 0x40b   :  { %19336 = vst [vmem:[#allocation10_spill] sm:$0xff] %v17311_v17 }
 0x40c   :  { %9378 = vmatpush1.bf16.msra.mxu0 %v13093_v46  ;;  %19338 = vst [vmem:[#allocation14_spill] sm:$0xff] %v17314_v13 }
 0x40d   :  { %9379 = vmatprep.subr.bf16.mxu0 %v13101_v50  ;;  %9227 = vmatpush1.bf16.msra.mxu1 %v13114_v42  ;;  %v19339_v42 = vld [vmem:[#allocation9_spill] sm:$0xff] }
 0x40e   :  { %9228 = vmatprep.subr.bf16.mxu1 %v13122_v37  ;;  %v17318_v37 = vrot.slane %v11419_v32, %v19339_v42 }
 0x410   :  { %9380 = vmatpush1.bf16.msra.mxu0 %v13099_v26 }
 0x411   :  { %9381 = vmatprep.subr.bf16.mxu0 %v13107_v21  ;;  %9229 = vmatpush1.bf16.msra.mxu1 %v13120_v7  ;;  %v11420_v7 = vld [vmem:[%s19020_s1 + $0x80] sm:$0x1f] }
 0x412   :  { %9230 = vmatprep.subr.bf16.mxu1 %v13128_v40  ;;  %v17325_v40 = vrot.slane %v11245_v51, %v19337_v2 }
 0x414   :  { %9382 = vmatpush1.bf16.msra.mxu0 %v13105_v29 }
 0x415   :  { %9383 = vmatprep.subr.bf16.mxu0 %v13113_v33  ;;  %9231 = vmatpush1.bf16.msra.mxu1 %v13126_v18  ;;  %v17328_v33 = vrot.slane %v11421_v60, %v19331_v19  ;;  %v17331_v18 = vrot.slane %v11421_v60, %v19333_v8 }
 0x416   :  { %9232 = vmatprep.subr.bf16.mxu1 %v13134_v4  ;;  %v17334_v4 = vrot.slane %v11421_v60, %v19332_v36 }
 0x418   :  { %9384 = vmatpush1.bf16.msra.mxu0 %v13111_v30 }
 0x419   :  { %9385 = vmatprep.subr.bf16.mxu0 %v13119_v48  ;;  %9233 = vmatpush1.bf16.msra.mxu1 %v13132_v27 }
 0x41a   :  { %9234 = vmatprep.subr.bf16.mxu1 %v13140_v56  ;;  %v17345_v56 = vrot.slane %v11420_v7, %v19331_v19 }
 0x41c   :  { %9386 = vmatpush1.bf16.msra.mxu0 %v13117_v31 }
 0x41d   :  { %9387 = vmatprep.subr.bf16.mxu0 %v13125_v12  ;;  %9235 = vmatpush1.bf16.msra.mxu1 %v13138_v3  ;;  %v17351_v3 = vrot.slane %v11420_v7, %v19332_v36 }
 0x41e   :  { %9236 = vmatprep.subr.bf16.mxu1 %v13146_v39 }
 0x420   :  { %9388 = vmatpush1.bf16.msra.mxu0 %v13123_v43  ;;  %v17338_v43 = vrot.slane %v11421_v60, %v19337_v2 }
 0x421   :  { %9389 = vmatprep.subr.bf16.mxu0 %v13131_v15  ;;  %9237 = vmatpush1.bf16.msra.mxu1 %v13144_v23 }
 0x422   :  { %9238 = vmatprep.subr.bf16.mxu1 %v13152_v20 }
 0x424   :  { %9390 = vmatpush1.bf16.msra.mxu0 %v13129_v57 }
 0x425   :  { %9391 = vmatprep.subr.bf16.mxu0 %v13137_v10  ;;  %9239 = vmatpush1.bf16.msra.mxu1 %v13150_v14  ;;  %v17363_v14 = vrot.slane %v11420_v7, %v19339_v42 }
 0x426   :  { %9240 = vmatprep.subr.bf16.mxu1 %v13158_v52  ;;  %v11423_v52 = vld [vmem:[%s19020_s1 + $0x98] sm:$0x1f] }
 0x428   :  { %9392 = vmatpush1.bf16.msra.mxu0 %v13135_v34  ;;  %v17342_v34 = vrot.slane %v11421_v60, %v19339_v42 }
 0x429   :  { %9393 = vmatprep.subr.bf16.mxu0 %v13143_v55  ;;  %9241 = vmatpush1.bf16.msra.mxu1 %v13156_v11  ;;  %v17348_v55 = vrot.slane %v11420_v7, %v19333_v8 }
 0x42a   :  { %9242 = vmatprep.subr.bf16.mxu1 %v13164_v6  ;;  %19340 = vst [vmem:[#allocation18_spill] sm:$0xff] %v17342_v34 }
 0x42c   :  { %9394 = vmatpush1.bf16.msra.mxu0 %v13141_v45  ;;  %v11422_v45 = vld [vmem:[%s19020_s1 + $0x90] sm:$0x1f] }
 0x42d   :  { %9395 = vmatprep.subr.bf16.mxu0 %v13149_v0  ;;  %9243 = vmatpush1.bf16.msra.mxu1 %v13162_v61  ;;  %v17373_v11 = vrot.slane %v11422_v45, %v19333_v8  ;;  %v17379_v6 = vrot.slane %v11422_v45, %v19337_v2  ;;  %v17383_v61 = vrot.slane %v11422_v45, %v19339_v42 }
 0x42e   :  { %9244 = vmatprep.subr.bf16.mxu1 %v13170_v16  ;;  %v17386_v16 = vrot.slane %v11245_v51, %v19339_v42 }
 0x42f   :  { %19341 = vst [vmem:[#allocation19_spill] sm:$0xff] %v17379_v6  ;;  %19342 = vst [vmem:[#allocation12_spill] sm:$0xff] %v17383_v61 }
 0x430   :  { %9396 = vmatpush1.bf16.msra.mxu0 %v13147_v24  ;;  %19343 = vst [vmem:[#allocation13_spill] sm:$0xff] %v17386_v16 }
 0x431   :  { %9397 = vmatprep.subr.bf16.mxu0 %v13155_v44  ;;  %9245 = vmatpush1.bf16.msra.mxu1 %v13168_v1  ;;  %v17360_v44 = vrot.slane %v11420_v7, %v19337_v2  ;;  %v17414_v7 = vrot.slane %v11423_v52, %v19332_v36 }
 0x432   :  { %9267 = vmatprep.subr.bf16.mxu1 %v13176_v53  ;;  %v17394_v53 = vrot.slane %v11423_v52, %v19331_v19 }
 0x433   :  { %19347 = vst [vmem:[#allocation16_spill] sm:$0xff] %v17414_v7 }
 0x434   :  { %9398 = vmatpush1.bf16.msra.mxu0 %v13153_v59  ;;  %19344 = vst [vmem:[#allocation11_spill] sm:$0xff] %v17394_v53 }
 0x435   :  { %9399 = vmatprep.subr.bf16.mxu0 %v13161_v5  ;;  %v17370_v5 = vrot.slane %v11422_v45, %v19331_v19 }
 0x438   :  { %9400 = vmatpush1.bf16.msra.mxu0 %v13159_v28  ;;  %v17376_v28 = vrot.slane %v11422_v45, %v19332_v36 }
 0x439   :  { %9401 = vmatprep.subr.bf16.mxu0 %v13167_v54 }
 0x43c   :  { %9402 = vmatpush1.bf16.msra.mxu0 %v13165_v38 }
 0x43d   :  { %9403 = vmatprep.subr.bf16.mxu0 %v13173_v63 }
 0x440   :  { %9404 = vmatpush1.bf16.msra.mxu0 %v13171_v22 }
 0x441   :  { %9426 = vmatprep.subr.bf16.mxu0 %v13179_v9 }
 0x4a6   :  { %v6943_v62 = vpop.f32.mrb[44].mxu0  ;;  %v7102_v46 = vpop.f32.mrb[44].mxu1 }
 0x4a7   :  { %v12215_v50 = vadd.f32 %v6943_v62, %v17290_v41  ;;  %v12223_v26 = vadd.f32 %v7102_v46, %v17296_v35  ;;  %v6945_v21 = vpop.f32.mrb[45].mxu0  ;;  %v7104_v29 = vpop.f32.mrb[45].mxu1  ;;  %v17402_v62 = vrot.slane %v11423_v52, %v19333_v8 }
 0x4a8   :  { %v12216_v30 = vadd.f32 %v6945_v21, %v17299_v49  ;;  %v6947_v48 = vpop.f32.mrb[46].mxu0  ;;  %v7106_v27 = vpop.f32.mrb[46].mxu1  ;;  %v12224_v23 = vadd.f32 %v7104_v29, %v17325_v40 }
 0x4a9   :  { %v7268_v31 = vmax.f32 %v12215_v50, 0.0  ;;  %v7270_v12 = vmax.f32 %v12223_v26, 0.0  ;;  %v12217_v15 = vadd.f32 %v6947_v48, %v17290_v41  ;;  %v6949_v57 = vpop.f32.mrb[47].mxu0  ;;  %v7108_v10 = vpop.f32.mrb[47].mxu1  ;;  %v12225_v59 = vadd.f32 %v7106_v27, %v17296_v35  ;;  %19345 = vst [vmem:[#allocation30_spill] sm:$0xff] %v17402_v62 }
 0x4aa   :  { %v7269_v20 = vmax.f32 %v12216_v30, 0.0  ;;  %v7271_v1 = vmax.f32 %v12224_v23, 0.0  ;;  %v17391_v22 = vadd.f32 %v6949_v57, %v17299_v49  ;;  %v17399_v60 = vadd.f32 %v7108_v10, %v17325_v40 }
 0x4ab   :  { %v7308_v39 = vrot.slane %v7268_v31, 6  ;;  %v17356_v0 = vrot.slane %v7270_v12, 6  ;;  %v7273_v24 = vmax.f32 %v12217_v15, 0.0  ;;  %v7275_v32 = vmax.f32 %v12225_v59, 0.0 }
 0x4ac   :  { %v17396_v9 = vrot.slane %v7269_v20, 6  ;;  %v17430_v15 = vrot.slane %v7271_v1, 6  ;;  %v7274_v57 = vmax.f32 %v17391_v22, 0.0  ;;  %v17438_v23 = vrot.slane %v11423_v52, %v19337_v2 }
 0x4ad   :  { %v7368_v54 = vsel %vm71_vm0, 0.0, %v7308_v39  ;;  %v7313_v38 = vrot.slane %v7273_v24, 6  ;;  %v7370_v63 = vsel %vm71_vm0, 0.0, %v17356_v0  ;;  %v17441_v24 = vrot.slane %v11423_v52, %v19339_v42 }
 0x4ae   :  { %v7454_v51 = vmul.f32 %v17308_v47, %v7368_v54  ;;  %v7624_v46 = vmul.f32 %v17311_v17, %v7368_v54  ;;  %v17407_v50 = vmul.f32 %v17314_v13, %v7368_v54  ;;  %v17417_v29 = vmul.f32 %v17318_v37, %v7368_v54  ;;  %19350 = vst [vmem:[#allocation15_spill] sm:$0xff] %v17438_v23 }
 0x4af   :  { %v17420_v30 = vmul.f32 %v17331_v18, %v7370_v63  ;;  %v17423_v48 = vmul.f32 %v17334_v4, %v7370_v63  ;;  %v7314_v27 = vsel %vm71_vm0, %v7308_v39, %v7313_v38  ;;  %19351 = vst [vmem:[#allocation31_spill] sm:$0xff] %v17441_v24  ;;  %v7414_v39 = vmul.f32 %v17305_v58, %v7368_v54 }
 0x4b0   :  { %19346 = vst [vmem:[#allocation24_spill] sm:$0xff] %v17407_v50  ;;  %19348 = vst [vmem:[#allocation17_spill] sm:$0xff] %v17417_v29  ;;  %v17446_v20 = vsel %vm71_vm0, 0.0, %v17396_v9  ;;  %v7317_v59 = vrot.slane %v7275_v32, 6  ;;  %v7514_v36 = vrot.slane %v7454_v51, 1  ;;  %v7684_v19 = vrot.slane %v7624_v46, 2 }
 0x4b1   :  { %v17409_v26 = vpop.f32.mrb[48].mxu0  ;;  %v17411_v21 = vpop.f32.mrb[48].mxu1  ;;  %v7416_v52 = vmul.f32 %v17328_v33, %v7370_v63  ;;  %v7520_v54 = vrot.slane %v17420_v30, 1  ;;  %v7690_v25 = vrot.slane %v17423_v48, 2  ;;  %v17459_v32 = vmul.f32 %v17338_v43, %v7370_v63 }
 0x4b2   :  { %v17426_v31 = vpop.f32.mrb[49].mxu0  ;;  %v17428_v12 = vpop.f32.mrb[49].mxu1  ;;  %v17462_v1 = vmul.f32 %v17342_v34, %v7370_v63  ;;  %v17466_v51 = vmul.f32 %v17348_v55, %v17446_v20  ;;  %v17470_v46 = vsel %vm71_vm0, 0.0, %v17430_v15  ;;  %v7378_v42 = vsel %vm71_vm0, %v7313_v38, 0.0 }
 0x4b3   :  { %v17433_v10 = vpop.f32.mrb[50].mxu0  ;;  %v17435_v45 = vpop.f32.mrb[50].mxu1  ;;  %19354 = vst [vmem:[#allocation21_spill] sm:$0xff] %v17459_v32  ;;  %v7419_v30 = vmul.f32 %v17305_v58, %v7314_v27  ;;  %v7459_v48 = vmul.f32 %v17308_v47, %v7314_v27  ;;  %v7464_v2 = vmul.f32 %v17308_v47, %v7378_v42  ;;  %v7629_v24 = vmul.f32 %v17311_v17, %v7314_v27 }
 0x4b4   :  { %19349 = vst [vmem:[#allocation26_spill] sm:$0xff] %v17435_v45  ;;  %v17449_v22 = vpop.f32.mrb[51].mxu0  ;;  %v17451_v8 = vpop.f32.mrb[51].mxu1  ;;  %19355 = vst [vmem:[#allocation22_spill] sm:$0xff] %v17462_v1  ;;  %v7634_v63 = vmul.f32 %v17311_v17, %v7378_v42  ;;  %v17479_v23 = vmul.f32 %v17314_v13, %v7314_v27  ;;  %v7804_v7 = vmul.f32 %v17314_v13, %v7378_v42 }
 0x4b5   :  { %19352 = vst [vmem:[#allocation28_spill] sm:$0xff] %v17449_v22  ;;  %19353 = vst [vmem:[#allocation25_spill] sm:$0xff] %v17451_v8  ;;  %v17483_v62 = vmul.f32 %v17318_v37, %v7314_v27  ;;  %v7515_v53 = vrot.slane %v7459_v48, 1  ;;  %v7529_v38 = vrot.slane %v7464_v2, 1  ;;  %v7685_v16 = vrot.slane %v7629_v24, 2 }
 0x4b6   :  { %19356 = vst [vmem:[#allocation23_spill] sm:$0xff] %v17479_v23  ;;  %v7974_v29 = vmul.f32 %v17318_v37, %v7378_v42  ;;  %v7699_v50 = vrot.slane %v7634_v63, 2  ;;  %v19113_v8 = vrot.slane %v17479_v23, 3  ;;  %v7869_v22 = vrot.slane %v7804_v7, 3 }
 0x4b7   :  { %19357 = vst [vmem:[#allocation29_spill] sm:$0xff] %v17483_v62  ;;  %v19112_v58 = vrot.slane %v17483_v62, 4  ;;  %v7516_v45 = vsel %vm277_vm1, %v7514_v36, %v7515_v53  ;;  %v7530_v17 = vsel %vm277_vm1, %v7515_v53, %v7529_v38  ;;  %v17491_v13 = vsel %vm448_vm2, %v7684_v19, %v7685_v16 }
 0x4b8   :  { %v8039_v27 = vrot.slane %v7974_v29, 4  ;;  %v17493_v47 = vadd.f32 %v7516_v45, %v7414_v39  ;;  %v7589_v2 = vadd.f32 %v7530_v17, %v7419_v30  ;;  %v7700_v24 = vsel %vm448_vm2, %v7685_v16, %v7699_v50 }
 0x4b9   :  { %v7870_v42 = vsel %vm619_vm3, %v19113_v8, %v7869_v22  ;;  %v7318_v36 = vsel %vm71_vm0, %v17356_v0, %v7317_v59  ;;  %v7380_v19 = vsel %vm71_vm0, %v7317_v59, 0.0  ;;  %v7315_v53 = vrot.slane %v7274_v57, 6 }
 0x4ba   :  { %v8040_v7 = vsel %vm790_vm4, %v19112_v58, %v8039_v27  ;;  %v7759_v29 = vadd.f32 %v7700_v24, %v7589_v2  ;;  %v7421_v45 = vmul.f32 %v17328_v33, %v7318_v36  ;;  %v7461_v17 = vmul.f32 %v17331_v18, %v7318_v36 }
 0x4bb   :  { %v7466_v16 = vmul.f32 %v17331_v18, %v7380_v19  ;;  %v7631_v50 = vmul.f32 %v17334_v4, %v7318_v36  ;;  %v7636_v39 = vmul.f32 %v17334_v4, %v7380_v19  ;;  %v17511_v22 = vmul.f32 %v17338_v43, %v7318_v36 }
 0x4bc   :  { %v7806_v30 = vmul.f32 %v17338_v43, %v7380_v19  ;;  %v7929_v0 = vadd.f32 %v7870_v42, %v7759_v29  ;;  %v7521_v48 = vrot.slane %v7461_v17, 1  ;;  %v17515_v57 = vmul.f32 %v17342_v34, %v7318_v36 }
 0x4bd   :  { %19358 = vst [vmem:[#allocation32_spill] sm:$0xff] %v17511_v22  ;;  %v7533_v59 = vrot.slane %v7466_v16, 1  ;;  %v7691_v63 = vrot.slane %v7631_v50, 2  ;;  %v7703_v38 = vrot.slane %v7636_v39, 2  ;;  %v19117_v27 = vrot.slane %v17511_v22, 3 }
 0x4be   :  { %19359 = vst [vmem:[#allocation33_spill] sm:$0xff] %v17515_v57  ;;  %v7873_v2 = vrot.slane %v7806_v30, 3  ;;  %v17518_v24 = vadd.f32 %v8040_v7, %v7929_v0  ;;  %v7522_v58 = vsel %vm277_vm1, %v7520_v54, %v7521_v48  ;;  %v7976_v62 = vmul.f32 %v17342_v34, %v7380_v19 }
 0x4bf   :  { %v7534_v8 = vsel %vm277_vm1, %v7521_v48, %v7533_v59  ;;  %v17523_v23 = vadd.f32 %v7522_v58, %v7416_v52  ;;  %v17526_v29 = vsel %vm448_vm2, %v7690_v25, %v7691_v63  ;;  %v7704_v36 = vsel %vm448_vm2, %v7691_v63, %v7703_v38 }
 0x4c0   :  { %19360 = vst [vmem:[#allocation34_spill] sm:$0xff] %v17518_v24  ;;  %v7591_v42 = vadd.f32 %v7534_v8, %v7421_v45  ;;  %19362 = vst [vmem:[#allocation36_spill] sm:$0xff] %v17526_v29  ;;  %v7874_v17 = vsel %vm619_vm3, %v19117_v27, %v7873_v2  ;;  %v19116_v7 = vrot.slane %v17515_v57, 4  ;;  %v8043_v16 = vrot.slane %v7976_v62, 4 }
 0x4c1   :  { %19361 = vst [vmem:[#allocation35_spill] sm:$0xff] %v17523_v23  ;;  %v17535_v54 = vsel %vm71_vm0, %v17396_v9, %v7315_v53  ;;  %v17539_v58 = vmul.f32 %v17351_v3, %v17446_v20  ;;  %v7379_v25 = vsel %vm71_vm0, %v7315_v53, 0.0  ;;  %v17562_v0 = vmul.f32 %v17345_v56, %v17446_v20 }
 0x4c2   :  { %v7761_v8 = vadd.f32 %v7704_v36, %v7591_v42  ;;  %v17544_v52 = vmul.f32 %v17348_v55, %v17535_v54  ;;  %v8044_v50 = vsel %vm790_vm4, %v19116_v7, %v8043_v16  ;;  %v7465_v39 = vmul.f32 %v17348_v55, %v7379_v25 }
 0x4c3   :  { %v17566_v48 = vmul.f32 %v17360_v44, %v17446_v20  ;;  %v17575_v42 = vmul.f32 %v17363_v14, %v17446_v20  ;;  %v17579_v36 = vmul.f32 %v17370_v5, %v17470_v46  ;;  %v17583_v16 = vmul.f32 %v17373_v11, %v17470_v46 }
 0x4c4   :  { %v7931_v59 = vadd.f32 %v7874_v17, %v7761_v8  ;;  %v7531_v9 = vrot.slane %v7465_v39, 1  ;;  %v19371_v20 = vmax.f32 %v17399_v60, 0.0  ;;  %v17597_v1 = vmul.f32 %v17376_v28, %v17470_v46 }
 0x4c5   :  { %19365 = vst [vmem:[#allocation39_spill] sm:$0xff] %v17575_v42  ;;  %19366 = vst [vmem:[#allocation40_spill] sm:$0xff] %v17579_v36  ;;  %v17601_v39 = vmul.f32 %v17379_v6, %v17470_v46  ;;  %v19374_v57 = vrot.slane %v17544_v52, 1  ;;  %v17613_v60 = vmul.f32 %v17383_v61, %v17470_v46  ;;  %v17644_v22 = vmul.f32 %v17360_v44, %v17535_v54 }
 0x4c6   :  { %v17546_v19 = vpop.f32.mrb[52].mxu0  ;;  %v17548_v45 = vpop.f32.mrb[52].mxu1  ;;  %19367 = vst [vmem:[#allocation41_spill] sm:$0xff] %v17583_v16  ;;  %v17591_v27 = vadd.f32 %v8044_v50, %v7931_v59  ;;  %v7319_v63 = vrot.slane %v19371_v20, 6  ;;  %19372 = vst [vmem:[#allocation45_spill] sm:$0xff] %v17597_v1  ;;  %v12219_v50 = vadd.f32 %v17409_v26, %v17290_v41  ;;  %v17631_v59 = vmul.f32 %v17351_v3, %v17535_v54 }
 0x4c7   :  { %v17556_v30 = vpop.f32.mrb[53].mxu0  ;;  %v17558_v53 = vpop.f32.mrb[53].mxu1  ;;  %19373 = vst [vmem:[#allocation46_spill] sm:$0xff] %v17601_v39  ;;  %v17606_v32 = vsel %vm277_vm1, %v19374_v57, %v7531_v9  ;;  %19375 = vst [vmem:[#allocation47_spill] sm:$0xff] %v17613_v60  ;;  %v12227_v9 = vadd.f32 %v17411_v21, %v17296_v35  ;;  %v17677_v60 = vmul.f32 %v17345_v56, %v17535_v54 }
 0x4c8   :  { %v17569_v38 = vpop.f32.mrb[54].mxu0  ;;  %v17571_v2 = vpop.f32.mrb[54].mxu1  ;;  %19370 = vst [vmem:[#allocation44_spill] sm:$0xff] %v17591_v27  ;;  %v17617_v20 = vsel %vm71_vm0, %v17430_v15, %v7319_v63  ;;  %v7381_v62 = vsel %vm71_vm0, %v7319_v63, 0.0  ;;  %v17634_v15 = vmul.f32 %v17351_v3, %v7379_v25  ;;  %v12220_v63 = vadd.f32 %v17426_v31, %v17299_v49 }
 0x4c9   :  { %19363 = vst [vmem:[#allocation37_spill] sm:$0xff] %v17569_v38  ;;  %19364 = vst [vmem:[#allocation38_spill] sm:$0xff] %v17571_v2  ;;  %v17585_v17 = vpop.f32.mrb[55].mxu0  ;;  %v17587_v8 = vpop.f32.mrb[55].mxu1  ;;  %v17623_v57 = vmul.f32 %v17373_v11, %v17617_v20  ;;  %v7467_v26 = vmul.f32 %v17373_v11, %v7381_v62  ;;  %v7278_v29 = vmax.f32 %v12219_v50, 0.0  ;;  %v7280_v31 = vmax.f32 %v12227_v9, 0.0 }
 0x4ca   :  { %19368 = vst [vmem:[#allocation42_spill] sm:$0xff] %v17585_v17  ;;  %19369 = vst [vmem:[#allocation43_spill] sm:$0xff] %v17587_v8  ;;  %v19397_v9 = vld [vmem:[#allocation10_spill] sm:$0xff]  ;;  %v19404_v17 = vld [vmem:[#allocation27_spill] sm:$0xff] }
 0x4cb   :  { %19376 = vst [vmem:[#allocation48_spill] sm:$0xff] %v17617_v20  ;;  %19377 = vst [vmem:[#allocation49_spill] sm:$0xff] %v17623_v57  ;;  %v19124_v21 = vrot.slane %v17623_v57, 1  ;;  %v7535_v46 = vrot.slane %v7467_v26, 1  ;;  %v17662_v26 = vmul.f32 %v17363_v14, %v7379_v25  ;;  %v17669_v16 = vrot.slane %v7278_v29, 6  ;;  %v19395_v29 = vld [vmem:[#allocation20_spill] sm:$0xff] }
 0x4cd   :  { %19384 = vst [vmem:[#allocation56_spill] sm:$0xff] %v17662_v26  ;;  %v17667_v50 = vsel %vm277_vm1, %v19124_v21, %v7535_v46  ;;  %v12228_v46 = vadd.f32 %v17428_v12, %v17325_v40  ;;  %v7373_v12 = vsel %vm71_vm0, 0.0, %v17669_v16  ;;  %v17709_v21 = vmul.f32 %v17383_v61, %v7381_v62 }
 0x4ce   :  { %v17638_v7 = vpop.f32.mrb[56].mxu0  ;;  %v17640_v27 = vpop.f32.mrb[56].mxu1  ;;  %19385 = vst [vmem:[#allocation57_spill] sm:$0xff] %v17667_v50  ;;  %v12221_v50 = vadd.f32 %v17433_v10, %v17290_v41  ;;  %v17719_v2 = vmul.f32 %v19395_v29, %v7373_v12  ;;  %v17722_v26 = vmul.f32 %v19397_v9, %v7373_v12  ;;  %v17740_v38 = vmul.f32 %v19404_v17, %v7373_v12 }
 0x4cf   :  { %19378 = vst [vmem:[#allocation50_spill] sm:$0xff] %v17638_v7  ;;  %19379 = vst [vmem:[#allocation51_spill] sm:$0xff] %v17640_v27  ;;  %v17647_v23 = vpop.f32.mrb[57].mxu0  ;;  %v17649_v36 = vpop.f32.mrb[57].mxu1  ;;  %v17655_v27 = vmul.f32 %v17360_v44, %v7379_v25  ;;  %v17681_v25 = vmul.f32 %v17376_v28, %v17617_v20  ;;  %v7281_v1 = vmax.f32 %v12228_v46, 0.0  ;;  %v17751_v10 = vmul.f32 %v17318_v37, %v7373_v12 }
 0x4d0   :  { %19380 = vst [vmem:[#allocation52_spill] sm:$0xff] %v17647_v23  ;;  %19381 = vst [vmem:[#allocation53_spill] sm:$0xff] %v17649_v36  ;;  %v17657_v24 = vpop.f32.mrb[58].mxu0  ;;  %v17659_v8 = vpop.f32.mrb[58].mxu1 }
 0x4d1   :  { %19382 = vst [vmem:[#allocation54_spill] sm:$0xff] %v17657_v24  ;;  %19383 = vst [vmem:[#allocation55_spill] sm:$0xff] %v17659_v8  ;;  %v17671_v36 = vpop.f32.mrb[59].mxu0  ;;  %v17673_v7 = vpop.f32.mrb[59].mxu1  ;;  %v7279_v8 = vmax.f32 %v12220_v63, 0.0  ;;  %v17695_v24 = vmul.f32 %v17379_v6, %v17617_v20  ;;  %v17698_v63 = vmul.f32 %v17379_v6, %v7381_v62 }
 0x4d2   :  { %19386 = vst [vmem:[#allocation58_spill] sm:$0xff] %v17671_v36  ;;  %19387 = vst [vmem:[#allocation59_spill] sm:$0xff] %v17673_v7  ;;  %v17688_v36 = vrot.slane %v7280_v31, 6  ;;  %v17691_v7 = vmul.f32 %v17376_v28, %v7381_v62  ;;  %v17706_v31 = vmul.f32 %v17370_v5, %v17617_v20  ;;  %v19399_v20 = vld [vmem:[#allocation26_spill] sm:$0xff] }
 0x4d3   :  { %19388 = vst [vmem:[#allocation60_spill] sm:$0xff] %v17681_v25  ;;  %19390 = vst [vmem:[#allocation62_spill] sm:$0xff] %v17695_v24  ;;  %v17712_v39 = vrot.slane %v7279_v8, 6  ;;  %v12229_v23 = vadd.f32 %v19399_v20, %v17296_v35  ;;  %v19406_v35 = vld [vmem:[#allocation28_spill] sm:$0xff] }
 0x4d4   :  { %19389 = vst [vmem:[#allocation61_spill] sm:$0xff] %v17691_v7  ;;  %19391 = vst [vmem:[#allocation63_spill] sm:$0xff] %v17698_v63  ;;  %v7375_v62 = vsel %vm71_vm0, 0.0, %v17688_v36  ;;  %v12222_v20 = vadd.f32 %v19406_v35, %v17299_v49  ;;  %v7283_v35 = vmax.f32 %v12221_v50, 0.0 }
 0x4d5   :  { %19392 = vst [vmem:[#allocation64_spill] sm:$0xff] %v17706_v31  ;;  %19393 = vst [vmem:[#allocation65_spill] sm:$0xff] %v17709_v21  ;;  %v17754_v63 = vmul.f32 %v17331_v18, %v7375_v62  ;;  %v7374_v42 = vsel %vm71_vm0, 0.0, %v17712_v39  ;;  %v17770_v24 = vmul.f32 %v17338_v43, %v7375_v62 }
 0x4d6   :  { %v17716_v57 = vpop.f32.mrb[60].mxu0  ;;  %19396 = vst [vmem:[#allocation20_spill] sm:$0xff] %v17719_v2  ;;  %19398 = vst [vmem:[#allocation10_spill] sm:$0xff] %v17722_v26  ;;  %v17776_v21 = vmul.f32 %v17348_v55, %v7374_v42  ;;  %v17779_v50 = vmul.f32 %v17351_v3, %v7374_v42  ;;  %v7284_v2 = vmax.f32 %v12222_v20, 0.0 }
 0x4d7   :  { %19394 = vst [vmem:[#allocation66_spill] sm:$0xff] %v17716_v57  ;;  %v17728_v8 = vpop.f32.mrb[61].mxu0  ;;  %v19401_v57 = vld [vmem:[#allocation14_spill] sm:$0xff]  ;;  %19405 = vst [vmem:[#allocation27_spill] sm:$0xff] %v17740_v38 }
 0x4d8   :  { %19400 = vst [vmem:[#allocation26_spill] sm:$0xff] %v17728_v8  ;;  %v17734_v25 = vmul.f32 %v19401_v57, %v7373_v12  ;;  %v17736_v31 = vpop.f32.mrb[62].mxu0  ;;  %v19407_v8 = vld [vmem:[#allocation25_spill] sm:$0xff]  ;;  %19410 = vst [vmem:[#allocation68_spill] sm:$0xff] %v17754_v63  ;;  %v17767_v12 = vmul.f32 %v17334_v4, %v7375_v62 }
 0x4d9   :  { %19403 = vst [vmem:[#allocation67_spill] sm:$0xff] %v17736_v31  ;;  %v17746_v46 = vadd.f32 %v19407_v8, %v17325_v40  ;;  %v17748_v41 = vpop.f32.mrb[63].mxu0  ;;  %19409 = vst [vmem:[#allocation25_spill] sm:$0xff] %v17751_v10  ;;  %v17758_v31 = vrot.slane %v7281_v1, 6  ;;  %v7285_v40 = vmax.f32 %v12229_v23, 0.0  ;;  %v17773_v1 = vmul.f32 %v17342_v34, %v7375_v62 }
 0x4da   :  { %19402 = vst [vmem:[#allocation14_spill] sm:$0xff] %v17734_v25  ;;  %19408 = vst [vmem:[#allocation28_spill] sm:$0xff] %v17748_v41  ;;  %v17764_v41 = vmul.f32 %v17328_v33, %v7375_v62  ;;  %v7328_v23 = vrot.slane %v7283_v35, 6  ;;  %v17787_v25 = vmul.f32 %v17360_v44, %v7374_v42  ;;  %v17790_v62 = vmul.f32 %v17363_v14, %v7374_v42 }
 0x4db   :  { %19412 = vst [vmem:[#allocation70_spill] sm:$0xff] %v17767_v12  ;;  %19413 = vst [vmem:[#allocation71_spill] sm:$0xff] %v17770_v24  ;;  %v7332_v7 = vrot.slane %v7285_v40, 6  ;;  %v7376_v49 = vsel %vm71_vm0, 0.0, %v17758_v31  ;;  %v7330_v24 = vrot.slane %v7284_v2, 6 }
 0x4dc   :  { %19411 = vst [vmem:[#allocation69_spill] sm:$0xff] %v17764_v41  ;;  %19414 = vst [vmem:[#allocation72_spill] sm:$0xff] %v17773_v1  ;;  %v17784_v41 = vmul.f32 %v17345_v56, %v7374_v42  ;;  %v17794_v26 = vsel %vm71_vm0, %v17669_v16, %v7328_v23  ;;  %v7383_v35 = vsel %vm71_vm0, %v7328_v23, 0.0  ;;  %v17817_v42 = vmul.f32 %v17370_v5, %v7376_v49 }
 0x4dd   :  { %v17802_v40 = vmul.f32 %v19395_v29, %v17794_v26  ;;  %v7479_v63 = vmul.f32 %v19395_v29, %v7383_v35  ;;  %v17812_v12 = vsel %vm71_vm0, %v17688_v36, %v7332_v7  ;;  %v17820_v10 = vmul.f32 %v17373_v11, %v7376_v49 }
 0x4de   :  { %19415 = vst [vmem:[#allocation73_spill] sm:$0xff] %v17784_v41  ;;  %19416 = vst [vmem:[#allocation74_spill] sm:$0xff] %v17812_v12  ;;  %v17829_v36 = vmul.f32 %v19397_v9, %v17794_v26  ;;  %v17834_v20 = vmul.f32 %v17331_v18, %v17812_v12  ;;  %v17837_v29 = vmul.f32 %v17376_v28, %v7376_v49  ;;  %v7384_v2 = vsel %vm71_vm0, %v7330_v24, 0.0 }
 0x4df   :  { %v19144_v23 = vrot.slane %v17802_v40, 1  ;;  %v7554_v8 = vrot.slane %v7479_v63, 1  ;;  %19417 = vst [vmem:[#allocation75_spill] sm:$0xff] %v17817_v42  ;;  %v7385_v63 = vsel %vm71_vm0, %v7332_v7, 0.0  ;;  %v17840_v41 = vmul.f32 %v17379_v6, %v7376_v49 }
 0x4e0   :  { %19418 = vst [vmem:[#allocation76_spill] sm:$0xff] %v17834_v20  ;;  %v17843_v16 = vmul.f32 %v19397_v9, %v7383_v35  ;;  %v17851_v7 = vmul.f32 %v19401_v57, %v17794_v26  ;;  %v19152_v1 = vrot.slane %v17834_v20, 1  ;;  %v17856_v42 = vmul.f32 %v19404_v17, %v17794_v26 }
 0x4e1   :  { %v17825_v38 = vsel %vm277_vm1, %v19144_v23, %v7554_v8  ;;  %v7481_v8 = vmul.f32 %v17331_v18, %v7385_v63  ;;  %v17847_v23 = vmul.f32 %v17383_v61, %v7376_v49  ;;  %v17859_v6 = vmul.f32 %v19401_v57, %v7383_v35 }
 0x4e2   :  { %v7286_v18 = vmax.f32 %v17746_v46, 0.0  ;;  %v17868_v61 = vsel %vm71_vm0, %v17712_v39, %v7330_v24  ;;  %v17885_v39 = vmul.f32 %v17328_v33, %v17812_v12  ;;  %v7650_v17 = vmul.f32 %v17351_v3, %v7384_v2 }
 0x4e3   :  { %19419 = vst [vmem:[#allocation77_spill] sm:$0xff] %v17847_v23  ;;  %v7558_v9 = vrot.slane %v7481_v8, 1  ;;  %v17864_v23 = vmul.f32 %v17318_v37, %v7383_v35  ;;  %v17879_v46 = vmul.f32 %v17348_v55, %v17868_v61  ;;  %v7480_v35 = vmul.f32 %v17348_v55, %v7384_v2 }
 0x4e4   :  { %19421 = vst [vmem:[#allocation79_spill] sm:$0xff] %v17885_v39  ;;  %v17889_v24 = vmul.f32 %v17351_v3, %v17868_v61  ;;  %v17895_v49 = vmul.f32 %v17360_v44, %v17868_v61  ;;  %v7334_v55 = vrot.slane %v7286_v18, 6  ;;  %v17899_v8 = vmul.f32 %v17334_v4, %v17812_v12 }
 0x4e5   :  { %v17875_v57 = vsel %vm277_vm1, %v19152_v1, %v7558_v9  ;;  %v7543_v9 = vrot.slane %v17879_v46, 1  ;;  %v7556_v1 = vrot.slane %v7480_v35, 1  ;;  %v17902_v33 = vmul.f32 %v17334_v4, %v7385_v63 }
 0x4e6   :  { %19420 = vst [vmem:[#allocation78_spill] sm:$0xff] %v17875_v57  ;;  %v17906_v57 = vmul.f32 %v17338_v43, %v17812_v12  ;;  %v17909_v3 = vmul.f32 %v17360_v44, %v7384_v2  ;;  %v17913_v35 = vmul.f32 %v17363_v14, %v7384_v2  ;;  %v17917_v18 = vsel %vm71_vm0, %v17758_v31, %v7334_v55 }
 0x4e7   :  { %19422 = vst [vmem:[#allocation80_spill] sm:$0xff] %v17902_v33  ;;  %v7557_v46 = vsel %vm277_vm1, %v7543_v9, %v7556_v1  ;;  %v17920_v39 = vsel %vm71_vm0, %v7334_v55, 0.0  ;;  %v17923_v4 = vmul.f32 %v17338_v43, %v7385_v63  ;;  %v17926_v12 = vmul.f32 %v17342_v34, %v7385_v63 }
 0x4e8   :  { %19423 = vst [vmem:[#allocation81_spill] sm:$0xff] %v17906_v57  ;;  %v17930_v44 = vmul.f32 %v17373_v11, %v17917_v18  ;;  %v7482_v1 = vmul.f32 %v17373_v11, %v17920_v39  ;;  %v7430_v31 = vmul.f32 %v17345_v56, %v17868_v61  ;;  %v7713_v2 = vrot.slane %v17889_v24, 2 }
 0x4e9   :  { %19424 = vst [vmem:[#allocation82_spill] sm:$0xff] %v17923_v4  ;;  %19425 = vst [vmem:[#allocation83_spill] sm:$0xff] %v17926_v12  ;;  %v7726_v55 = vrot.slane %v7650_v17, 2  ;;  %v7883_v20 = vrot.slane %v17895_v49, 3  ;;  %v7896_v43 = vrot.slane %v17909_v3, 3  ;;  %v19426_v12 = vrot.slane %v17544_v52, 1 }
 0x4ea   :  { %v19159_v63 = vrot.slane %v17930_v44, 1  ;;  %v7560_v34 = vrot.slane %v7482_v1, 1  ;;  %v19427_v4 = vrot.slane %v17466_v51, 1  ;;  %v17948_v56 = vmul.f32 %v17370_v5, %v17917_v18 }
 0x4eb   :  { %v17952_v49 = vmul.f32 %v17376_v28, %v17917_v18  ;;  %v17956_v17 = vmul.f32 %v17376_v28, %v17920_v39  ;;  %v19428_v5 = vrot.slane %v17631_v59, 2  ;;  %v19429_v24 = vrot.slane %v17539_v58, 2 }
 0x4ec   :  { %v7519_v57 = vsel %vm277_vm1, %v19427_v4, %v19426_v12  ;;  %v17961_v51 = vsel %vm277_vm1, %v19159_v63, %v7560_v34  ;;  %v7590_v12 = vadd.f32 %v17606_v32, %v17677_v60  ;;  %v19430_v4 = vrot.slane %v17634_v15, 2 }
 0x4ed   :  { %v7585_v52 = vadd.f32 %v7519_v57, %v17562_v0  ;;  %v7689_v3 = vsel %vm448_vm2, %v19429_v24, %v19428_v5  ;;  %v19431_v28 = vmov %v19428_v5  ;;  %v19432_v34 = vrot.slane %v17644_v22, 3  ;;  %v19436_v24 = vld [vmem:[#allocation23_spill] sm:$0xff]  ;;  %v19442_v22 = vld [vmem:[#allocation17_spill] sm:$0xff] }
 0x4ee   :  { %v7702_v1 = vsel %vm448_vm2, %v19431_v28, %v19430_v4  ;;  %v19433_v63 = vrot.slane %v17566_v48, 3  ;;  %v19434_v32 = vrot.slane %v17655_v27, 3  ;;  %v7970_v57 = vmul.f32 %v17363_v14, %v17535_v54  ;;  %v19438_v28 = vld [vmem:[#allocation24_spill] sm:$0xff]  ;;  %v19440_v27 = vld [vmem:[#allocation29_spill] sm:$0xff] }
 0x4ef   :  { %v19435_v60 = vmov %v19432_v34  ;;  %v7755_v15 = vadd.f32 %v7689_v3, %v7585_v52  ;;  %v7760_v5 = vadd.f32 %v7702_v1, %v7590_v12  ;;  %v7754_v59 = vadd.f32 %v17491_v13, %v17493_v47  ;;  %v19444_v3 = vld [vmem:[#allocation37_spill] sm:$0xff]  ;;  %v19445_v1 = vld [vmem:[#allocation42_spill] sm:$0xff] }
 0x4f0   :  { %v7859_v0 = vsel %vm619_vm3, %v19433_v63, %v19432_v34  ;;  %v7872_v58 = vsel %vm619_vm3, %v19435_v60, %v19434_v32  ;;  %v19437_v4 = vrot.slane %v19436_v24, 3  ;;  %v19439_v48 = vrot.slane %v19438_v28, 3  ;;  %v19448_v28 = vld [vmem:[#allocation56_spill] sm:$0xff] }
 0x4f1   :  { %v8028_v34 = vrot.slane %v7970_v57, 4  ;;  %v19441_v11 = vrot.slane %v19440_v27, 4  ;;  %v19443_v33 = vrot.slane %v19442_v22, 4  ;;  %v12015_v54 = vadd.f32 %v17556_v30, %v17546_v19  ;;  %v19446_v57 = vld [vmem:[#allocation39_spill] sm:$0xff]  ;;  %v19451_v30 = vld [vmem:[#allocation38_spill] sm:$0xff] }
 0x4f2   :  { %v7856_v63 = vsel %vm619_vm3, %v19439_v48, %v19437_v4  ;;  %v18004_v52 = vadd.f32 %v17558_v53, %v17548_v45  ;;  %v7925_v47 = vadd.f32 %v7859_v0, %v7755_v15  ;;  %v7930_v13 = vadd.f32 %v7872_v58, %v7760_v5  ;;  %v19452_v45 = vld [vmem:[#allocation43_spill] sm:$0xff] }
 0x4f3   :  { %v8026_v32 = vsel %vm790_vm4, %v19443_v33, %v19441_v11  ;;  %v7924_v12 = vadd.f32 %v7856_v63, %v7754_v59  ;;  %v12018_v60 = vadd.f32 %v19445_v1, %v19444_v3  ;;  %v19447_v24 = vrot.slane %v19446_v57, 4  ;;  %v19450_v11 = vld [vmem:[#allocation13_spill] sm:$0xff] }
 0x4f4   :  { %v19449_v48 = vrot.slane %v19448_v28, 4  ;;  %v18015_v19 = vadd.f32 %v12015_v54, %v19450_v11  ;;  %v18019_v53 = vadd.f32 %v19452_v45, %v19451_v30  ;;  %v19453_v59 = vrot.slane %v17776_v21, 1  ;;  %v19455_v21 = vld [vmem:[#allocation34_spill] sm:$0xff] }
 0x4f5   :  { %v8029_v4 = vsel %vm790_vm4, %v19447_v24, %v8028_v34  ;;  %v8094_v15 = vadd.f32 %v8026_v32, %v7924_v12  ;;  %v18022_v5 = vadd.f32 %v12018_v60, %v19450_v11  ;;  %v7600_v27 = vadd.f32 %v7557_v46, %v7430_v31  ;;  %v13174_v32 = vld [vmem:[%s19021_s2 + $0x11bc] ss:$20 sps:$4 sm:$0xff]  }
 0x4f6   :  { %v8042_v33 = vsel %vm790_vm4, %v8028_v34, %v19449_v48  ;;  %v8095_v0 = vadd.f32 %v8029_v4, %v7925_v47  ;;  %v7544_v63 = vsel %vm277_vm1, %v19453_v59, %v7543_v9  ;;  %v19454_v34 = vrot.slane %v17779_v50, 2  ;;  %v13177_v47 = vld [vmem:[%s19021_s2 + $0x11c4] ss:$20 sps:$4 sm:$0xff]   ;;  %v13183_v59 = vld [vmem:[%s19021_s2 + $0x11ec] ss:$20 sps:$4 sm:$0xff]  }
 0x4f7   :  { %v8100_v58 = vadd.f32 %v8042_v33, %v7930_v13  ;;  %v7727_v54 = vsel %vm448_vm2, %v7713_v2, %v7726_v55  ;;  %v18040_v13 = vpack.c.bf16 %v19455_v21, %v8094_v15  ;;  %v19456_v9 = vld [vmem:[#allocation73_spill] sm:$0xff]  ;;  %v19457_v50 = vrot.slane %v17787_v25, 3  ;;  %v19459_v24 = vld [vmem:[#allocation20_spill] sm:$0xff]  ;;  %v19461_v33 = vld [vmem:[#allocation27_spill] sm:$0xff] }
 0x4f8   :  { %v7714_v22 = vsel %vm448_vm2, %v19454_v34, %v7713_v2  ;;  %v7595_v46 = vadd.f32 %v7544_v63, %v19456_v9  ;;  %v13182_v2 = vld [vmem:[%s19021_s2 + $0x11e8] ss:$20 sps:$4 sm:$0xff]   ;;  %v13185_v55 = vld [vmem:[%s19021_s2 + $0x11f0] ss:$20 sps:$4 sm:$0xff]   ;;  %v7770_v12 = vadd.f32 %v7727_v54, %v7600_v27  ;;  %v7897_v1 = vsel %vm619_vm3, %v7883_v20, %v7896_v43  ;;  %v13191_v21 = vld [vmem:[%s19021_s2 + $0x1218] ss:$20 sps:$4 sm:$0xff]  }
 0x4f9   :  { %v18031_v3 = vpack.c.bf16 %v8100_v58, %v8095_v0  ;;  %v7884_v31 = vsel %vm619_vm3, %v19457_v50, %v7883_v20  ;;  %v7985_v60 = vmul.f32 %v17363_v14, %v17868_v61  ;;  %v19458_v57 = vrot.slane %v17802_v40, 1  ;;  %v19463_v43 = vld [vmem:[#allocation10_spill] sm:$0xff] }
 0x4fa   :  { %v19460_v25 = vrot.slane %v19459_v24, 1  ;;  %v7894_v28 = vrot.slane %v17859_v6, 3  ;;  %v7765_v48 = vadd.f32 %v7714_v22, %v7595_v46  ;;  %v7599_v20 = vadd.f32 %v17825_v38, %v17856_v42  ;;  %v13180_v42 = vld [vmem:[%s19021_s2 + $0x11e4] ss:$20 sps:$4 sm:$0xff]   ;;  %v19470_v9 = vld [vmem:[#allocation14_spill] sm:$0xff] }
 0x4fb   :  { %9246 = vmatprep.mubr.bf16.mxu1 %v18031_v3  ;;  %9405 = vmatprep.mubr.bf16.mxu0 %v18031_v3  ;;  %v7940_v14 = vadd.f32 %v7897_v1, %v7770_v12  ;;  %v8053_v61 = vrot.slane %v7985_v60, 4  ;;  %v19462_v40 = vrot.slane %v17829_v36, 2  ;;  %v19464_v6 = vrot.slane %v19463_v43, 2  ;;  %v19473_v60 = vld [vmem:[#allocation49_spill] sm:$0xff] }
 0x4fc   :  { %v7541_v4 = vsel %vm277_vm1, %v19460_v25, %v19458_v57  ;;  %9247 = vmatmul.mubr.bf16.vlgmr.msra.gmra.mrb[60].mxu1 %v18040_v13  ;;  %9406 = vmatmul.mubr.bf16.vlgmr.msra.gmra.mrb[64].mxu0 %v18040_v13  ;;  %v19465_v0 = vrot.slane %v17843_v16, 2  ;;  %v7548_v38 = vrot.slane %v17820_v10, 1  ;;  %v7935_v63 = vadd.f32 %v7884_v31, %v7765_v48  ;;  %v19475_v24 = vld [vmem:[#allocation41_spill] sm:$0xff]  ;;  %v19477_v48 = vld [vmem:[#allocation64_spill] sm:$0xff] }
 0x4fd   :  { %v7594_v30 = vadd.f32 %v7541_v4, %v19461_v33  ;;  %v7711_v45 = vsel %vm448_vm2, %v19464_v6, %v19462_v40  ;;  %v19466_v58 = vmov %v19462_v40  ;;  %9268 = vmatpush1.bf16.msra.mxu1 %v13174_v32  ;;  %9427 = vmatpush1.bf16.msra.mxu0 %v13177_v47  ;;  %v8064_v16 = vrot.slane %v17864_v23, 4  ;;  %v13188_v47 = vld [vmem:[%s19021_s2 + $0x1210] ss:$20 sps:$4 sm:$0xff]  }
 0x4fe   :  { %v7725_v15 = vsel %vm448_vm2, %v19466_v58, %v19465_v0  ;;  %9269 = vmatprep.subr.bf16.mxu1 %v13182_v2  ;;  %9428 = vmatprep.subr.bf16.mxu0 %v13185_v55  ;;  %v19467_v36 = vrot.slane %v17790_v62, 4  ;;  %v19468_v54 = vrot.slane %v17913_v35, 4  ;;  %v19469_v23 = vrot.slane %v17851_v7, 3  ;;  %v19478_v33 = vld [vmem:[#allocation57_spill] sm:$0xff] }
 0x4ff   :  { %v7764_v27 = vadd.f32 %v7711_v45, %v7594_v30  ;;  %v7769_v34 = vadd.f32 %v7725_v15, %v7599_v20  ;;  %v19471_v46 = vrot.slane %v19470_v9, 3  ;;  %v7984_v1 = vmul.f32 %v17318_v37, %v17794_v26  ;;  %v13189_v37 = vld [vmem:[%s19021_s2 + $0x1214] ss:$20 sps:$4 sm:$0xff]   ;;  %v19480_v26 = vld [vmem:[#allocation40_spill] sm:$0xff]  ;;  %v19483_v43 = vld [vmem:[#allocation45_spill] sm:$0xff] }
 0x500   :  { %v8054_v22 = vsel %vm790_vm4, %v19467_v36, %v8053_v61  ;;  %v8067_v32 = vsel %vm790_vm4, %v8053_v61, %v19468_v54  ;;  %v19472_v35 = vmov %v19469_v23  ;;  %v19474_v57 = vrot.slane %v19473_v60, 1  ;;  %v19481_v61 = vld [vmem:[#allocation60_spill] sm:$0xff]  ;;  %v19485_v58 = vld [vmem:[#allocation61_spill] sm:$0xff]  ;;  %v19492_v54 = vld [vmem:[#allocation63_spill] sm:$0xff] }
 0x501   :  { %v7881_v62 = vsel %vm619_vm3, %v19471_v46, %v19469_v23  ;;  %v8105_v50 = vadd.f32 %v8054_v22, %v7935_v63  ;;  %v8110_v31 = vadd.f32 %v8067_v32, %v7940_v14  ;;  %v7895_v2 = vsel %vm619_vm3, %v19472_v35, %v7894_v28  ;;  %9270 = vmatpush1.bf16.msra.mxu1 %v13180_v42  ;;  %v13186_v28 = vld [vmem:[%s19021_s2 + $0x120c] ss:$20 sps:$4 sm:$0xff]   ;;  %v19496_v35 = vld [vmem:[#allocation12_spill] sm:$0xff] }
 0x502   :  { %v7934_v55 = vadd.f32 %v7881_v62, %v7764_v27  ;;  %v7939_v12 = vadd.f32 %v7895_v2, %v7769_v34  ;;  %v19476_v25 = vrot.slane %v19475_v24, 1  ;;  %v7592_v30 = vadd.f32 %v19478_v33, %v19477_v48  ;;  %9429 = vmatpush1.bf16.msra.mxu0 %v13183_v59  ;;  %9271 = vmatprep.subr.bf16.mxu1 %v13188_v47  ;;  %v19488_v63 = vld [vmem:[#allocation62_spill] sm:$0xff]  ;;  %v13197_v9 = vld [vmem:[%s19021_s2 + $0x1240] ss:$20 sps:$4 sm:$0xff]  }
 0x503   :  { %v7718_v20 = vrot.slane %v17837_v29, 2  ;;  %v18116_v7 = vpack.c.bf16 %v8110_v31, %v8105_v50  ;;  %v19482_v40 = vrot.slane %v19481_v61, 2  ;;  %v19484_v6 = vrot.slane %v19483_v43, 2  ;;  %9430 = vmatprep.subr.bf16.mxu0 %v13191_v21  ;;  %v19490_v34 = vld [vmem:[#allocation46_spill] sm:$0xff]  ;;  %v19495_v31 = vld [vmem:[#allocation48_spill] sm:$0xff]  ;;  %v19501_v33 = vld [vmem:[#allocation51_spill] sm:$0xff] }
 0x504   :  { %v7525_v4 = vsel %vm277_vm1, %v19476_v25, %v19474_v57  ;;  %v8050_v0 = vrot.slane %v7984_v1, 4  ;;  %v19486_v15 = vrot.slane %v19485_v58, 2  ;;  %v19489_v27 = vrot.slane %v19488_v63, 3  ;;  %v13194_v21 = vld [vmem:[%s19021_s2 + $0x1238] ss:$20 sps:$4 sm:$0xff]   ;;  %v19497_v1 = vld [vmem:[#allocation25_spill] sm:$0xff] }
 0x505   :  { %19479 = vst [vmem:[#allocation23_spill] sm:$0xff] %v18116_v7  ;;  %v7587_v14 = vadd.f32 %v7525_v4, %v19480_v26  ;;  %v7695_v45 = vsel %vm448_vm2, %v19484_v6, %v19482_v40  ;;  %v19487_v42 = vmov %v19482_v40  ;;  %v19491_v36 = vrot.slane %v19490_v34, 3  ;;  %9256 = vmatprep.mubr.bf16.mxu1 %v18116_v7  ;;  %9415 = vmatprep.mubr.bf16.mxu0 %v18116_v7  ;;  %v19499_v25 = vld [vmem:[#allocation50_spill] sm:$0xff]  ;;  %v19500_v4 = vld [vmem:[#allocation52_spill] sm:$0xff]  ;;  %v19502_v26 = vld [vmem:[#allocation53_spill] sm:$0xff] }
 0x506   :  { %v7706_v59 = vsel %vm448_vm2, %v19487_v42, %v19486_v15  ;;  %v19493_v32 = vrot.slane %v19492_v54, 3  ;;  %v19494_v23 = vmov %v19489_v27  ;;  %v7972_v2 = vmul.f32 %v19496_v35, %v19495_v31  ;;  %9272 = vmatpush1.bf16.msra.mxu1 %v13186_v28  ;;  %9431 = vmatpush1.bf16.msra.mxu0 %v13189_v37  ;;  %v19503_v6 = vld [vmem:[#allocation77_spill] sm:$0xff]  ;;  %v13192_v15 = vld [vmem:[%s19021_s2 + $0x1234] ss:$20 sps:$4 sm:$0xff]   ;;  %v13239_v7 = vld [vmem:[%s19021_s2 + $0x1358] ss:$20 sps:$4 sm:$0xff]  }
 0x507   :  { %v7865_v22 = vsel %vm619_vm3, %v19491_v36, %v19489_v27  ;;  %v7757_v62 = vadd.f32 %v7695_v45, %v7587_v14  ;;  %v7762_v50 = vadd.f32 %v7706_v59, %v7592_v30  ;;  %v19498_v60 = vrot.slane %v19497_v1, 4  ;;  %9273 = vmatprep.subr.bf16.mxu1 %v13194_v21  ;;  %9432 = vmatprep.subr.bf16.mxu0 %v13197_v9  ;;  %v19505_v28 = vld [vmem:[#allocation58_spill] sm:$0xff]  ;;  %v19507_v42 = vld [vmem:[#allocation47_spill] sm:$0xff]  ;;  %v19509_v27 = vld [vmem:[#allocation65_spill] sm:$0xff] }
 0x508   :  { %v7876_v47 = vsel %vm619_vm3, %v19494_v23, %v19493_v32  ;;  %v8065_v24 = vsel %vm790_vm4, %v8050_v0, %v8064_v16  ;;  %v12021_v48 = vadd.f32 %v19500_v4, %v19499_v25  ;;  %v12049_v61 = vadd.f32 %v19502_v26, %v19501_v33  ;;  %v13195_v16 = vld [vmem:[%s19021_s2 + $0x123c] ss:$20 sps:$4 sm:$0xff]   ;;  %v13200_v23 = vld [vmem:[%s19021_s2 + $0x1260] ss:$20 sps:$4 sm:$0xff]   ;;  %v19516_v26 = vld [vmem:[#allocation26_spill] sm:$0xff] }
 0x509   :  { %v8051_v57 = vsel %vm790_vm4, %v19498_v60, %v8050_v0  ;;  %v8109_v43 = vadd.f32 %v8065_v24, %v7939_v12  ;;  %v7927_v30 = vadd.f32 %v7865_v22, %v7757_v62  ;;  %v8034_v14 = vrot.slane %v7972_v2, 4  ;;  %v19504_v12 = vld [vmem:[#allocation54_spill] sm:$0xff]  ;;  %v19511_v22 = vld [vmem:[#allocation55_spill] sm:$0xff] }
 0x50a   :  { %v8104_v40 = vadd.f32 %v8051_v57, %v7934_v55  ;;  %v7932_v58 = vadd.f32 %v7876_v47, %v7762_v50  ;;  %v7164_v55 = vadd.f32 %v12021_v48, %v19450_v11  ;;  %v12024_v37 = vadd.f32 %v19505_v28, %v19504_v12  ;;  %v19512_v54 = vld [vmem:[#allocation59_spill] sm:$0xff]  ;;  %v13203_v47 = vld [vmem:[%s19021_s2 + $0x1268] ss:$20 sps:$4 sm:$0xff]   ;;  %9274 = vmatpush1.bf16.msra.mxu1 %v13192_v15 }
 0x50b   :  { %v19508_v59 = vrot.slane %v19507_v42, 4  ;;  %v19510_v34 = vrot.slane %v19509_v27, 4  ;;  %v12052_v32 = vadd.f32 %v19512_v54, %v19511_v22  ;;  %v7205_v2 = vadd.f32 %v18004_v52, %v18015_v19  ;;  %v19513_v60 = vld [vmem:[#allocation35_spill] sm:$0xff]  ;;  %v19514_v57 = vld [vmem:[#allocation36_spill] sm:$0xff]  ;;  %9433 = vmatpush1.bf16.msra.mxu0 %v13195_v16  ;;  %v19515_v19 = vld [vmem:[#allocation66_spill] sm:$0xff]  ;;  %9275 = vmatprep.subr.bf16.mxu1 %v13200_v23 }
 0x50c   :  { %v18174_v0 = vpack.c.bf16 %v8109_v43, %v8104_v40  ;;  %v7167_v62 = vadd.f32 %v12024_v37, %v19450_v11  ;;  %v7213_v50 = vadd.f32 %v12049_v61, %v7164_v55  ;;  %v7208_v1 = vadd.f32 %v18019_v53, %v18022_v5  ;;  %v13198_v11 = vld [vmem:[%s19021_s2 + $0x125c] ss:$20 sps:$4 sm:$0xff]   ;;  %v13201_v52 = vld [vmem:[%s19021_s2 + $0x1264] ss:$20 sps:$4 sm:$0xff]   ;;  %9434 = vmatprep.subr.bf16.mxu0 %v13203_v47 }
 0x50d   :  { %v8035_v63 = vsel %vm790_vm4, %v19508_v59, %v8034_v14  ;;  %v8046_v36 = vsel %vm790_vm4, %v8034_v14, %v19510_v34  ;;  %v7756_v24 = vadd.f32 %v19514_v57, %v19513_v60  ;;  %v7719_v25 = vrot.slane %v17952_v49, 2  ;;  %v13206_v49 = vld [vmem:[%s19021_s2 + $0x1288] ss:$20 sps:$4 sm:$0xff]   ;;  %v13209_v33 = vld [vmem:[%s19021_s2 + $0x1290] ss:$20 sps:$4 sm:$0xff]  }
 0x50e   :  { %19506 = vst [vmem:[#allocation24_spill] sm:$0xff] %v18174_v0  ;;  %v8097_v21 = vadd.f32 %v8035_v63, %v7927_v30  ;;  %v8102_v9 = vadd.f32 %v8046_v36, %v7932_v58  ;;  %9257 = vmatmul.mubr.bf16.gmra.mrb[64].mxu1 %v18174_v0  ;;  %9416 = vmatmul.mubr.bf16.gmra.mrb[68].mxu0 %v18174_v0  ;;  %v7730_v5 = vrot.slane %v17956_v17, 2  ;;  %v19517_v40 = vld [vmem:[#allocation28_spill] sm:$0xff]  ;;  %v19520_v58 = vld [vmem:[#allocation21_spill] sm:$0xff]  ;;  %v19522_v55 = vld [vmem:[#allocation67_spill] sm:$0xff] }
 0x50f   :  { %v7262_v48 = vadd.f32 %v19515_v19, %v7213_v50  ;;  %v7216_v53 = vadd.f32 %v12052_v32, %v7167_v62  ;;  %v7254_v61 = vadd.f32 %v19516_v26, %v7205_v2  ;;  %v7257_v43 = vadd.f32 %v19517_v40, %v7208_v1  ;;  %v19518_v30 = vld [vmem:[#allocation32_spill] sm:$0xff]  ;;  %v19523_v37 = vld [vmem:[#allocation33_spill] sm:$0xff]  ;;  %v19525_v59 = vld [vmem:[#allocation22_spill] sm:$0xff]  ;;  %9276 = vmatpush1.bf16.msra.mxu1 %v13198_v11 }
 0x510   :  { %v18201_v4 = vpack.c.bf16 %v8102_v9, %v8097_v21  ;;  %v19519_v14 = vrot.slane %v19518_v30, 3  ;;  %v19521_v15 = vrot.slane %v19520_v58, 3  ;;  %v19524_v42 = vrot.slane %v19523_v37, 4  ;;  %v19527_v34 = vld [vmem:[#allocation19_spill] sm:$0xff]  ;;  %9435 = vmatpush1.bf16.msra.mxu0 %v13201_v52  ;;  %v13204_v47 = vld [vmem:[%s19021_s2 + $0x1284] ss:$20 sps:$4 sm:$0xff]   ;;  %9277 = vmatprep.subr.bf16.mxu1 %v13206_v49 }
 0x511   :  { %v7282_v16 = vmax.f32 %v7262_v48, 0.0  ;;  %v7265_v12 = vadd.f32 %v19522_v55, %v7216_v53  ;;  %v19526_v63 = vrot.slane %v19525_v59, 4  ;;  %v18234_v36 = vmul.f32 %v19527_v34, %v17917_v18  ;;  %v13207_v21 = vld [vmem:[%s19021_s2 + $0x128c] ss:$20 sps:$4 sm:$0xff]   ;;  %v19529_v2 = vld [vmem:[#allocation75_spill] sm:$0xff]  ;;  %9436 = vmatprep.subr.bf16.mxu0 %v13209_v33  ;;  %v19530_v19 = vld [vmem:[#allocation44_spill] sm:$0xff] }
 0x512   :  { %v7862_v17 = vsel %vm619_vm3, %v19521_v15, %v19519_v14  ;;  %9299 = vmatprep.mubr.bf16.mxu1 %v18201_v4  ;;  %9458 = vmatprep.mubr.bf16.mxu0 %v18201_v4  ;;  %v18238_v22 = vmul.f32 %v19527_v34, %v17920_v39  ;;  %v7272_v54 = vmax.f32 %v7254_v61, 0.0  ;;  %v19528_v32 = vrot.slane %v17930_v44, 1  ;;  %v13215_v60 = vld [vmem:[%s19021_s2 + $0x12b8] ss:$20 sps:$4 sm:$0xff]   ;;  %v19532_v26 = vld [vmem:[#allocation81_spill] sm:$0xff]  ;;  %v19534_v40 = vld [vmem:[#allocation83_spill] sm:$0xff] }
 0x513   :  { %v7926_v28 = vadd.f32 %v7862_v17, %v7756_v24  ;;  %v8032_v27 = vsel %vm790_vm4, %v19526_v63, %v19524_v42  ;;  %v7327_v9 = vrot.slane %v7282_v16, 6  ;;  %v7287_v62 = vmax.f32 %v7265_v12, 0.0  ;;  %v19531_v49 = vld [vmem:[#allocation80_spill] sm:$0xff]  ;;  %9278 = vmatpush1.bf16.msra.mxu1 %v13204_v47  ;;  %v13213_v14 = vld [vmem:[%s19021_s2 + $0x12b4] ss:$20 sps:$4 sm:$0xff]  }
 0x514   :  { %v7550_v23 = vsel %vm277_vm1, %v7548_v38, %v19528_v32  ;;  %v7312_v10 = vrot.slane %v7272_v54, 6  ;;  %v7277_v44 = vmax.f32 %v7257_v43, 0.0  ;;  %v13212_v38 = vld [vmem:[%s19021_s2 + $0x12b0] ss:$20 sps:$4 sm:$0xff]   ;;  %v18262_v57 = vadd.f32 %v17961_v51, %v17948_v56  ;;  %v19533_v56 = vld [vmem:[#allocation82_spill] sm:$0xff]  ;;  %9437 = vmatpush1.bf16.msra.mxu0 %v13207_v21  ;;  %v19537_v42 = vld [vmem:[#allocation16_spill] sm:$0xff] }
 0x515   :  { %v8096_v50 = vadd.f32 %v8032_v27, %v7926_v28  ;;  %v18252_v1 = vadd.f32 %v7550_v23, %v19529_v2  ;;  %v18267_v24 = vsel %vm448_vm2, %v7718_v20, %v7719_v25  ;;  %v7377_v11 = vsel %vm71_vm0, 0.0, %v7327_v9  ;;  %v13210_v20 = vld [vmem:[%s19021_s2 + $0x12ac] ss:$20 sps:$4 sm:$0xff]   ;;  %v19535_v17 = vld [vmem:[#allocation11_spill] sm:$0xff]  ;;  %9279 = vmatprep.subr.bf16.mxu1 %v13212_v38  ;;  %9438 = vmatprep.subr.bf16.mxu0 %v13215_v60 }
 0x516   :  { %v7336_v52 = vrot.slane %v7287_v62, 6  ;;  %v18274_v53 = vsel %vm448_vm2, %v7719_v25, %v7730_v5  ;;  %v18285_v43 = vmul.f32 %v19496_v35, %v17920_v39  ;;  %v7372_v25 = vsel %vm71_vm0, 0.0, %v7312_v10  ;;  %v13218_v58 = vld [vmem:[%s19021_s2 + $0x12d8] ss:$20 sps:$4 sm:$0xff]   ;;  %v13221_v12 = vld [vmem:[%s19021_s2 + $0x12e0] ss:$20 sps:$4 sm:$0xff]  }
 0x517   :  { %v18271_v48 = vpack.c.bf16 %v19530_v19, %v8096_v50  ;;  %v18301_v16 = vmul.f32 %v19535_v17, %v7377_v11  ;;  %v7321_v55 = vrot.slane %v7277_v44, 6  ;;  %v19536_v28 = vld [vmem:[#allocation30_spill] sm:$0xff]  ;;  %v18310_v59 = vmul.f32 %v19537_v42, %v7377_v11  ;;  %v19538_v34 = vld [vmem:[#allocation15_spill] sm:$0xff]  ;;  %9280 = vmatpush1.bf16.msra.mxu1 %v13210_v20 }
 0x518   :  { %v7337_v5 = vsel %vm71_vm0, %v7327_v9, %v7336_v52  ;;  %v18290_v30 = vsel %vm71_vm0, %v7336_v52, 0.0  ;;  %v18307_v37 = vmul.f32 %v19536_v28, %v7377_v11  ;;  %v18313_v63 = vmul.f32 %v19536_v28, %v7372_v25  ;;  %v19539_v9 = vld [vmem:[#allocation31_spill] sm:$0xff]  ;;  %9439 = vmatpush1.bf16.msra.mxu0 %v13213_v14  ;;  %9281 = vmatprep.subr.bf16.mxu1 %v13218_v58  ;;  %v13227_v14 = vld [vmem:[%s19021_s2 + $0x1308] ss:$20 sps:$4 sm:$0xff]  }
 0x519   :  { %v18316_v27 = vmul.f32 %v19537_v42, %v7372_v25  ;;  %v18319_v54 = vmul.f32 %v19538_v34, %v7377_v11  ;;  %v18322_v32 = vmul.f32 %v19538_v34, %v7372_v25  ;;  %v18325_v23 = vmul.f32 %v19536_v28, %v7337_v5  ;;  %v13216_v44 = vld [vmem:[%s19021_s2 + $0x12d4] ss:$20 sps:$4 sm:$0xff]   ;;  %v13219_v38 = vld [vmem:[%s19021_s2 + $0x12dc] ss:$20 sps:$4 sm:$0xff]   ;;  %9440 = vmatprep.subr.bf16.mxu0 %v13221_v12 }
 0x51a   :  { %v7483_v47 = vmul.f32 %v19536_v28, %v18290_v30  ;;  %v18331_v62 = vmul.f32 %v19539_v9, %v7377_v11  ;;  %v18334_v50 = vmul.f32 %v19539_v9, %v7372_v25  ;;  %v18337_v2 = vmul.f32 %v19537_v42, %v7337_v5  ;;  %v13224_v20 = vld [vmem:[%s19021_s2 + $0x1300] ss:$20 sps:$4 sm:$0xff]  }
 0x51b   :  { %v7418_v60 = vmul.f32 %v19535_v17, %v7372_v25  ;;  %v19162_v11 = vrot.slane %v18325_v23, 1  ;;  %v7653_v19 = vmul.f32 %v19537_v42, %v18290_v30  ;;  %v7526_v29 = vrot.slane %v18313_v63, 1  ;;  %9282 = vmatpush1.bf16.msra.mxu1 %v13216_v44 }
 0x51c   :  { %v7562_v52 = vrot.slane %v7483_v47, 1  ;;  %v7696_v25 = vrot.slane %v18316_v27, 2  ;;  %v7433_v51 = vmul.f32 %v19535_v17, %v7337_v5  ;;  %v19161_v47 = vrot.slane %v18337_v2, 2  ;;  %9441 = vmatpush1.bf16.msra.mxu0 %v13219_v38  ;;  %9283 = vmatprep.subr.bf16.mxu1 %v13224_v20  ;;  %v13230_v38 = vld [vmem:[%s19021_s2 + $0x1328] ss:$20 sps:$4 sm:$0xff]  }
 0x51d   :  { %v7866_v61 = vrot.slane %v18322_v32, 3  ;;  %v7732_v12 = vrot.slane %v7653_v19, 2  ;;  %v7322_v33 = vsel %vm71_vm0, %v7312_v10, %v7321_v55  ;;  %v8036_v31 = vrot.slane %v18334_v50, 4  ;;  %v13222_v32 = vld [vmem:[%s19021_s2 + $0x12fc] ss:$20 sps:$4 sm:$0xff]   ;;  %9442 = vmatprep.subr.bf16.mxu0 %v13227_v14 }
 0x51e   :  { %v7563_v58 = vsel %vm277_vm1, %v19162_v11, %v7562_v52  ;;  %v18368_v63 = vmul.f32 %v19538_v34, %v7337_v5  ;;  %v18372_v27 = vmul.f32 %v19538_v34, %v18290_v30  ;;  %v13225_v10 = vld [vmem:[%s19021_s2 + $0x1304] ss:$20 sps:$4 sm:$0xff]   ;;  %v18386_v50 = vmul.f32 %v19539_v9, %v7337_v5 }
 0x51f   :  { %v18365_v21 = vadd.f32 %v7563_v58, %v7433_v51  ;;  %v18383_v51 = vsel %vm448_vm2, %v19161_v47, %v7732_v12  ;;  %v7382_v52 = vsel %vm71_vm0, %v7321_v55, 0.0  ;;  %v7423_v44 = vmul.f32 %v19535_v17, %v7322_v33  ;;  %v13233_v19 = vld [vmem:[%s19021_s2 + $0x1330] ss:$20 sps:$4 sm:$0xff]   ;;  %9284 = vmatpush1.bf16.msra.mxu1 %v13222_v32 }
 0x520   :  { %v7463_v58 = vmul.f32 %v19536_v28, %v7322_v33  ;;  %v7468_v12 = vmul.f32 %v19536_v28, %v7382_v52  ;;  %v7633_v5 = vmul.f32 %v19537_v42, %v7322_v33  ;;  %v7638_v55 = vmul.f32 %v19537_v42, %v7382_v52  ;;  %v13228_v11 = vld [vmem:[%s19021_s2 + $0x1324] ss:$20 sps:$4 sm:$0xff]   ;;  %v13231_v28 = vld [vmem:[%s19021_s2 + $0x132c] ss:$20 sps:$4 sm:$0xff]   ;;  %9443 = vmatpush1.bf16.msra.mxu0 %v13225_v10 }
 0x521   :  { %v7803_v17 = vmul.f32 %v19538_v34, %v7322_v33  ;;  %v7808_v20 = vmul.f32 %v19538_v34, %v7382_v52  ;;  %v7973_v14 = vmul.f32 %v19539_v9, %v7322_v33  ;;  %v7978_v47 = vmul.f32 %v19539_v9, %v7382_v52  ;;  %v13236_v33 = vld [vmem:[%s19021_s2 + $0x1350] ss:$20 sps:$4 sm:$0xff]   ;;  %9285 = vmatprep.subr.bf16.mxu1 %v13230_v38 }
 0x522   :  { %v7527_v45 = vrot.slane %v7463_v58, 1  ;;  %v7537_v15 = vrot.slane %v7468_v12, 1  ;;  %v7697_v46 = vrot.slane %v7633_v5, 2  ;;  %v7707_v42 = vrot.slane %v7638_v55, 2  ;;  %9444 = vmatprep.subr.bf16.mxu0 %v13233_v19 }
 0x523   :  { %v7867_v34 = vrot.slane %v7803_v17, 3  ;;  %v7877_v52 = vrot.slane %v7808_v20, 3  ;;  %v8037_v39 = vrot.slane %v7973_v14, 4  ;;  %v8047_v0 = vrot.slane %v7978_v47, 4  ;;  %9286 = vmatpush1.bf16.msra.mxu1 %v13228_v11 }
 0x524   :  { %v7528_v58 = vsel %vm277_vm1, %v7526_v29, %v7527_v45  ;;  %v7538_v12 = vsel %vm277_vm1, %v7527_v45, %v7537_v15  ;;  %v7698_v32 = vsel %vm448_vm2, %v7696_v25, %v7697_v46  ;;  %v7708_v10 = vsel %vm448_vm2, %v7697_v46, %v7707_v42  ;;  %9445 = vmatpush1.bf16.msra.mxu0 %v13231_v28  ;;  %v13234_v45 = vld [vmem:[%s19021_s2 + $0x134c] ss:$20 sps:$4 sm:$0xff]   ;;  %v13237_v46 = vld [vmem:[%s19021_s2 + $0x1354] ss:$20 sps:$4 sm:$0xff]  }
 0x525   :  { %v7588_v5 = vadd.f32 %v7528_v58, %v7418_v60  ;;  %v7593_v55 = vadd.f32 %v7538_v12, %v7423_v44  ;;  %v7868_v17 = vsel %vm619_vm3, %v7866_v61, %v7867_v34  ;;  %v7878_v47 = vsel %vm619_vm3, %v7867_v34, %v7877_v52  ;;  %9287 = vmatprep.subr.bf16.mxu1 %v13236_v33  ;;  %v19544_v33 = vld [vmem:[#allocation76_spill] sm:$0xff]  ;;  %v19548_v58 = vld [vmem:[#allocation79_spill] sm:$0xff]  ;;  %v19549_v12 = vld [vmem:[#allocation78_spill] sm:$0xff] }
 0x526   :  { %v7551_v38 = vrot.slane %v18307_v37, 1  ;;  %v8038_v19 = vsel %vm790_vm4, %v8036_v31, %v8037_v39  ;;  %v8048_v20 = vsel %vm790_vm4, %v8037_v39, %v8047_v0  ;;  %v7767_v61 = vadd.f32 %v18267_v24, %v18252_v1  ;;  %9446 = vmatprep.subr.bf16.mxu0 %v13239_v7  ;;  %v13242_v0 = vld [vmem:[%s19021_s2 + $0x1378] ss:$20 sps:$4 sm:$0xff]   ;;  %v13245_v31 = vld [vmem:[%s19021_s2 + $0x1380] ss:$20 sps:$4 sm:$0xff]  }
 0x527   :  { %v7721_v29 = vrot.slane %v18310_v59, 2  ;;  %v7758_v15 = vadd.f32 %v7698_v32, %v7588_v5  ;;  %v7763_v60 = vadd.f32 %v7708_v10, %v7593_v55  ;;  %v7772_v39 = vadd.f32 %v18274_v53, %v18262_v57  ;;  %9288 = vmatpush1.bf16.msra.mxu1 %v13234_v45  ;;  %v13248_v55 = vld [vmem:[%s19021_s2 + $0x13a0] ss:$20 sps:$4 sm:$0xff]   ;;  %v13252_v37 = vld [vmem:[%s19021_s2 + $0x13c4] ss:$20 sps:$4 sm:$0xff]  }
 0x528   :  { %v18444_v1 = vmul.f32 %v19539_v9, %v18290_v30  ;;  %v19540_v24 = vrot.slane %v18234_v36, 3  ;;  %v19541_v11 = vrot.slane %v17840_v41, 3  ;;  %v19542_v25 = vrot.slane %v18238_v22, 3  ;;  %9447 = vmatpush1.bf16.msra.mxu0 %v13237_v46  ;;  %v13240_v41 = vld [vmem:[%s19021_s2 + $0x1374] ss:$20 sps:$4 sm:$0xff]   ;;  %9289 = vmatprep.subr.bf16.mxu1 %v13242_v0 }
 0x529   :  { %v7987_v28 = vmul.f32 %v19496_v35, %v17917_v18  ;;  %v7928_v57 = vadd.f32 %v7868_v17, %v7758_v15  ;;  %v7933_v53 = vadd.f32 %v7878_v47, %v7763_v60  ;;  %v7892_v9 = vrot.slane %v18368_v63, 3  ;;  %v13243_v36 = vld [vmem:[%s19021_s2 + $0x137c] ss:$20 sps:$4 sm:$0xff]   ;;  %9448 = vmatprep.subr.bf16.mxu0 %v13245_v31  ;;  %v19550_v47 = vld [vmem:[#allocation69_spill] sm:$0xff]  ;;  %v19554_v15 = vld [vmem:[#allocation70_spill] sm:$0xff] }
 0x52a   :  { %v7890_v7 = vsel %vm619_vm3, %v19541_v11, %v19540_v24  ;;  %v19543_v44 = vmov %v19540_v24  ;;  %v19545_v34 = vrot.slane %v19544_v33, 1  ;;  %v19546_v18 = vld [vmem:[#allocation68_spill] sm:$0xff]  ;;  %v7601_v63 = vadd.f32 %v19549_v12, %v19548_v58 }
 0x52b   :  { %v7901_v14 = vsel %vm619_vm3, %v19543_v44, %v19542_v25  ;;  %v7937_v42 = vadd.f32 %v7890_v7, %v7767_v61  ;;  %v8059_v22 = vrot.slane %v7987_v28, 4  ;;  %v19547_v35 = vrot.slane %v19546_v18, 1  ;;  %v13251_v17 = vld [vmem:[%s19021_s2 + $0x13a8] ss:$20 sps:$4 sm:$0xff]   ;;  %9290 = vmatpush1.bf16.msra.mxu1 %v13240_v41  ;;  %v19559_v28 = vld [vmem:[#allocation71_spill] sm:$0xff] }
 0x52c   :  { %v7942_v30 = vadd.f32 %v7901_v14, %v7772_v39  ;;  %v7902_v32 = vrot.slane %v18372_v27, 3  ;;  %v8098_v10 = vadd.f32 %v8038_v19, %v7928_v57  ;;  %v8103_v5 = vadd.f32 %v8048_v20, %v7933_v53  ;;  %9449 = vmatpush1.bf16.msra.mxu0 %v13243_v36  ;;  %v13246_v44 = vld [vmem:[%s19021_s2 + $0x139c] ss:$20 sps:$4 sm:$0xff]   ;;  %9291 = vmatprep.subr.bf16.mxu1 %v13248_v55  ;;  %v19564_v18 = vld [vmem:[#allocation18_spill] sm:$0xff] }
 0x52d   :  { %v7547_v52 = vsel %vm277_vm1, %v19547_v35, %v19545_v34  ;;  %v19551_v46 = vrot.slane %v19503_v6, 4  ;;  %v19552_v27 = vrot.slane %v18285_v43, 4  ;;  %v19553_v20 = vrot.slane %v17899_v8, 2  ;;  %9450 = vmatprep.subr.bf16.mxu0 %v13251_v17  ;;  %v13254_v36 = vld [vmem:[%s19021_s2 + $0x13c8] ss:$20 sps:$4 sm:$0xff]  }
 0x52e   :  { %v7596_v45 = vadd.f32 %v7547_v52, %v19550_v47  ;;  %v19555_v60 = vrot.slane %v19554_v15, 2  ;;  %v19556_v31 = vrot.slane %v19531_v49, 2  ;;  %v18496_v11 = vpack.c.bf16 %v8103_v5, %v8098_v10  ;;  %v13249_v49 = vld [vmem:[%s19021_s2 + $0x13a4] ss:$20 sps:$4 sm:$0xff]  }
 0x52f   :  { %v8060_v61 = vsel %vm790_vm4, %v19551_v46, %v8059_v22  ;;  %v8071_v19 = vsel %vm790_vm4, %v8059_v22, %v19552_v27  ;;  %v19557_v39 = vmov %v19553_v20  ;;  %v8062_v43 = vrot.slane %v18386_v50, 4  ;;  %v13257_v22 = vld [vmem:[%s19021_s2 + $0x13d0] ss:$20 sps:$4 sm:$0xff]   ;;  %9292 = vmatpush1.bf16.msra.mxu1 %v13246_v44 }
 0x530   :  { %v7717_v0 = vsel %vm448_vm2, %v19555_v60, %v19553_v20  ;;  %v7729_v24 = vsel %vm448_vm2, %v19557_v39, %v19556_v31  ;;  %v8107_v6 = vadd.f32 %v8060_v61, %v7937_v42  ;;  %v8112_v7 = vadd.f32 %v8071_v19, %v7942_v30  ;;  %9451 = vmatpush1.bf16.msra.mxu0 %v13249_v49  ;;  %v13258_v19 = vld [vmem:[%s19021_s2 + $0x13ec] ss:$20 sps:$4 sm:$0xff]   ;;  %v13261_v20 = vld [vmem:[%s19021_s2 + $0x13f4] ss:$20 sps:$4 sm:$0xff]  }
 0x531   :  { %v7766_v25 = vadd.f32 %v7717_v0, %v7596_v45  ;;  %v7771_v8 = vadd.f32 %v7729_v24, %v7601_v63  ;;  %v19558_v14 = vrot.slane %v19532_v26, 3  ;;  %v19560_v57 = vrot.slane %v19559_v28, 3  ;;  %9293 = vmatprep.subr.bf16.mxu1 %v13254_v36  ;;  %9452 = vmatprep.subr.bf16.mxu0 %v13257_v22  ;;  %v13266_v60 = vld [vmem:[%s19021_s2 + $0x1418] ss:$20 sps:$4 sm:$0xff]   ;;  %v13269_v0 = vld [vmem:[%s19021_s2 + $0x1420] ss:$20 sps:$4 sm:$0xff]  }
 0x532   :  { %v19561_v42 = vrot.slane %v19533_v56, 3  ;;  %v7891_v41 = vrot.slane %v18319_v54, 3  ;;  %v18522_v33 = vpack.c.bf16 %v8112_v7, %v8107_v6  ;;  %v19563_v56 = vld [vmem:[#allocation74_spill] sm:$0xff]  ;;  %v8061_v35 = vrot.slane %v18331_v62, 4  ;;  %v11616_v39 = vld [vmem:[%s19021_s2 + $0x143c] sm:$0x11] }
 0x533   :  { %v7887_v53 = vsel %vm619_vm3, %v19560_v57, %v19558_v14  ;;  %v19562_v50 = vmov %v19558_v14  ;;  %v7986_v26 = vmul.f32 %v19564_v18, %v19563_v56  ;;  %v8072_v54 = vrot.slane %v18444_v1, 4  ;;  %9294 = vmatpush1.bf16.msra.mxu1 %v13252_v37  ;;  %v11617_v24 = vld [vmem:[%s19021_s2 + $0x1444] sm:$0x11]  ;;  %v13274_v57 = vld [vmem:[%s19021_s2 + $0x108c] ss:$20 sps:$4 sm:$0xff]  }
 0x534   :  { %v7899_v30 = vsel %vm619_vm3, %v19562_v50, %v19561_v42  ;;  %v7936_v34 = vadd.f32 %v7887_v53, %v7766_v25  ;;  %v19565_v58 = vrot.slane %v18325_v23, 1  ;;  %v19566_v5 = vrot.slane %v18337_v2, 2  ;;  %v13255_v23 = vld [vmem:[%s19021_s2 + $0x13cc] ss:$20 sps:$4 sm:$0xff]   ;;  %v13264_v7 = vld [vmem:[%s19021_s2 + $0x1414] ss:$20 sps:$4 sm:$0xff]  }
 0x535   :  { %v7941_v52 = vadd.f32 %v7899_v30, %v7771_v8  ;;  %v8056_v63 = vrot.slane %v7986_v26, 4  ;;  %v7773_v62 = vadd.f32 %v18383_v51, %v18365_v21  ;;  %v7903_v2 = vsel %vm619_vm3, %v7892_v9, %v7902_v32  ;;  %v13260_v21 = vld [vmem:[%s19021_s2 + $0x13f0] ss:$20 sps:$4 sm:$0xff]   ;;  %v13263_v51 = vld [vmem:[%s19021_s2 + $0x13f8] ss:$20 sps:$4 sm:$0xff]   ;;  %9453 = vmatpush1.bf16.msra.mxu0 %v13255_v23 }
 0x536   :  { %v7553_v12 = vsel %vm277_vm1, %v7551_v38, %v19565_v58  ;;  %v7723_v55 = vsel %vm448_vm2, %v7721_v29, %v19566_v5  ;;  %v8063_v59 = vsel %vm790_vm4, %v8061_v35, %v8062_v43  ;;  %v19567_v38 = vld [vmem:[#allocation72_spill] sm:$0xff]  ;;  %v19569_v17 = vrot.slane %v19534_v40, 4  ;;  %9295 = vmatprep.subr.bf16.mxu1 %v13260_v21  ;;  %9454 = vmatprep.subr.bf16.mxu0 %v13263_v51  ;;  %v13275_v53 = vld [vmem:[%s19021_s2 + $0x130c] ss:$20 sps:$4 sm:$0xff]   ;;  %v13279_v36 = vld [vmem:[%s19021_s2 + $0x1334] ss:$20 sps:$4 sm:$0xff]  }
 0x537   :  { %v7598_v10 = vadd.f32 %v7553_v12, %v18301_v16  ;;  %v7893_v16 = vsel %vm619_vm3, %v7891_v41, %v7892_v9  ;;  %v19568_v29 = vrot.slane %v19567_v38, 4  ;;  %v7943_v46 = vadd.f32 %v7903_v2, %v7773_v62  ;;  %9296 = vmatpush1.bf16.msra.mxu1 %v13258_v19  ;;  %v13267_v25 = vld [vmem:[%s19021_s2 + $0x141c] ss:$20 sps:$4 sm:$0xff]   ;;  %v13276_v50 = vld [vmem:[%s19021_s2 + $0xf4c] ss:$20 sps:$4 sm:$0xff]  }
 0x538   :  { %v8069_v9 = vsel %vm790_vm4, %v8056_v63, %v19569_v17  ;;  %v8073_v61 = vsel %vm790_vm4, %v8062_v43, %v8072_v54  ;;  %9297 = vmatprep.subr.bf16.mxu1 %v13266_v60  ;;  %v11781_v43 = vcombine.high %v11616_v39, %v11616_v39  ;;  %v11780_v44 = vcombine.low %v11616_v39, %v11616_v39  ;;  %v13277_v30 = vld [vmem:[%s19021_s2 + $0x11cc] ss:$20 sps:$4 sm:$0xff]   ;;  %v13278_v41 = vld [vmem:[%s19021_s2 + $0x10b4] ss:$20 sps:$4 sm:$0xff]   ;;  %v13282_v56 = vld [vmem:[%s19021_s2 + $0x10dc] ss:$20 sps:$4 sm:$0xff]  }
 0x539   :  { %v8057_v1 = vsel %vm790_vm4, %v19568_v29, %v8056_v63  ;;  %v7768_v32 = vadd.f32 %v7723_v55, %v7598_v10  ;;  %v8111_v45 = vadd.f32 %v8069_v9, %v7941_v52  ;;  %v8113_v15 = vadd.f32 %v8073_v61, %v7943_v46  ;;  %9455 = vmatpush1.bf16.msra.mxu0 %v13261_v20  ;;  %v13280_v22 = vld [vmem:[%s19021_s2 + $0xf74] ss:$20 sps:$4 sm:$0xff]   ;;  %v13283_v18 = vld [vmem:[%s19021_s2 + $0x135c] ss:$20 sps:$4 sm:$0xff]   ;;  %v13286_v54 = vld [vmem:[%s19021_s2 + $0x1104] ss:$20 sps:$4 sm:$0xff]  }
 0x53a   :  { %v8106_v47 = vadd.f32 %v8057_v1, %v7936_v34  ;;  %9456 = vmatprep.subr.bf16.mxu0 %v13269_v0  ;;  %v11783_v49 = vcombine.high %v11617_v24, %v11617_v24  ;;  %v11782_v8 = vcombine.low %v11617_v24, %v11617_v24  ;;  %v9200_v14 = vsel %vm1965_vm5, %v11780_v44, 0  ;;  %v13281_v34 = vld [vmem:[%s19021_s2 + $0x11f4] ss:$20 sps:$4 sm:$0xff]   ;;  %v13284_v26 = vld [vmem:[%s19021_s2 + $0xf9c] ss:$20 sps:$4 sm:$0xff]  }
 0x53b   :  { %v7938_v27 = vadd.f32 %v7893_v16, %v7768_v32  ;;  %9298 = vmatpush1.bf16.msra.mxu1 %v13264_v7  ;;  %v19570_v42 = vmov 0   ;;  %v13285_v35 = vld [vmem:[%s19021_s2 + $0x121c] ss:$20 sps:$4 sm:$0xff]   ;;  %v13287_v52 = vld [vmem:[%s19021_s2 + $0x1384] ss:$20 sps:$4 sm:$0xff]  }
 0x53c   :  { %v18569_v40 = vpack.c.bf16 %v8111_v45, %v8106_v47  ;;  %11785 = vmatprep.subr.msk.bf16.mxu1 %vm1965_vm5, %v11781_v43  ;;  %v9206_v28 = vsel %vm1965_vm5, %v11782_v8, 0  ;;  %v13288_v58 = vld [vmem:[%s19021_s2 + $0xfc4] ss:$20 sps:$4 sm:$0xff]   ;;  %v13290_v63 = vld [vmem:[%s19021_s2 + $0x112c] ss:$20 sps:$4 sm:$0xff]   ;;  %v19571_v45 = vld [vmem:[#allocation23_spill] sm:$0xff] }
 0x53d   :  { %v8108_v31 = vadd.f32 %v8063_v59, %v7938_v27  ;;  %9457 = vmatpush1.bf16.msra.mxu0 %v13267_v25  ;;  %v13289_v12 = vld [vmem:[%s19021_s2 + $0x1244] ss:$20 sps:$4 sm:$0xff]   ;;  %v13291_v10 = vld [vmem:[%s19021_s2 + $0x13ac] ss:$20 sps:$4 sm:$0xff]   ;;  %v13295_v55 = vld [vmem:[%s19021_s2 + $0x13d4] ss:$20 sps:$4 sm:$0xff]  }
 0x53e   :  { %11788 = vmatprep.subr.msk.bf16.mxu0 %vm1965_vm5, %v11783_v49  ;;  %9300 = vmatmul.mubr.bf16.vlgmr.msra.gmra.mrb[60].mxu1 %v18271_v48  ;;  %v13292_v5 = vld [vmem:[%s19021_s2 + $0xfec] ss:$20 sps:$4 sm:$0xff]   ;;  %v13296_v62 = vld [vmem:[%s19021_s2 + $0x1014] ss:$20 sps:$4 sm:$0xff]   ;;  %v13298_v23 = vld [vmem:[%s19021_s2 + $0x117c] ss:$20 sps:$4 sm:$0xff]  }
 0x53f   :  { %v18583_v6 = vpack.c.bf16 %v8113_v15, %v8108_v31  ;;  %9309 = vmatprep.mubr.bf16.mxu1 %v18522_v33  ;;  %9321 = vmatpush1.bf16.msra.mxu1 %v9200_v14  ;;  %v13297_v37 = vld [vmem:[%s19021_s2 + $0x1294] ss:$20 sps:$4 sm:$0xff]   ;;  %v13299_v16 = vld [vmem:[%s19021_s2 + $0x13fc] ss:$20 sps:$4 sm:$0xff]   ;;  %v13302_v21 = vld [vmem:[%s19021_s2 + $0x11a4] ss:$20 sps:$4 sm:$0xff]  }
 0x540   :  { %9459 = vmatmul.mubr.bf16.vlgmr.msra.gmra.mrb[64].mxu0 %v18271_v48  ;;  %12056 = vmatprep.subr.bf16.mxu1 %v13274_v57  ;;  %v13300_v2 = vld [vmem:[%s19021_s2 + $0x103c] ss:$20 sps:$4 sm:$0xff]   ;;  %v13303_v51 = vld [vmem:[%s19021_s2 + $0x1424] ss:$20 sps:$4 sm:$0xff]   ;;  %v13307_v9 = vld [vmem:[%s19023_s4] ss:$8 sps:$4 sm:$0xff]  }
 0x541   :  { %9468 = vmatprep.mubr.bf16.mxu0 %v18522_v33  ;;  %9480 = vmatpush1.bf16.msra.mxu0 %v9206_v28  ;;  %v13301_v59 = vld [vmem:[%s19021_s2 + $0x12bc] ss:$20 sps:$4 sm:$0xff]   ;;  %v13304_v38 = vld [vmem:[%s19021_s2 + $0x1064] ss:$20 sps:$4 sm:$0xff]   ;;  %v13319_v20 = vld [vmem:[%s19023_s4 + $0x40] ss:$8 sps:$4 sm:$0xff]  }
 0x542   :  { %12084 = vmatprep.subr.bf16.mxu0 %v13275_v53  ;;  %v13305_v29 = vld [vmem:[%s19021_s2 + $0x12e4] ss:$20 sps:$4 sm:$0xff]   ;;  %v13306_v1 = vld [vmem:[%s19021_s2 + $0x144c] ss:$0 sps:$4 sm:$0x11]  }
 0x543   :  { %v13309_v17 = vld [vmem:[%s19023_s4 + $0x4] ss:$8 sps:$4 sm:$0xff]   ;;  %v9212_v32 = vsel %vm1965_vm5, %v13306_v1, 0  ;;  %v13312_v47 = vld [vmem:[%s19023_s4 + $0x14] ss:$8 sps:$4 sm:$0xff]  }
 0x544   :  { %v13310_v46 = vld [vmem:[%s19023_s4 + $0x10] ss:$8 sps:$4 sm:$0xff]   ;;  %v13315_v61 = vld [vmem:[%s19023_s4 + $0x24] ss:$8 sps:$4 sm:$0xff]   ;;  %v13325_v60 = vld [vmem:[%s19023_s4 + $0x60] ss:$8 sps:$4 sm:$0xff]  }
 0x545   :  { %v13316_v27 = vld [vmem:[%s19023_s4 + $0x30] ss:$8 sps:$4 sm:$0xff]   ;;  %v13321_v19 = vld [vmem:[%s19023_s4 + $0x44] ss:$8 sps:$4 sm:$0xff]   ;;  %v13330_v0 = vld [vmem:[%s19023_s4 + $0x74] ss:$8 sps:$4 sm:$0xff]  }
 0x546   :  { %9310 = vmatmul.mubr.bf16.gmra.mrb[64].mxu1 %v18569_v40  ;;  %v13327_v15 = vld [vmem:[%s19023_s4 + $0x64] ss:$8 sps:$4 sm:$0xff]   ;;  %v13328_v31 = vld [vmem:[%s19023_s4 + $0x70] ss:$8 sps:$4 sm:$0xff]   ;;  %v13331_v24 = vld [vmem:[%s19023_s4 + $0x80] ss:$8 sps:$4 sm:$0xff]  }
 0x547   :  { %9352 = vmatprep.mubr.bf16.mxu1 %v19570_v42  ;;  %v13333_v39 = vld [vmem:[%s19023_s4 + $0x84] ss:$8 sps:$4 sm:$0xff]   ;;  %v13334_v7 = vld [vmem:[%s19023_s4 + $0x90] ss:$8 sps:$4 sm:$0xff]   ;;  %v13337_v43 = vld [vmem:[%s19023_s4 + $0xa0] ss:$8 sps:$4 sm:$0xff]  }
 0x548   :  { %9469 = vmatmul.mubr.bf16.gmra.mrb[68].mxu0 %v18569_v40  ;;  %v13339_v25 = vld [vmem:[%s19023_s4 + $0xa4] ss:$8 sps:$4 sm:$0xff]   ;;  %v13342_v44 = vld [vmem:[%s19023_s4 + $0xb4] ss:$8 sps:$4 sm:$0xff]   ;;  %v13340_v49 = vld [vmem:[%s19023_s4 + $0xb0] ss:$8 sps:$4 sm:$0xff]  }
 0x549   :  { %9511 = vmatprep.mubr.bf16.mxu0 %v19570_v42  ;;  %v13345_v8 = vld [vmem:[%s19023_s4 + $0xc4] ss:$8 sps:$4 sm:$0xff]   ;;  %v13343_v14 = vld [vmem:[%s19023_s4 + $0xc0] ss:$8 sps:$4 sm:$0xff]   ;;  %v13348_v28 = vld [vmem:[%s19023_s4 + $0xd4] ss:$8 sps:$4 sm:$0xff]  }
 0x54a   :  { %v13346_v57 = vld [vmem:[%s19023_s4 + $0xd0] ss:$8 sps:$4 sm:$0xff]   ;;  %v13349_v53 = vld [vmem:[%s19023_s4 + $0xe0] ss:$8 sps:$4 sm:$0xff]  }
 0x54e   :  { %11786 = vmatmul.mubr.msk.bf16.vlgmr.msra.gmra.mrb[60].mxu1 %vm1958_vm6, %v18496_v11 }
 0x54f   :  { %12057 = vmatpush3.bf16.msra.mxu1 %v13276_v50  ;;  %9362 = vmatprep.mubr.bf16.mxu1 %v19570_v42  ;;  %v13351_v50 = vld [vmem:[%s19023_s4 + $0xe4] ss:$8 sps:$4 sm:$0xff]  }
 0x550   :  { %11789 = vmatmul.mubr.msk.bf16.vlgmr.msra.gmra.mrb[64].mxu0 %vm1958_vm6, %v18496_v11  ;;  %12058 = vmatprep.subr.bf16.mxu1 %v13278_v41  ;;  %v13352_v41 = vld [vmem:[%s19023_s4 + $0xf0] ss:$8 sps:$4 sm:$0xff]  }
 0x551   :  { %12085 = vmatpush3.bf16.msra.mxu0 %v13277_v30  ;;  %9521 = vmatprep.mubr.bf16.mxu0 %v19570_v42  ;;  %v13354_v30 = vld [vmem:[%s19023_s4 + $0xf4] ss:$8 sps:$4 sm:$0xff]  }
 0x552   :  { %12086 = vmatprep.subr.bf16.mxu0 %v13279_v36  ;;  %v13357_v36 = vld [vmem:[%s19023_s4 + $0x104] ss:$8 sps:$4 sm:$0xff]  }
 0x553   :  { %12059 = vmatpush3.bf16.msra.mxu1 %v13280_v22  ;;  %v13405_v22 = vld [vmem:[%s19025_s6 + $0x40] sm:$0xff]  }
 0x554   :  { %12060 = vmatprep.subr.bf16.mxu1 %v13282_v56  ;;  %v13407_v56 = vld [vmem:[%s19025_s6 + $0x48] sm:$0xff]  }
 0x555   :  { %12087 = vmatpush3.bf16.msra.mxu0 %v13281_v34  ;;  %v13406_v34 = vld [vmem:[%s19025_s6] sm:$0xff]  }
 0x556   :  { %12088 = vmatprep.subr.bf16.mxu0 %v13283_v18  ;;  %11787 = vmatmul.mubr.msk.bf16.gmra.mrb[64].mxu1 %vm1958_vm6, %v18583_v6  ;;  %v13408_v18 = vld [vmem:[%s19025_s6 + $0x8] sm:$0xff]  }
 0x557   :  { %12061 = vmatpush3.bf16.msra.mxu1 %v13284_v26  ;;  %9564 = vmatprep.mubr.bf16.mxu1 %v18031_v3  ;;  %v13293_v3 = vld [vmem:[%s19021_s2 + $0x126c] ss:$20 sps:$4 sm:$0xff]   ;;  %v13409_v26 = vld [vmem:[%s19025_s6 + $0x50] sm:$0xff]  }
 0x558   :  { %11790 = vmatmul.mubr.msk.bf16.gmra.mrb[68].mxu0 %vm1958_vm6, %v18583_v6  ;;  %12062 = vmatprep.subr.bf16.mxu1 %v13286_v54  ;;  %v13411_v54 = vld [vmem:[%s19025_s6 + $0x58] sm:$0xff]  }
 0x559   :  { %12089 = vmatpush3.bf16.msra.mxu0 %v13285_v35  ;;  %9613 = vmatprep.mubr.bf16.mxu0 %v18201_v4  ;;  %v13294_v4 = vld [vmem:[%s19021_s2 + $0x1154] ss:$20 sps:$4 sm:$0xff]  }
 0x55a   :  { %12090 = vmatprep.subr.bf16.mxu0 %v13287_v52  ;;  %v13410_v35 = vld [vmem:[%s19025_s6 + $0x10] sm:$0xff]   ;;  %v13412_v52 = vld [vmem:[%s19025_s6 + $0x18] sm:$0xff]  }
 0x55b   :  { %12063 = vmatpush3.bf16.msra.mxu1 %v13288_v58  ;;  %v13413_v58 = vld [vmem:[%s19025_s6 + $0x60] sm:$0xff]  }
 0x55c   :  { %12064 = vmatprep.subr.bf16.mxu1 %v13290_v63  ;;  %v13415_v63 = vld [vmem:[%s19025_s6 + $0x68] sm:$0xff]  }
 0x55d   :  { %12091 = vmatpush3.bf16.msra.mxu0 %v13289_v12  ;;  %v13414_v12 = vld [vmem:[%s19025_s6 + $0x20] sm:$0xff]  }
 0x55e   :  { %12092 = vmatprep.subr.bf16.mxu0 %v13291_v10  ;;  %v18861_v10 = vld [vmem:[%s19022_s3 + $0xf] sm:$0x1f] }
 0x55f   :  { %12065 = vmatpush3.bf16.msra.mxu1 %v13292_v5  ;;  %v19573_v5 = vld [vmem:[#allocation5_spill] sm:$0xff] }
 0x560   :  { %12066 = vmatprep.subr.bf16.mxu1 %v13294_v4  ;;  %v19574_v4 = vld [vmem:[#allocation7_spill] sm:$0xff] }
 0x561   :  { %12093 = vmatpush3.bf16.msra.mxu0 %v13293_v3  ;;  %v8326_v3 = vrot.slane %v18861_v10, %v19573_v5 }
 0x562   :  { %12094 = vmatprep.subr.bf16.mxu0 %v13295_v55  ;;  %v8334_v55 = vrot.slane %v18861_v10, %v19574_v4 }
 0x563   :  { %12067 = vmatpush3.bf16.msra.mxu1 %v13296_v62  ;;  %v19575_v62 = vld [vmem:[#allocation6_spill] sm:$0xff] }
 0x564   :  { %12068 = vmatprep.subr.bf16.mxu1 %v13298_v23  ;;  %v19576_v23 = vld [vmem:[#allocation8_spill] sm:$0xff] }
 0x565   :  { %12095 = vmatpush3.bf16.msra.mxu0 %v13297_v37  ;;  %v8330_v37 = vrot.slane %v18861_v10, %v19575_v62 }
 0x566   :  { %12096 = vmatprep.subr.bf16.mxu0 %v13299_v16  ;;  %v8338_v16 = vrot.slane %v18861_v10, %v19576_v23 }
 0x567   :  { %12069 = vmatpush3.bf16.msra.mxu1 %v13300_v2 }
 0x568   :  { %12070 = vmatprep.subr.bf16.mxu1 %v13302_v21 }
 0x569   :  { %12097 = vmatpush3.bf16.msra.mxu0 %v13301_v59 }
 0x56a   :  { %12098 = vmatprep.subr.bf16.mxu0 %v13303_v51 }
 0x56b   :  { %12071 = vmatpush3.bf16.msra.mxu1 %v13304_v38 }
 0x56c   :  { %12386 = vmatprep.subr.msk.bf16.mxu1 %vm1965_vm5, %v13306_v1 }
 0x56d   :  { %12099 = vmatpush3.bf16.msra.mxu0 %v13305_v29 }
 0x56e   :  { %10123 = vmatprep.subr.bf16.mxu0 %v13309_v17  ;;  %9565 = vmatmul.mubr.bf16.vlgmr.msra.gmra.mrb[68].mxu1 %v18040_v13  ;;  %v13313_v13 = vld [vmem:[%s19023_s4 + $0x20] ss:$8 sps:$4 sm:$0xff]  }
 0x56f   :  { %9572 = vmatprep.mubr.bf16.mxu1 %v19571_v45  ;;  %12162 = vmatpush3.bf16.msra.mxu1 %v9212_v32 }
 0x570   :  { %9614 = vmatmul.mubr.bf16.vlgmr.msra.gmra.mrb[72].mxu0 %v18271_v48  ;;  %v13318_v48 = vld [vmem:[%s19023_s4 + $0x34] ss:$8 sps:$4 sm:$0xff]   ;;  %12115 = vmatprep.subr.bf16.mxu1 %v13405_v22 }
 0x571   :  { %9621 = vmatprep.mubr.bf16.mxu0 %v18522_v33  ;;  %10124 = vmatpush1.bf16.msra.mxu0 %v13307_v9  ;;  %v19572_v33 = vld [vmem:[#allocation24_spill] sm:$0xff] }
 0x572   :  { %10125 = vmatprep.subr.bf16.mxu0 %v13312_v47 }
 0x575   :  { %10126 = vmatpush1.bf16.msra.mxu0 %v13310_v46 }
 0x576   :  { %10127 = vmatprep.subr.bf16.mxu0 %v13315_v61  ;;  %9573 = vmatmul.mubr.bf16.gmra.mrb[72].mxu1 %v19572_v33 }
 0x577   :  { %12163 = vmatprep.mubr.msk.bf16.mxu1 %vm1958_vm6, %v18496_v11  ;;  %v13324_v11 = vld [vmem:[%s19023_s4 + $0x54] ss:$8 sps:$4 sm:$0xff]  }
 0x578   :  { %9622 = vmatmul.mubr.bf16.gmra.mrb[76].mxu0 %v18569_v40  ;;  %v13322_v40 = vld [vmem:[%s19023_s4 + $0x50] ss:$8 sps:$4 sm:$0xff]  }
 0x579   :  { %10128 = vmatpush1.bf16.msra.mxu0 %v13313_v13 }
 0x57a   :  { %10129 = vmatprep.subr.bf16.mxu0 %v13318_v48 }
 0x57d   :  { %10130 = vmatpush1.bf16.msra.mxu0 %v13316_v27 }
 0x57e   :  { %10131 = vmatprep.subr.bf16.mxu0 %v13321_v19  ;;  %12164 = vmatmul.mubr.msk.bf16.vlgmr.msra.gmra.mrb[76].mxu1 %vm1958_vm6, %v18583_v6  ;;  %v13336_v6 = vld [vmem:[%s19023_s4 + $0x94] ss:$8 sps:$4 sm:$0xff]  }
 0x57f   :  { %12116 = vmatpush3.bf16.msra.mxu1 %v13406_v34 }
 0x580   :  { %12117 = vmatprep.subr.bf16.mxu1 %v13407_v56 }
 0x581   :  { %10132 = vmatpush1.bf16.msra.mxu0 %v13319_v20 }
 0x582   :  { %10133 = vmatprep.subr.bf16.mxu0 %v13324_v11 }
 0x583   :  { %12118 = vmatpush3.bf16.msra.mxu1 %v13408_v18  ;;  %v13358_v18 = vld [vmem:[%s19023_s4 + $0x110] ss:$8 sps:$4 sm:$0xff]  }
 0x584   :  { %12119 = vmatprep.subr.bf16.mxu1 %v13409_v26 }
 0x585   :  { %10134 = vmatpush1.bf16.msra.mxu0 %v13322_v40 }
 0x586   :  { %10135 = vmatprep.subr.bf16.mxu0 %v13327_v15 }
 0x587   :  { %12120 = vmatpush3.bf16.msra.mxu1 %v13410_v35 }
 0x588   :  { %12121 = vmatprep.subr.bf16.mxu1 %v13411_v54 }
 0x589   :  { %10136 = vmatpush1.bf16.msra.mxu0 %v13325_v60 }
 0x58a   :  { %10137 = vmatprep.subr.bf16.mxu0 %v13330_v0 }
 0x58b   :  { %12122 = vmatpush3.bf16.msra.mxu1 %v13412_v52 }
 0x58c   :  { %12123 = vmatprep.subr.bf16.mxu1 %v13413_v58  ;;  %v13363_v58 = vld [vmem:[%s19023_s4 + $0x124] ss:$8 sps:$4 sm:$0xff]  }
 0x58d   :  { %10138 = vmatpush1.bf16.msra.mxu0 %v13328_v31 }
 0x58e   :  { %10139 = vmatprep.subr.bf16.mxu0 %v13333_v39 }
 0x58f   :  { %12124 = vmatpush3.bf16.msra.mxu1 %v13414_v12 }
 0x590   :  { %12125 = vmatprep.subr.bf16.mxu1 %v13415_v63 }
 0x591   :  { %10140 = vmatpush1.bf16.msra.mxu0 %v13331_v24 }
 0x592   :  { %10141 = vmatprep.subr.bf16.mxu0 %v13336_v6 }
 0x595   :  { %10142 = vmatpush1.bf16.msra.mxu0 %v13334_v7 }
 0x596   :  { %10143 = vmatprep.subr.bf16.mxu0 %v13339_v25  ;;  %v13355_v25 = vld [vmem:[%s19023_s4 + $0x100] ss:$8 sps:$4 sm:$0xff]  }
 0x599   :  { %10144 = vmatpush1.bf16.msra.mxu0 %v13337_v43 }
 0x59a   :  { %10145 = vmatprep.subr.bf16.mxu0 %v13342_v44 }
 0x59d   :  { %10146 = vmatpush1.bf16.msra.mxu0 %v13340_v49 }
 0x59e   :  { %10147 = vmatprep.subr.bf16.mxu0 %v13345_v8 }
 0x5a1   :  { %10148 = vmatpush1.bf16.msra.mxu0 %v13343_v14  ;;  %v13360_v14 = vld [vmem:[%s19023_s4 + $0x114] ss:$8 sps:$4 sm:$0xff]  }
 0x5a2   :  { %10149 = vmatprep.subr.bf16.mxu0 %v13348_v28 }
 0x5a5   :  { %10150 = vmatpush1.bf16.msra.mxu0 %v13346_v57 }
 0x5a6   :  { %10151 = vmatprep.subr.bf16.mxu0 %v13351_v50 }
 0x5a9   :  { %10152 = vmatpush1.bf16.msra.mxu0 %v13349_v53 }
 0x5aa   :  { %10153 = vmatprep.subr.bf16.mxu0 %v13354_v30 }
 0x5ad   :  { %10154 = vmatpush1.bf16.msra.mxu0 %v13352_v41 }
 0x5ae   :  { %10176 = vmatprep.subr.bf16.mxu0 %v13357_v36 }
 0x621   :  { %v9354_v2 = vpop.f32.mrb[60].mxu1 }
 0x622   :  { %v12231_v21 = vadd.f32 %v9354_v2, %v8326_v3  ;;  %v9356_v38 = vpop.f32.mrb[61].mxu1  ;;  %v13361_v2 = vld [vmem:[%s19023_s4 + $0x120] ss:$8 sps:$4 sm:$0xff]  }
 0x623   :  { %v9513_v59 = vpop.f32.mrb[64].mxu0  ;;  %v12232_v1 = vadd.f32 %v9356_v38, %v8330_v37  ;;  %v9358_v9 = vpop.f32.mrb[62].mxu1  ;;  %v13367_v38 = vld [vmem:[%s19023_s4 + $0x140] ss:$8 sps:$4 sm:$0xff]  }
 0x624   :  { %v12239_v51 = vadd.f32 %v9513_v59, %v8334_v55  ;;  %v9515_v29 = vpop.f32.mrb[65].mxu0  ;;  %v12233_v47 = vadd.f32 %v9358_v9, %v8326_v3  ;;  %v9360_v46 = vpop.f32.mrb[63].mxu1  ;;  %v9679_v33 = vmax.f32 %v12231_v21, 0.0  ;;  %v13366_v59 = vld [vmem:[%s19023_s4 + $0x134] ss:$8 sps:$4 sm:$0xff]  }
 0x625   :  { %v12240_v17 = vadd.f32 %v9515_v29, %v8338_v16  ;;  %v9517_v32 = vpop.f32.mrb[66].mxu0  ;;  %v12234_v13 = vadd.f32 %v9360_v46, %v8330_v37  ;;  %v9680_v11 = vmax.f32 %v12232_v1, 0.0  ;;  %v13364_v21 = vld [vmem:[%s19023_s4 + $0x130] ss:$8 sps:$4 sm:$0xff]   ;;  %v13372_v29 = vld [vmem:[%s19023_s4 + $0x154] ss:$8 sps:$4 sm:$0xff]  }
 0x626   :  { %v12241_v45 = vadd.f32 %v9517_v32, %v8334_v55  ;;  %v9519_v61 = vpop.f32.mrb[67].mxu0  ;;  %v9681_v27 = vmax.f32 %v12239_v51, 0.0  ;;  %v9684_v19 = vmax.f32 %v12233_v47, 0.0  ;;  %v13369_v51 = vld [vmem:[%s19023_s4 + $0x144] ss:$8 sps:$4 sm:$0xff]  }
 0x627   :  { %v12242_v48 = vadd.f32 %v9519_v61, %v8338_v16  ;;  %v9682_v40 = vmax.f32 %v12240_v17, 0.0  ;;  %v9685_v15 = vmax.f32 %v12234_v13, 0.0  ;;  %v13370_v1 = vld [vmem:[%s19023_s4 + $0x150] ss:$8 sps:$4 sm:$0xff]   ;;  %v13375_v17 = vld [vmem:[%s19023_s4 + $0x164] ss:$8 sps:$4 sm:$0xff]  }
 0x628   :  { %v9686_v20 = vmax.f32 %v12241_v45, 0.0  ;;  %v9699_v0 = vpack.c.bf16 %v9684_v19, %v9679_v33  ;;  %v19577_v47 = vld [vmem:[#allocation9_spill] sm:$0xff] }
 0x629   :  { %v9687_v60 = vmax.f32 %v12242_v48, 0.0  ;;  %v9700_v39 = vpack.c.bf16 %v9685_v15, %v9680_v11  ;;  %v9364_v6 = vpop.f32.mrb[64].mxu1  ;;  %v8342_v45 = vrot.slane %v18861_v10, %v19577_v47  ;;  %v13373_v46 = vld [vmem:[%s19023_s4 + $0x160] ss:$8 sps:$4 sm:$0xff]   ;;  %v13378_v48 = vld [vmem:[%s19023_s4 + $0x174] ss:$8 sps:$4 sm:$0xff]  }
 0x62a   :  { %v18871_v31 = vpack.c.bf16 %v9686_v20, %v9681_v27  ;;  %v12235_v43 = vadd.f32 %v9364_v6, %v8326_v3  ;;  %v9366_v49 = vpop.f32.mrb[65].mxu1  ;;  %v13391_v47 = vld [vmem:[%s19023_s4 + $0x1c0] ss:$8 sps:$4 sm:$0xff]  }
 0x62b   :  { %v9702_v24 = vpack.c.bf16 %v9687_v60, %v9682_v40  ;;  %v9523_v7 = vpop.f32.mrb[68].mxu0  ;;  %v12236_v28 = vadd.f32 %v9366_v49, %v8330_v37  ;;  %v9368_v53 = vpop.f32.mrb[66].mxu1  ;;  %10155 = vmatprep.mubr.bf16.mxu0 %v9700_v39  ;;  %v13381_v39 = vld [vmem:[%s19023_s4 + $0x184] ss:$8 sps:$4 sm:$0xff]  }
 0x62c   :  { %v12243_v44 = vadd.f32 %v9523_v7, %v8334_v55  ;;  %v9525_v8 = vpop.f32.mrb[69].mxu0  ;;  %v12237_v30 = vadd.f32 %v9368_v53, %v8326_v3  ;;  %v9370_v36 = vpop.f32.mrb[67].mxu1  ;;  %10156 = vmatmul.mubr.bf16.vlgmr.msra.gmra.mrb[80].mxu0 %v9699_v0  ;;  %v9689_v26 = vmax.f32 %v12235_v43, 0.0  ;;  %v13376_v0 = vld [vmem:[%s19023_s4 + $0x170] ss:$8 sps:$4 sm:$0xff]  }
 0x62d   :  { %v12244_v57 = vadd.f32 %v9525_v8, %v8338_v16  ;;  %v9527_v50 = vpop.f32.mrb[70].mxu0  ;;  %v12238_v34 = vadd.f32 %v9370_v36, %v8330_v37  ;;  %10177 = vmatpush1.bf16.msra.mxu0 %v13355_v25  ;;  %v9690_v12 = vmax.f32 %v12236_v28, 0.0  ;;  %v13379_v43 = vld [vmem:[%s19023_s4 + $0x180] ss:$8 sps:$4 sm:$0xff]  }
 0x62e   :  { %v12245_v41 = vadd.f32 %v9527_v50, %v8334_v55  ;;  %v9529_v22 = vpop.f32.mrb[71].mxu0  ;;  %v9691_v35 = vmax.f32 %v12243_v44, 0.0  ;;  %v9694_v54 = vmax.f32 %v12237_v30, 0.0  ;;  %10178 = vmatprep.subr.bf16.mxu0 %v13360_v14  ;;  %v13384_v14 = vld [vmem:[%s19023_s4 + $0x194] ss:$8 sps:$4 sm:$0xff]  }
 0x62f   :  { %v12246_v56 = vadd.f32 %v9529_v22, %v8338_v16  ;;  %v9692_v63 = vmax.f32 %v12244_v57, 0.0  ;;  %v9695_v3 = vmax.f32 %v12238_v34, 0.0 }
 0x630   :  { %v9696_v52 = vmax.f32 %v12245_v41, 0.0  ;;  %v9704_v55 = vpack.c.bf16 %v9694_v54, %v9689_v26 }
 0x631   :  { %v9697_v4 = vmax.f32 %v12246_v56, 0.0  ;;  %v9705_v23 = vpack.c.bf16 %v9695_v3, %v9690_v12  ;;  %10179 = vmatpush1.bf16.msra.mxu0 %v13358_v18  ;;  %v13382_v56 = vld [vmem:[%s19023_s4 + $0x190] ss:$8 sps:$4 sm:$0xff]   ;;  %v13387_v18 = vld [vmem:[%s19023_s4 + $0x1a4] ss:$8 sps:$4 sm:$0xff]  }
 0x632   :  { %v18885_v37 = vpack.c.bf16 %v9696_v52, %v9691_v35  ;;  %10180 = vmatprep.subr.bf16.mxu0 %v13363_v58  ;;  %v13385_v58 = vld [vmem:[%s19023_s4 + $0x1a0] ss:$8 sps:$4 sm:$0xff]   ;;  %v13390_v3 = vld [vmem:[%s19023_s4 + $0x1b4] ss:$8 sps:$4 sm:$0xff]  }
 0x633   :  { %v18887_v16 = vpack.c.bf16 %v9697_v4, %v9692_v63  ;;  %10165 = vmatprep.mubr.bf16.mxu0 %v9705_v23 }
 0x634   :  { %10166 = vmatmul.mubr.bf16.gmra.mrb[84].mxu0 %v9704_v55 }
 0x635   :  { %10181 = vmatpush1.bf16.msra.mxu0 %v13361_v2  ;;  %10208 = vmatprep.mubr.bf16.mxu0 %v9702_v24 }
 0x636   :  { %10182 = vmatprep.subr.bf16.mxu0 %v13366_v59 }
 0x639   :  { %10183 = vmatpush1.bf16.msra.mxu0 %v13364_v21  ;;  %v13388_v21 = vld [vmem:[%s19023_s4 + $0x1b0] ss:$8 sps:$4 sm:$0xff]  }
 0x63a   :  { %10184 = vmatprep.subr.bf16.mxu0 %v13369_v51 }
 0x63d   :  { %10185 = vmatpush1.bf16.msra.mxu0 %v13367_v38 }
 0x63e   :  { %10186 = vmatprep.subr.bf16.mxu0 %v13372_v29  ;;  %v13393_v29 = vld [vmem:[%s19023_s4 + $0x1c4] ss:$8 sps:$4 sm:$0xff]  }
 0x641   :  { %v12072_v9 = vpop.f32.mrb[68].mxu1  ;;  %10187 = vmatpush1.bf16.msra.mxu0 %v13370_v1 }
 0x642   :  { %v12073_v61 = vpop.f32.mrb[69].mxu1  ;;  %10188 = vmatprep.subr.bf16.mxu0 %v13375_v17 }
 0x643   :  { %v12100_v32 = vpop.f32.mrb[72].mxu0  ;;  %v12074_v33 = vadd.f32 %v12073_v61, %v12072_v9  ;;  %v12075_v19 = vpop.f32.mrb[70].mxu1  ;;  %v13399_v61 = vld [vmem:[%s19023_s4 + $0x1e4] ss:$8 sps:$4 sm:$0xff]  }
 0x644   :  { %v12101_v13 = vpop.f32.mrb[73].mxu0  ;;  %v12076_v11 = vpop.f32.mrb[71].mxu1 }
 0x645   :  { %v12102_v27 = vadd.f32 %v12101_v13, %v12100_v32  ;;  %v12103_v20 = vpop.f32.mrb[74].mxu0  ;;  %v9567_v15 = vadd.f32 %v12074_v33, %v8342_v45  ;;  %v12077_v60 = vadd.f32 %v12076_v11, %v12075_v19  ;;  %10189 = vmatpush1.bf16.msra.mxu0 %v13373_v46  ;;  %v13394_v46 = vld [vmem:[%s19023_s4 + $0x1d0] ss:$8 sps:$4 sm:$0xff]   ;;  %v13397_v13 = vld [vmem:[%s19023_s4 + $0x1e0] ss:$8 sps:$4 sm:$0xff]  }
 0x646   :  { %v12104_v40 = vpop.f32.mrb[75].mxu0  ;;  %10190 = vmatprep.subr.bf16.mxu0 %v13378_v48  ;;  %v13402_v48 = vld [vmem:[%s19023_s4 + $0x1f4] ss:$8 sps:$4 sm:$0xff]   ;;  %v9773_v33 = vld [vmem:[%s19023_s4 + $0x200] sm:$0x11] }
 0x647   :  { %v12105_v10 = vadd.f32 %v12104_v40, %v12103_v20  ;;  %v9570_v24 = vadd.f32 %v12077_v60, %v8342_v45  ;;  %v9616_v6 = vadd.f32 %v12102_v27, %v9567_v15  ;;  %v13400_v27 = vld [vmem:[%s19023_s4 + $0x1f0] ss:$8 sps:$4 sm:$0xff]   ;;  %v11858_v19 = vcombine.high %v9773_v33, %v9773_v33  ;;  %v13416_v40 = vld [vmem:[%s19025_s6 + $0x28] sm:$0xff]   ;;  %v9774_v15 = vld [vmem:[%s19024_s5] sm:$0x3] }
 0x648   :  { %v11857_v20 = vcombine.low %v9773_v33, %v9773_v33  ;;  %12126 = vmatpush3.bf16.msra.mxu1 %v13416_v40  ;;  %v9779_v60 = vrot.slane %v9774_v15, %v19573_v5 }
 0x649   :  { %v12078_v7 = vpop.f32.mrb[72].mxu1  ;;  %10191 = vmatpush1.bf16.msra.mxu0 %v13376_v0  ;;  %v9619_v44 = vadd.f32 %v12105_v10, %v9570_v24  ;;  %v9783_v10 = vrot.slane %v9774_v15, %v19575_v62 }
 0x64a   :  { %v12079_v49 = vpop.f32.mrb[73].mxu1  ;;  %10192 = vmatprep.subr.bf16.mxu0 %v13381_v39  ;;  %v10118_v11 = vsel %vm1965_vm5, %v11857_v20, 0 }
 0x64b   :  { %v12106_v25 = vpop.f32.mrb[76].mxu0  ;;  %v12080_v28 = vadd.f32 %v12079_v49, %v12078_v7  ;;  %v12081_v53 = vpop.f32.mrb[74].mxu1 }
 0x64c   :  { %v12107_v8 = vpop.f32.mrb[77].mxu0  ;;  %v12082_v30 = vpop.f32.mrb[75].mxu1 }
 0x64d   :  { %v12108_v57 = vadd.f32 %v12107_v8, %v12106_v25  ;;  %v12109_v50 = vpop.f32.mrb[78].mxu0  ;;  %v9575_v36 = vadd.f32 %v12080_v28, %v8342_v45  ;;  %v12083_v22 = vadd.f32 %v12082_v30, %v12081_v53  ;;  %10193 = vmatpush1.bf16.msra.mxu0 %v13379_v43 }
 0x64e   :  { %v12110_v41 = vpop.f32.mrb[79].mxu0  ;;  %10194 = vmatprep.subr.bf16.mxu0 %v13384_v14 }
 0x64f   :  { %v12111_v34 = vadd.f32 %v12110_v41, %v12109_v50  ;;  %v9578_v26 = vadd.f32 %v12083_v22, %v8342_v45  ;;  %v9624_v35 = vadd.f32 %v12108_v57, %v9575_v36  ;;  %v13396_v45 = vld [vmem:[%s19023_s4 + $0x1d4] ss:$8 sps:$4 sm:$0xff]  }
 0x651   :  { %v12165_v54 = vpop.f32.mrb[76].mxu1  ;;  %10195 = vmatpush1.bf16.msra.mxu0 %v13382_v56  ;;  %v9627_v52 = vadd.f32 %v12111_v34, %v9578_v26 }
 0x652   :  { %v9673_v12 = vadd.f32 %v12165_v54, %v9624_v35  ;;  %v9664_v63 = vpop.f32.mrb[77].mxu1  ;;  %10196 = vmatprep.subr.bf16.mxu0 %v13387_v18 }
 0x653   :  { %v9665_v4 = vadd.f32 %v9664_v63, %v9616_v6  ;;  %v12166_v55 = vpop.f32.mrb[78].mxu1 }
 0x654   :  { %v9676_v23 = vadd.f32 %v12166_v55, %v9627_v52  ;;  %v9667_v2 = vpop.f32.mrb[79].mxu1  ;;  %v9693_v51 = vmax.f32 %v9673_v12, 0.0  ;;  %v11862_v12 = vld [vmem:[%s19026_s7] ss:$0 sm:$0xff]  ;;  %s13421_s7 = scalar_lea.vmem %s10488_s28, 512 }
 0x655   :  { %v9668_v59 = vadd.f32 %v9667_v2, %v9619_v44  ;;  %10197 = vmatpush1.bf16.msra.mxu0 %v13385_v58  ;;  %v9683_v1 = vmax.f32 %v9665_v4, 0.0  ;;  %p13422_p0 = scmp.ne.s32.totalorder %s10488_s28, %s13421_s7  ;;  %p13427_p2 = scmp.lt.s32.totalorder %s13421_s7, %s13421_s7 }
 0x656   :  { %v9698_v38 = vmax.f32 %v9676_v23, 0.0  ;;  %10198 = vmatprep.subr.bf16.mxu0 %v13390_v3 }
 0x657   :  { %v9688_v17 = vmax.f32 %v9668_v59, 0.0  ;;  %p13428_p3 = por %p13427_p2, %p13426_p1 }
 0x658   :  { %v9708_v9 = vpack.c.bf16 %v9698_v38, %v9693_v51 }
 0x659   :  { %v9703_v32 = vpack.c.bf16 %v9688_v17, %v9683_v1  ;;  %10199 = vmatpush1.bf16.msra.mxu0 %v13388_v21  ;;  %p13429_p4 = pnand %p13428_p3, %p13422_p0 }
 0x65a   :  { %10200 = vmatprep.subr.bf16.mxu0 %v13393_v29 }
 0x65d   :  { %10201 = vmatpush1.bf16.msra.mxu0 %v13391_v47 }
 0x65e   :  { %10202 = vmatprep.subr.bf16.mxu0 %v13396_v45 }
 0x661   :  { %10203 = vmatpush1.bf16.msra.mxu0 %v13394_v46 }
 0x662   :  { %10204 = vmatprep.subr.bf16.mxu0 %v13399_v61 }
 0x665   :  { %10205 = vmatpush1.bf16.msra.mxu0 %v13397_v13 }
 0x666   :  { %10206 = vmatprep.subr.bf16.mxu0 %v13402_v48 }
 0x669   :  { %10207 = vmatpush1.bf16.msra.mxu0 %v13400_v27 }
 0x66a   :  { %11859 = vmatprep.subr.msk.bf16.mxu0 %vm1965_vm5, %v11858_v19 }
 0x66c   :  { %10209 = vmatmul.mubr.bf16.vlgmr.msra.gmra.mrb[80].mxu0 %v18871_v31  ;;  %v13417_v31 = vld [vmem:[%s19025_s6 + $0x70] sm:$0xff]  }
 0x66d   :  { %10218 = vmatprep.mubr.bf16.mxu0 %v18887_v16  ;;  %10230 = vmatpush1.bf16.msra.mxu0 %v10118_v11  ;;  %v13419_v16 = vld [vmem:[%s19025_s6 + $0x78] sm:$0xff]  }
 0x66e   :  { %12127 = vmatprep.subr.bf16.mxu1 %v13417_v31 }
 0x674   :  { %10219 = vmatmul.mubr.bf16.gmra.mrb[84].mxu0 %v18885_v37  ;;  %v13418_v37 = vld [vmem:[%s19025_s6 + $0x30] sm:$0xff]  }
 0x675   :  { %10261 = vmatprep.mubr.bf16.mxu0 %v19570_v42  ;;  %12128 = vmatpush3.bf16.msra.mxu1 %v13418_v37 }
 0x676   :  { %12129 = vmatprep.subr.bf16.mxu1 %v13419_v16 }
 0x67c   :  { %11860 = vmatmul.mubr.msk.bf16.vlgmr.msra.gmra.mrb[80].mxu0 %vm1958_vm6, %v9703_v32 }
 0x67d   :  { %10271 = vmatprep.mubr.bf16.mxu0 %v19570_v42  ;;  %v13420_v42 = vld [vmem:[%s19025_s6 + $0x38] sm:$0xff]  }
 0x67e   :  { %12130 = vmatpush3.bf16.msra.mxu1 %v13420_v42 }
 0x684   :  { %11861 = vmatmul.mubr.msk.bf16.gmra.mrb[84].mxu0 %vm1958_vm6, %v9708_v9 }
 0x74f   :  { %v10263_v0 = vpop.f32.mrb[80].mxu0 }
 0x750   :  { %v12247_v39 = vadd.f32 %v10263_v0, %v9779_v60  ;;  %v10265_v24 = vpop.f32.mrb[81].mxu0 }
 0x751   :  { %v12248_v6 = vadd.f32 %v10265_v24, %v9783_v10  ;;  %v10267_v7 = vpop.f32.mrb[82].mxu0 }
 0x752   :  { %v12249_v25 = vadd.f32 %v10267_v7, %v9779_v60  ;;  %v10269_v43 = vpop.f32.mrb[83].mxu0  ;;  %v10282_v49 = vmax.f32 %v12247_v39, 0.0 }
 0x753   :  { %v12250_v44 = vadd.f32 %v10269_v43, %v9783_v10  ;;  %v10283_v14 = vmax.f32 %v12248_v6, 0.0 }
 0x754   :  { %v10284_v8 = vmax.f32 %v12249_v25, 0.0 }
 0x755   :  { %v10285_v28 = vmax.f32 %v12250_v44, 0.0 }
 0x756   :  { %v10290_v57 = vpack.c.bf16 %v10284_v8, %v10282_v49 }
 0x757   :  { %v10291_v53 = vpack.c.bf16 %v10285_v28, %v10283_v14  ;;  %v10273_v50 = vpop.f32.mrb[84].mxu0 }
 0x758   :  { %v12251_v30 = vadd.f32 %v10273_v50, %v9779_v60  ;;  %v10275_v41 = vpop.f32.mrb[85].mxu0 }
 0x759   :  { %v12252_v5 = vadd.f32 %v10275_v41, %v9783_v10  ;;  %v10277_v36 = vpop.f32.mrb[86].mxu0  ;;  %10461 = vmatprep.mubr.bf16.mxu1 %v10291_v53 }
 0x75a   :  { %v12253_v62 = vadd.f32 %v10277_v36, %v9779_v60  ;;  %v10279_v22 = vpop.f32.mrb[87].mxu0  ;;  %10462 = vmatmul.mubr.bf16.vlgmr.msra.gmra.mrb[80].mxu1 %v10290_v57  ;;  %v10286_v56 = vmax.f32 %v12251_v30, 0.0 }
 0x75b   :  { %v12254_v34 = vadd.f32 %v10279_v22, %v9783_v10  ;;  %v10287_v26 = vmax.f32 %v12252_v5, 0.0 }
 0x75c   :  { %v10288_v18 = vmax.f32 %v12253_v62, 0.0 }
 0x75d   :  { %v10289_v35 = vmax.f32 %v12254_v34, 0.0 }
 0x75e   :  { %v10292_v54 = vpack.c.bf16 %v10288_v18, %v10286_v56 }
 0x75f   :  { %v10293_v52 = vpack.c.bf16 %v10289_v35, %v10287_v26 }
 0x761   :  { %10469 = vmatprep.mubr.bf16.mxu1 %v10293_v52 }
 0x762   :  { %10470 = vmatmul.mubr.bf16.gmra.mrb[84].mxu1 %v10292_v54 }
 0x82d   :  { %v12131_v58 = vpop.f32.mrb[80].mxu1 }
 0x82e   :  { %v12132_v63 = vpop.f32.mrb[81].mxu1 }
 0x82f   :  { %v12133_v3 = vadd.f32 %v12132_v63, %v12131_v58  ;;  %v12134_v4 = vpop.f32.mrb[82].mxu1 }
 0x830   :  { %v12135_v55 = vpop.f32.mrb[83].mxu1 }
 0x831   :  { %v10464_v23 = vadd.f32 %v12133_v3, %v11862_v12  ;;  %v12136_v2 = vadd.f32 %v12135_v55, %v12134_v4 }
 0x833   :  { %10478 = vst [vmem:[#allocation2] sm:$0xff] %v10464_v23  ;;  %v10467_v59 = vadd.f32 %v12136_v2, %v11862_v12 }
 0x835   :  { %10479 = vst [vmem:[#allocation2 + $0x8] sm:$0xff] %v10467_v59  ;;  %v12137_v21 = vpop.f32.mrb[84].mxu1 }
 0x836   :  { %v12138_v51 = vpop.f32.mrb[85].mxu1 }
 0x837   :  { %v12139_v38 = vadd.f32 %v12138_v51, %v12137_v21  ;;  %v12140_v29 = vpop.f32.mrb[86].mxu1 }
 0x838   :  { %v12141_v1 = vpop.f32.mrb[87].mxu1 }
 0x839   :  { %v10472_v17 = vadd.f32 %v12139_v38, %v11862_v12  ;;  %v12142_v9 = vadd.f32 %v12141_v1, %v12140_v29 }
 0x83b   :  { %10480 = vst [vmem:[#allocation2 + $0x10] sm:$0xff] %v10472_v17  ;;  %v10475_v32 = vadd.f32 %v12142_v9, %v11862_v12 }
 0x83d   :  { %10481 = vst [vmem:[#allocation2 + $0x18] sm:$0xff] %v10475_v32 }
 0x83e   :  { %13432 = shalt.err (!%p13429_p4)
}
 0x83f   :  { %s13433_s30 = scalar_lea.hbm %s19027_s8, 512 }
 0x840   :  { %p13434_p5 = scmp.ne.s32.totalorder %s19027_s8, %s13433_s30  ;;  %p13437_p6 = scmp.lt.u32.totalorder %s13433_s30, %s19027_s8 }
 0x842   :  { %p13439_p7 = pnand %p13437_p6, %p13434_p5 }
 0x844   :  { %13442 = shalt.err (!%p13439_p7)
}
 0x845   :  { %s13447_s13 = smov 128   ;;  %s13448_s14 = smov 8  }
 0x846   :  { %10493 = dma.vmem_to_hbm [thread:$0]  %s10488_s28, 512, %s19027_s8, [#allocation3], %s13447_s13, %s13447_s13, %s13448_s14  }
 0x847   :  { %13443 = dma.done.wait [#allocation3], 512  }
 0x848   :  { %13444 = vsyncadd [#allocation3], 4294966784 }
 0x849   :  { %10497 = vsyncpa [#allocation3], 1 }

</bundles_post_ra>
